<compile_context>
chip_gen: v5e
topology: v5e:2x2
jax: 0.10.0
libtpu: 0.0.40
codegen_flags: <defaults>
</compile_context>

<pallas_src>
import jax
import jax.numpy as jnp
from jax.experimental import pallas as pl
from jax.experimental.pallas import tpu as pltpu


def _ceil_to(x, m):
    return ((x + m - 1) // m) * m


# ---------------------------------------------------------------------------
# Host-side im2col for the stem conv: one XLA identity-kernel conv.
# ---------------------------------------------------------------------------
def _stem_patches(x_ncdhw, k_pad):
    """x: (B, 1, T, H, W) f32 -> (B, To*Ho*Wo, k_pad) bf16 patches.
    Patch channel i corresponds to filter offset (kt,kh,kw) flattened
    row-major, matching conv0_w's (3,7,7,Cin=1,Cout) -> (147, Cout) reshape."""
    patches = jax.lax.conv_general_dilated_patches(
        x_ncdhw,
        filter_shape=(3, 7, 7),
        window_strides=(2, 2, 2),
        padding=((1, 1), (3, 3), (3, 3)),
        dimension_numbers=("NCDHW", "OIDHW", "NCDHW"),
        precision=jax.lax.Precision.HIGHEST,
    )                                    # (B, 147, To, Ho, Wo)
    B, K = patches.shape[0], patches.shape[1]
    To, Ho, Wo = patches.shape[2:]
    p = jnp.moveaxis(patches, 1, -1).reshape(B, To * Ho * Wo, K)
    if k_pad > K:
        p = jnp.pad(p, ((0, 0), (0, 0), (0, k_pad - K)))
    return p.astype(jnp.bfloat16), (To, Ho, Wo)


# ---------------------------------------------------------------------------
# The single fused kernel: stem + all dense layers + head, per sample.
# ---------------------------------------------------------------------------
def _make_fused_kernel(To, Ho, Wo, C0, Tp, Hp, Wp, layer_dims, live_taps, nc):
    Mb = To * Ho * Wo
    M = Tp * Hp * Wp
    n_layers = len(layer_dims)
    inv_vol = 1.0 / float(M)

    def maxpool3_s2(x, axis, n_out):
        # MaxPool(kernel=3, stride=2, padding=1) along `axis`.  x >= 0 (post
        # ReLU), so zero padding is exact (equivalent to -inf padding).
        zshape = list(x.shape)
        zshape[axis] = 1
        zero = jnp.zeros(zshape, x.dtype)
        xp = jnp.concatenate([zero, x, zero], axis=axis)
        n_in = x.shape[axis]

        def sl(a, start, size):
            idx = [slice(None)] * a.ndim
            idx[axis] = slice(start, start + size)
            return a[tuple(idx)]

        # m[i] = max over original indices {i-1, i, i+1}; output j -> m[2j].
        m = jnp.maximum(jnp.maximum(sl(xp, 0, n_in), sl(xp, 1, n_in)),
                        sl(xp, 2, n_in))
        cols = [sl(m, 2 * j, 1) for j in range(n_out)]
        return cols[0] if n_out == 1 else jnp.concatenate(cols, axis=axis)

    def kernel(*refs):
        p_ref, w0_ref, s0_ref, b0_ref = refs[:4]
        layer_refs = [refs[4 + 6 * l: 4 + 6 * (l + 1)] for l in range(n_layers)]
        s5_ref, b5_ref, cw_ref, cb_ref, o_ref = refs[4 + 6 * n_layers:]

        # --- stem: conv0 as ONE MXU matmul over im2col patches + BN0 + ReLU --
        pm = p_ref[...].reshape(Mb, -1)                       # (Mb, Kp) bf16
        z = jnp.dot(pm, w0_ref[...], preferred_element_type=jnp.float32)
        y = jnp.maximum(z * s0_ref[...] + b0_ref[...], 0.0)   # (Mb, C0) f32
        y = y.reshape(To, Ho, Wo, C0)

        # --- pool0: separable MaxPool3d(3, stride 2, pad 1) on full slabs ----
        y = maxpool3_s2(y, axis=2, n_out=Wp)                  # W
        y = maxpool3_s2(y, axis=1, n_out=Hp)                  # H
        y = maxpool3_s2(y, axis=0, n_out=Tp)                  # T
        feats = y.reshape(M, C0)                              # (M, C0) f32

        # --- dense layers; torch.cat(dim=1) == lane-axis concat -------------
        for (cin, cmid, growth), lref in zip(layer_dims, layer_refs):
            s1_ref, b1_ref, w1_ref, s2_ref, b2_ref, w2_ref = lref
            # norm_1 + relu_1 + conv_1 (1x1x1 -> matmul)
            y1 = jnp.maximum(feats * s1_ref[...] + b1_ref[...], 0.0)
            z1 = jnp.dot(y1.astype(jnp.bfloat16), w1_ref[...],
                         preferred_element_type=jnp.float32)  # (M, cmid)
            # norm_2 + relu_2
            y2 = jnp.maximum(z1 * s2_ref[...] + b2_ref[...], 0.0)
            y2 = y2.reshape(Tp, Hp, Wp, cmid)
            # conv_2 (3x3x3, pad 1): zero-pad via concats, then a single
            # im2col matmul over the statically-live taps (K = ntap*cmid).
            yp = y2
            for ax in range(3):
                zshape = list(yp.shape)
                zshape[ax] = 1
                zero = jnp.zeros(zshape, yp.dtype)
                yp = jnp.concatenate([zero, yp, zero], axis=ax)
            slabs = [yp[kt:kt + Tp, kh:kh + Hp, kw:kw + Wp, :].reshape(M, cmid)
                     for (kt, kh, kw) in live_taps]
            patches2 = jnp.concatenate(slabs, axis=-1).astype(jnp.bfloat16)
            new = jnp.dot(patches2, w2_ref[...],
                          preferred_element_type=jnp.float32)  # (M, growth)
            feats = jnp.concatenate([feats, new], axis=-1)

        # --- head: norm5 + ReLU + avg_pool3d((1,7,7)) + flatten + Linear ----
        yh = jnp.maximum(feats * s5_ref[...] + b5_ref[...], 0.0)
        pooled = jnp.sum(yh, axis=0, keepdims=True) * inv_vol  # (1, nf)
        # num_classes is tiny: do the Linear on the VPU + a lane reduction.
        logits = jnp.sum(pooled * cw_ref[...], axis=-1, keepdims=True)  # (nc,1)
        o_ref[...] = logits.reshape(1, 1, nc) + cb_ref[...].reshape(1, 1, nc)

    return kernel


# ---------------------------------------------------------------------------
# Forward pass wrapper: one pallas_call for the whole network.
# ---------------------------------------------------------------------------
def densenet3d_forward(params, x_ncdhw):
    """x_ncdhw: (B, 1, T, H, W) float32 (PyTorch NCDHW layout)."""
    B = x_ncdhw.shape[0]
    k_pad = params['conv0_w'].shape[0]
    C0 = params['conv0_w'].shape[1]
    nc, nf = params['cls_w'].shape

    patches, (To, Ho, Wo) = _stem_patches(x_ncdhw, k_pad)
    Mb = To * Ho * Wo
    # pool0 output extents for MaxPool3d(kernel=3, stride=2, padding=1).
    Tp = (To + 2 - 3) // 2 + 1
    Hp = (Ho + 2 - 3) // 2 + 1
    Wp = (Wo + 2 - 3) // 2 + 1
    M = Tp * Hp * Wp
    # PyTorch's avg_pool3d((1,7,7)).view(B,-1) -> Linear(nf) only type-checks
    # when the pooled volume collapses to a single cell.
    assert (Tp, Hp, Wp) == (1, 7, 7), "classifier flatten-size mismatch"

    # Statically-live taps of conv_2 (a tap is dead when its shifted slab lies
    # entirely inside the zero padding, e.g. kt != 1 when Tp == 1).
    live_taps = []
    for kt in range(3):
        if kt + Tp <= 1 or kt >= Tp + 1:
            continue
        for kh in range(3):
            if kh + Hp <= 1 or kh >= Hp + 1:
                continue
            for kw in range(3):
                if kw + Wp <= 1 or kw >= Wp + 1:
                    continue
                live_taps.append((kt, kh, kw))
    ntap = len(live_taps)
    flat_idx = jnp.array([(kt * 3 + kh) * 3 + kw for kt, kh, kw in live_taps],
                         jnp.int32)

    # Flatten operands; pack conv_2 weights to (ntap*cmid, growth) so the
    # in-kernel conv_2 is one matmul (and dead taps are never shipped).
    flat_inputs = [patches, params['conv0_w'], params['norm0_scale'],
                   params['norm0_shift']]
    layer_dims = []
    for lp in params['layers']:
        cin, cmid = lp['w1'].shape
        growth = lp['w2'].shape[2]
        w2p = jnp.take(lp['w2'], flat_idx, axis=0).reshape(ntap * cmid, growth)
        flat_inputs += [lp['scale1'], lp['shift1'], lp['w1'],
                        lp['scale2'], lp['shift2'], w2p]
        layer_dims.append((cin, cmid, growth))
    flat_inputs += [params['norm5_scale'], params['norm5_shift'],
                    params['cls_w'], params['cls_b']]

    kernel = _make_fused_kernel(To, Ho, Wo, C0, Tp, Hp, Wp, layer_dims,
                                live_taps, nc)

    def _bcast_spec(arr):
        zeros = (0,) * arr.ndim
        return pl.BlockSpec(arr.shape, lambda b, _z=zeros: _z)

    in_specs = ([pl.BlockSpec((1, Mb, k_pad), lambda b: (b, 0, 0))]
                + [_bcast_spec(a) for a in flat_inputs[1:]])

    flops = 2 * B * Mb * k_pad * C0 + 2 * B * nf * nc
    for (cin, cmid, growth) in layer_dims:
        flops += 2 * B * M * (cin * cmid + ntap * cmid * growth)
    bytes_accessed = (sum(int(a.size) * a.dtype.itemsize for a in flat_inputs)
                      + B * nc * 4)

    out = pl.pallas_call(
        kernel,
        out_shape=jax.ShapeDtypeStruct((B, 1, nc), jnp.float32),
        grid=(B,),
        in_specs=in_specs,
        out_specs=pl.BlockSpec((1, 1, nc), lambda b: (b, 0, 0)),
        compiler_params=pltpu.CompilerParams(
            dimension_semantics=("parallel",)),
        cost_estimate=pl.CostEstimate(flops=int(flops), transcendentals=0,
                                      bytes_accessed=int(bytes_accessed)),
    )(*flat_inputs)
    return out.reshape(B, nc)


# ---------------------------------------------------------------------------
# Parameter construction (eval-mode BN folded to scale/shift; matmul weights
# in bf16).  Weights are stored at exact channel widths — no lane padding is
# needed now that the feature map lives inside the kernel.
# ---------------------------------------------------------------------------
def _bn_scale_shift(key, c, eps=1e-5):
    k1, k2, k3, k4 = jax.random.split(key, 4)
    gamma = 1.0 + 0.1 * jax.random.normal(k1, (c,), jnp.float32)
    beta = 0.1 * jax.random.normal(k2, (c,), jnp.float32)
    running_mean = 0.1 * jax.random.normal(k3, (c,), jnp.float32)
    running_var = 1.0 + 0.1 * jax.random.uniform(k4, (c,), jnp.float32)
    scale = gamma / jnp.sqrt(running_var + eps)
    shift = beta - running_mean * scale
    return scale.reshape(1, c), shift.reshape(1, c)


def _conv_w(key, kt, kh, kw, cin, cout):
    fan_in = kt * kh * kw * cin
    return (jax.random.normal(key, (kt, kh, kw, cin, cout), jnp.float32)
            / jnp.sqrt(jnp.float32(fan_in)))


def make_params(key, growth_rate=16, block_config=(2,), num_init_features=32,
                bn_size=4, num_classes=1):
    keys = iter(jax.random.split(key, 512))
    p = {}
    # conv0: Conv3d(1, C0, k=(3,7,7), stride=2, pad=(1,3,3), no bias).
    k0 = 3 * 7 * 7 * 1
    k0p = _ceil_to(k0, 32)
    w0 = _conv_w(next(keys), 3, 7, 7, 1, num_init_features).reshape(
        k0, num_init_features)
    p['conv0_w'] = jnp.pad(w0, ((0, k0p - k0), (0, 0))).astype(jnp.bfloat16)
    p['norm0_scale'], p['norm0_shift'] = _bn_scale_shift(
        next(keys), num_init_features)
    # dense layers
    layers = []
    nf = num_init_features
    for num_layers in block_config:
        for _ in range(num_layers):
            cin = nf
            cmid = bn_size * growth_rate
            lp = {}
            lp['scale1'], lp['shift1'] = _bn_scale_shift(next(keys), cin)
            lp['w1'] = _conv_w(next(keys), 1, 1, 1, cin, cmid).reshape(
                cin, cmid).astype(jnp.bfloat16)
            lp['scale2'], lp['shift2'] = _bn_scale_shift(next(keys), cmid)
            lp['w2'] = _conv_w(next(keys), 3, 3, 3, cmid, growth_rate).reshape(
                27, cmid, growth_rate).astype(jnp.bfloat16)
            layers.append(lp)
            nf += growth_rate
    p['layers'] = layers
    # norm5 + classifier (nn.Linear weight layout: (out_features, in_features))
    p['norm5_scale'], p['norm5_shift'] = _bn_scale_shift(next(keys), nf)
    p['cls_w'] = (jax.random.normal(next(keys), (num_classes, nf), jnp.float32)
                  / jnp.sqrt(jnp.float32(nf)))
    p['cls_b'] = 0.1 * jax.random.normal(next(keys), (1, num_classes),
                                         jnp.float32)
    return p


# ---------------------------------------------------------------------------
if __name__ == "__main__":
    key = jax.random.PRNGKey(0)
    pkey, xkey = jax.random.split(key)

    # Small, shape-consistent DenseNet3D config (see header note).
    params = make_params(pkey, growth_rate=16, block_config=(2,),
                         num_init_features=32, bn_size=4, num_classes=1)

    # Input in PyTorch NCDHW layout: (batch=2, channels=1, T=4, H=28, W=28).
    x = jax.random.normal(xkey, (2, 1, 4, 28, 28), jnp.float32)

    fwd = jax.jit(densenet3d_forward)
    out = jax.block_until_ready(fwd(params, x))
    assert out.shape == (2, 1) and out.dtype == jnp.float32
    print("KERNEL_OK")
</pallas_src>

<mosaic_0001>
module attributes {stable_mosaic.version = 11 : i64} {
  func.func @kernel(%arg0: i32, %arg1: memref<1x392x160xbf16, #tpu.memory_space<vmem>>, %arg2: memref<160x32xbf16, #tpu.memory_space<vmem>>, %arg3: memref<1x32xf32, #tpu.memory_space<vmem>>, %arg4: memref<1x32xf32, #tpu.memory_space<vmem>>, %arg5: memref<1x32xf32, #tpu.memory_space<vmem>>, %arg6: memref<1x32xf32, #tpu.memory_space<vmem>>, %arg7: memref<32x64xbf16, #tpu.memory_space<vmem>>, %arg8: memref<1x64xf32, #tpu.memory_space<vmem>>, %arg9: memref<1x64xf32, #tpu.memory_space<vmem>>, %arg10: memref<576x16xbf16, #tpu.memory_space<vmem>>, %arg11: memref<1x48xf32, #tpu.memory_space<vmem>>, %arg12: memref<1x48xf32, #tpu.memory_space<vmem>>, %arg13: memref<48x64xbf16, #tpu.memory_space<vmem>>, %arg14: memref<1x64xf32, #tpu.memory_space<vmem>>, %arg15: memref<1x64xf32, #tpu.memory_space<vmem>>, %arg16: memref<576x16xbf16, #tpu.memory_space<vmem>>, %arg17: memref<1x64xf32, #tpu.memory_space<vmem>>, %arg18: memref<1x64xf32, #tpu.memory_space<vmem>>, %arg19: memref<1x64xf32, #tpu.memory_space<vmem>>, %arg20: memref<1x1xf32, #tpu.memory_space<vmem>>, %arg21: memref<1x1x1xf32, #tpu.memory_space<vmem>>) attributes {dimension_semantics = [#tpu.dimension_semantics<parallel>], iteration_bounds = array<i64: 2>, scalar_prefetch = 0 : i64, scratch_operands = 0 : i64, tpu.core_type = #tpu.core_type<tc>, window_params = [{transform_indices = @transform_0, window_bounds = array<i64: 1, 392, 160>}, {pipeline_mode = #tpu.pipeline_mode<synchronous>, transform_indices = @transform_1, window_bounds = array<i64: 160, 32>}, {pipeline_mode = #tpu.pipeline_mode<synchronous>, transform_indices = @transform_2, window_bounds = array<i64: 1, 32>}, {pipeline_mode = #tpu.pipeline_mode<synchronous>, transform_indices = @transform_3, window_bounds = array<i64: 1, 32>}, {pipeline_mode = #tpu.pipeline_mode<synchronous>, transform_indices = @transform_4, window_bounds = array<i64: 1, 32>}, {pipeline_mode = #tpu.pipeline_mode<synchronous>, transform_indices = @transform_5, window_bounds = array<i64: 1, 32>}, {pipeline_mode = #tpu.pipeline_mode<synchronous>, transform_indices = @transform_6, window_bounds = array<i64: 32, 64>}, {pipeline_mode = #tpu.pipeline_mode<synchronous>, transform_indices = @transform_7, window_bounds = array<i64: 1, 64>}, {pipeline_mode = #tpu.pipeline_mode<synchronous>, transform_indices = @transform_8, window_bounds = array<i64: 1, 64>}, {pipeline_mode = #tpu.pipeline_mode<synchronous>, transform_indices = @transform_9, window_bounds = array<i64: 576, 16>}, {pipeline_mode = #tpu.pipeline_mode<synchronous>, transform_indices = @transform_10, window_bounds = array<i64: 1, 48>}, {pipeline_mode = #tpu.pipeline_mode<synchronous>, transform_indices = @transform_11, window_bounds = array<i64: 1, 48>}, {pipeline_mode = #tpu.pipeline_mode<synchronous>, transform_indices = @transform_12, window_bounds = array<i64: 48, 64>}, {pipeline_mode = #tpu.pipeline_mode<synchronous>, transform_indices = @transform_13, window_bounds = array<i64: 1, 64>}, {pipeline_mode = #tpu.pipeline_mode<synchronous>, transform_indices = @transform_14, window_bounds = array<i64: 1, 64>}, {pipeline_mode = #tpu.pipeline_mode<synchronous>, transform_indices = @transform_15, window_bounds = array<i64: 576, 16>}, {pipeline_mode = #tpu.pipeline_mode<synchronous>, transform_indices = @transform_16, window_bounds = array<i64: 1, 64>}, {pipeline_mode = #tpu.pipeline_mode<synchronous>, transform_indices = @transform_17, window_bounds = array<i64: 1, 64>}, {pipeline_mode = #tpu.pipeline_mode<synchronous>, transform_indices = @transform_18, window_bounds = array<i64: 1, 64>}, {pipeline_mode = #tpu.pipeline_mode<synchronous>, transform_indices = @transform_19, window_bounds = array<i64: 1, 1>}, {transform_indices = @transform_20, window_bounds = array<i64: 1, 1, 1>}]} {
    %c0 = arith.constant 0 : index
    %c0_0 = arith.constant 0 : index
    %c0_1 = arith.constant 0 : index
    %0 = vector.load %arg1[%c0, %c0_0, %c0_1] : memref<1x392x160xbf16, #tpu.memory_space<vmem>>, vector<1x392x160xbf16>
    %1 = vector.shape_cast %0 : vector<1x392x160xbf16> to vector<392x160xbf16>
    %c0_2 = arith.constant 0 : index
    %c0_3 = arith.constant 0 : index
    %2 = vector.load %arg2[%c0_2, %c0_3] : memref<160x32xbf16, #tpu.memory_space<vmem>>, vector<160x32xbf16>
    %cst = arith.constant dense<0.000000e+00> : vector<392x32xf32>
    %3 = tpu.matmul %1, %2, %cst {dimension_numbers = #tpu.dot_dimension_numbers<[1], [0], [0], [1], [0, 0, 1, 1], [], []>} : vector<392x160xbf16>, vector<160x32xbf16>, vector<392x32xf32> -> vector<392x32xf32>
    %c0_4 = arith.constant 0 : index
    %c0_5 = arith.constant 0 : index
    %4 = vector.load %arg3[%c0_4, %c0_5] : memref<1x32xf32, #tpu.memory_space<vmem>>, vector<1x32xf32>
    %5 = vector.broadcast %4 : vector<1x32xf32> to vector<392x32xf32>
    %6 = arith.mulf %3, %5 : vector<392x32xf32>
    %c0_6 = arith.constant 0 : index
    %c0_7 = arith.constant 0 : index
    %7 = vector.load %arg4[%c0_6, %c0_7] : memref<1x32xf32, #tpu.memory_space<vmem>>, vector<1x32xf32>
    %8 = vector.broadcast %7 : vector<1x32xf32> to vector<392x32xf32>
    %9 = arith.addf %6, %8 : vector<392x32xf32>
    %cst_8 = arith.constant 0.000000e+00 : f32
    %10 = vector.broadcast %cst_8 : f32 to vector<392x32xf32>
    %11 = arith.maximumf %9, %10 : vector<392x32xf32>
    %12 = vector.shape_cast %11 : vector<392x32xf32> to vector<2x14x14x32xf32>
    %cst_9 = arith.constant 0.000000e+00 : f32
    %13 = vector.broadcast %cst_9 : f32 to vector<2x14x1x32xf32>
    %14 = tpu.concatenate %13, %12, %13 in 2 : vector<2x14x1x32xf32>, vector<2x14x14x32xf32>, vector<2x14x1x32xf32> -> vector<2x14x16x32xf32>
    %15 = vector.extract_strided_slice %14 {offsets = [0, 0, 0, 0], sizes = [2, 14, 14, 32], strides = [1, 1, 1, 1]} : vector<2x14x16x32xf32> to vector<2x14x14x32xf32>
    %16 = vector.extract_strided_slice %14 {offsets = [0, 0, 1, 0], sizes = [2, 14, 14, 32], strides = [1, 1, 1, 1]} : vector<2x14x16x32xf32> to vector<2x14x14x32xf32>
    %17 = arith.maximumf %15, %16 : vector<2x14x14x32xf32>
    %18 = vector.extract_strided_slice %14 {offsets = [0, 0, 2, 0], sizes = [2, 14, 14, 32], strides = [1, 1, 1, 1]} : vector<2x14x16x32xf32> to vector<2x14x14x32xf32>
    %19 = arith.maximumf %17, %18 : vector<2x14x14x32xf32>
    %20 = vector.extract_strided_slice %19 {offsets = [0, 0, 0, 0], sizes = [2, 14, 1, 32], strides = [1, 1, 1, 1]} : vector<2x14x14x32xf32> to vector<2x14x1x32xf32>
    %21 = vector.extract_strided_slice %19 {offsets = [0, 0, 2, 0], sizes = [2, 14, 1, 32], strides = [1, 1, 1, 1]} : vector<2x14x14x32xf32> to vector<2x14x1x32xf32>
    %22 = vector.extract_strided_slice %19 {offsets = [0, 0, 4, 0], sizes = [2, 14, 1, 32], strides = [1, 1, 1, 1]} : vector<2x14x14x32xf32> to vector<2x14x1x32xf32>
    %23 = vector.extract_strided_slice %19 {offsets = [0, 0, 6, 0], sizes = [2, 14, 1, 32], strides = [1, 1, 1, 1]} : vector<2x14x14x32xf32> to vector<2x14x1x32xf32>
    %24 = vector.extract_strided_slice %19 {offsets = [0, 0, 8, 0], sizes = [2, 14, 1, 32], strides = [1, 1, 1, 1]} : vector<2x14x14x32xf32> to vector<2x14x1x32xf32>
    %25 = vector.extract_strided_slice %19 {offsets = [0, 0, 10, 0], sizes = [2, 14, 1, 32], strides = [1, 1, 1, 1]} : vector<2x14x14x32xf32> to vector<2x14x1x32xf32>
    %26 = vector.extract_strided_slice %19 {offsets = [0, 0, 12, 0], sizes = [2, 14, 1, 32], strides = [1, 1, 1, 1]} : vector<2x14x14x32xf32> to vector<2x14x1x32xf32>
    %27 = tpu.concatenate %20, %21, %22, %23, %24, %25, %26 in 2 : vector<2x14x1x32xf32>, vector<2x14x1x32xf32>, vector<2x14x1x32xf32>, vector<2x14x1x32xf32>, vector<2x14x1x32xf32>, vector<2x14x1x32xf32>, vector<2x14x1x32xf32> -> vector<2x14x7x32xf32>
    %cst_10 = arith.constant 0.000000e+00 : f32
    %28 = vector.broadcast %cst_10 : f32 to vector<2x1x7x32xf32>
    %29 = tpu.concatenate %28, %27, %28 in 1 : vector<2x1x7x32xf32>, vector<2x14x7x32xf32>, vector<2x1x7x32xf32> -> vector<2x16x7x32xf32>
    %30 = vector.extract_strided_slice %29 {offsets = [0, 0, 0, 0], sizes = [2, 14, 7, 32], strides = [1, 1, 1, 1]} : vector<2x16x7x32xf32> to vector<2x14x7x32xf32>
    %31 = vector.extract_strided_slice %29 {offsets = [0, 1, 0, 0], sizes = [2, 14, 7, 32], strides = [1, 1, 1, 1]} : vector<2x16x7x32xf32> to vector<2x14x7x32xf32>
    %32 = arith.maximumf %30, %31 : vector<2x14x7x32xf32>
    %33 = vector.extract_strided_slice %29 {offsets = [0, 2, 0, 0], sizes = [2, 14, 7, 32], strides = [1, 1, 1, 1]} : vector<2x16x7x32xf32> to vector<2x14x7x32xf32>
    %34 = arith.maximumf %32, %33 : vector<2x14x7x32xf32>
    %35 = vector.extract_strided_slice %34 {offsets = [0, 0, 0, 0], sizes = [2, 1, 7, 32], strides = [1, 1, 1, 1]} : vector<2x14x7x32xf32> to vector<2x1x7x32xf32>
    %36 = vector.extract_strided_slice %34 {offsets = [0, 2, 0, 0], sizes = [2, 1, 7, 32], strides = [1, 1, 1, 1]} : vector<2x14x7x32xf32> to vector<2x1x7x32xf32>
    %37 = vector.extract_strided_slice %34 {offsets = [0, 4, 0, 0], sizes = [2, 1, 7, 32], strides = [1, 1, 1, 1]} : vector<2x14x7x32xf32> to vector<2x1x7x32xf32>
    %38 = vector.extract_strided_slice %34 {offsets = [0, 6, 0, 0], sizes = [2, 1, 7, 32], strides = [1, 1, 1, 1]} : vector<2x14x7x32xf32> to vector<2x1x7x32xf32>
    %39 = vector.extract_strided_slice %34 {offsets = [0, 8, 0, 0], sizes = [2, 1, 7, 32], strides = [1, 1, 1, 1]} : vector<2x14x7x32xf32> to vector<2x1x7x32xf32>
    %40 = vector.extract_strided_slice %34 {offsets = [0, 10, 0, 0], sizes = [2, 1, 7, 32], strides = [1, 1, 1, 1]} : vector<2x14x7x32xf32> to vector<2x1x7x32xf32>
    %41 = vector.extract_strided_slice %34 {offsets = [0, 12, 0, 0], sizes = [2, 1, 7, 32], strides = [1, 1, 1, 1]} : vector<2x14x7x32xf32> to vector<2x1x7x32xf32>
    %42 = tpu.concatenate %35, %36, %37, %38, %39, %40, %41 in 1 : vector<2x1x7x32xf32>, vector<2x1x7x32xf32>, vector<2x1x7x32xf32>, vector<2x1x7x32xf32>, vector<2x1x7x32xf32>, vector<2x1x7x32xf32>, vector<2x1x7x32xf32> -> vector<2x7x7x32xf32>
    %cst_11 = arith.constant 0.000000e+00 : f32
    %43 = vector.broadcast %cst_11 : f32 to vector<1x7x7x32xf32>
    %44 = tpu.concatenate %43, %42, %43 in 0 : vector<1x7x7x32xf32>, vector<2x7x7x32xf32>, vector<1x7x7x32xf32> -> vector<4x7x7x32xf32>
    %45 = vector.extract_strided_slice %44 {offsets = [0, 0, 0, 0], sizes = [2, 7, 7, 32], strides = [1, 1, 1, 1]} : vector<4x7x7x32xf32> to vector<2x7x7x32xf32>
    %46 = vector.extract_strided_slice %44 {offsets = [1, 0, 0, 0], sizes = [2, 7, 7, 32], strides = [1, 1, 1, 1]} : vector<4x7x7x32xf32> to vector<2x7x7x32xf32>
    %47 = arith.maximumf %45, %46 : vector<2x7x7x32xf32>
    %48 = vector.extract_strided_slice %44 {offsets = [2, 0, 0, 0], sizes = [2, 7, 7, 32], strides = [1, 1, 1, 1]} : vector<4x7x7x32xf32> to vector<2x7x7x32xf32>
    %49 = arith.maximumf %47, %48 : vector<2x7x7x32xf32>
    %50 = vector.extract_strided_slice %49 {offsets = [0, 0, 0, 0], sizes = [1, 7, 7, 32], strides = [1, 1, 1, 1]} : vector<2x7x7x32xf32> to vector<1x7x7x32xf32>
    %51 = vector.shape_cast %50 : vector<1x7x7x32xf32> to vector<49x32xf32>
    %c0_12 = arith.constant 0 : index
    %c0_13 = arith.constant 0 : index
    %52 = vector.load %arg5[%c0_12, %c0_13] : memref<1x32xf32, #tpu.memory_space<vmem>>, vector<1x32xf32>
    %53 = vector.broadcast %52 : vector<1x32xf32> to vector<49x32xf32>
    %54 = arith.mulf %51, %53 : vector<49x32xf32>
    %c0_14 = arith.constant 0 : index
    %c0_15 = arith.constant 0 : index
    %55 = vector.load %arg6[%c0_14, %c0_15] : memref<1x32xf32, #tpu.memory_space<vmem>>, vector<1x32xf32>
    %56 = vector.broadcast %55 : vector<1x32xf32> to vector<49x32xf32>
    %57 = arith.addf %54, %56 : vector<49x32xf32>
    %cst_16 = arith.constant 0.000000e+00 : f32
    %58 = vector.broadcast %cst_16 : f32 to vector<49x32xf32>
    %59 = arith.maximumf %57, %58 : vector<49x32xf32>
    %60 = arith.truncf %59 : vector<49x32xf32> to vector<49x32xbf16>
    %c0_17 = arith.constant 0 : index
    %c0_18 = arith.constant 0 : index
    %61 = vector.load %arg7[%c0_17, %c0_18] : memref<32x64xbf16, #tpu.memory_space<vmem>>, vector<32x64xbf16>
    %cst_19 = arith.constant dense<0.000000e+00> : vector<49x64xf32>
    %62 = tpu.matmul %60, %61, %cst_19 {dimension_numbers = #tpu.dot_dimension_numbers<[1], [0], [0], [1], [0, 0, 1, 1], [], []>} : vector<49x32xbf16>, vector<32x64xbf16>, vector<49x64xf32> -> vector<49x64xf32>
    %c0_20 = arith.constant 0 : index
    %c0_21 = arith.constant 0 : index
    %63 = vector.load %arg8[%c0_20, %c0_21] : memref<1x64xf32, #tpu.memory_space<vmem>>, vector<1x64xf32>
    %64 = vector.broadcast %63 : vector<1x64xf32> to vector<49x64xf32>
    %65 = arith.mulf %62, %64 : vector<49x64xf32>
    %c0_22 = arith.constant 0 : index
    %c0_23 = arith.constant 0 : index
    %66 = vector.load %arg9[%c0_22, %c0_23] : memref<1x64xf32, #tpu.memory_space<vmem>>, vector<1x64xf32>
    %67 = vector.broadcast %66 : vector<1x64xf32> to vector<49x64xf32>
    %68 = arith.addf %65, %67 : vector<49x64xf32>
    %cst_24 = arith.constant 0.000000e+00 : f32
    %69 = vector.broadcast %cst_24 : f32 to vector<49x64xf32>
    %70 = arith.maximumf %68, %69 : vector<49x64xf32>
    %71 = vector.shape_cast %70 : vector<49x64xf32> to vector<1x7x7x64xf32>
    %cst_25 = arith.constant 0.000000e+00 : f32
    %72 = vector.broadcast %cst_25 : f32 to vector<1x7x7x64xf32>
    %73 = tpu.concatenate %72, %71, %72 in 0 : vector<1x7x7x64xf32>, vector<1x7x7x64xf32>, vector<1x7x7x64xf32> -> vector<3x7x7x64xf32>
    %cst_26 = arith.constant 0.000000e+00 : f32
    %74 = vector.broadcast %cst_26 : f32 to vector<3x1x7x64xf32>
    %75 = tpu.concatenate %74, %73, %74 in 1 : vector<3x1x7x64xf32>, vector<3x7x7x64xf32>, vector<3x1x7x64xf32> -> vector<3x9x7x64xf32>
    %cst_27 = arith.constant 0.000000e+00 : f32
    %76 = vector.broadcast %cst_27 : f32 to vector<3x9x1x64xf32>
    %77 = tpu.concatenate %76, %75, %76 in 2 : vector<3x9x1x64xf32>, vector<3x9x7x64xf32>, vector<3x9x1x64xf32> -> vector<3x9x9x64xf32>
    %78 = vector.extract_strided_slice %77 {offsets = [1, 0, 0, 0], sizes = [1, 7, 7, 64], strides = [1, 1, 1, 1]} : vector<3x9x9x64xf32> to vector<1x7x7x64xf32>
    %79 = vector.shape_cast %78 : vector<1x7x7x64xf32> to vector<49x64xf32>
    %80 = vector.extract_strided_slice %77 {offsets = [1, 0, 1, 0], sizes = [1, 7, 7, 64], strides = [1, 1, 1, 1]} : vector<3x9x9x64xf32> to vector<1x7x7x64xf32>
    %81 = vector.shape_cast %80 : vector<1x7x7x64xf32> to vector<49x64xf32>
    %82 = vector.extract_strided_slice %77 {offsets = [1, 0, 2, 0], sizes = [1, 7, 7, 64], strides = [1, 1, 1, 1]} : vector<3x9x9x64xf32> to vector<1x7x7x64xf32>
    %83 = vector.shape_cast %82 : vector<1x7x7x64xf32> to vector<49x64xf32>
    %84 = vector.extract_strided_slice %77 {offsets = [1, 1, 0, 0], sizes = [1, 7, 7, 64], strides = [1, 1, 1, 1]} : vector<3x9x9x64xf32> to vector<1x7x7x64xf32>
    %85 = vector.shape_cast %84 : vector<1x7x7x64xf32> to vector<49x64xf32>
    %86 = vector.extract_strided_slice %77 {offsets = [1, 1, 1, 0], sizes = [1, 7, 7, 64], strides = [1, 1, 1, 1]} : vector<3x9x9x64xf32> to vector<1x7x7x64xf32>
    %87 = vector.shape_cast %86 : vector<1x7x7x64xf32> to vector<49x64xf32>
    %88 = vector.extract_strided_slice %77 {offsets = [1, 1, 2, 0], sizes = [1, 7, 7, 64], strides = [1, 1, 1, 1]} : vector<3x9x9x64xf32> to vector<1x7x7x64xf32>
    %89 = vector.shape_cast %88 : vector<1x7x7x64xf32> to vector<49x64xf32>
    %90 = vector.extract_strided_slice %77 {offsets = [1, 2, 0, 0], sizes = [1, 7, 7, 64], strides = [1, 1, 1, 1]} : vector<3x9x9x64xf32> to vector<1x7x7x64xf32>
    %91 = vector.shape_cast %90 : vector<1x7x7x64xf32> to vector<49x64xf32>
    %92 = vector.extract_strided_slice %77 {offsets = [1, 2, 1, 0], sizes = [1, 7, 7, 64], strides = [1, 1, 1, 1]} : vector<3x9x9x64xf32> to vector<1x7x7x64xf32>
    %93 = vector.shape_cast %92 : vector<1x7x7x64xf32> to vector<49x64xf32>
    %94 = vector.extract_strided_slice %77 {offsets = [1, 2, 2, 0], sizes = [1, 7, 7, 64], strides = [1, 1, 1, 1]} : vector<3x9x9x64xf32> to vector<1x7x7x64xf32>
    %95 = vector.shape_cast %94 : vector<1x7x7x64xf32> to vector<49x64xf32>
    %96 = tpu.concatenate %79, %81, %83, %85, %87, %89, %91, %93, %95 in 1 : vector<49x64xf32>, vector<49x64xf32>, vector<49x64xf32>, vector<49x64xf32>, vector<49x64xf32>, vector<49x64xf32>, vector<49x64xf32>, vector<49x64xf32>, vector<49x64xf32> -> vector<49x576xf32>
    %97 = arith.truncf %96 : vector<49x576xf32> to vector<49x576xbf16>
    %c0_28 = arith.constant 0 : index
    %c0_29 = arith.constant 0 : index
    %98 = vector.load %arg10[%c0_28, %c0_29] : memref<576x16xbf16, #tpu.memory_space<vmem>>, vector<576x16xbf16>
    %cst_30 = arith.constant dense<0.000000e+00> : vector<49x16xf32>
    %99 = tpu.matmul %97, %98, %cst_30 {dimension_numbers = #tpu.dot_dimension_numbers<[1], [0], [0], [1], [0, 0, 1, 1], [], []>} : vector<49x576xbf16>, vector<576x16xbf16>, vector<49x16xf32> -> vector<49x16xf32>
    %100 = tpu.concatenate %51, %99 in 1 : vector<49x32xf32>, vector<49x16xf32> -> vector<49x48xf32>
    %c0_31 = arith.constant 0 : index
    %c0_32 = arith.constant 0 : index
    %101 = vector.load %arg11[%c0_31, %c0_32] : memref<1x48xf32, #tpu.memory_space<vmem>>, vector<1x48xf32>
    %102 = vector.broadcast %101 : vector<1x48xf32> to vector<49x48xf32>
    %103 = arith.mulf %100, %102 : vector<49x48xf32>
    %c0_33 = arith.constant 0 : index
    %c0_34 = arith.constant 0 : index
    %104 = vector.load %arg12[%c0_33, %c0_34] : memref<1x48xf32, #tpu.memory_space<vmem>>, vector<1x48xf32>
    %105 = vector.broadcast %104 : vector<1x48xf32> to vector<49x48xf32>
    %106 = arith.addf %103, %105 : vector<49x48xf32>
    %cst_35 = arith.constant 0.000000e+00 : f32
    %107 = vector.broadcast %cst_35 : f32 to vector<49x48xf32>
    %108 = arith.maximumf %106, %107 : vector<49x48xf32>
    %109 = arith.truncf %108 : vector<49x48xf32> to vector<49x48xbf16>
    %c0_36 = arith.constant 0 : index
    %c0_37 = arith.constant 0 : index
    %110 = vector.load %arg13[%c0_36, %c0_37] : memref<48x64xbf16, #tpu.memory_space<vmem>>, vector<48x64xbf16>
    %cst_38 = arith.constant dense<0.000000e+00> : vector<49x64xf32>
    %111 = tpu.matmul %109, %110, %cst_38 {dimension_numbers = #tpu.dot_dimension_numbers<[1], [0], [0], [1], [0, 0, 1, 1], [], []>} : vector<49x48xbf16>, vector<48x64xbf16>, vector<49x64xf32> -> vector<49x64xf32>
    %c0_39 = arith.constant 0 : index
    %c0_40 = arith.constant 0 : index
    %112 = vector.load %arg14[%c0_39, %c0_40] : memref<1x64xf32, #tpu.memory_space<vmem>>, vector<1x64xf32>
    %113 = vector.broadcast %112 : vector<1x64xf32> to vector<49x64xf32>
    %114 = arith.mulf %111, %113 : vector<49x64xf32>
    %c0_41 = arith.constant 0 : index
    %c0_42 = arith.constant 0 : index
    %115 = vector.load %arg15[%c0_41, %c0_42] : memref<1x64xf32, #tpu.memory_space<vmem>>, vector<1x64xf32>
    %116 = vector.broadcast %115 : vector<1x64xf32> to vector<49x64xf32>
    %117 = arith.addf %114, %116 : vector<49x64xf32>
    %cst_43 = arith.constant 0.000000e+00 : f32
    %118 = vector.broadcast %cst_43 : f32 to vector<49x64xf32>
    %119 = arith.maximumf %117, %118 : vector<49x64xf32>
    %120 = vector.shape_cast %119 : vector<49x64xf32> to vector<1x7x7x64xf32>
    %cst_44 = arith.constant 0.000000e+00 : f32
    %121 = vector.broadcast %cst_44 : f32 to vector<1x7x7x64xf32>
    %122 = tpu.concatenate %121, %120, %121 in 0 : vector<1x7x7x64xf32>, vector<1x7x7x64xf32>, vector<1x7x7x64xf32> -> vector<3x7x7x64xf32>
    %cst_45 = arith.constant 0.000000e+00 : f32
    %123 = vector.broadcast %cst_45 : f32 to vector<3x1x7x64xf32>
    %124 = tpu.concatenate %123, %122, %123 in 1 : vector<3x1x7x64xf32>, vector<3x7x7x64xf32>, vector<3x1x7x64xf32> -> vector<3x9x7x64xf32>
    %cst_46 = arith.constant 0.000000e+00 : f32
    %125 = vector.broadcast %cst_46 : f32 to vector<3x9x1x64xf32>
    %126 = tpu.concatenate %125, %124, %125 in 2 : vector<3x9x1x64xf32>, vector<3x9x7x64xf32>, vector<3x9x1x64xf32> -> vector<3x9x9x64xf32>
    %127 = vector.extract_strided_slice %126 {offsets = [1, 0, 0, 0], sizes = [1, 7, 7, 64], strides = [1, 1, 1, 1]} : vector<3x9x9x64xf32> to vector<1x7x7x64xf32>
    %128 = vector.shape_cast %127 : vector<1x7x7x64xf32> to vector<49x64xf32>
    %129 = vector.extract_strided_slice %126 {offsets = [1, 0, 1, 0], sizes = [1, 7, 7, 64], strides = [1, 1, 1, 1]} : vector<3x9x9x64xf32> to vector<1x7x7x64xf32>
    %130 = vector.shape_cast %129 : vector<1x7x7x64xf32> to vector<49x64xf32>
    %131 = vector.extract_strided_slice %126 {offsets = [1, 0, 2, 0], sizes = [1, 7, 7, 64], strides = [1, 1, 1, 1]} : vector<3x9x9x64xf32> to vector<1x7x7x64xf32>
    %132 = vector.shape_cast %131 : vector<1x7x7x64xf32> to vector<49x64xf32>
    %133 = vector.extract_strided_slice %126 {offsets = [1, 1, 0, 0], sizes = [1, 7, 7, 64], strides = [1, 1, 1, 1]} : vector<3x9x9x64xf32> to vector<1x7x7x64xf32>
    %134 = vector.shape_cast %133 : vector<1x7x7x64xf32> to vector<49x64xf32>
    %135 = vector.extract_strided_slice %126 {offsets = [1, 1, 1, 0], sizes = [1, 7, 7, 64], strides = [1, 1, 1, 1]} : vector<3x9x9x64xf32> to vector<1x7x7x64xf32>
    %136 = vector.shape_cast %135 : vector<1x7x7x64xf32> to vector<49x64xf32>
    %137 = vector.extract_strided_slice %126 {offsets = [1, 1, 2, 0], sizes = [1, 7, 7, 64], strides = [1, 1, 1, 1]} : vector<3x9x9x64xf32> to vector<1x7x7x64xf32>
    %138 = vector.shape_cast %137 : vector<1x7x7x64xf32> to vector<49x64xf32>
    %139 = vector.extract_strided_slice %126 {offsets = [1, 2, 0, 0], sizes = [1, 7, 7, 64], strides = [1, 1, 1, 1]} : vector<3x9x9x64xf32> to vector<1x7x7x64xf32>
    %140 = vector.shape_cast %139 : vector<1x7x7x64xf32> to vector<49x64xf32>
    %141 = vector.extract_strided_slice %126 {offsets = [1, 2, 1, 0], sizes = [1, 7, 7, 64], strides = [1, 1, 1, 1]} : vector<3x9x9x64xf32> to vector<1x7x7x64xf32>
    %142 = vector.shape_cast %141 : vector<1x7x7x64xf32> to vector<49x64xf32>
    %143 = vector.extract_strided_slice %126 {offsets = [1, 2, 2, 0], sizes = [1, 7, 7, 64], strides = [1, 1, 1, 1]} : vector<3x9x9x64xf32> to vector<1x7x7x64xf32>
    %144 = vector.shape_cast %143 : vector<1x7x7x64xf32> to vector<49x64xf32>
    %145 = tpu.concatenate %128, %130, %132, %134, %136, %138, %140, %142, %144 in 1 : vector<49x64xf32>, vector<49x64xf32>, vector<49x64xf32>, vector<49x64xf32>, vector<49x64xf32>, vector<49x64xf32>, vector<49x64xf32>, vector<49x64xf32>, vector<49x64xf32> -> vector<49x576xf32>
    %146 = arith.truncf %145 : vector<49x576xf32> to vector<49x576xbf16>
    %c0_47 = arith.constant 0 : index
    %c0_48 = arith.constant 0 : index
    %147 = vector.load %arg16[%c0_47, %c0_48] : memref<576x16xbf16, #tpu.memory_space<vmem>>, vector<576x16xbf16>
    %cst_49 = arith.constant dense<0.000000e+00> : vector<49x16xf32>
    %148 = tpu.matmul %146, %147, %cst_49 {dimension_numbers = #tpu.dot_dimension_numbers<[1], [0], [0], [1], [0, 0, 1, 1], [], []>} : vector<49x576xbf16>, vector<576x16xbf16>, vector<49x16xf32> -> vector<49x16xf32>
    %149 = tpu.concatenate %100, %148 in 1 : vector<49x48xf32>, vector<49x16xf32> -> vector<49x64xf32>
    %c0_50 = arith.constant 0 : index
    %c0_51 = arith.constant 0 : index
    %150 = vector.load %arg17[%c0_50, %c0_51] : memref<1x64xf32, #tpu.memory_space<vmem>>, vector<1x64xf32>
    %151 = vector.broadcast %150 : vector<1x64xf32> to vector<49x64xf32>
    %152 = arith.mulf %149, %151 : vector<49x64xf32>
    %c0_52 = arith.constant 0 : index
    %c0_53 = arith.constant 0 : index
    %153 = vector.load %arg18[%c0_52, %c0_53] : memref<1x64xf32, #tpu.memory_space<vmem>>, vector<1x64xf32>
    %154 = vector.broadcast %153 : vector<1x64xf32> to vector<49x64xf32>
    %155 = arith.addf %152, %154 : vector<49x64xf32>
    %cst_54 = arith.constant 0.000000e+00 : f32
    %156 = vector.broadcast %cst_54 : f32 to vector<49x64xf32>
    %157 = arith.maximumf %155, %156 : vector<49x64xf32>
    %cst_55 = arith.constant dense<0.000000e+00> : vector<64xf32>
    %158 = vector.multi_reduction <add>, %157, %cst_55 [0] : vector<49x64xf32> to vector<64xf32>
    %159 = vector.shape_cast %158 : vector<64xf32> to vector<1x64xf32>
    %cst_56 = arith.constant 0.0204081628 : f32
    %160 = vector.broadcast %cst_56 : f32 to vector<1x64xf32>
    %161 = arith.mulf %159, %160 : vector<1x64xf32>
    %c0_57 = arith.constant 0 : index
    %c0_58 = arith.constant 0 : index
    %162 = vector.load %arg19[%c0_57, %c0_58] : memref<1x64xf32, #tpu.memory_space<vmem>>, vector<1x64xf32>
    %163 = arith.mulf %161, %162 : vector<1x64xf32>
    %cst_59 = arith.constant dense<0.000000e+00> : vector<1xf32>
    %164 = vector.multi_reduction <add>, %163, %cst_59 [1] : vector<1x64xf32> to vector<1xf32>
    %165 = vector.shape_cast %164 : vector<1xf32> to vector<1x1xf32>
    %166 = vector.shape_cast %165 : vector<1x1xf32> to vector<1x1x1xf32>
    %c0_60 = arith.constant 0 : index
    %c0_61 = arith.constant 0 : index
    %167 = vector.load %arg20[%c0_60, %c0_61] : memref<1x1xf32, #tpu.memory_space<vmem>>, vector<1x1xf32>
    %168 = vector.shape_cast %167 : vector<1x1xf32> to vector<1x1x1xf32>
    %169 = arith.addf %166, %168 : vector<1x1x1xf32>
    %c0_62 = arith.constant 0 : index
    %c0_63 = arith.constant 0 : index
    %c0_64 = arith.constant 0 : index
    %170 = vector.load %arg21[%c0_62, %c0_63, %c0_64] : memref<1x1x1xf32, #tpu.memory_space<vmem>>, vector<1x1x1xf32>
    tpu.vector_store %arg21[%c0_62, %c0_63, %c0_64], %169 {strides = array<i32>} : memref<1x1x1xf32, #tpu.memory_space<vmem>>, vector<1x1x1xf32>,
    return
  }
  func.func @transform_0(%arg0: i32) -> (i32, i32, i32) {
    %c0_i32 = arith.constant 0 : i32
    %c0_i32_0 = arith.constant 0 : i32
    %c0_i32_1 = arith.constant 0 : i32
    return %arg0, %c0_i32, %c0_i32_0 : i32, i32, i32
  }
  func.func @transform_1(%arg0: i32) -> (i32, i32) {
    %c0_i32 = arith.constant 0 : i32
    %c0_i32_0 = arith.constant 0 : i32
    %c0_i32_1 = arith.constant 0 : i32
    return %c0_i32, %c0_i32_0 : i32, i32
  }
  func.func @transform_2(%arg0: i32) -> (i32, i32) {
    %c0_i32 = arith.constant 0 : i32
    %c0_i32_0 = arith.constant 0 : i32
    %c0_i32_1 = arith.constant 0 : i32
    return %c0_i32, %c0_i32_0 : i32, i32
  }
  func.func @transform_3(%arg0: i32) -> (i32, i32) {
    %c0_i32 = arith.constant 0 : i32
    %c0_i32_0 = arith.constant 0 : i32
    %c0_i32_1 = arith.constant 0 : i32
    return %c0_i32, %c0_i32_0 : i32, i32
  }
  func.func @transform_4(%arg0: i32) -> (i32, i32) {
    %c0_i32 = arith.constant 0 : i32
    %c0_i32_0 = arith.constant 0 : i32
    %c0_i32_1 = arith.constant 0 : i32
    return %c0_i32, %c0_i32_0 : i32, i32
  }
  func.func @transform_5(%arg0: i32) -> (i32, i32) {
    %c0_i32 = arith.constant 0 : i32
    %c0_i32_0 = arith.constant 0 : i32
    %c0_i32_1 = arith.constant 0 : i32
    return %c0_i32, %c0_i32_0 : i32, i32
  }
  func.func @transform_6(%arg0: i32) -> (i32, i32) {
    %c0_i32 = arith.constant 0 : i32
    %c0_i32_0 = arith.constant 0 : i32
    %c0_i32_1 = arith.constant 0 : i32
    return %c0_i32, %c0_i32_0 : i32, i32
  }
  func.func @transform_7(%arg0: i32) -> (i32, i32) {
    %c0_i32 = arith.constant 0 : i32
    %c0_i32_0 = arith.constant 0 : i32
    %c0_i32_1 = arith.constant 0 : i32
    return %c0_i32, %c0_i32_0 : i32, i32
  }
  func.func @transform_8(%arg0: i32) -> (i32, i32) {
    %c0_i32 = arith.constant 0 : i32
    %c0_i32_0 = arith.constant 0 : i32
    %c0_i32_1 = arith.constant 0 : i32
    return %c0_i32, %c0_i32_0 : i32, i32
  }
  func.func @transform_9(%arg0: i32) -> (i32, i32) {
    %c0_i32 = arith.constant 0 : i32
    %c0_i32_0 = arith.constant 0 : i32
    %c0_i32_1 = arith.constant 0 : i32
    return %c0_i32, %c0_i32_0 : i32, i32
  }
  func.func @transform_10(%arg0: i32) -> (i32, i32) {
    %c0_i32 = arith.constant 0 : i32
    %c0_i32_0 = arith.constant 0 : i32
    %c0_i32_1 = arith.constant 0 : i32
    return %c0_i32, %c0_i32_0 : i32, i32
  }
  func.func @transform_11(%arg0: i32) -> (i32, i32) {
    %c0_i32 = arith.constant 0 : i32
    %c0_i32_0 = arith.constant 0 : i32
    %c0_i32_1 = arith.constant 0 : i32
    return %c0_i32, %c0_i32_0 : i32, i32
  }
  func.func @transform_12(%arg0: i32) -> (i32, i32) {
    %c0_i32 = arith.constant 0 : i32
    %c0_i32_0 = arith.constant 0 : i32
    %c0_i32_1 = arith.constant 0 : i32
    return %c0_i32, %c0_i32_0 : i32, i32
  }
  func.func @transform_13(%arg0: i32) -> (i32, i32) {
    %c0_i32 = arith.constant 0 : i32
    %c0_i32_0 = arith.constant 0 : i32
    %c0_i32_1 = arith.constant 0 : i32
    return %c0_i32, %c0_i32_0 : i32, i32
  }
  func.func @transform_14(%arg0: i32) -> (i32, i32) {
    %c0_i32 = arith.constant 0 : i32
    %c0_i32_0 = arith.constant 0 : i32
    %c0_i32_1 = arith.constant 0 : i32
    return %c0_i32, %c0_i32_0 : i32, i32
  }
  func.func @transform_15(%arg0: i32) -> (i32, i32) {
    %c0_i32 = arith.constant 0 : i32
    %c0_i32_0 = arith.constant 0 : i32
    %c0_i32_1 = arith.constant 0 : i32
    return %c0_i32, %c0_i32_0 : i32, i32
  }
  func.func @transform_16(%arg0: i32) -> (i32, i32) {
    %c0_i32 = arith.constant 0 : i32
    %c0_i32_0 = arith.constant 0 : i32
    %c0_i32_1 = arith.constant 0 : i32
    return %c0_i32, %c0_i32_0 : i32, i32
  }
  func.func @transform_17(%arg0: i32) -> (i32, i32) {
    %c0_i32 = arith.constant 0 : i32
    %c0_i32_0 = arith.constant 0 : i32
    %c0_i32_1 = arith.constant 0 : i32
    return %c0_i32, %c0_i32_0 : i32, i32
  }
  func.func @transform_18(%arg0: i32) -> (i32, i32) {
    %c0_i32 = arith.constant 0 : i32
    %c0_i32_0 = arith.constant 0 : i32
    %c0_i32_1 = arith.constant 0 : i32
    return %c0_i32, %c0_i32_0 : i32, i32
  }
  func.func @transform_19(%arg0: i32) -> (i32, i32) {
    %c0_i32 = arith.constant 0 : i32
    %c0_i32_0 = arith.constant 0 : i32
    %c0_i32_1 = arith.constant 0 : i32
    return %c0_i32, %c0_i32_0 : i32, i32
  }
  func.func @transform_20(%arg0: i32) -> (i32, i32, i32) {
    %c0_i32 = arith.constant 0 : i32
    %c0_i32_0 = arith.constant 0 : i32
    %c0_i32_1 = arith.constant 0 : i32
    return %arg0, %c0_i32, %c0_i32_0 : i32, i32, i32
  }
}

</mosaic_0001>

<bundles_post_ra>
// kernel: densenet3d_forward.1
= control target key start
LH: loop header
LB: loop body
LE: loop exit
PB: predicated region body
PF: predicated region fallthrough
CT: control target
= control target key end

     0   :  { %s8558_s23 = smov 0   ;;  %s14000_s0 = inlined_call_operand.vmem [shape: bf16[2,392,160], index: 0, kind: input, shape index: {}]   ;;  %s14001_s1 = inlined_call_operand.vmem [shape: bf16[160,32], index: 1, kind: input, shape index: {}]   ;;  %s14002_s2 = inlined_call_operand.vmem [shape: f32[1,32], index: 2, kind: input, shape index: {}]   ;;  %s14003_s3 = inlined_call_operand.vmem [shape: f32[1,32], index: 3, kind: input, shape index: {}]   ;;  %s14004_s4 = inlined_call_operand.vmem [shape: f32[1,32], index: 4, kind: input, shape index: {}]   ;;  %s14005_s5 = inlined_call_operand.vmem [shape: f32[1,32], index: 5, kind: input, shape index: {}]   ;;  %s14006_s6 = inlined_call_operand.vmem [shape: bf16[32,64], index: 6, kind: input, shape index: {}]   ;;  %s14007_s7 = inlined_call_operand.vmem [shape: f32[1,64], index: 7, kind: input, shape index: {}]   ;;  %s14008_s8 = inlined_call_operand.vmem [shape: f32[1,64], index: 8, kind: input, shape index: {}]   ;;  %s14009_s9 = inlined_call_operand.vmem [shape: bf16[576,16], index: 9, kind: input, shape index: {}]   ;;  %s14010_s10 = inlined_call_operand.vmem [shape: f32[1,48], index: 10, kind: input, shape index: {}]   ;;  %s14011_s11 = inlined_call_operand.vmem [shape: f32[1,48], index: 11, kind: input, shape index: {}]   ;;  %s14012_s12 = inlined_call_operand.vmem [shape: bf16[48,64], index: 12, kind: input, shape index: {}]   ;;  %s14013_s13 = inlined_call_operand.vmem [shape: f32[1,64], index: 13, kind: input, shape index: {}]   ;;  %s14014_s14 = inlined_call_operand.vmem [shape: f32[1,64], index: 14, kind: input, shape index: {}]   ;;  %s14015_s15 = inlined_call_operand.vmem [shape: bf16[576,16], index: 15, kind: input, shape index: {}]   ;;  %s14016_s16 = inlined_call_operand.vmem [shape: f32[1,64], index: 16, kind: input, shape index: {}]   ;;  %s14017_s17 = inlined_call_operand.vmem [shape: f32[1,64], index: 17, kind: input, shape index: {}]   ;;  %s14018_s18 = inlined_call_operand.vmem [shape: f32[1,64], index: 18, kind: input, shape index: {}]   ;;  %s14019_s19 = inlined_call_operand.<no memory space> [shape: f32[1,1], index: 19, kind: input, shape index: {}]   ;;  %s14020_s20 = inlined_call_operand.vmem [shape: f32[2,1,1], index: 20, kind: output, shape index: {}]  }
   0x1   :  { %14220 = sst [smem:[#allocation292_spill]] %s14000_s0  ;;  %v25_v0 = vstv %s14019_s19 }
   0x2   :  { %14221 = sst [smem:[#allocation293_spill]] %s14001_s1  ;;  %26 = vst [vmem:[#allocation2] sm:$0x1] %v25_v0 }
   0x3   :  { %14222 = sst [smem:[#allocation294_spill]] %s14002_s2 }
   0x4   :  { %14223 = sst [smem:[#allocation295_spill]] %s14003_s3 }
   0x5   :  { %14224 = sst [smem:[#allocation296_spill]] %s14004_s4 }
   0x6 LB: > { %s7553_s24 = sadd.s32 4294967295, %s8444_s23   ;;  %p7557_p0 = scmp.ge.s32.totalorder %s8444_s23, 1  ;;  %s8444_s23 = sphi %s8558_s23, %s32_s23  }
   0x7   : > { %p564_p1 = scmp.lt.s32.totalorder %s8444_s23, 3 }
   0x9   : > { %p565_p2 = pnand %p7557_p0, %p564_p1 }
   0xb   : > { %568 = sbr.rel (%p565_p2) target bundleno = 5054 (0x13be), region = 100 }
  0x10   : > { %s14225_s3 = sld [smem:[#allocation293_spill]]  ;;  %p620_p3 = scmp.lt.s32.totalorder %s7553_s24, 1  ;;  %vm980_vm0 = vcmask 261120   ;;  %vm1931_vm1 = vcmask 1040384   ;;  %vm2100_vm2 = vcmask 1046528   ;;  %vm2381_vm3 = vcmask 1045504  }
  0x11   : > { %s14226_s2 = sld [smem:[#allocation292_spill]]  ;;  %vm2998_vm4 = vcmask 1041408   ;;  %vm3027_vm5 = vcmask 1042432   ;;  %vm3056_vm6 = vcmask 1043456   ;;  %vm3085_vm7 = vcmask 1044480   ;;  %s8449_s4 = smov 48  }
  0x12   : > { %s15532_s24 = smov (!%p620_p3, %s7553_s24), 1  ;;  %s14227_s19 = sld [smem:[#allocation294_spill]]  ;;  %vm4940_vm8 = vcmask 523264   ;;  %vm5591_vm9 = vcmask 392192   ;;  %vm7487_vm10 = vcmask 516096   ;;  %vm7504_vm11 = vcmask 0  }
  0x13   : > { %s8277_s21 = smul.u32 392, %s15532_s24  ;;  %s14228_s28 = sld [smem:[#allocation295_spill]] }
  0x14   : > { %s14235_s27 = sld [smem:[#allocation296_spill]]  ;;  %s627_s26 = scalar_lea.vmem %s14020_s20, %s15532_s24 }
  0x16   : > { %v8197_v1 = vld [vmem:[%s14225_s3 + $0x38] sm:$0xff]  ;;  %v8199_v2 = vld [vmem:[%s14225_s3 + $0x48] sm:$0xff]  ;;  %v8196_v3 = vld [vmem:[%s14225_s3 + $0x30] sm:$0xff] }
  0x17   : > { %1056 = vmatpush.bf16.msra.mxu0 %v8197_v1  ;;  %1195 = vmatpush.bf16.msra.mxu1 %v8199_v2  ;;  %v8198_v4 = vld [vmem:[%s14225_s3 + $0x40] sm:$0xff]  ;;  %v8195_v5 = vld [vmem:[%s14225_s3 + $0x28] sm:$0xff]  ;;  %s8587_s25 = scalar_lea.vmem %s14226_s2, %s8277_s21  ;;  %v8193_v10 = vld [vmem:[%s14225_s3 + $0x18] sm:$0xff]  ;;  %s8448_s21 = smov 32  }
  0x18   : > { %v8142_v6 = vld [vmem:[%s8587_s25 + $0x4] sm:$0xf]  ;;  %v7563_v7 = vld [vmem:[%s8587_s25 + $0x8] sm:$0xf0]  ;;  %v8192_v11 = vld [vmem:[%s14225_s3 + $0x10] sm:$0xff] }
  0x19   : > { %v7566_v8 = vor.u32 %v8142_v6, %v7563_v7  ;;  %v8194_v9 = vld [vmem:[%s14225_s3 + $0x20] sm:$0xff]  ;;  %v8144_v12 = vld [vmem:[%s8587_s25 + $0x14] sm:$0xf]  ;;  %v7571_v13 = vld [vmem:[%s8587_s25 + $0x18] sm:$0xf0] }
  0x1a   : > { %v8191_v14 = vld [vmem:[%s14225_s3 + $0x8] sm:$0xff]  ;;  %v7574_v15 = vor.u32 %v8144_v12, %v7571_v13  ;;  %v8190_v16 = vld [vmem:[%s14225_s3] sm:$0xff]  ;;  %v7569_v23 = vld [vmem:[%s8587_s25 + $0x10] sm:$0xf] }
  0x1b   : > { %1057 = vmatpush.bf16.msra.mxu0 %v8196_v3  ;;  %1196 = vmatpush.bf16.msra.mxu1 %v8198_v4  ;;  %v7561_v17 = vld [vmem:[%s8587_s25] sm:$0xf]  ;;  %v8143_v18 = vld [vmem:[%s8587_s25 + $0x4] sm:$0xf0]  ;;  %v8146_v20 = vld [vmem:[%s8587_s25 + $0x24] sm:$0xf] }
  0x1c   : > { %v7562_v19 = vor.u32 %v8143_v18, %v7561_v17  ;;  %v7579_v21 = vld [vmem:[%s8587_s25 + $0x28] sm:$0xf0]  ;;  %v8145_v24 = vld [vmem:[%s8587_s25 + $0x14] sm:$0xf0]  ;;  %v8148_v26 = vld [vmem:[%s8587_s25 + $0x34] sm:$0xf] }
  0x1d   : > { %v7582_v22 = vor.u32 %v8146_v20, %v7579_v21  ;;  %v7570_v25 = vor.u32 %v8145_v24, %v7569_v23  ;;  %v7587_v27 = vld [vmem:[%s8587_s25 + $0x38] sm:$0xf0]  ;;  %v7577_v29 = vld [vmem:[%s8587_s25 + $0x20] sm:$0xf]  ;;  %v8147_v30 = vld [vmem:[%s8587_s25 + $0x24] sm:$0xf0] }
  0x1e   : > { %7791 = vmatmul.msk.bf16.vlgmr.msra.gmra.mxu1 %vm980_vm0, %v7566_v8  ;;  %v7590_v28 = vor.u32 %v8148_v26, %v7587_v27  ;;  %v7578_v31 = vor.u32 %v8147_v30, %v7577_v29  ;;  %v8150_v32 = vld [vmem:[%s8587_s25 + $0x44] sm:$0xf]  ;;  %v7595_v33 = vld [vmem:[%s8587_s25 + $0x48] sm:$0xf0]  ;;  %v7585_v35 = vld [vmem:[%s8587_s25 + $0x30] sm:$0xf] }
  0x1f   : > { %1058 = vmatpush.bf16.msra.mxu0 %v8195_v5  ;;  %v7598_v34 = vor.u32 %v8150_v32, %v7595_v33  ;;  %v8149_v36 = vld [vmem:[%s8587_s25 + $0x34] sm:$0xf0]  ;;  %v8152_v38 = vld [vmem:[%s8587_s25 + $0x54] sm:$0xf]  ;;  %v7603_v39 = vld [vmem:[%s8587_s25 + $0x58] sm:$0xf0] }
  0x20   : > { %v7586_v37 = vor.u32 %v8149_v36, %v7585_v35  ;;  %v7606_v40 = vor.u32 %v8152_v38, %v7603_v39  ;;  %v7593_v41 = vld [vmem:[%s8587_s25 + $0x40] sm:$0xf]  ;;  %v8151_v42 = vld [vmem:[%s8587_s25 + $0x44] sm:$0xf0]  ;;  %v8154_v44 = vld [vmem:[%s8587_s25 + $0x64] sm:$0xf] }
  0x21   : > { %v7594_v43 = vor.u32 %v8151_v42, %v7593_v41  ;;  %v7611_v45 = vld [vmem:[%s8587_s25 + $0x68] sm:$0xf0]  ;;  %v7601_v47 = vld [vmem:[%s8587_s25 + $0x50] sm:$0xf]  ;;  %v8153_v48 = vld [vmem:[%s8587_s25 + $0x54] sm:$0xf0] }
  0x22   : > { %v7614_v46 = vor.u32 %v8154_v44, %v7611_v45  ;;  %v7602_v49 = vor.u32 %v8153_v48, %v7601_v47  ;;  %v8156_v50 = vld [vmem:[%s8587_s25 + $0x74] sm:$0xf]  ;;  %v7619_v51 = vld [vmem:[%s8587_s25 + $0x78] sm:$0xf0]  ;;  %v7609_v53 = vld [vmem:[%s8587_s25 + $0x60] sm:$0xf] }
  0x23   : > { %1059 = vmatpush.bf16.msra.mxu0 %v8194_v9  ;;  %v7622_v52 = vor.u32 %v8156_v50, %v7619_v51  ;;  %v8155_v54 = vld [vmem:[%s8587_s25 + $0x64] sm:$0xf0]  ;;  %v8158_v56 = vld [vmem:[%s8587_s25 + $0x84] sm:$0xf]  ;;  %v7627_v57 = vld [vmem:[%s8587_s25 + $0x88] sm:$0xf0] }
  0x24   : > { %v7610_v55 = vor.u32 %v8155_v54, %v7609_v53  ;;  %v7630_v58 = vor.u32 %v8158_v56, %v7627_v57  ;;  %v7617_v60 = vld [vmem:[%s8587_s25 + $0x70] sm:$0xf]  ;;  %v8157_v61 = vld [vmem:[%s8587_s25 + $0x74] sm:$0xf0]  ;;  %v8160_v0 = vld [vmem:[%s8587_s25 + $0x94] sm:$0xf] }
  0x25   : > { %v7618_v62 = vor.u32 %v8157_v61, %v7617_v60  ;;  %v7635_v1 = vld [vmem:[%s8587_s25 + $0x98] sm:$0xf0]  ;;  %v7625_v4 = vld [vmem:[%s8587_s25 + $0x80] sm:$0xf]  ;;  %v8159_v5 = vld [vmem:[%s8587_s25 + $0x84] sm:$0xf0] }
  0x26   : > { %v7638_v2 = vor.u32 %v8160_v0, %v7635_v1  ;;  %v8655_v6 = vld [vmem:[%s14227_s19] ss:$0 sm:$0xff]  ;;  %v7626_v7 = vor.u32 %v8159_v5, %v7625_v4  ;;  %v8161_v26 = vld [vmem:[%s8587_s25 + $0x94] sm:$0xf0]  ;;  %v8164_v39 = vld [vmem:[%s8587_s25 + $0xb4] sm:$0xf] }
  0x27   : > { %1060 = vmatpush.bf16.msra.mxu0 %v8193_v10  ;;  %v8660_v10 = vld [vmem:[%s14228_s28] ss:$0 sm:$0xff]  ;;  %v8166_v1 = vld [vmem:[%s8587_s25 + $0xc4] sm:$0xf] }
  0x28   : > { %v7641_v51 = vld [vmem:[%s8587_s25 + $0xa0] sm:$0xf] }
  0x2b   : > { %1061 = vmatpush.bf16.msra.mxu0 %v8192_v11 }
  0x2e   : > { %7792 = vmatmul.msk.bf16.gmra.mxu1 %vm980_vm0, %v7574_v15  ;;  %v7643_v15 = vld [vmem:[%s8587_s25 + $0xa8] sm:$0xf0] }
  0x2f   : > { %1062 = vmatpush.bf16.msra.mxu0 %v8191_v14  ;;  %v8162_v14 = vld [vmem:[%s8587_s25 + $0xa4] sm:$0xf] }
  0x30   : > { %v7646_v18 = vor.u32 %v8162_v14, %v7643_v15  ;;  %v7649_v15 = vld [vmem:[%s8587_s25 + $0xb0] sm:$0xf] }
  0x33   : > { %1063 = vmatpush.bf16.msra.mxu0 %v8190_v16 }
  0x36   : > { %1064 = vmatmul.bf16.vlgmr.msra.gmra.mxu0 %v7562_v19 }
  0x3e   : > { %7793 = vmatmul.msk.bf16.gmra.mxu1 %vm980_vm0, %v7582_v22 }
  0x46   : > { %1069 = vmatmul.bf16.gmra.mxu0 %v7570_v25  ;;  %v7633_v25 = vld [vmem:[%s8587_s25 + $0x90] sm:$0xf] }
  0x47   : > { %v7634_v29 = vor.u32 %v8161_v26, %v7633_v25 }
  0x4e   : > { %7794 = vmatmul.msk.bf16.gmra.mxu1 %vm980_vm0, %v7590_v28 }
  0x56   : > { %1074 = vmatmul.bf16.gmra.mxu0 %v7578_v31 }
  0x5e   : > { %7795 = vmatmul.msk.bf16.gmra.mxu1 %vm980_vm0, %v7598_v34 }
  0x66   : > { %1079 = vmatmul.bf16.gmra.mxu0 %v7586_v37 }
  0x6e   : > { %7796 = vmatmul.msk.bf16.gmra.mxu1 %vm980_vm0, %v7606_v40  ;;  %v7651_v40 = vld [vmem:[%s8587_s25 + $0xb8] sm:$0xf0] }
  0x76   : > { %1084 = vmatmul.bf16.gmra.mxu0 %v7594_v43  ;;  %v7654_v43 = vor.u32 %v8164_v39, %v7651_v40 }
  0x7e   : > { %7797 = vmatmul.msk.bf16.gmra.mxu1 %vm980_vm0, %v7614_v46 }
  0x86   : > { %1089 = vmatmul.bf16.gmra.mxu0 %v7602_v49 }
  0x8e   : > { %7798 = vmatmul.msk.bf16.gmra.mxu1 %vm980_vm0, %v7622_v52  ;;  %v8163_v52 = vld [vmem:[%s8587_s25 + $0xa4] sm:$0xf0] }
  0x96   : > { %1094 = vmatmul.bf16.gmra.mxu0 %v7610_v55  ;;  %v7642_v55 = vor.u32 %v8163_v52, %v7641_v51 }
  0x9b   : > { %v1198_v59 = vpop.f32.mrf.mxu1 }
  0x9e   : > { %7799 = vmatmul.msk.bf16.gmra.mxu1 %vm980_vm0, %v7630_v58 }
  0xa3   : > { %v1200_v63 = vpop.f32.mrf.mxu1 }
  0xa6   : > { %1099 = vmatmul.bf16.gmra.mxu0 %v7618_v62 }
  0xab   : > { %v1203_v3 = vpop.f32.mrf.mxu1 }
  0xae   : > { %7800 = vmatmul.msk.bf16.gmra.mxu1 %vm980_vm0, %v7638_v2  ;;  %v7659_v2 = vld [vmem:[%s8587_s25 + $0xc8] sm:$0xf0] }
  0xaf   : > { %v7662_v5 = vor.u32 %v8166_v1, %v7659_v2 }
  0xb3   : > { %v1065_v8 = vpop.f32.mrf.mxu0  ;;  %v1205_v11 = vpop.f32.mrf.mxu1 }
  0xb4   : > { %v1199_v9 = vadd.f32 %v1198_v59, %v1065_v8 }
  0xb6   : > { %v1326_v12 = vmul.f32 %v8655_v6, %v1199_v9  ;;  %1104 = vmatmul.bf16.gmra.mxu0 %v7626_v7 }
  0xb8   : > { %v1379_v13 = vadd.f32 %v8660_v10, %v1326_v12 }
  0xba   : > { %v1428_v16 = vmax.f32 %v1379_v13, 0.0 }
  0xbb   : > { %v1067_v17 = vpop.f32.mrf.mxu0  ;;  %v1208_v23 = vpop.f32.mrf.mxu1 }
  0xbc   : > { %v1526_v19 = vrot.slane %v1428_v16, 2  ;;  %v1527_v20 = vrot.slane %v1428_v16, 4  ;;  %v1528_v21 = vrot.slane %v1428_v16, 6  ;;  %1673 = vst [vmem:[#allocation1] ss:$4 sm:$0xff] %v1428_v16  ;;  %v1201_v22 = vadd.f32 %v1200_v63, %v1067_v17 }
  0xbd   : > { %v8165_v16 = vld [vmem:[%s8587_s25 + $0xb4] sm:$0xf0] }
  0xbe   : > { %1675 = vst [vmem:[#allocation1 + $0x1] ss:$4 sm:$0xff] %v1526_v19  ;;  %v1327_v24 = vmul.f32 %v8655_v6, %v1201_v22  ;;  %7801 = vmatmul.msk.bf16.gmra.mxu1 %vm980_vm0, %v7646_v18  ;;  %v7650_v19 = vor.u32 %v8165_v16, %v7649_v15 }
  0xbf   : > { %1677 = vst [vmem:[#allocation1 + $0x2] ss:$4 sm:$0xff] %v1527_v20 }
  0xc0   : > { %1679 = vst [vmem:[#allocation1 + $0x3] ss:$4 sm:$0xff] %v1528_v21  ;;  %v1380_v27 = vadd.f32 %v8660_v10, %v1327_v24 }
  0xc2   : > { %v1429_v28 = vmax.f32 %v1380_v27, 0.0 }
  0xc3   : > { %v1070_v30 = vpop.f32.mrf.mxu0  ;;  %v1210_v35 = vpop.f32.mrf.mxu1 }
  0xc4   : > { %v1529_v31 = vrot.slane %v1429_v28, 2  ;;  %v1530_v32 = vrot.slane %v1429_v28, 4  ;;  %v1531_v33 = vrot.slane %v1429_v28, 6  ;;  %1681 = vst [vmem:[#allocation1 + $0x20] ss:$4 sm:$0xff] %v1429_v28  ;;  %v1204_v34 = vadd.f32 %v1203_v3, %v1070_v30 }
  0xc5   : > { %v7667_v30 = vld [vmem:[%s8587_s25 + $0xd8] sm:$0xf0] }
  0xc6   : > { %1683 = vst [vmem:[#allocation1 + $0x21] ss:$4 sm:$0xff] %v1529_v31  ;;  %v1328_v36 = vmul.f32 %v8655_v6, %v1204_v34  ;;  %1109 = vmatmul.bf16.gmra.mxu0 %v7634_v29  ;;  %v8168_v29 = vld [vmem:[%s8587_s25 + $0xd4] sm:$0xf] }
  0xc7   : > { %v8672_v37 = vld.sshfl [vmem:[#allocation1] sm:$0xff pattern:$0x73625140]  ;;  %1685 = vst [vmem:[#allocation1 + $0x22] ss:$4 sm:$0xff] %v1530_v32 }
  0xc8   : > { %1688 = vst [vmem:[#allocation1] ss:$4 sm:$0xff] %v1531_v33  ;;  %v1381_v38 = vadd.f32 %v8660_v10, %v1328_v36  ;;  %v7670_v33 = vor.u32 %v8168_v29, %v7667_v30 }
  0xca   : > { %v1430_v41 = vmax.f32 %v1381_v38, 0.0 }
  0xcb   : > { %v1072_v42 = vpop.f32.mrf.mxu0  ;;  %v1213_v48 = vpop.f32.mrf.mxu1 }
  0xcc   : > { %v1532_v44 = vrot.slane %v1430_v41, 2  ;;  %v1533_v45 = vrot.slane %v1430_v41, 4  ;;  %v1534_v46 = vrot.slane %v1430_v41, 6  ;;  %1689 = vst [vmem:[#allocation1 + $0x1] ss:$4 sm:$0xff] %v1430_v41  ;;  %v1206_v47 = vadd.f32 %v1205_v11, %v1072_v42 }
  0xcd   : > { %v7657_v42 = vld [vmem:[%s8587_s25 + $0xc0] sm:$0xf] }
  0xce   : > { %v8677_v49 = vld.sshfl [vmem:[#allocation1 + $0x20] sm:$0xff pattern:$0x73625140]  ;;  %1691 = vst [vmem:[#allocation1 + $0x3] ss:$4 sm:$0xff] %v1533_v45  ;;  %v1329_v50 = vmul.f32 %v8655_v6, %v1206_v47  ;;  %7802 = vmatmul.msk.bf16.gmra.mxu1 %vm980_vm0, %v7654_v43 }
  0xcf   : > { %1692 = vst [vmem:[#allocation1 + $0x20] ss:$4 sm:$0xff] %v1534_v46  ;;  %v8167_v43 = vld [vmem:[%s8587_s25 + $0xc4] sm:$0xf0] }
  0xd0   : > { %1690 = vst [vmem:[#allocation1 + $0x2] ss:$4 sm:$0xff] %v1532_v44  ;;  %v1382_v53 = vadd.f32 %v8660_v10, %v1329_v50  ;;  %v7658_v46 = vor.u32 %v8167_v43, %v7657_v42 }
  0xd2   : > { %v1431_v54 = vmax.f32 %v1382_v53, 0.0 }
  0xd3   : > { %v1075_v56 = vpop.f32.mrf.mxu0  ;;  %v1215_v60 = vpop.f32.mrf.mxu1 }
  0xd4   : > { %v1535_v57 = vrot.slane %v1431_v54, 2  ;;  %v1536_v58 = vrot.slane %v1431_v54, 4  ;;  %1693 = vst [vmem:[#allocation1 + $0x21] ss:$4 sm:$0xff] %v1431_v54  ;;  %v1209_v59 = vadd.f32 %v1208_v23, %v1075_v56  ;;  %v1537_v61 = vrot.slane %v1431_v54, 6 }
  0xd6   : > { %1694 = vst [vmem:[#allocation1 + $0x22] ss:$4 sm:$0xff] %v1535_v57  ;;  %v1330_v62 = vmul.f32 %v8655_v6, %v1209_v59  ;;  %1114 = vmatmul.bf16.gmra.mxu0 %v7642_v55  ;;  %v8170_v57 = vld [vmem:[%s8587_s25 + $0xe4] sm:$0xf] }
  0xd7   : > { %v8685_v63 = vld.sshfl [vmem:[#allocation1] sm:$0xff pattern:$0x73625140] }
  0xd8   : > { %1697 = vst [vmem:[#allocation1] ss:$4 sm:$0xff] %v1536_v58  ;;  %v1383_v0 = vadd.f32 %v8660_v10, %v1330_v62  ;;  %v7675_v58 = vld [vmem:[%s8587_s25 + $0xe8] sm:$0xf0] }
  0xd9   : > { %1698 = vst [vmem:[#allocation1 + $0x1] ss:$4 sm:$0xff] %v1537_v61  ;;  %v7678_v62 = vor.u32 %v8170_v57, %v7675_v58 }
  0xda   : > { %v1432_v3 = vmax.f32 %v1383_v0, 0.0 }
  0xdb   : > { %v1077_v4 = vpop.f32.mrf.mxu0  ;;  %v1218_v12 = vpop.f32.mrf.mxu1 }
  0xdc   : > { %v1538_v7 = vrot.slane %v1432_v3, 2  ;;  %v1539_v8 = vrot.slane %v1432_v3, 4  ;;  %v1540_v9 = vrot.slane %v1432_v3, 6  ;;  %1699 = vst [vmem:[#allocation1 + $0x2] ss:$4 sm:$0xff] %v1432_v3  ;;  %v1211_v11 = vadd.f32 %v1210_v35, %v1077_v4 }
  0xdd   : > { %v8690_v13 = vld.sshfl [vmem:[#allocation1 + $0x20] sm:$0xff pattern:$0x73625140] }
  0xde   : > { %1700 = vst [vmem:[#allocation1 + $0x3] ss:$4 sm:$0xff] %v1538_v7  ;;  %v1331_v14 = vmul.f32 %v8655_v6, %v1211_v11  ;;  %7803 = vmatmul.msk.bf16.gmra.mxu1 %vm980_vm0, %v7662_v5  ;;  %v7665_v7 = vld [vmem:[%s8587_s25 + $0xd0] sm:$0xf] }
  0xdf   : > { %1701 = vst [vmem:[#allocation1 + $0x20] ss:$4 sm:$0xff] %v1539_v8  ;;  %v8169_v8 = vld [vmem:[%s8587_s25 + $0xd4] sm:$0xf0] }
  0xe0   : > { %1702 = vst [vmem:[#allocation1 + $0x21] ss:$4 sm:$0xff] %v1540_v9  ;;  %v1384_v17 = vadd.f32 %v8660_v10, %v1331_v14  ;;  %v7666_v14 = vor.u32 %v8169_v8, %v7665_v7  ;;  %v8173_v7 = vld [vmem:[%s8587_s25 + $0xf4] sm:$0xf0] }
  0xe2   : > { %v1433_v18 = vmax.f32 %v1384_v17, 0.0 }
  0xe3   : > { %v1080_v20 = vpop.f32.mrf.mxu0  ;;  %v1220_v25 = vpop.f32.mrf.mxu1 }
  0xe4   : > { %v1541_v21 = vrot.slane %v1433_v18, 2  ;;  %v1542_v22 = vrot.slane %v1433_v18, 4  ;;  %v1543_v23 = vrot.slane %v1433_v18, 6  ;;  %1703 = vst [vmem:[#allocation1 + $0x22] ss:$4 sm:$0xff] %v1433_v18  ;;  %v1214_v24 = vadd.f32 %v1213_v48, %v1080_v20 }
  0xe5   : > { %v8697_v26 = vld.sshfl [vmem:[#allocation1] sm:$0xff pattern:$0x73625140] }
  0xe6   : > { %1706 = vst [vmem:[#allocation1] ss:$4 sm:$0xff] %v1541_v21  ;;  %v1332_v27 = vmul.f32 %v8655_v6, %v1214_v24  ;;  %1119 = vmatmul.bf16.gmra.mxu0 %v7650_v19  ;;  %v8172_v24 = vld [vmem:[%s8587_s25 + $0xf4] sm:$0xf] }
  0xe7   : > { %1707 = vst [vmem:[#allocation1 + $0x1] ss:$4 sm:$0xff] %v1542_v22 }
  0xe8   : > { %1708 = vst [vmem:[#allocation1 + $0x2] ss:$4 sm:$0xff] %v1543_v23  ;;  %v1385_v28 = vadd.f32 %v8660_v10, %v1332_v27 }
  0xea   : > { %v1434_v31 = vmax.f32 %v1385_v28, 0.0 }
  0xeb   : > { %v1082_v32 = vpop.f32.mrf.mxu0  ;;  %v1223_v39 = vpop.f32.mrf.mxu1  ;;  %v8703_v40 = vld.sshfl [vmem:[#allocation1 + $0x20] sm:$0xff pattern:$0x73625140] }
  0xec   : > { %v1544_v34 = vrot.slane %v1434_v31, 2  ;;  %v1545_v35 = vrot.slane %v1434_v31, 4  ;;  %v1546_v36 = vrot.slane %v1434_v31, 6  ;;  %1709 = vst [vmem:[#allocation1 + $0x3] ss:$4 sm:$0xff] %v1434_v31  ;;  %v1216_v38 = vadd.f32 %v1215_v60, %v1082_v32 }
  0xee   : > { %1710 = vst [vmem:[#allocation1 + $0x20] ss:$4 sm:$0xff] %v1544_v34  ;;  %v1333_v41 = vmul.f32 %v8655_v6, %v1216_v38  ;;  %7804 = vmatmul.msk.bf16.gmra.mxu1 %vm980_vm0, %v7670_v33  ;;  %v7673_v38 = vld [vmem:[%s8587_s25 + $0xe0] sm:$0xf] }
  0xef   : > { %1711 = vst [vmem:[#allocation1 + $0x21] ss:$4 sm:$0xff] %v1545_v35 }
  0xf0   : > { %1712 = vst [vmem:[#allocation1 + $0x22] ss:$4 sm:$0xff] %v1546_v36  ;;  %v1386_v44 = vadd.f32 %v8660_v10, %v1333_v41 }
  0xf2   : > { %v1435_v45 = vmax.f32 %v1386_v44, 0.0 }
  0xf3   : > { %v8710_v47 = vld.sshfl [vmem:[#allocation1] sm:$0xff pattern:$0x73625140]  ;;  %v1085_v48 = vpop.f32.mrf.mxu0  ;;  %v1225_v54 = vpop.f32.mrf.mxu1 }
  0xf4   : > { %v1547_v50 = vrot.slane %v1435_v45, 2  ;;  %v1548_v51 = vrot.slane %v1435_v45, 4  ;;  %v1549_v52 = vrot.slane %v1435_v45, 6  ;;  %1715 = vst [vmem:[#allocation1] ss:$4 sm:$0xff] %v1435_v45  ;;  %v1219_v53 = vadd.f32 %v1218_v12, %v1085_v48 }
  0xf6   : > { %1716 = vst [vmem:[#allocation1 + $0x1] ss:$4 sm:$0xff] %v1547_v50  ;;  %v1334_v55 = vmul.f32 %v8655_v6, %v1219_v53  ;;  %1124 = vmatmul.bf16.gmra.mxu0 %v7658_v46 }
  0xf7   : > { %1717 = vst [vmem:[#allocation1 + $0x2] ss:$4 sm:$0xff] %v1548_v51  ;;  %v8716_v60 = vld.sshfl [vmem:[#allocation1 + $0x20] sm:$0xff pattern:$0x73625140] }
  0xf8   : > { %1718 = vst [vmem:[#allocation1 + $0x3] ss:$4 sm:$0xff] %v1549_v52  ;;  %v1387_v56 = vadd.f32 %v8660_v10, %v1334_v55  ;;  %v8174_v55 = vld [vmem:[%s8587_s25 + $0x104] sm:$0xf] }
  0xfa   : > { %v1436_v59 = vmax.f32 %v1387_v56, 0.0  ;;  %v7691_v56 = vld [vmem:[%s8587_s25 + $0x108] sm:$0xf0] }
  0xfb   : > { %v1087_v61 = vpop.f32.mrf.mxu0  ;;  %v1228_v4 = vpop.f32.mrf.mxu1 }
  0xfc   : > { %v1550_v0 = vrot.slane %v1436_v59, 2  ;;  %v1551_v1 = vrot.slane %v1436_v59, 4  ;;  %v1552_v2 = vrot.slane %v1436_v59, 6  ;;  %1719 = vst [vmem:[#allocation1 + $0x20] ss:$4 sm:$0xff] %v1436_v59  ;;  %v1221_v3 = vadd.f32 %v1220_v25, %v1087_v61 }
  0xfd   : > { %v7683_v25 = vld [vmem:[%s8587_s25 + $0xf8] sm:$0xf0]  ;;  %v7694_v59 = vor.u32 %v8174_v55, %v7691_v56 }
  0xfe   : > { %1720 = vst [vmem:[#allocation1 + $0x21] ss:$4 sm:$0xff] %v1550_v0  ;;  %v1335_v5 = vmul.f32 %v8655_v6, %v1221_v3  ;;  %7805 = vmatmul.msk.bf16.gmra.mxu1 %vm980_vm0, %v7678_v62  ;;  %v7686_v29 = vor.u32 %v8172_v24, %v7683_v25  ;;  %v8176_v24 = vld [vmem:[%s8587_s25 + $0x114] sm:$0xf]  ;;  %v7699_v25 = vld [vmem:[%s8587_s25 + $0x118] sm:$0xf0] }
  0xff   : > { %v8721_v9 = vld.sshfl [vmem:[#allocation1] sm:$0xff pattern:$0x73625140]  ;;  %1721 = vst [vmem:[#allocation1 + $0x22] ss:$4 sm:$0xff] %v1551_v1 }
 0x100   : > { %1724 = vst [vmem:[#allocation1] ss:$4 sm:$0xff] %v1552_v2  ;;  %v1388_v11 = vadd.f32 %v8660_v10, %v1335_v5  ;;  %v7681_v5 = vld [vmem:[%s8587_s25 + $0xf0] sm:$0xf] }
 0x102   : > { %v1437_v12 = vmax.f32 %v1388_v11, 0.0 }
 0x103   : > { %v1090_v15 = vpop.f32.mrf.mxu0  ;;  %v1230_v20 = vpop.f32.mrf.mxu1 }
 0x104   : > { %v1553_v16 = vrot.slane %v1437_v12, 2  ;;  %v1554_v17 = vrot.slane %v1437_v12, 4  ;;  %v1555_v18 = vrot.slane %v1437_v12, 6  ;;  %1725 = vst [vmem:[#allocation1 + $0x1] ss:$4 sm:$0xff] %v1437_v12  ;;  %v1224_v19 = vadd.f32 %v1223_v39, %v1090_v15 }
 0x105   : > { %v8171_v39 = vld [vmem:[%s8587_s25 + $0xe4] sm:$0xf0]  ;;  %v7682_v12 = vor.u32 %v8173_v7, %v7681_v5 }
 0x106   : > { %v8725_v21 = vld.sshfl [vmem:[#allocation1 + $0x20] sm:$0xff pattern:$0x73625140]  ;;  %1726 = vst [vmem:[#allocation1 + $0x2] ss:$4 sm:$0xff] %v1553_v16  ;;  %v1336_v22 = vmul.f32 %v8655_v6, %v1224_v19  ;;  %1129 = vmatmul.bf16.gmra.mxu0 %v7666_v14  ;;  %v7674_v43 = vor.u32 %v8171_v39, %v7673_v38 }
 0x107   : > { %1727 = vst [vmem:[#allocation1 + $0x3] ss:$4 sm:$0xff] %v1554_v17  ;;  %v7689_v39 = vld [vmem:[%s8587_s25 + $0x100] sm:$0xf] }
 0x108   : > { %1728 = vst [vmem:[#allocation1 + $0x20] ss:$4 sm:$0xff] %v1555_v18  ;;  %v1389_v23 = vadd.f32 %v8660_v10, %v1336_v22 }
 0x10a   : > { %v1438_v27 = vmax.f32 %v1389_v23, 0.0 }
 0x10b   : > { %v1092_v28 = vpop.f32.mrf.mxu0  ;;  %v1233_v34 = vpop.f32.mrf.mxu1 }
 0x10c   : > { %v1556_v30 = vrot.slane %v1438_v27, 2  ;;  %v1557_v31 = vrot.slane %v1438_v27, 4  ;;  %v1558_v32 = vrot.slane %v1438_v27, 6  ;;  %1729 = vst [vmem:[#allocation1 + $0x21] ss:$4 sm:$0xff] %v1438_v27  ;;  %v1226_v33 = vadd.f32 %v1225_v54, %v1092_v28 }
 0x10e   : > { %v8731_v35 = vld.sshfl [vmem:[#allocation1] sm:$0xff pattern:$0x73625140]  ;;  %1730 = vst [vmem:[#allocation1 + $0x22] ss:$4 sm:$0xff] %v1556_v30  ;;  %v1337_v36 = vmul.f32 %v8655_v6, %v1226_v33  ;;  %7806 = vmatmul.msk.bf16.gmra.mxu1 %vm980_vm0, %v7686_v29  ;;  %v7702_v30 = vor.u32 %v8176_v24, %v7699_v25 }
 0x10f   : > { %1733 = vst [vmem:[#allocation1] ss:$4 sm:$0xff] %v1557_v31 }
 0x110   : > { %1734 = vst [vmem:[#allocation1 + $0x1] ss:$4 sm:$0xff] %v1558_v32  ;;  %v1390_v41 = vadd.f32 %v8660_v10, %v1337_v36 }
 0x112   : > { %v1439_v42 = vmax.f32 %v1390_v41, 0.0  ;;  %v8175_v41 = vld [vmem:[%s8587_s25 + $0x104] sm:$0xf0] }
 0x113   : > { %v1095_v44 = vpop.f32.mrf.mxu0  ;;  %v1235_v51 = vpop.f32.mrf.mxu1 }
 0x114   : > { %v1559_v45 = vrot.slane %v1439_v42, 2  ;;  %v1560_v46 = vrot.slane %v1439_v42, 4  ;;  %v1561_v48 = vrot.slane %v1439_v42, 6  ;;  %1735 = vst [vmem:[#allocation1 + $0x2] ss:$4 sm:$0xff] %v1439_v42  ;;  %v1229_v50 = vadd.f32 %v1228_v4, %v1095_v44 }
 0x115   : > { %v8738_v52 = vld.sshfl [vmem:[#allocation1 + $0x20] sm:$0xff pattern:$0x73625140]  ;;  %v7690_v44 = vor.u32 %v8175_v41, %v7689_v39 }
 0x116   : > { %1736 = vst [vmem:[#allocation1 + $0x3] ss:$4 sm:$0xff] %v1559_v45  ;;  %v1338_v53 = vmul.f32 %v8655_v6, %v1229_v50  ;;  %1134 = vmatmul.bf16.gmra.mxu0 %v7674_v43 }
 0x117   : > { %1737 = vst [vmem:[#allocation1 + $0x20] ss:$4 sm:$0xff] %v1560_v46 }
 0x118   : > { %1738 = vst [vmem:[#allocation1 + $0x21] ss:$4 sm:$0xff] %v1561_v48  ;;  %v1391_v54 = vadd.f32 %v8660_v10, %v1338_v53 }
 0x11a   : > { %v1440_v57 = vmax.f32 %v1391_v54, 0.0 }
 0x11b   : > { %v1097_v58 = vpop.f32.mrf.mxu0  ;;  %v1238_v2 = vpop.f32.mrf.mxu1 }
 0x11c   : > { %v1562_v61 = vrot.slane %v1440_v57, 2  ;;  %v1563_v62 = vrot.slane %v1440_v57, 4  ;;  %v1564_v0 = vrot.slane %v1440_v57, 6  ;;  %1739 = vst [vmem:[#allocation1 + $0x22] ss:$4 sm:$0xff] %v1440_v57  ;;  %v1231_v1 = vadd.f32 %v1230_v20, %v1097_v58 }
 0x11d   : > { %v8744_v3 = vld.sshfl [vmem:[#allocation1] sm:$0xff pattern:$0x73625140] }
 0x11e   : > { %1742 = vst [vmem:[#allocation1] ss:$4 sm:$0xff] %v1562_v61  ;;  %v1339_v4 = vmul.f32 %v8655_v6, %v1231_v1  ;;  %7807 = vmatmul.msk.bf16.gmra.mxu1 %vm980_vm0, %v7694_v59  ;;  %v8178_v58 = vld [vmem:[%s8587_s25 + $0x124] sm:$0xf]  ;;  %v7707_v59 = vld [vmem:[%s8587_s25 + $0x128] sm:$0xf0] }
 0x11f   : > { %1743 = vst [vmem:[#allocation1 + $0x1] ss:$4 sm:$0xff] %v1563_v62 }
 0x120   : > { %1744 = vst [vmem:[#allocation1 + $0x2] ss:$4 sm:$0xff] %v1564_v0  ;;  %v1392_v8 = vadd.f32 %v8660_v10, %v1339_v4  ;;  %v7710_v0 = vor.u32 %v8178_v58, %v7707_v59  ;;  %v8179_v58 = vld [vmem:[%s8587_s25 + $0x124] sm:$0xf0]  ;;  %v1935_v59 = vrot.slane %v8685_v63, 7 }
 0x122   : > { %v1441_v11 = vmax.f32 %v1392_v8, 0.0 }
 0x123   : > { %v1100_v14 = vpop.f32.mrf.mxu0  ;;  %v1240_v19 = vpop.f32.mrf.mxu1  ;;  %v8751_v20 = vld.sshfl [vmem:[#allocation1 + $0x20] sm:$0xff pattern:$0x73625140] }
 0x124   : > { %v1565_v15 = vrot.slane %v1441_v11, 2  ;;  %v1566_v16 = vrot.slane %v1441_v11, 4  ;;  %v1567_v17 = vrot.slane %v1441_v11, 6  ;;  %1745 = vst [vmem:[#allocation1 + $0x3] ss:$4 sm:$0xff] %v1441_v11  ;;  %v1234_v18 = vadd.f32 %v1233_v34, %v1100_v14 }
 0x125   : > { %v8177_v14 = vld [vmem:[%s8587_s25 + $0x114] sm:$0xf0] }
 0x126   : > { %1746 = vst [vmem:[#allocation1 + $0x20] ss:$4 sm:$0xff] %v1565_v15  ;;  %v1340_v22 = vmul.f32 %v8655_v6, %v1234_v18  ;;  %1139 = vmatmul.bf16.gmra.mxu0 %v7682_v12  ;;  %v7697_v12 = vld [vmem:[%s8587_s25 + $0x110] sm:$0xf] }
 0x127   : > { %1747 = vst [vmem:[#allocation1 + $0x21] ss:$4 sm:$0xff] %v1566_v16 }
 0x128   : > { %1748 = vst [vmem:[#allocation1 + $0x22] ss:$4 sm:$0xff] %v1567_v17  ;;  %v1393_v23 = vadd.f32 %v8660_v10, %v1340_v22  ;;  %v7698_v17 = vor.u32 %v8177_v14, %v7697_v12 }
 0x12a   : > { %v1442_v27 = vmax.f32 %v1393_v23, 0.0 }
 0x12b   : > { %v8757_v28 = vld.sshfl [vmem:[#allocation1] sm:$0xff pattern:$0x73625140]  ;;  %v1102_v29 = vpop.f32.mrf.mxu0  ;;  %v1243_v36 = vpop.f32.mrf.mxu1 }
 0x12c   : > { %v1568_v31 = vrot.slane %v1442_v27, 2  ;;  %v1569_v32 = vrot.slane %v1442_v27, 4  ;;  %v1570_v33 = vrot.slane %v1442_v27, 6  ;;  %1751 = vst [vmem:[#allocation1] ss:$4 sm:$0xff] %v1442_v27  ;;  %v1236_v34 = vadd.f32 %v1235_v51, %v1102_v29 }
 0x12e   : > { %1752 = vst [vmem:[#allocation1 + $0x1] ss:$4 sm:$0xff] %v1568_v31  ;;  %v1341_v38 = vmul.f32 %v8655_v6, %v1236_v34  ;;  %7808 = vmatmul.msk.bf16.gmra.mxu1 %vm980_vm0, %v7702_v30  ;;  %v1932_v31 = vrot.slane %v8672_v37, 7 }
 0x12f   : > { %1753 = vst [vmem:[#allocation1 + $0x2] ss:$4 sm:$0xff] %v1569_v32  ;;  %v8764_v45 = vld.sshfl [vmem:[#allocation1 + $0x20] sm:$0xff pattern:$0x73625140] }
 0x130   : > { %1754 = vst [vmem:[#allocation1 + $0x3] ss:$4 sm:$0xff] %v1570_v33  ;;  %v1394_v42 = vadd.f32 %v8660_v10, %v1341_v38  ;;  %v8180_v32 = vld [vmem:[%s8587_s25 + $0x134] sm:$0xf]  ;;  %v7715_v33 = vld [vmem:[%s8587_s25 + $0x138] sm:$0xf0] }
 0x131   : > { %v7718_v39 = vor.u32 %v8180_v32, %v7715_v33 }
 0x132   : > { %v1443_v43 = vmax.f32 %v1394_v42, 0.0 }
 0x133   : > { %v1105_v46 = vpop.f32.mrf.mxu0  ;;  %v1245_v54 = vpop.f32.mrf.mxu1 }
 0x134   : > { %v1571_v48 = vrot.slane %v1443_v43, 2  ;;  %v1572_v50 = vrot.slane %v1443_v43, 4  ;;  %v1573_v51 = vrot.slane %v1443_v43, 6  ;;  %1755 = vst [vmem:[#allocation1 + $0x20] ss:$4 sm:$0xff] %v1443_v43  ;;  %v1239_v53 = vadd.f32 %v1238_v2, %v1105_v46 }
 0x136   : > { %1756 = vst [vmem:[#allocation1 + $0x21] ss:$4 sm:$0xff] %v1571_v48  ;;  %v1342_v55 = vmul.f32 %v8655_v6, %v1239_v53  ;;  %1144 = vmatmul.bf16.gmra.mxu0 %v7690_v44  ;;  %v2072_v53 = vsel %vm1931_vm1, 0.0, %v1932_v31 }
 0x137   : > { %v8767_v56 = vld.sshfl [vmem:[#allocation1] sm:$0xff pattern:$0x73625140]  ;;  %1757 = vst [vmem:[#allocation1 + $0x22] ss:$4 sm:$0xff] %v1572_v50 }
 0x138   : > { %1760 = vst [vmem:[#allocation1] ss:$4 sm:$0xff] %v1573_v51  ;;  %v1395_v57 = vadd.f32 %v8660_v10, %v1342_v55  ;;  %v1936_v51 = vrot.slane %v8690_v13, 7 }
 0x13a   : > { %v1444_v61 = vmax.f32 %v1395_v57, 0.0  ;;  %v7705_v57 = vld [vmem:[%s8587_s25 + $0x120] sm:$0xf]  ;;  %v1937_v13 = vsel %vm1931_vm1, %v1935_v59, %v1936_v51 }
 0x13b   : > { %v1107_v62 = vpop.f32.mrf.mxu0  ;;  %v8772_v7 = vpop.f32.mrf.mxu1 }
 0x13c   : > { %v1574_v1 = vrot.slane %v1444_v61, 2  ;;  %v1575_v2 = vrot.slane %v1444_v61, 4  ;;  %v1576_v4 = vrot.slane %v1444_v61, 6  ;;  %1761 = vst [vmem:[#allocation1 + $0x1] ss:$4 sm:$0xff] %v1444_v61  ;;  %v1241_v5 = vadd.f32 %v1240_v19, %v1107_v62 }
 0x13d   : > { %v1933_v19 = vrot.slane %v8677_v49, 7  ;;  %v2185_v61 = vrot.slane %v2072_v53, 1 }
 0x13e   : > { %v8774_v8 = vld.sshfl [vmem:[#allocation1 + $0x20] sm:$0xff pattern:$0x73625140]  ;;  %1762 = vst [vmem:[#allocation1 + $0x2] ss:$4 sm:$0xff] %v1574_v1  ;;  %v1343_v11 = vmul.f32 %v8655_v6, %v1241_v5  ;;  %7809 = vmatmul.msk.bf16.gmra.mxu1 %vm980_vm0, %v7710_v0  ;;  %v7706_v0 = vor.u32 %v8179_v58, %v7705_v57 }
 0x13f   : > { %1763 = vst [vmem:[#allocation1 + $0x3] ss:$4 sm:$0xff] %v1575_v2  ;;  %v1934_v34 = vsel %vm1931_vm1, %v1932_v31, %v1933_v19  ;;  %v2382_v19 = vrot.slane %v2072_v53, 2  ;;  %v2073_v31 = vsel %vm1931_vm1, 0.0, %v1935_v59  ;;  %v8181_v57 = vld [vmem:[%s8587_s25 + $0x134] sm:$0xf0] }
 0x140   : > { %1764 = vst [vmem:[#allocation1 + $0x20] ss:$4 sm:$0xff] %v1576_v4  ;;  %v1396_v15 = vadd.f32 %v8660_v10, %v1343_v11  ;;  %v8793_v41 = vsel %vm2100_vm2, %v1934_v34, 0.0  ;;  %v2188_v51 = vrot.slane %v2073_v31, 1 }
 0x141   : > { %v2186_v55 = vrot.slane %v8793_v41, 1  ;;  %v2383_v63 = vrot.slane %v8793_v41, 2 }
 0x142   : > { %v1445_v16 = vmax.f32 %v1396_v15, 0.0 }
 0x143   : > { %v1110_v18 = vpop.f32.mrf.mxu0  ;;  %v8782_v27 = vpop.f32.mrf.mxu1  ;;  %v2187_v2 = vsel %vm2100_vm2, %v2185_v61, %v2186_v55 }
 0x144   : > { %v1577_v22 = vrot.slane %v1445_v16, 2  ;;  %v1578_v23 = vrot.slane %v1445_v16, 4  ;;  %v1579_v24 = vrot.slane %v1445_v16, 6  ;;  %1765 = vst [vmem:[#allocation1 + $0x21] ss:$4 sm:$0xff] %v1445_v16  ;;  %v1244_v25 = vadd.f32 %v1243_v36, %v1110_v18 }
 0x145   : > { %v8818_v18 = vsel %vm2100_vm2, %v1937_v13, 0.0 }
 0x146   : > { %v8784_v29 = vld.sshfl [vmem:[#allocation1] sm:$0xff pattern:$0x73625140]  ;;  %1766 = vst [vmem:[#allocation1 + $0x22] ss:$4 sm:$0xff] %v1577_v22  ;;  %v1344_v30 = vmul.f32 %v8655_v6, %v1244_v25  ;;  %1149 = vmatmul.bf16.gmra.mxu0 %v7698_v17  ;;  %v2325_v17 = vmax.f32 %v2072_v53, %v2187_v2  ;;  %v2384_v25 = vsel %vm2381_vm3, %v2382_v19, %v2383_v63 }
 0x147   : > { %1769 = vst [vmem:[#allocation1] ss:$4 sm:$0xff] %v1578_v23  ;;  %v8182_v22 = vld [vmem:[%s8587_s25 + $0x144] sm:$0xf]  ;;  %v7723_v23 = vld [vmem:[%s8587_s25 + $0x148] sm:$0xf0] }
 0x148   : > { %1770 = vst [vmem:[#allocation1 + $0x1] ss:$4 sm:$0xff] %v1579_v24  ;;  %v1397_v49 = vadd.f32 %v8660_v10, %v1344_v30  ;;  %v1939_v24 = vrot.slane %v8703_v40, 7  ;;  %v8827_v32 = vmax.f32 %v2325_v17, %v2384_v25  ;;  %v7726_v34 = vor.u32 %v8182_v22, %v7723_v23 }
 0x14a   : > { %v1446_v36 = vmax.f32 %v1397_v49, 0.0  ;;  %v2326_v49 = vmax.f32 %v8793_v41, %v2186_v55  ;;  %v2606_v53 = vrot.slane %v8827_v32, 1  ;;  %v7713_v55 = vld [vmem:[%s8587_s25 + $0x130] sm:$0xf] }
 0x14b   : > { %v1112_v38 = vpop.f32.mrf.mxu0  ;;  %v8795_v46 = vpop.f32.mrf.mxu1  ;;  %v7714_v13 = vor.u32 %v8181_v57, %v7713_v55 }
 0x14c   : > { %v1580_v42 = vrot.slane %v1446_v36, 2  ;;  %v1581_v37 = vrot.slane %v1446_v36, 4  ;;  %v1582_v43 = vrot.slane %v1446_v36, 6  ;;  %1771 = vst [vmem:[#allocation1 + $0x2] ss:$4 sm:$0xff] %v1446_v36  ;;  %v1246_v44 = vadd.f32 %v1245_v54, %v1112_v38 }
 0x14d   : > { %v8797_v48 = vld.sshfl [vmem:[#allocation1 + $0x20] sm:$0xff pattern:$0x73625140]  ;;  %v1938_v36 = vrot.slane %v8697_v26, 7  ;;  %v1942_v38 = vrot.slane %v8716_v60, 7  ;;  %v1941_v60 = vrot.slane %v8710_v47, 7  ;;  %v8845_v58 = vmax.f32 %v2326_v49, %v2383_v63 }
 0x14e   : > { %1772 = vst [vmem:[#allocation1 + $0x3] ss:$4 sm:$0xff] %v1580_v42  ;;  %v1345_v50 = vmul.f32 %v8655_v6, %v1246_v44  ;;  %7810 = vmatmul.msk.bf16.gmra.mxu1 %vm980_vm0, %v7718_v39  ;;  %v2189_v39 = vrot.slane %v8818_v18, 1  ;;  %v2385_v47 = vrot.slane %v2073_v31, 2  ;;  %v2970_v17 = vsel %vm1931_vm1, %v8827_v32, %v2606_v53 }
 0x14f   : > { %1773 = vst [vmem:[#allocation1 + $0x20] ss:$4 sm:$0xff] %v1581_v37  ;;  %v1943_v59 = vsel %vm1931_vm1, %v1941_v60, %v1942_v38  ;;  %v8855_v2 = vsel %vm1931_vm1, 0.0, %v1938_v36  ;;  %v2858_v49 = vrot.slane %v8845_v58, 5 }
 0x150   : > { %1774 = vst [vmem:[#allocation1 + $0x21] ss:$4 sm:$0xff] %v1582_v43  ;;  %v1398_v54 = vadd.f32 %v8660_v10, %v1345_v50  ;;  %v1940_v50 = vsel %vm1931_vm1, %v1938_v36, %v1939_v24  ;;  %v2191_v25 = vrot.slane %v8855_v2, 1  ;;  %v2388_v57 = vrot.slane %v8855_v2, 2 }
 0x151   : > { %v8850_v61 = vsel %vm2100_vm2, %v1940_v50, 0.0 }
 0x152   : > { %v1447_v62 = vmax.f32 %v1398_v54, 0.0  ;;  %v2192_v63 = vrot.slane %v8850_v61, 1 }
 0x153   : > { %v1115_v1 = vpop.f32.mrf.mxu0  ;;  %v8811_v14 = vpop.f32.mrf.mxu1 }
 0x154   : > { %v1583_v4 = vrot.slane %v1447_v62, 2  ;;  %v1584_v5 = vrot.slane %v1447_v62, 4  ;;  %v1585_v11 = vrot.slane %v1447_v62, 6  ;;  %1775 = vst [vmem:[#allocation1 + $0x22] ss:$4 sm:$0xff] %v1447_v62  ;;  %v1249_v12 = vadd.f32 %v8772_v7, %v1115_v1 }
 0x155   : > { %v8813_v15 = vld.sshfl [vmem:[#allocation1] sm:$0xff pattern:$0x73625140]  ;;  %v2386_v62 = vrot.slane %v8818_v18, 2 }
 0x156   : > { %1778 = vst [vmem:[#allocation1] ss:$4 sm:$0xff] %v1583_v4  ;;  %v1346_v16 = vmul.f32 %v8655_v6, %v1249_v12  ;;  %1154 = vmatmul.bf16.gmra.mxu0 %v7706_v0  ;;  %v2662_v0 = vrot.slane %v8827_v32, 2  ;;  %v8860_v12 = vsel %vm2100_vm2, %v1943_v59, 0.0 }
 0x157   : > { %1779 = vst [vmem:[#allocation1 + $0x1] ss:$4 sm:$0xff] %v1584_v5  ;;  %v2195_v38 = vrot.slane %v8860_v12, 1 }
 0x158   : > { %1780 = vst [vmem:[#allocation1 + $0x2] ss:$4 sm:$0xff] %v1585_v11  ;;  %v1399_v7 = vadd.f32 %v8660_v10, %v1346_v16  ;;  %v2802_v16 = vrot.slane %v8845_v58, 4  ;;  %v2999_v36 = vsel %vm2998_vm4, %v2970_v17, %v2662_v0  ;;  %v1944_v17 = vrot.slane %v8721_v9, 7 }
 0x159   : > { %v1948_v9 = vrot.slane %v8738_v52, 7 }
 0x15a   : > { %v1448_v30 = vmax.f32 %v1399_v7, 0.0 }
 0x15b   : > { %v1117_v33 = vpop.f32.mrf.mxu0  ;;  %v8833_v44 = vpop.f32.mrf.mxu1  ;;  %v8835_v41 = vld.sshfl [vmem:[#allocation1 + $0x20] sm:$0xff pattern:$0x73625140] }
 0x15c   : > { %v1586_v40 = vrot.slane %v1448_v30, 2  ;;  %v1587_v42 = vrot.slane %v1448_v30, 4  ;;  %v1588_v37 = vrot.slane %v1448_v30, 6  ;;  %1781 = vst [vmem:[#allocation1 + $0x3] ss:$4 sm:$0xff] %v1448_v30  ;;  %v1251_v43 = vadd.f32 %v8782_v27, %v1117_v33 }
 0x15d   : > { %v2190_v27 = vsel %vm2100_vm2, %v2188_v51, %v2189_v39  ;;  %v2328_v30 = vmax.f32 %v8818_v18, %v2189_v39  ;;  %v2193_v18 = vsel %vm2100_vm2, %v2191_v25, %v2192_v63  ;;  %v2718_v39 = vrot.slane %v8827_v32, 3  ;;  %v8183_v25 = vld [vmem:[%s8587_s25 + $0x144] sm:$0xf0] }
 0x15e   : > { %1782 = vst [vmem:[#allocation1 + $0x20] ss:$4 sm:$0xff] %v1586_v40  ;;  %v1347_v26 = vmul.f32 %v8655_v6, %v1251_v43  ;;  %7811 = vmatmul.msk.bf16.gmra.mxu1 %vm980_vm0, %v7726_v34  ;;  %v2327_v4 = vmax.f32 %v2073_v31, %v2190_v27  ;;  %v2387_v31 = vsel %vm2381_vm3, %v2385_v47, %v2386_v62  ;;  %v2075_v34 = vsel %vm1931_vm1, 0.0, %v1941_v60  ;;  %v7731_v43 = vld [vmem:[%s8587_s25 + $0x158] sm:$0xf0] }
 0x15f   : > { %1783 = vst [vmem:[#allocation1 + $0x21] ss:$4 sm:$0xff] %v1587_v42  ;;  %v2914_v40 = vrot.slane %v8845_v58, 6  ;;  %v2194_v50 = vrot.slane %v2075_v34, 1  ;;  %v2389_v51 = vrot.slane %v8850_v61, 2  ;;  %v3028_v60 = vsel %vm3027_vm5, %v2999_v36, %v2718_v39 }
 0x160   : > { %1784 = vst [vmem:[#allocation1 + $0x22] ss:$4 sm:$0xff] %v1588_v37  ;;  %v1400_v54 = vadd.f32 %v8660_v10, %v1347_v26  ;;  %v8184_v37 = vld [vmem:[%s8587_s25 + $0x154] sm:$0xf]  ;;  %v8888_v26 = vmax.f32 %v2328_v30, %v2386_v62  ;;  %v2329_v55 = vmax.f32 %v8855_v2, %v2193_v18  ;;  %v1945_v47 = vrot.slane %v8725_v21, 7 }
 0x161   : > { %v7734_v59 = vor.u32 %v8184_v37, %v7731_v43  ;;  %v2196_v62 = vsel %vm2100_vm2, %v2194_v50, %v2195_v38  ;;  %v2390_v21 = vsel %vm2381_vm3, %v2388_v57, %v2389_v51  ;;  %v1947_v39 = vrot.slane %v8731_v35, 7 }
 0x162   : > { %v1449_v1 = vmax.f32 %v1400_v54, 0.0  ;;  %v2331_v30 = vmax.f32 %v2075_v34, %v2196_v62  ;;  %v2803_v18 = vrot.slane %v8888_v26, 4 }
 0x163   : > { %v8857_v5 = vld.sshfl [vmem:[#allocation1] sm:$0xff pattern:$0x73625140]  ;;  %v1120_v11 = vpop.f32.mrf.mxu0  ;;  %v8867_v24 = vpop.f32.mrf.mxu1 }
 0x164   : > { %v1589_v19 = vrot.slane %v1449_v1, 2  ;;  %v1590_v7 = vrot.slane %v1449_v1, 4  ;;  %v1591_v22 = vrot.slane %v1449_v1, 6  ;;  %1787 = vst [vmem:[#allocation1] ss:$4 sm:$0xff] %v1449_v1  ;;  %v1254_v23 = vadd.f32 %v8795_v46, %v1120_v11 }
 0x165   : > { %v8875_v46 = vmax.f32 %v2327_v4, %v2387_v31  ;;  %v8910_v31 = vmax.f32 %v2329_v55, %v2390_v21 }
 0x166   : > { %1788 = vst [vmem:[#allocation1 + $0x1] ss:$4 sm:$0xff] %v1589_v19  ;;  %v1348_v33 = vmul.f32 %v8655_v6, %v1254_v23  ;;  %1159 = vmatmul.bf16.gmra.mxu0 %v7714_v13  ;;  %v2391_v19 = vrot.slane %v2075_v34, 2  ;;  %v7721_v23 = vld [vmem:[%s8587_s25 + $0x140] sm:$0xf]  ;;  %v3057_v34 = vsel %vm3056_vm6, %v3028_v60, %v2802_v16  ;;  %v1949_v16 = vsel %vm1931_vm1, %v1947_v39, %v1948_v9 }
 0x167   : > { %1789 = vst [vmem:[#allocation1 + $0x2] ss:$4 sm:$0xff] %v1590_v7  ;;  %v2607_v32 = vrot.slane %v8875_v46, 1  ;;  %v8894_v27 = vld.sshfl [vmem:[#allocation1 + $0x20] sm:$0xff pattern:$0x73625140]  ;;  %v7722_v43 = vor.u32 %v8183_v25, %v7721_v23  ;;  %v3086_v9 = vsel %vm3085_vm7, %v3057_v34, %v2858_v49 }
 0x168   : > { %1790 = vst [vmem:[#allocation1 + $0x3] ss:$4 sm:$0xff] %v1591_v22  ;;  %v1401_v42 = vadd.f32 %v8660_v10, %v1348_v33  ;;  %v2663_v0 = vrot.slane %v8875_v46, 2  ;;  %v2392_v7 = vrot.slane %v8860_v12, 2  ;;  %v8186_v25 = vld [vmem:[%s8587_s25 + $0x164] sm:$0xf] }
 0x16a   : > { %v1450_v53 = vmax.f32 %v1401_v42, 0.0  ;;  %v2330_v42 = vmax.f32 %v8850_v61, %v2192_v63  ;;  %v2393_v52 = vsel %vm2381_vm3, %v2391_v19, %v2392_v7  ;;  %v2719_v61 = vrot.slane %v8875_v46, 3 }
 0x16b   : > { %v1122_v54 = vpop.f32.mrf.mxu0  ;;  %v8902_v11 = vpop.f32.mrf.mxu1  ;;  %v8932_v50 = vmax.f32 %v2331_v30, %v2393_v52  ;;  %v2859_v63 = vrot.slane %v8888_v26, 5  ;;  %v2720_v19 = vrot.slane %v8910_v31, 3  ;;  %v7739_v30 = vld [vmem:[%s8587_s25 + $0x168] sm:$0xf0] }
 0x16c   : > { %v1592_v1 = vrot.slane %v1450_v53, 2  ;;  %v1593_v13 = vrot.slane %v1450_v53, 4  ;;  %v1594_v4 = vrot.slane %v1450_v53, 6  ;;  %1791 = vst [vmem:[#allocation1 + $0x20] ss:$4 sm:$0xff] %v1450_v53  ;;  %v1256_v2 = vadd.f32 %v8811_v14, %v1122_v54 }
 0x16d   : > { %v2971_v14 = vsel %vm1931_vm1, %v8875_v46, %v2607_v32  ;;  %v2608_v53 = vrot.slane %v8910_v31, 1  ;;  %v8947_v62 = vmax.f32 %v2330_v42, %v2389_v51  ;;  %v2332_v51 = vmax.f32 %v8860_v12, %v2195_v38  ;;  %v8974_v38 = vld [vmem:[%s14228_s28] ss:$0 sm:$0xff] }
 0x16e   : > { %1792 = vst [vmem:[#allocation1 + $0x21] ss:$4 sm:$0xff] %v1592_v1  ;;  %v1349_v22 = vmul.f32 %v8655_v6, %v1256_v2  ;;  %7812 = vmatmul.msk.bf16.gmra.mxu1 %vm980_vm0, %v7734_v59  ;;  %v1946_v6 = vsel %vm1931_vm1, %v1944_v17, %v1945_v47  ;;  %v8945_v47 = vsel %vm1931_vm1, 0.0, %v1944_v17  ;;  %v8966_v17 = vsel %vm2100_vm2, %v1949_v16, 0.0 }
 0x16f   : > { %v8914_v33 = vld.sshfl [vmem:[#allocation1] sm:$0xff pattern:$0x73625140]  ;;  %1793 = vst [vmem:[#allocation1 + $0x22] ss:$4 sm:$0xff] %v1593_v13  ;;  %v8937_v35 = vsel %vm2100_vm2, %v1946_v6, 0.0  ;;  %v2972_v2 = vsel %vm1931_vm1, %v8910_v31, %v2608_v53  ;;  %v7742_v34 = vor.u32 %v8186_v25, %v7739_v30 }
 0x170   : > { %1796 = vst [vmem:[#allocation1] ss:$4 sm:$0xff] %v1594_v4  ;;  %v1402_v36 = vadd.f32 %v8660_v10, %v1349_v22  ;;  %v3000_v10 = vsel %vm2998_vm4, %v2971_v14, %v2663_v0  ;;  %v2664_v0 = vrot.slane %v8910_v31, 2  ;;  %v2609_v4 = vrot.slane %v8932_v50, 1 }
 0x171   : > { %v3029_v1 = vsel %vm3027_vm5, %v3000_v10, %v2719_v61  ;;  %v2198_v21 = vrot.slane %v8937_v35, 1  ;;  %v2915_v22 = vrot.slane %v8888_v26, 6  ;;  %v2197_v31 = vrot.slane %v8945_v47, 1 }
 0x172   : > { %v1451_v37 = vmax.f32 %v1402_v36, 0.0  ;;  %v3058_v14 = vsel %vm3056_vm6, %v3029_v1, %v2803_v18  ;;  %v2665_v36 = vrot.slane %v8932_v50, 2  ;;  %v2804_v6 = vrot.slane %v8947_v62, 4 }
 0x173   : > { %v1125_v55 = vpop.f32.mrf.mxu0  ;;  %v8942_v59 = vpop.f32.mrf.mxu1  ;;  %v3001_v42 = vsel %vm2998_vm4, %v2972_v2, %v2664_v0  ;;  %v8988_v10 = vsel %vm1931_vm1, 0.0, %v1947_v39  ;;  %v2973_v18 = vsel %vm1931_vm1, %v8932_v50, %v2609_v4  ;;  %v2201_v53 = vrot.slane %v8966_v17, 1  ;;  %v7729_v4 = vld [vmem:[%s8587_s25 + $0x150] sm:$0xf]  ;;  %v8185_v2 = vld [vmem:[%s8587_s25 + $0x154] sm:$0xf0] }
 0x174   : > { %v1595_v60 = vrot.slane %v1451_v37, 2  ;;  %v1596_v57 = vrot.slane %v1451_v37, 4  ;;  %v1597_v32 = vrot.slane %v1451_v37, 6  ;;  %1797 = vst [vmem:[#allocation1 + $0x1] ss:$4 sm:$0xff] %v1451_v37  ;;  %v1259_v54 = vadd.f32 %v8833_v44, %v1125_v55 }
 0x175   : > { %v8956_v44 = vld [vmem:[%s14227_s19] ss:$0 sm:$0xff]  ;;  %v8992_v37 = vmax.f32 %v2332_v51, %v2392_v7  ;;  %v2394_v55 = vrot.slane %v8945_v47, 2  ;;  %v1950_v30 = vrot.slane %v8744_v3, 7  ;;  %v2397_v3 = vrot.slane %v8988_v10, 2 }
 0x176   : > { %v8951_v46 = vld.sshfl [vmem:[#allocation1 + $0x20] sm:$0xff pattern:$0x73625140]  ;;  %1798 = vst [vmem:[#allocation1 + $0x2] ss:$4 sm:$0xff] %v1595_v60  ;;  %v1350_v13 = vmul.f32 %v8956_v44, %v1259_v54  ;;  %1164 = vmatmul.bf16.gmra.mxu0 %v7722_v43  ;;  %v2199_v43 = vsel %vm2100_vm2, %v2197_v31, %v2198_v21  ;;  %v2200_v60 = vrot.slane %v8988_v10, 1  ;;  %v3002_v54 = vsel %vm2998_vm4, %v2973_v18, %v2665_v36 }
 0x177   : > { %1799 = vst [vmem:[#allocation1 + $0x3] ss:$4 sm:$0xff] %v1596_v57  ;;  %v2395_v57 = vrot.slane %v8937_v35, 2  ;;  %v2333_v51 = vmax.f32 %v8945_v47, %v2199_v43  ;;  %v2805_v58 = vrot.slane %v8992_v37, 4  ;;  %v2398_v31 = vrot.slane %v8966_v17, 2 }
 0x178   : > { %1800 = vst [vmem:[#allocation1 + $0x20] ss:$4 sm:$0xff] %v1597_v32  ;;  %v1403_v23 = vadd.f32 %v8974_v38, %v1350_v13  ;;  %v2721_v32 = vrot.slane %v8932_v50, 3  ;;  %v1951_v13 = vrot.slane %v8751_v20, 7  ;;  %v3087_v50 = vsel %vm3085_vm7, %v3058_v14, %v2859_v63 }
 0x179   : > { %v2202_v47 = vsel %vm2100_vm2, %v2200_v60, %v2201_v53  ;;  %v2396_v63 = vsel %vm2381_vm3, %v2394_v55, %v2395_v57 }
 0x17a   : > { %v1452_v52 = vmax.f32 %v1403_v23, 0.0  ;;  %v3114_v23 = vsel %vm2381_vm3, %v3086_v9, %v2914_v40  ;;  %v3031_v25 = vsel %vm3027_vm5, %v3002_v54, %v2721_v32  ;;  %v7730_v9 = vor.u32 %v8185_v2, %v7729_v4  ;;  %v7747_v4 = vld [vmem:[%s8587_s25 + $0x178] sm:$0xf0] }
 0x17b   : > { %v1127_v49 = vpop.f32.mrf.mxu0  ;;  %v9002_v7 = vpop.f32.mrf.mxu1  ;;  %v9036_v36 = vmax.f32 %v2333_v51, %v2396_v63  ;;  %v2335_v18 = vmax.f32 %v8988_v10, %v2202_v47  ;;  %v3115_v10 = vsel %vm2381_vm3, %v3087_v50, %v2915_v22  ;;  %v3142_v60 = vmax.f32 %v3114_v23, 0.0 }
 0x17c   : > { %v1598_v16 = vrot.slane %v1452_v52, 2  ;;  %v1599_v39 = vrot.slane %v1452_v52, 4  ;;  %v1600_v61 = vrot.slane %v1452_v52, 6  ;;  %1801 = vst [vmem:[#allocation1 + $0x21] ss:$4 sm:$0xff] %v1452_v52  ;;  %v1261_v12 = vadd.f32 %v8867_v24, %v1127_v49 }
 0x17d   : > { %v3030_v24 = vsel %vm3027_vm5, %v3001_v42, %v2720_v19  ;;  %v2860_v19 = vrot.slane %v8947_v62, 5  ;;  %v1952_v52 = vsel %vm1931_vm1, %v1950_v30, %v1951_v13  ;;  %v3060_v49 = vsel %vm3056_vm6, %v3031_v25, %v2805_v58 }
 0x17e   : > { %v9008_v0 = vld.sshfl [vmem:[#allocation1] sm:$0xff pattern:$0x73625140]  ;;  %1802 = vst [vmem:[#allocation1 + $0x22] ss:$4 sm:$0xff] %v1598_v16  ;;  %v1351_v1 = vmul.f32 %v8956_v44, %v1261_v12  ;;  %7813 = vmatmul.msk.bf16.gmra.mxu1 %vm980_vm0, %v7742_v34  ;;  %v3059_v40 = vsel %vm3056_vm6, %v3030_v24, %v2804_v6  ;;  %v2916_v12 = vrot.slane %v8947_v62, 6  ;;  %v2334_v2 = vmax.f32 %v8937_v35, %v2198_v21 }
 0x17f   : > { %1805 = vst [vmem:[#allocation1] ss:$4 sm:$0xff] %v1599_v39  ;;  %v2610_v54 = vrot.slane %v9036_v36, 1  ;;  %v9059_v26 = vsel %vm2100_vm2, %v1952_v52, 0.0  ;;  %v2917_v22 = vrot.slane %v8992_v37, 6  ;;  %v2666_v50 = vrot.slane %v9036_v36, 2 }
 0x180   : > { %1806 = vst [vmem:[#allocation1 + $0x1] ss:$4 sm:$0xff] %v1600_v61  ;;  %v1404_v20 = vadd.f32 %v8974_v38, %v1351_v1  ;;  %v2861_v61 = vrot.slane %v8992_v37, 5  ;;  %v3088_v1 = vsel %vm3085_vm7, %v3059_v40, %v2860_v19  ;;  %v8188_v24 = vld [vmem:[%s8587_s25 + $0x174] sm:$0xf]  ;;  %v9076_v37 = vsel %vm1931_vm1, 0.0, %v1950_v30 }
 0x181   : > { %v3116_v23 = vsel %vm2381_vm3, %v3088_v1, %v2916_v12  ;;  %v2974_v19 = vsel %vm1931_vm1, %v9036_v36, %v2610_v54  ;;  %v7750_v58 = vor.u32 %v8188_v24, %v7747_v4  ;;  %v1954_v21 = vrot.slane %v8764_v45, 7  ;;  %v7737_v12 = vld [vmem:[%s8587_s25 + $0x160] sm:$0xf]  ;;  %v8187_v35 = vld [vmem:[%s8587_s25 + $0x164] sm:$0xf0] }
 0x182   : > { %v1453_v14 = vmax.f32 %v1404_v20, 0.0  ;;  %v3089_v13 = vsel %vm3085_vm7, %v3060_v49, %v2861_v61  ;;  %v9073_v20 = vmax.f32 %v3142_v60, %v3115_v10  ;;  %v2204_v40 = vrot.slane %v9059_v26, 1 }
 0x183   : > { %v1130_v42 = vpop.f32.mrf.mxu0  ;;  %v9043_v16 = vpop.f32.mrf.mxu1  ;;  %v9081_v25 = vsel %vm2381_vm3, %v3089_v13, %v2917_v22  ;;  %v2203_v49 = vrot.slane %v9076_v37, 1  ;;  %v9094_v45 = vmax.f32 %v2334_v2, %v2395_v57  ;;  %v7738_v13 = vor.u32 %v8187_v35, %v7737_v12 }
 0x184   : > { %v1601_v34 = vrot.slane %v1453_v14, 2  ;;  %v1602_v43 = vrot.slane %v1453_v14, 4  ;;  %v1603_v55 = vrot.slane %v1453_v14, 6  ;;  %1807 = vst [vmem:[#allocation1 + $0x2] ss:$4 sm:$0xff] %v1453_v14  ;;  %v1264_v6 = vadd.f32 %v8902_v11, %v1130_v42 }
 0x185   : > { %v9045_v39 = vld.sshfl [vmem:[#allocation1 + $0x20] sm:$0xff pattern:$0x73625140]  ;;  %v2399_v11 = vsel %vm2381_vm3, %v2397_v3, %v2398_v31  ;;  %v2205_v57 = vsel %vm2100_vm2, %v2203_v49, %v2204_v40  ;;  %v2806_v54 = vrot.slane %v9094_v45, 4  ;;  %v1957_v2 = vrot.slane %v8774_v8, 7 }
 0x186   : > { %1808 = vst [vmem:[#allocation1 + $0x3] ss:$4 sm:$0xff] %v1601_v34  ;;  %v1352_v32 = vmul.f32 %v8956_v44, %v1264_v6  ;;  %1169 = vmatmul.bf16.gmra.mxu0 %v7730_v9  ;;  %v9061_v62 = vmax.f32 %v2335_v18, %v2399_v11  ;;  %v2722_v34 = vrot.slane %v9036_v36, 3  ;;  %v1953_v6 = vrot.slane %v8757_v28, 7 }
 0x187   : > { %1809 = vst [vmem:[#allocation1 + $0x20] ss:$4 sm:$0xff] %v1602_v43  ;;  %v3003_v43 = vsel %vm2998_vm4, %v2974_v19, %v2666_v50  ;;  %v3143_v36 = vmax.f32 %v3115_v10, %v3116_v23  ;;  %v2401_v11 = vrot.slane %v9059_v26, 2  ;;  %v2400_v23 = vrot.slane %v9076_v37, 2 }
 0x188   : > { %1810 = vst [vmem:[#allocation1 + $0x21] ss:$4 sm:$0xff] %v1603_v55  ;;  %v1405_v51 = vadd.f32 %v8974_v38, %v1352_v32  ;;  %v2611_v14 = vrot.slane %v9061_v62, 1  ;;  %v2667_v61 = vrot.slane %v9061_v62, 2  ;;  %v1955_v28 = vsel %vm1931_vm1, %v1953_v6, %v1954_v21 }
 0x189   : > { %v3170_v32 = vmax.f32 %v9073_v20, 0.0  ;;  %v3032_v1 = vsel %vm3027_vm5, %v3003_v43, %v2722_v34  ;;  %v9119_v22 = vmax.f32 %v3143_v36, %v9081_v25  ;;  %v9128_v50 = vsel %vm2100_vm2, %v1955_v28, 0.0 }
 0x18a   : > { %v1454_v47 = vmax.f32 %v1405_v51, 0.0  ;;  %v2337_v51 = vmax.f32 %v9076_v37, %v2205_v57  ;;  %v2079_v8 = vsel %vm1931_vm1, 0.0, %v1953_v6  ;;  %v2402_v37 = vsel %vm2381_vm3, %v2400_v23, %v2401_v11 }
 0x18b   : > { %v1132_v63 = vpop.f32.mrf.mxu0  ;;  %v9087_v18 = vpop.f32.mrf.mxu1  ;;  %v2862_v43 = vrot.slane %v9094_v45, 5  ;;  %v1960_v12 = vrot.slane %v8797_v48, 7  ;;  %v2918_v57 = vrot.slane %v9094_v45, 6  ;;  %v1959_v48 = vrot.slane %v8784_v29, 7 }
 0x18c   : > { %v1604_v9 = vrot.slane %v1454_v47, 2  ;;  %v1605_v42 = vrot.slane %v1454_v47, 4  ;;  %v1606_v52 = vrot.slane %v1454_v47, 6  ;;  %1811 = vst [vmem:[#allocation1 + $0x22] ss:$4 sm:$0xff] %v1454_v47  ;;  %v1266_v30 = vadd.f32 %v8942_v59, %v1132_v63 }
 0x18d   : > { %v9089_v3 = vld.sshfl [vmem:[#allocation1] sm:$0xff pattern:$0x73625140]  ;;  %v2336_v59 = vmax.f32 %v8966_v17, %v2201_v53  ;;  %v2975_v53 = vsel %vm1931_vm1, %v9061_v62, %v2611_v14  ;;  %v9149_v49 = vmax.f32 %v2337_v51, %v2402_v37  ;;  %v2404_v45 = vrot.slane %v9128_v50, 2 }
 0x18e   : > { %1814 = vst [vmem:[#allocation1] ss:$4 sm:$0xff] %v1604_v9  ;;  %v1353_v55 = vmul.f32 %v8956_v44, %v1266_v30  ;;  %7814 = vmatmul.msk.bf16.gmra.mxu1 %vm980_vm0, %v7750_v58  ;;  %v3004_v47 = vsel %vm2998_vm4, %v2975_v53, %v2667_v61  ;;  %v9136_v17 = vld [vmem:[%s8587_s25 + $0x180] sm:$0xff]  ;;  %v2723_v9 = vrot.slane %v9061_v62, 3  ;;  %v2207_v30 = vrot.slane %v9128_v50, 1 }
 0x18f   : > { %1815 = vst [vmem:[#allocation1 + $0x1] ss:$4 sm:$0xff] %v1605_v42  ;;  %v9124_v24 = vmax.f32 %v2336_v59, %v2398_v31  ;;  %v3061_v42 = vsel %vm3056_vm6, %v3032_v1, %v2806_v54  ;;  %v844_v34 = vunpack.c.h.b16 %v9136_v17  ;;  %v2206_v61 = vrot.slane %v2079_v8, 1 }
 0x190   : > { %1816 = vst [vmem:[#allocation1 + $0x2] ss:$4 sm:$0xff] %v1606_v52  ;;  %v1406_v60 = vadd.f32 %v8974_v38, %v1353_v55  ;;  %v3033_v55 = vsel %vm3027_vm5, %v3004_v47, %v2723_v9  ;;  %v3090_v36 = vsel %vm3085_vm7, %v3061_v42, %v2862_v43  ;;  %v2612_v53 = vrot.slane %v9149_v49, 1 }
 0x191   : > { %v2863_v35 = vrot.slane %v9124_v24, 5  ;;  %v2208_v28 = vsel %vm2100_vm2, %v2206_v61, %v2207_v30  ;;  %v2338_v29 = vmax.f32 %v9059_v26, %v2204_v40  ;;  %v2403_v42 = vrot.slane %v2079_v8, 2 }
 0x192   : > { %v1455_v10 = vmax.f32 %v1406_v60, 0.0  ;;  %v9191_v43 = vsel %vm2381_vm3, %v3090_v36, %v2918_v57  ;;  %v2081_v26 = vsel %vm1931_vm1, 0.0, %v1959_v48 }
 0x193   : > { %v1135_v4 = vpop.f32.mrf.mxu0  ;;  %v9133_v14 = vpop.f32.mrf.mxu1  ;;  %v9138_v31 = vld.sshfl [vmem:[#allocation1 + $0x20] sm:$0xff pattern:$0x73625140] }
 0x194   : > { %v1607_v19 = vrot.slane %v1455_v10, 2  ;;  %v1608_v63 = vrot.slane %v1455_v10, 4  ;;  %v1609_v58 = vrot.slane %v1455_v10, 6  ;;  %1817 = vst [vmem:[#allocation1 + $0x3] ss:$4 sm:$0xff] %v1455_v10  ;;  %v1269_v21 = vadd.f32 %v9002_v7, %v1135_v4 }
 0x195   : > { %v1956_v7 = vrot.slane %v8767_v56, 7  ;;  %v2807_v56 = vrot.slane %v9124_v24, 4 }
 0x196   : > { %1818 = vst [vmem:[#allocation1 + $0x20] ss:$4 sm:$0xff] %v1607_v19  ;;  %v1354_v52 = vmul.f32 %v8956_v44, %v1269_v21  ;;  %1174 = vmatmul.bf16.gmra.mxu0 %v7738_v13  ;;  %v894_v13 = vpack.c.b16 %v844_v34, %v844_v34  ;;  %v2339_v21 = vmax.f32 %v2079_v8, %v2208_v28  ;;  %v8189_v34 = vld [vmem:[%s8587_s25 + $0x174] sm:$0xf0] }
 0x197   : > { %1819 = vst [vmem:[#allocation1 + $0x21] ss:$4 sm:$0xff] %v1608_v63  ;;  %v1958_v59 = vsel %vm1931_vm1, %v1956_v7, %v1957_v2  ;;  %v3062_v54 = vsel %vm3056_vm6, %v3033_v55, %v2807_v56  ;;  %v1961_v63 = vsel %vm1931_vm1, %v1959_v48, %v1960_v12  ;;  %v2919_v56 = vrot.slane %v9124_v24, 6 }
 0x198   : > { %1820 = vst [vmem:[#allocation1 + $0x22] ss:$4 sm:$0xff] %v1609_v58  ;;  %v1407_v6 = vadd.f32 %v8974_v38, %v1354_v52  ;;  %v9171_v51 = vsel %vm2100_vm2, %v1958_v59, 0.0  ;;  %v2080_v58 = vsel %vm1931_vm1, 0.0, %v1956_v7  ;;  %v2668_v52 = vrot.slane %v9149_v49, 2 }
 0x199   : > { %v2210_v9 = vrot.slane %v9171_v51, 1  ;;  %v2976_v7 = vsel %vm1931_vm1, %v9149_v49, %v2612_v53  ;;  %v9195_v55 = vsel %vm2100_vm2, %v1961_v63, 0.0  ;;  %v2209_v8 = vrot.slane %v2080_v58, 1 }
 0x19a   : > { %v1456_v60 = vmax.f32 %v1407_v6, 0.0  ;;  %v2405_v6 = vsel %vm2381_vm3, %v2403_v42, %v2404_v45  ;;  %v9202_v59 = vmax.f32 %v2338_v29, %v2401_v11  ;;  %v3091_v12 = vsel %vm3085_vm7, %v3062_v54, %v2863_v35 }
 0x19b   : > { %v9167_v1 = vld.sshfl [vmem:[#allocation1] sm:$0xff pattern:$0x73625140]  ;;  %v1137_v10 = vpop.f32.mrf.mxu0  ;;  %v9175_v19 = vpop.f32.mrf.mxu1  ;;  %v9204_v61 = vmax.f32 %v2339_v21, %v2405_v6  ;;  %v2407_v28 = vrot.slane %v9171_v51, 2  ;;  %v2213_v11 = vrot.slane %v9195_v55, 1  ;;  %v1963_v24 = vrot.slane %v8835_v41, 7 }
 0x19c   : > { %v1610_v4 = vrot.slane %v1456_v60, 2  ;;  %v1611_v2 = vrot.slane %v1456_v60, 4  ;;  %v1612_v23 = vrot.slane %v1456_v60, 6  ;;  %1823 = vst [vmem:[#allocation1] ss:$4 sm:$0xff] %v1456_v60  ;;  %v1271_v47 = vadd.f32 %v9043_v16, %v1137_v10 }
 0x19d   : > { %v7745_v16 = vld [vmem:[%s8587_s25 + $0x170] sm:$0xf]  ;;  %v2211_v60 = vsel %vm2100_vm2, %v2209_v8, %v2210_v9  ;;  %v2406_v63 = vrot.slane %v2080_v58, 2  ;;  %v2724_v29 = vrot.slane %v9149_v49, 3  ;;  %v2808_v48 = vrot.slane %v9202_v59, 4  ;;  %s8447_s25 = smov 64  }
 0x19e   : > { %1824 = vst [vmem:[#allocation1 + $0x1] ss:$4 sm:$0xff] %v1610_v4  ;;  %v1355_v37 = vmul.f32 %v8956_v44, %v1271_v47  ;;  %7815 = vmatmul.msk.bf16.gmra.mxu1 %vm980_vm0, %v894_v13  ;;  %v7746_v36 = vor.u32 %v8189_v34, %v7745_v16  ;;  %v3005_v13 = vsel %vm2998_vm4, %v2976_v7, %v2668_v52  ;;  %v2613_v41 = vrot.slane %v9204_v61, 1 }
 0x19f   : > { %1825 = vst [vmem:[#allocation1 + $0x2] ss:$4 sm:$0xff] %v1611_v2  ;;  %v9212_v53 = vld.sshfl [vmem:[#allocation1 + $0x20] sm:$0xff pattern:$0x73625140]  ;;  %v2341_v47 = vmax.f32 %v2080_v58, %v2211_v60  ;;  %v1962_v42 = vrot.slane %v8813_v15, 7  ;;  %v3034_v58 = vsel %vm3027_vm5, %v3005_v13, %v2724_v29  ;;  %v9231_v49 = vsel %vm2381_vm3, %v3091_v12, %v2919_v56 }
 0x1a0   : > { %1826 = vst [vmem:[#allocation1 + $0x3] ss:$4 sm:$0xff] %v1612_v23  ;;  %v1408_v40 = vadd.f32 %v8974_v38, %v1355_v37  ;;  %v2212_v37 = vrot.slane %v2081_v26, 1  ;;  %v3144_v16 = vmax.f32 %v9081_v25, %v9191_v43  ;;  %v2408_v7 = vsel %vm2381_vm3, %v2406_v63, %v2407_v28 }
 0x1a1   : > { %v2340_v8 = vmax.f32 %v9128_v50, %v2207_v30  ;;  %v9246_v6 = vmax.f32 %v2341_v47, %v2408_v7  ;;  %v2669_v25 = vrot.slane %v9204_v61, 2  ;;  %v1966_v43 = vrot.slane %v8894_v27, 7 }
 0x1a2   : > { %v1457_v57 = vmax.f32 %v1408_v40, 0.0  ;;  %v2214_v15 = vsel %vm2100_vm2, %v2212_v37, %v2213_v11  ;;  %v1964_v40 = vsel %vm1931_vm1, %v1962_v42, %v1963_v24  ;;  %v2410_v12 = vrot.slane %v9195_v55, 2 }
 0x1a3   : > { %v1140_v10 = vpop.f32.mrf.mxu0  ;;  %v9219_v23 = vpop.f32.mrf.mxu1  ;;  %v2409_v13 = vrot.slane %v2081_v26, 2  ;;  %v1965_v24 = vrot.slane %v8857_v5, 7  ;;  %v9256_v30 = vsel %vm2100_vm2, %v1964_v40, 0.0  ;;  %v9263_v47 = vmax.f32 %v2340_v8, %v2404_v45 }
 0x1a4   : > { %v1613_v35 = vrot.slane %v1457_v57, 2  ;;  %v1614_v54 = vrot.slane %v1457_v57, 4  ;;  %v1615_v4 = vrot.slane %v1457_v57, 6  ;;  %1827 = vst [vmem:[#allocation1 + $0x20] ss:$4 sm:$0xff] %v1457_v57  ;;  %v1274_v2 = vadd.f32 %v9087_v18, %v1140_v10 }
 0x1a5   : > { %v2864_v18 = vrot.slane %v9202_v59, 5  ;;  %v2977_v57 = vsel %vm1931_vm1, %v9204_v61, %v2613_v41  ;;  %v2343_v10 = vmax.f32 %v2081_v26, %v2214_v15  ;;  %v2614_v63 = vrot.slane %v9246_v6, 1 }
 0x1a6   : > { %1828 = vst [vmem:[#allocation1 + $0x21] ss:$4 sm:$0xff] %v1613_v35  ;;  %v1356_v21 = vmul.f32 %v8956_v44, %v1274_v2  ;;  %1179 = vmatmul.bf16.gmra.mxu0 %v7746_v36  ;;  %v3063_v36 = vsel %vm3056_vm6, %v3034_v58, %v2808_v48  ;;  %v3006_v26 = vsel %vm2998_vm4, %v2977_v57, %v2669_v25  ;;  %v9276_v50 = vsel %vm1931_vm1, 0.0, %v1962_v42 }
 0x1a7   : > { %v9226_v52 = vld.sshfl [vmem:[#allocation1] sm:$0xff pattern:$0x73625140]  ;;  %1829 = vst [vmem:[#allocation1 + $0x22] ss:$4 sm:$0xff] %v1614_v54  ;;  %v1967_v5 = vsel %vm1931_vm1, %v1965_v24, %v1966_v43  ;;  %v2725_v37 = vrot.slane %v9204_v61, 3  ;;  %v9282_v41 = vmax.f32 %v3144_v16, %v9231_v49  ;;  %v3092_v15 = vsel %vm3085_vm7, %v3063_v36, %v2864_v18 }
 0x1a8   : > { %1832 = vst [vmem:[#allocation1] ss:$4 sm:$0xff] %v1615_v4  ;;  %v1409_v34 = vadd.f32 %v8974_v38, %v1356_v21  ;;  %v843_v21 = vunpack.c.l.b16 %v9136_v17  ;;  %v2216_v58 = vrot.slane %v9256_v30, 1  ;;  %v9289_v42 = vsel %vm2100_vm2, %v1967_v5, 0.0 }
 0x1a9   : > { %v2342_v7 = vmax.f32 %v9171_v51, %v2210_v9  ;;  %v2809_v61 = vrot.slane %v9263_v47, 4  ;;  %v3035_v16 = vsel %vm3027_vm5, %v3006_v26, %v2725_v37  ;;  %v2215_v40 = vrot.slane %v9276_v50, 1 }
 0x1aa   : > { %v1458_v56 = vmax.f32 %v1409_v34, 0.0  ;;  %v2920_v34 = vrot.slane %v9202_v59, 6  ;;  %v893_v25 = vpack.c.b16 %v843_v21, %v843_v21  ;;  %v2670_v43 = vrot.slane %v9246_v6, 2 }
 0x1ab   : > { %v1142_v60 = vpop.f32.mrf.mxu0  ;;  %v9259_v2 = vpop.f32.mrf.mxu1  ;;  %v2978_v59 = vsel %vm1931_vm1, %v9246_v6, %v2614_v63  ;;  %v9302_v57 = vsel %vm1931_vm1, 0.0, %v1965_v24  ;;  %v2217_v9 = vsel %vm2100_vm2, %v2215_v40, %v2216_v58  ;;  %v2219_v36 = vrot.slane %v9289_v42, 1 }
 0x1ac   : > { %v1616_v35 = vrot.slane %v1458_v56, 2  ;;  %v1617_v54 = vrot.slane %v1458_v56, 4  ;;  %v1618_v4 = vrot.slane %v1458_v56, 6  ;;  %1833 = vst [vmem:[#allocation1 + $0x1] ss:$4 sm:$0xff] %v1458_v56  ;;  %v1276_v27 = vadd.f32 %v9133_v14, %v1142_v60 }
 0x1ad   : > { %v2411_v14 = vsel %vm2381_vm3, %v2409_v13, %v2410_v12  ;;  %v3064_v24 = vsel %vm3056_vm6, %v3035_v16, %v2809_v61  ;;  %v2413_v63 = vrot.slane %v9256_v30, 2  ;;  %v3007_v51 = vsel %vm2998_vm4, %v2978_v59, %v2670_v43 }
 0x1ae   : > { %v9268_v29 = vld.sshfl [vmem:[#allocation1 + $0x20] sm:$0xff pattern:$0x73625140]  ;;  %1834 = vst [vmem:[#allocation1 + $0x2] ss:$4 sm:$0xff] %v1616_v35  ;;  %v1357_v48 = vmul.f32 %v8956_v44, %v1276_v27  ;;  %v9278_v45 = vmax.f32 %v2343_v10, %v2411_v14  ;;  %v3120_v27 = vsel %vm2381_vm3, %v3092_v15, %v2920_v34  ;;  %v2726_v21 = vrot.slane %v9246_v6, 3 }
 0x1af   : > { %1835 = vst [vmem:[#allocation1 + $0x3] ss:$4 sm:$0xff] %v1617_v54  ;;  %v2865_v14 = vrot.slane %v9263_v47, 5  ;;  %v2345_v37 = vmax.f32 %v9276_v50, %v2217_v9  ;;  %v2412_v15 = vrot.slane %v9276_v50, 2  ;;  %v2921_v6 = vrot.slane %v9263_v47, 6 }
 0x1b0   : > { %1836 = vst [vmem:[#allocation1 + $0x20] ss:$4 sm:$0xff] %v1618_v4  ;;  %v1410_v17 = vadd.f32 %v8974_v38, %v1357_v48  ;;  %v2615_v56 = vrot.slane %v9278_v45, 1  ;;  %v9313_v4 = vmax.f32 %v2342_v7, %v2407_v28  ;;  %v2218_v28 = vrot.slane %v9302_v57, 1 }
 0x1b1   : > { %v2671_v48 = vrot.slane %v9278_v45, 2  ;;  %v3036_v61 = vsel %vm3027_vm5, %v3007_v51, %v2726_v21  ;;  %v3093_v16 = vsel %vm3085_vm7, %v3064_v24, %v2865_v14  ;;  %v2416_v43 = vrot.slane %v9289_v42, 2 }
 0x1b2   : > { %v1459_v8 = vmax.f32 %v1410_v17, 0.0  ;;  %v2979_v34 = vsel %vm1931_vm1, %v9278_v45, %v2615_v56  ;;  %v2810_v7 = vrot.slane %v9313_v4, 4  ;;  %v9361_v24 = vsel %vm2381_vm3, %v3093_v16, %v2921_v6 }
 0x1b3   : > { %v1145_v18 = vpop.f32.mrf.mxu0  ;;  %v9309_v54 = vpop.f32.mrf.mxu1  ;;  %v3008_v59 = vsel %vm2998_vm4, %v2979_v34, %v2671_v48  ;;  %v2866_v51 = vrot.slane %v9313_v4, 5  ;;  %v1969_v48 = vrot.slane %v8951_v46, 7  ;;  %v1975_v34 = vrot.slane %v9138_v31, 7 }
 0x1b4   : > { %v1619_v60 = vrot.slane %v1459_v8, 2  ;;  %v1620_v10 = vrot.slane %v1459_v8, 4  ;;  %v1621_v13 = vrot.slane %v1459_v8, 6  ;;  %1837 = vst [vmem:[#allocation1 + $0x21] ss:$4 sm:$0xff] %v1459_v8  ;;  %v1279_v35 = vadd.f32 %v9175_v19, %v1145_v18 }
 0x1b5   : > { %v2344_v19 = vmax.f32 %v9195_v55, %v2213_v11  ;;  %v2220_v11 = vsel %vm2100_vm2, %v2218_v28, %v2219_v36  ;;  %v2415_v18 = vrot.slane %v9302_v57, 2  ;;  %v1968_v46 = vrot.slane %v8914_v33, 7 }
 0x1b6   : > { %v9318_v26 = vld.sshfl [vmem:[#allocation1] sm:$0xff pattern:$0x73625140]  ;;  %1838 = vst [vmem:[#allocation1 + $0x22] ss:$4 sm:$0xff] %v1619_v60  ;;  %v1358_v5 = vmul.f32 %v8956_v44, %v1279_v35  ;;  %1184 = vmatmul.bf16.gmra.mxu0 %v893_v25  ;;  %v2414_v25 = vsel %vm2381_vm3, %v2412_v15, %v2413_v63  ;;  %v2347_v47 = vmax.f32 %v9302_v57, %v2220_v11  ;;  %v2727_v35 = vrot.slane %v9278_v45, 3 }
 0x1b7   : > { %1841 = vst [vmem:[#allocation1] ss:$4 sm:$0xff] %v1620_v10  ;;  %v9343_v8 = vmax.f32 %v2344_v19, %v2410_v12  ;;  %v9352_v56 = vmax.f32 %v2345_v37, %v2414_v25  ;;  %v2417_v28 = vsel %vm2381_vm3, %v2415_v18, %v2416_v43  ;;  %v2922_v37 = vrot.slane %v9313_v4, 6 }
 0x1b8   : > { %1842 = vst [vmem:[#allocation1 + $0x1] ss:$4 sm:$0xff] %v1621_v13  ;;  %v1411_v17 = vadd.f32 %v8974_v38, %v1358_v5  ;;  %v3145_v5 = vmax.f32 %v9231_v49, %v3120_v27  ;;  %v3037_v45 = vsel %vm3027_vm5, %v3008_v59, %v2727_v35  ;;  %v9373_v21 = vmax.f32 %v2347_v47, %v2417_v28 }
 0x1b9   : > { %v2616_v49 = vrot.slane %v9352_v56, 1  ;;  %v2811_v14 = vrot.slane %v9343_v8, 4  ;;  %v2346_v15 = vmax.f32 %v9256_v30, %v2216_v58  ;;  %v2867_v6 = vrot.slane %v9343_v8, 5 }
 0x1ba   : > { %v1460_v40 = vmax.f32 %v1411_v17, 0.0  ;;  %v9380_v17 = vmax.f32 %v3145_v5, %v9361_v24  ;;  %v2672_v4 = vrot.slane %v9352_v56, 2  ;;  %v1970_v31 = vsel %vm1931_vm1, %v1968_v46, %v1969_v48 }
 0x1bb   : > { %v1147_v50 = vpop.f32.mrf.mxu0  ;;  %v9355_v10 = vpop.f32.mrf.mxu1  ;;  %v2617_v25 = vrot.slane %v9373_v21, 1  ;;  %v2980_v33 = vsel %vm1931_vm1, %v9352_v56, %v2616_v49  ;;  %v2673_v5 = vrot.slane %v9373_v21, 2  ;;  %v2728_v30 = vrot.slane %v9352_v56, 3 }
 0x1bc   : > { %v1622_v9 = vrot.slane %v1460_v40, 2  ;;  %v1623_v60 = vrot.slane %v1460_v40, 4  ;;  %v1624_v55 = vrot.slane %v1460_v40, 6  ;;  %1843 = vst [vmem:[#allocation1 + $0x2] ss:$4 sm:$0xff] %v1460_v40  ;;  %v1281_v12 = vadd.f32 %v9219_v23, %v1147_v50 }
 0x1bd   : > { %v9357_v13 = vld.sshfl [vmem:[#allocation1 + $0x20] sm:$0xff pattern:$0x73625140]  ;;  %v3065_v23 = vsel %vm3056_vm6, %v3036_v61, %v2810_v7  ;;  %14229 = vst [vmem:[#allocation3_spill] sm:$0xff] %v9380_v17  ;;  %v3066_v61 = vsel %vm3056_vm6, %v3037_v45, %v2811_v14  ;;  %v1974_v40 = vrot.slane %v9089_v3, 7  ;;  %v1978_v48 = vrot.slane %v9212_v53, 7 }
 0x1be   : > { %1844 = vst [vmem:[#allocation1 + $0x3] ss:$4 sm:$0xff] %v1622_v9  ;;  %v1359_v19 = vmul.f32 %v8956_v44, %v1281_v12  ;;  %v3094_v11 = vsel %vm3085_vm7, %v3065_v23, %v2866_v51  ;;  %v3095_v3 = vsel %vm3085_vm7, %v3066_v61, %v2867_v6  ;;  %v9408_v12 = vmax.f32 %v2346_v15, %v2413_v63 }
 0x1bf   : > { %1845 = vst [vmem:[#allocation1 + $0x20] ss:$4 sm:$0xff] %v1623_v60  ;;  %v1976_v60 = vsel %vm1931_vm1, %v1974_v40, %v1975_v34  ;;  %v9415_v51 = vsel %vm1931_vm1, 0.0, %v1968_v46  ;;  %v9418_v23 = vsel %vm2100_vm2, %v1970_v31, 0.0  ;;  %v3122_v28 = vsel %vm2381_vm3, %v3094_v11, %v2922_v37 }
 0x1c0   : > { %1846 = vst [vmem:[#allocation1 + $0x21] ss:$4 sm:$0xff] %v1624_v55  ;;  %v1412_v27 = vadd.f32 %v8974_v38, %v1359_v19  ;;  %v2348_v55 = vmax.f32 %v9289_v42, %v2219_v36  ;;  %v3009_v19 = vsel %vm2998_vm4, %v2980_v33, %v2672_v4  ;;  %v2981_v36 = vsel %vm1931_vm1, %v9373_v21, %v2617_v25 }
 0x1c1   : > { %v2812_v56 = vrot.slane %v9408_v12, 4  ;;  %v2221_v34 = vrot.slane %v9415_v51, 1  ;;  %v2222_v46 = vrot.slane %v9418_v23, 1  ;;  %v3010_v37 = vsel %vm2998_vm4, %v2981_v36, %v2673_v5 }
 0x1c2   : > { %v1461_v7 = vmax.f32 %v1412_v27, 0.0  ;;  %v9434_v49 = vmax.f32 %v2348_v55, %v2416_v43  ;;  %v3038_v27 = vsel %vm3027_vm5, %v3009_v19, %v2728_v30  ;;  %v1977_v15 = vrot.slane %v9167_v1, 7 }
 0x1c3   : > { %v1150_v16 = vpop.f32.mrf.mxu0  ;;  %v9397_v18 = vpop.f32.mrf.mxu1  ;;  %v2086_v53 = vsel %vm1931_vm1, 0.0, %v1974_v40  ;;  %v2729_v43 = vrot.slane %v9373_v21, 3  ;;  %v3146_v1 = vmax.f32 %v9361_v24, %v3122_v28  ;;  %v3067_v33 = vsel %vm3056_vm6, %v3038_v27, %v2812_v56 }
 0x1c4   : > { %v1625_v50 = vrot.slane %v1461_v7, 2  ;;  %v1626_v59 = vrot.slane %v1461_v7, 4  ;;  %v1627_v58 = vrot.slane %v1461_v7, 6  ;;  %1847 = vst [vmem:[#allocation1 + $0x22] ss:$4 sm:$0xff] %v1461_v7  ;;  %v1284_v47 = vadd.f32 %v9259_v2, %v1150_v16 }
 0x1c5   : > { %v9399_v9 = vld.sshfl [vmem:[#allocation1] sm:$0xff pattern:$0x73625140]  ;;  %v2923_v2 = vrot.slane %v9343_v8, 6  ;;  %v9425_v8 = vsel %vm2100_vm2, %v1976_v60, 0.0  ;;  %v1979_v25 = vsel %vm1931_vm1, %v1977_v15, %v1978_v48  ;;  %v3039_v40 = vsel %vm3027_vm5, %v3010_v37, %v2729_v43 }
 0x1c6   : > { %1850 = vst [vmem:[#allocation1] ss:$4 sm:$0xff] %v1625_v50  ;;  %v1360_v35 = vmul.f32 %v8956_v44, %v1284_v47  ;;  %v2228_v42 = vrot.slane %v9425_v8, 1  ;;  %v2227_v50 = vrot.slane %v2086_v53, 1  ;;  %v2813_v47 = vrot.slane %v9434_v49, 4 }
 0x1c7   : > { %1851 = vst [vmem:[#allocation1 + $0x1] ss:$4 sm:$0xff] %v1626_v59  ;;  %v9429_v45 = vsel %vm2381_vm3, %v3095_v3, %v2923_v2  ;;  %v2223_v59 = vsel %vm2100_vm2, %v2221_v34, %v2222_v46  ;;  %v2868_v24 = vrot.slane %v9408_v12, 5  ;;  %v2924_v60 = vrot.slane %v9408_v12, 6 }
 0x1c8   : > { %1852 = vst [vmem:[#allocation1 + $0x2] ss:$4 sm:$0xff] %v1627_v58  ;;  %v1413_v63 = vadd.f32 %v8974_v38, %v1360_v35  ;;  %v9458_v58 = vmax.f32 %v3146_v1, %v9429_v45  ;;  %v9465_v55 = vsel %vm2100_vm2, %v1979_v25, 0.0  ;;  %v2229_v35 = vsel %vm2100_vm2, %v2227_v50, %v2228_v42 }
 0x1c9   : > { %v2418_v2 = vrot.slane %v9415_v51, 2  ;;  %v2349_v5 = vmax.f32 %v9415_v51, %v2223_v59  ;;  %v2869_v19 = vrot.slane %v9434_v49, 5  ;;  %v3068_v30 = vsel %vm3056_vm6, %v3039_v40, %v2813_v47 }
 0x1ca   : > { %v1462_v14 = vmax.f32 %v1413_v63, 0.0  ;;  %14230 = vst [vmem:[#allocation4_spill] sm:$0xff] %v9458_v58  ;;  %v3096_v12 = vsel %vm3085_vm7, %v3067_v33, %v2868_v24  ;;  %v2425_v63 = vrot.slane %v9425_v8, 2  ;;  %v1972_v28 = vrot.slane %v9045_v39, 7 }
 0x1cb   : > { %v1152_v11 = vpop.f32.mrf.mxu0  ;;  %v9446_v16 = vpop.f32.mrf.mxu1  ;;  %v9448_v31 = vld.sshfl [vmem:[#allocation1 + $0x20] sm:$0xff pattern:$0x73625140]  ;;  %v2231_v51 = vrot.slane %v9465_v55, 1  ;;  %v2353_v34 = vmax.f32 %v2086_v53, %v2229_v35  ;;  %v2424_v37 = vrot.slane %v2086_v53, 2  ;;  %v1971_v39 = vrot.slane %v9008_v0, 7 }
 0x1cc   : > { %v1628_v7 = vrot.slane %v1462_v14, 2  ;;  %v1629_v6 = vrot.slane %v1462_v14, 4  ;;  %v1630_v61 = vrot.slane %v1462_v14, 6  ;;  %1853 = vst [vmem:[#allocation1 + $0x3] ss:$4 sm:$0xff] %v1462_v14  ;;  %v1286_v4 = vadd.f32 %v9309_v54, %v1152_v11 }
 0x1cd   : > { %v2419_v54 = vrot.slane %v9418_v23, 2  ;;  %v2087_v14 = vsel %vm1931_vm1, 0.0, %v1977_v15  ;;  %v3124_v15 = vsel %vm2381_vm3, %v3096_v12, %v2924_v60  ;;  %v2426_v40 = vsel %vm2381_vm3, %v2424_v37, %v2425_v63 }
 0x1ce   : > { %1854 = vst [vmem:[#allocation1 + $0x20] ss:$4 sm:$0xff] %v1628_v7  ;;  %v1361_v21 = vmul.f32 %v8956_v44, %v1286_v4  ;;  %v2350_v4 = vmax.f32 %v9418_v23, %v2222_v46  ;;  %v2230_v53 = vrot.slane %v2087_v14, 1  ;;  %v9495_v33 = vmax.f32 %v2353_v34, %v2426_v40 }
 0x1cf   : > { %1855 = vst [vmem:[#allocation1 + $0x21] ss:$4 sm:$0xff] %v1629_v6  ;;  %v2420_v48 = vsel %vm2381_vm3, %v2418_v2, %v2419_v54  ;;  %v1973_v23 = vsel %vm1931_vm1, %v1971_v39, %v1972_v28  ;;  %v2925_v46 = vrot.slane %v9434_v49, 6  ;;  %v3147_v59 = vmax.f32 %v9429_v45, %v3124_v15 }
 0x1d0   : > { %1856 = vst [vmem:[#allocation1 + $0x22] ss:$4 sm:$0xff] %v1630_v61  ;;  %v1414_v3 = vadd.f32 %v8974_v38, %v1361_v21  ;;  %v9487_v25 = vmax.f32 %v2349_v5, %v2420_v48  ;;  %v1981_v47 = vrot.slane %v9268_v29, 7  ;;  %v9507_v24 = vmax.f32 %v2350_v4, %v2419_v54 }
 0x1d1   : > { %v9515_v35 = vsel %vm1931_vm1, 0.0, %v1971_v39  ;;  %v9518_v2 = vsel %vm2100_vm2, %v1973_v23, 0.0  ;;  %v1980_v29 = vrot.slane %v9226_v52, 7  ;;  %v2676_v15 = vrot.slane %v9495_v33, 2 }
 0x1d2   : > { %v1463_v36 = vmax.f32 %v1414_v3, 0.0  ;;  %14231 = vst [vmem:[#allocation5_spill] sm:$0xff] %v9507_v24  ;;  %v2618_v60 = vrot.slane %v9487_v25, 1  ;;  %v2224_v37 = vrot.slane %v9515_v35, 1  ;;  %v2421_v23 = vrot.slane %v9515_v35, 2 }
 0x1d3   : > { %v9478_v56 = vld.sshfl [vmem:[#allocation1] sm:$0xff pattern:$0x73625140]  ;;  %v1155_v27 = vpop.f32.mrf.mxu0  ;;  %v9483_v61 = vpop.f32.mrf.mxu1  ;;  %v1982_v34 = vsel %vm1931_vm1, %v1980_v29, %v1981_v47  ;;  %v1986_v50 = vrot.slane %v9399_v9, 7 }
 0x1d4   : > { %v1631_v11 = vrot.slane %v1463_v36, 2  ;;  %v1632_v43 = vrot.slane %v1463_v36, 4  ;;  %v1633_v7 = vrot.slane %v1463_v36, 6  ;;  %1859 = vst [vmem:[#allocation1] ss:$4 sm:$0xff] %v1463_v36  ;;  %v1289_v6 = vadd.f32 %v9355_v10, %v1155_v27 }
 0x1d5   : > { %v3097_v10 = vsel %vm3085_vm7, %v3068_v30, %v2869_v19  ;;  %v2427_v19 = vrot.slane %v2087_v14, 2  ;;  %v2620_v30 = vrot.slane %v9495_v33, 1  ;;  %v2982_v52 = vsel %vm1931_vm1, %v9487_v25, %v2618_v60 }
 0x1d6   : > { %1860 = vst [vmem:[#allocation1 + $0x1] ss:$4 sm:$0xff] %v1631_v11  ;;  %v1362_v1 = vmul.f32 %v8956_v44, %v1289_v6  ;;  %v2232_v44 = vsel %vm2100_vm2, %v2230_v53, %v2231_v51  ;;  %v9511_v3 = vsel %vm2381_vm3, %v3097_v10, %v2925_v46  ;;  %v2674_v11 = vrot.slane %v9487_v25, 2 }
 0x1d7   : > { %1861 = vst [vmem:[#allocation1 + $0x2] ss:$4 sm:$0xff] %v1632_v43  ;;  %v9520_v5 = vld.sshfl [vmem:[#allocation1 + $0x20] sm:$0xff pattern:$0x73625140]  ;;  %v2355_v54 = vmax.f32 %v2087_v14, %v2232_v44  ;;  %v2225_v6 = vrot.slane %v9518_v2, 1  ;;  %v2984_v10 = vsel %vm1931_vm1, %v9495_v33, %v2620_v30 }
 0x1d8   : > { %1862 = vst [vmem:[#allocation1 + $0x3] ss:$4 sm:$0xff] %v1633_v7  ;;  %v1415_v21 = vadd.f32 %v8974_v38, %v1362_v1  ;;  %v2428_v38 = vrot.slane %v9465_v55, 2  ;;  %v9535_v14 = vld [vmem:[%s14227_s19] ss:$0 sm:$0xff]  ;;  %v9551_v1 = vmax.f32 %v3147_v59, %v9511_v3  ;;  %v9560_v40 = vsel %vm2100_vm2, %v1982_v34, 0.0 }
 0x1d9   : > { %14232 = vst [vmem:[#allocation6_spill] sm:$0xff] %v9511_v3  ;;  %v2422_v46 = vrot.slane %v9518_v2, 2  ;;  %v2814_v44 = vrot.slane %v9507_v24, 4  ;;  %v3011_v59 = vsel %vm2998_vm4, %v2982_v52, %v2674_v11  ;;  %v9570_v60 = vsel %vm1931_vm1, 0.0, %v1980_v29 }
 0x1da   : > { %v1464_v49 = vmax.f32 %v1415_v21, 0.0  ;;  %v2429_v7 = vsel %vm2381_vm3, %v2427_v19, %v2428_v38  ;;  %14233 = vst [vmem:[#allocation7_spill] sm:$0xff] %v9551_v1  ;;  %v2730_v21 = vrot.slane %v9487_v25, 3  ;;  %v2234_v19 = vrot.slane %v9560_v40, 1 }
 0x1db   : > { %v1157_v45 = vpop.f32.mrf.mxu0  ;;  %v9525_v27 = vpop.f32.mrf.mxu1  ;;  %v9547_v4 = vmax.f32 %v2355_v54, %v2429_v7  ;;  %v2732_v25 = vrot.slane %v9495_v33, 3  ;;  %v2870_v7 = vrot.slane %v9507_v24, 5 }
 0x1dc   : > { %v1634_v12 = vrot.slane %v1464_v49, 2  ;;  %v1635_v36 = vrot.slane %v1464_v49, 4  ;;  %v1636_v28 = vrot.slane %v1464_v49, 6  ;;  %1863 = vst [vmem:[#allocation1 + $0x20] ss:$4 sm:$0xff] %v1464_v49  ;;  %v1291_v48 = vadd.f32 %v9397_v18, %v1157_v45 }
 0x1dd   : > { %v2354_v18 = vmax.f32 %v9425_v8, %v2228_v42  ;;  %v9556_v42 = vld [vmem:[%s14228_s28] ss:$0 sm:$0xff]  ;;  %v2226_v45 = vsel %vm2100_vm2, %v2224_v37, %v2225_v6  ;;  %v2621_v30 = vrot.slane %v9547_v4, 1  ;;  %v2352_v37 = vmax.f32 %v9518_v2, %v2225_v6 }
 0x1de   : > { %1864 = vst [vmem:[#allocation1 + $0x21] ss:$4 sm:$0xff] %v1634_v12  ;;  %v1363_v43 = vmul.f32 %v9535_v14, %v1291_v48  ;;  %v3013_v12 = vsel %vm2998_vm4, %v2984_v10, %v2676_v15  ;;  %v2351_v34 = vmax.f32 %v9515_v35, %v2226_v45  ;;  %v3040_v11 = vsel %vm3027_vm5, %v3011_v59, %v2730_v21 }
 0x1df   : > { %v9545_v39 = vld.sshfl [vmem:[#allocation1] sm:$0xff pattern:$0x73625140]  ;;  %1865 = vst [vmem:[#allocation1 + $0x22] ss:$4 sm:$0xff] %v1635_v36  ;;  %v9574_v49 = vmax.f32 %v2354_v18, %v2425_v63  ;;  %v2233_v63 = vrot.slane %v9570_v60, 1  ;;  %v3042_v18 = vsel %vm3027_vm5, %v3013_v12, %v2732_v25  ;;  %v2985_v2 = vsel %vm1931_vm1, %v9547_v4, %v2621_v30 }
 0x1e0   : > { %1868 = vst [vmem:[#allocation1] ss:$4 sm:$0xff] %v1636_v28  ;;  %v1416_v53 = vadd.f32 %v9556_v42, %v1363_v43  ;;  %v2356_v43 = vmax.f32 %v9465_v55, %v2231_v51  ;;  %v3069_v10 = vsel %vm3056_vm6, %v3040_v11, %v2814_v44  ;;  %v1984_v21 = vrot.slane %v9357_v13, 7 }
 0x1e1   : > { %v2816_v35 = vrot.slane %v9574_v49, 4  ;;  %v2235_v51 = vsel %vm2100_vm2, %v2233_v63, %v2234_v19  ;;  %v9611_v45 = vmax.f32 %v2352_v37, %v2422_v46  ;;  %v2431_v30 = vrot.slane %v9560_v40, 2 }
 0x1e2   : > { %v1465_v47 = vmax.f32 %v1416_v53, 0.0  ;;  %v2423_v53 = vsel %vm2381_vm3, %v2421_v23, %v2422_v46  ;;  %v9616_v25 = vmax.f32 %v2356_v43, %v2428_v38  ;;  %v1983_v44 = vrot.slane %v9318_v26, 7 }
 0x1e3   : > { %v1160_v54 = vpop.f32.mrf.mxu0  ;;  %v9582_v8 = vpop.f32.mrf.mxu1  ;;  %v3071_v59 = vsel %vm3056_vm6, %v3042_v18, %v2816_v35  ;;  %14234 = vst [vmem:[#allocation8_spill] sm:$0xff] %v9611_v45  ;;  %v2357_v13 = vmax.f32 %v9570_v60, %v2235_v51  ;;  %v9643_v43 = vsel %vm3085_vm7, %v3069_v10, %v2870_v7 }
 0x1e4   : > { %v1637_v36 = vrot.slane %v1465_v47, 2  ;;  %v1638_v28 = vrot.slane %v1465_v47, 4  ;;  %v1639_v48 = vrot.slane %v1465_v47, 6  ;;  %1869 = vst [vmem:[#allocation1 + $0x1] ss:$4 sm:$0xff] %v1465_v47  ;;  %v1294_v29 = vadd.f32 %v9446_v16, %v1160_v54 }
 0x1e5   : > { %v2677_v16 = vrot.slane %v9547_v4, 2  ;;  %v9609_v47 = vmax.f32 %v2351_v34, %v2423_v53  ;;  %v1985_v38 = vsel %vm1931_vm1, %v1983_v44, %v1984_v21  ;;  %v2872_v34 = vrot.slane %v9574_v49, 5  ;;  %14236 = vst [vmem:[#allocation9_spill] sm:$0xff] %v9643_v43 }
 0x1e6   : > { %v9588_v52 = vld.sshfl [vmem:[#allocation1 + $0x20] sm:$0xff pattern:$0x73625140]  ;;  %1870 = vst [vmem:[#allocation1 + $0x2] ss:$4 sm:$0xff] %v1637_v36  ;;  %v1364_v33 = vmul.f32 %v9535_v14, %v1294_v29  ;;  %v2430_v36 = vrot.slane %v9570_v60, 2 }
 0x1e7   : > { %1871 = vst [vmem:[#allocation1 + $0x3] ss:$4 sm:$0xff] %v1638_v28  ;;  %v3014_v12 = vsel %vm2998_vm4, %v2985_v2, %v2677_v16  ;;  %v2733_v28 = vrot.slane %v9547_v4, 3  ;;  %v9632_v60 = vld [vmem:[%s14235_s27] ss:$0 sm:$0xff]  ;;  %v3100_v18 = vsel %vm3085_vm7, %v3071_v59, %v2872_v34  ;;  %v2619_v35 = vrot.slane %v9609_v47, 1 }
 0x1e8   : > { %1872 = vst [vmem:[#allocation1 + $0x20] ss:$4 sm:$0xff] %v1639_v48  ;;  %v1417_v15 = vadd.f32 %v9556_v42, %v1364_v33  ;;  %v2432_v11 = vsel %vm2381_vm3, %v2430_v36, %v2431_v30  ;;  %v2817_v33 = vrot.slane %v9616_v25, 4  ;;  %v9652_v51 = vsel %vm2100_vm2, %v1985_v38, 0.0 }
 0x1e9   : > { %v3043_v26 = vsel %vm3027_vm5, %v3014_v12, %v2733_v28  ;;  %v9645_v16 = vmax.f32 %v2357_v13, %v2432_v11  ;;  %v2928_v53 = vrot.slane %v9574_v49, 6  ;;  %v2873_v10 = vrot.slane %v9616_v25, 5 }
 0x1ea   : > { %v1466_v54 = vmax.f32 %v1417_v15, 0.0  ;;  %v3072_v7 = vsel %vm3056_vm6, %v3043_v26, %v2817_v33  ;;  %v2675_v21 = vrot.slane %v9609_v47, 2  ;;  %v2731_v59 = vrot.slane %v9609_v47, 3 }
 0x1eb   : > { %v1162_v23 = vpop.f32.mrf.mxu0  ;;  %v9624_v55 = vpop.f32.mrf.mxu1  ;;  %v3128_v13 = vsel %vm2381_vm3, %v3100_v18, %v2928_v53  ;;  %v9663_v36 = vrot.slane %v9632_v60, 1  ;;  %v2089_v49 = vsel %vm1931_vm1, 0.0, %v1983_v44  ;;  %v9680_v11 = vrot.slane %v9632_v60, 2 }
 0x1ec   : > { %v1640_v46 = vrot.slane %v1466_v54, 2  ;;  %v1641_v48 = vrot.slane %v1466_v54, 4  ;;  %v1642_v29 = vrot.slane %v1466_v54, 6  ;;  %1873 = vst [vmem:[#allocation1 + $0x21] ss:$4 sm:$0xff] %v1466_v54  ;;  %v1296_v63 = vadd.f32 %v9483_v61, %v1162_v23 }
 0x1ed   : > { %v2929_v23 = vrot.slane %v9616_v25, 6  ;;  %14237 = vst [vmem:[#allocation10_spill] sm:$0xff] %v9680_v11  ;;  %v9683_v33 = vrot.slane %v9632_v60, 3  ;;  %v9686_v18 = vrot.slane %v9632_v60, 4  ;;  %v9699_v4 = vrot.slane %v9632_v60, 5 }
 0x1ee   : > { %v9635_v37 = vld.sshfl [vmem:[#allocation1] sm:$0xff pattern:$0x73625140]  ;;  %1874 = vst [vmem:[#allocation1 + $0x22] ss:$4 sm:$0xff] %v1640_v46  ;;  %v1365_v61 = vmul.f32 %v9535_v14, %v1296_v63  ;;  %v2237_v46 = vrot.slane %v9652_v51, 1 }
 0x1ef   : > { %1877 = vst [vmem:[#allocation1] ss:$4 sm:$0xff] %v1641_v48  ;;  %v2622_v48 = vrot.slane %v9645_v16, 1  ;;  %v9672_v63 = vld [vmem:[%s14005_s5] ss:$0 sm:$0xff]  ;;  %v2433_v6 = vrot.slane %v2089_v49, 2 }
 0x1f0   : > { %1878 = vst [vmem:[#allocation1 + $0x1] ss:$4 sm:$0xff] %v1642_v29  ;;  %v1418_v15 = vadd.f32 %v9556_v42, %v1365_v61  ;;  %v3101_v29 = vsel %vm3085_vm7, %v3072_v7, %v2873_v10  ;;  %v2358_v7 = vmax.f32 %v9560_v40, %v2234_v19  ;;  %v2434_v54 = vrot.slane %v9652_v51, 2 }
 0x1f1   : > { %v9695_v10 = vsel %vm2381_vm3, %v3101_v29, %v2929_v23  ;;  %v2986_v23 = vsel %vm1931_vm1, %v9645_v16, %v2622_v48  ;;  %v9711_v29 = vrot.slane %v9672_v63, 1 }
 0x1f2   : > { %v1467_v12 = vmax.f32 %v1418_v15, 0.0  ;;  %v2983_v15 = vsel %vm1931_vm1, %v9609_v47, %v2619_v35  ;;  %v9702_v35 = vrot.slane %v9632_v60, 6 }
 0x1f3   : > { %v1165_v28 = vpop.f32.mrf.mxu0  ;;  %v9675_v61 = vpop.f32.mrf.mxu1 }
 0x1f4   : > { %v1643_v25 = vrot.slane %v1467_v12, 2  ;;  %v1644_v38 = vrot.slane %v1467_v12, 4  ;;  %v1645_v34 = vrot.slane %v1467_v12, 6  ;;  %1879 = vst [vmem:[#allocation1 + $0x2] ss:$4 sm:$0xff] %v1467_v12  ;;  %v1299_v26 = vadd.f32 %v9525_v27, %v1165_v28 }
 0x1f5   : > { %v9677_v44 = vld.sshfl [vmem:[#allocation1 + $0x20] sm:$0xff pattern:$0x73625140]  ;;  %v2236_v27 = vrot.slane %v2089_v49, 1  ;;  %v2678_v12 = vrot.slane %v9645_v16, 2  ;;  %v3149_v28 = vmax.f32 %v3128_v13, 0.0 }
 0x1f6   : > { %1880 = vst [vmem:[#allocation1 + $0x3] ss:$4 sm:$0xff] %v1643_v25  ;;  %v1366_v53 = vmul.f32 %v9535_v14, %v1299_v26  ;;  %v1987_v13 = vrot.slane %v9448_v31, 7  ;;  %v9716_v26 = vrot.slane %v9672_v63, 2  ;;  %v1990_v31 = vrot.slane %v9520_v5, 7 }
 0x1f7   : > { %1881 = vst [vmem:[#allocation1 + $0x20] ss:$4 sm:$0xff] %v1644_v38  ;;  %v2238_v19 = vsel %vm2100_vm2, %v2236_v27, %v2237_v46  ;;  %v3163_v38 = vmax.f32 %v3149_v28, %v9695_v10  ;;  %v9722_v27 = vmax.f32 %v2358_v7, %v2431_v30  ;;  %v3015_v28 = vsel %vm2998_vm4, %v2986_v23, %v2678_v12 }
 0x1f8   : > { %1882 = vst [vmem:[#allocation1 + $0x21] ss:$4 sm:$0xff] %v1645_v34  ;;  %v1419_v25 = vadd.f32 %v9556_v42, %v1366_v53  ;;  %v3012_v34 = vsel %vm2998_vm4, %v2983_v15, %v2675_v21  ;;  %v2359_v0 = vmax.f32 %v2089_v49, %v2238_v19  ;;  %v1988_v40 = vsel %vm1931_vm1, %v1986_v50, %v1987_v13 }
 0x1f9   : > { %v2734_v30 = vrot.slane %v9645_v16, 3  ;;  %v9736_v9 = vmax.f32 %v3170_v32, %v3163_v38  ;;  %v9739_v5 = vrot.slane %v9672_v63, 3  ;;  %v2435_v7 = vsel %vm2381_vm3, %v2433_v6, %v2434_v54 }
 0x1fa   : > { %v1468_v53 = vmax.f32 %v1419_v25, 0.0  ;;  %v9747_v12 = vrot.slane %v9672_v63, 4  ;;  %v9749_v16 = vmax.f32 %v2359_v0, %v2435_v7  ;;  %v9753_v32 = vrot.slane %v9672_v63, 5 }
 0x1fb   : > { %v1167_v48 = vpop.f32.mrf.mxu0  ;;  %v9728_v15 = vpop.f32.mrf.mxu1  ;;  %14238 = vst [vmem:[#allocation11_spill] sm:$0xff] %v9736_v9  ;;  %v3044_v20 = vsel %vm3027_vm5, %v3015_v28, %v2734_v30  ;;  %v9761_v6 = vsel %vm2100_vm2, %v1988_v40, 0.0  ;;  %v2874_v0 = vrot.slane %v9722_v27, 5  ;;  %v2930_v23 = vrot.slane %v9722_v27, 6 }
 0x1fc   : > { %v1646_v57 = vrot.slane %v1468_v53, 2  ;;  %v1647_v2 = vrot.slane %v1468_v53, 4  ;;  %v1648_v62 = vrot.slane %v1468_v53, 6  ;;  %1883 = vst [vmem:[#allocation1 + $0x22] ss:$4 sm:$0xff] %v1468_v53  ;;  %v1301_v21 = vadd.f32 %v9582_v8, %v1167_v48 }
 0x1fd   : > { %v9730_v25 = vld.sshfl [vmem:[#allocation1] sm:$0xff pattern:$0x73625140]  ;;  %v1989_v8 = vrot.slane %v9478_v56, 7  ;;  %v14027_v13 = vrot.slane %v9736_v9, 1  ;;  %v9770_v38 = vsel %vm3027_vm5, %v3012_v34, %v2731_v59  ;;  %v2623_v47 = vrot.slane %v9749_v16, 1 }
 0x1fe   : > { %1886 = vst [vmem:[#allocation1] ss:$4 sm:$0xff] %v1646_v57  ;;  %v1367_v49 = vmul.f32 %v9535_v14, %v1301_v21  ;;  %v9756_v57 = vrot.slane %v9672_v63, 6  ;;  %v2090_v21 = vsel %vm1931_vm1, 0.0, %v1986_v50  ;;  %v2360_v50 = vmax.f32 %v9652_v51, %v2237_v46 }
 0x1ff   : > { %1887 = vst [vmem:[#allocation1 + $0x1] ss:$4 sm:$0xff] %v1647_v2  ;;  %v1991_v19 = vsel %vm1931_vm1, %v1989_v8, %v1990_v31  ;;  %v2818_v2 = vrot.slane %v9722_v27, 4  ;;  %v14025_v27 = vrot.slane %v9761_v6, 1  ;;  %v2987_v46 = vsel %vm1931_vm1, %v9749_v16, %v2623_v47 }
 0x200   : > { %1888 = vst [vmem:[#allocation1 + $0x2] ss:$4 sm:$0xff] %v1648_v62  ;;  %v1420_v56 = vadd.f32 %v9556_v42, %v1367_v49  ;;  %v9777_v40 = vsel %vm2100_vm2, %v1991_v19, 0.0  ;;  %v1993_v51 = vrot.slane %v9588_v52, 7  ;;  %v14241_v1 = vrot.slane %v9736_v9, 3 }
 0x201   : > { %v3073_v53 = vsel %vm3056_vm6, %v3044_v20, %v2818_v2 }
 0x202   : > { %v1469_v62 = vmax.f32 %v1420_v56, 0.0  ;;  %v3102_v56 = vsel %vm3085_vm7, %v3073_v53, %v2874_v0  ;;  %v9800_v53 = vrot.slane %v9632_v60, 7  ;;  %v9813_v0 = vmax.f32 %v2360_v50, %v2434_v54 }
 0x203   : > { %v1170_v28 = vpop.f32.mrf.mxu0  ;;  %v9782_v7 = vpop.f32.mrf.mxu1  ;;  %v9784_v20 = vld.sshfl [vmem:[#allocation1 + $0x20] sm:$0xff pattern:$0x73625140]  ;;  %v14240_v54 = vrot.slane %v9777_v40, 1 }
 0x204   : > { %v1649_v30 = vrot.slane %v1469_v62, 2  ;;  %v1650_v59 = vrot.slane %v1469_v62, 4  ;;  %v1651_v34 = vrot.slane %v1469_v62, 6  ;;  %1889 = vst [vmem:[#allocation1 + $0x3] ss:$4 sm:$0xff] %v1469_v62  ;;  %v1304_v49 = vadd.f32 %v9624_v55, %v1170_v28 }
 0x205   : > { %v2091_v62 = vsel %vm1931_vm1, 0.0, %v1989_v8  ;;  %v2239_v55 = vrot.slane %v2090_v21, 1  ;;  %v2679_v28 = vrot.slane %v9749_v16, 2 }
 0x206   : > { %1890 = vst [vmem:[#allocation1 + $0x20] ss:$4 sm:$0xff] %v1649_v30  ;;  %v1368_v31 = vmul.f32 %v9535_v14, %v1304_v49  ;;  %v3294_v49 = vmul.f32 %v9663_v36, %v14027_v13  ;;  %v2242_v47 = vrot.slane %v2091_v62, 1 }
 0x207   : > { %1891 = vst [vmem:[#allocation1 + $0x21] ss:$4 sm:$0xff] %v1650_v59  ;;  %v2241_v8 = vsel %vm2100_vm2, %v2239_v55, %v14025_v27  ;;  %v3293_v59 = vmul.f32 %v9632_v60, %v9736_v9  ;;  %v2436_v27 = vrot.slane %v2090_v21, 2  ;;  %v3016_v48 = vsel %vm2998_vm4, %v2987_v46, %v2679_v28 }
 0x208   : > { %1892 = vst [vmem:[#allocation1 + $0x22] ss:$4 sm:$0xff] %v1651_v34  ;;  %v1421_v30 = vadd.f32 %v9556_v42, %v1368_v31  ;;  %v9816_v34 = vsel %vm2381_vm3, %v3102_v56, %v2930_v23  ;;  %v14239_v31 = vrot.slane %v9736_v9, 2  ;;  %v2244_v23 = vsel %vm2100_vm2, %v2242_v47, %v14240_v54 }
 0x209   : > { %v2361_v50 = vmax.f32 %v2090_v21, %v2241_v8  ;;  %v2735_v56 = vrot.slane %v9749_v16, 3  ;;  %v14030_v28 = vrot.slane %v9777_v40, 2  ;;  %v2819_v46 = vrot.slane %v9813_v0, 4 }
 0x20a   : > { %v3295_v2 = vmul.f32 %v9680_v11, %v14239_v31  ;;  %v1470_v55 = vmax.f32 %v1421_v30, 0.0  ;;  %v3296_v21 = vmul.f32 %v9683_v33, %v14241_v1  ;;  %v1992_v8 = vrot.slane %v9545_v39, 7 }
 0x20b   : > { %v9823_v3 = vld.sshfl [vmem:[#allocation1] sm:$0xff pattern:$0x73625140]  ;;  %v1172_v13 = vpop.f32.mrf.mxu0  ;;  %v9831_v24 = vpop.f32.mrf.mxu1  ;;  %v3045_v52 = vsel %vm3027_vm5, %v3016_v48, %v2735_v56  ;;  %v2363_v47 = vmax.f32 %v2091_v62, %v2244_v23  ;;  %v3150_v48 = vmax.f32 %v9695_v10, %v9816_v34  ;;  %v14243_v56 = vrot.slane %v9736_v9, 4 }
 0x20c   : > { %v1652_v43 = vrot.slane %v1470_v55, 2  ;;  %v1653_v31 = vrot.slane %v1470_v55, 4  ;;  %v1654_v30 = vrot.slane %v1470_v55, 6  ;;  %1895 = vst [vmem:[#allocation1] ss:$4 sm:$0xff] %v1470_v55  ;;  %v1306_v19 = vadd.f32 %v9675_v61, %v1172_v13 }
 0x20d   : > { %v14242_v61 = vrot.slane %v9761_v6, 2  ;;  %v2439_v55 = vrot.slane %v2091_v62, 2  ;;  %v3297_v1 = vmul.f32 %v9686_v18, %v14243_v56  ;;  %v1994_v39 = vsel %vm1931_vm1, %v1992_v8, %v1993_v51 }
 0x20e   : > { %1896 = vst [vmem:[#allocation1 + $0x1] ss:$4 sm:$0xff] %v1652_v43  ;;  %v1369_v16 = vmul.f32 %v9535_v14, %v1306_v19  ;;  %v3074_v19 = vsel %vm3056_vm6, %v3045_v52, %v2819_v46  ;;  %v2875_v10 = vrot.slane %v9813_v0, 5  ;;  %v14245_v34 = vrot.slane %v9736_v9, 6 }
 0x20f   : > { %v2438_v13 = vsel %vm2381_vm3, %v2436_v27, %v14242_v61  ;;  %1897 = vst [vmem:[#allocation1 + $0x2] ss:$4 sm:$0xff] %v1653_v31  ;;  %v14244_v27 = vrot.slane %v9736_v9, 5  ;;  %v2441_v23 = vsel %vm2381_vm3, %v2439_v55, %v14030_v28  ;;  %v9865_v31 = vadd.f32 %v9672_v63, %v3293_v59 }
 0x210   : > { %v9844_v54 = vmax.f32 %v2361_v50, %v2438_v13  ;;  %1898 = vst [vmem:[#allocation1 + $0x3] ss:$4 sm:$0xff] %v1654_v30  ;;  %v1422_v43 = vadd.f32 %v9556_v42, %v1369_v16  ;;  %v3299_v50 = vmul.f32 %v9702_v35, %v14245_v34  ;;  %v9867_v30 = vmax.f32 %v2363_v47, %v2441_v23  ;;  %v9875_v16 = vld.sshfl [vmem:[#allocation1 + $0x20] sm:$0xff pattern:$0x73625140] }
 0x211   : > { %v3298_v62 = vmul.f32 %v9699_v4, %v14244_v27  ;;  %v9870_v46 = vrot.slane %v9672_v63, 7  ;;  %v9873_v52 = vadd.f32 %v9711_v29, %v3294_v49  ;;  %v9878_v13 = vsel %vm2100_vm2, %v1994_v39, 0.0 }
 0x212   : > { %v1471_v51 = vmax.f32 %v1422_v43, 0.0  ;;  %v2624_v55 = vrot.slane %v9844_v54, 1  ;;  %v3103_v59 = vsel %vm3085_vm7, %v3074_v19, %v2875_v10  ;;  %v9883_v56 = vadd.f32 %v9716_v26, %v3295_v2 }
 0x213   : > { %v1175_v61 = vpop.f32.mrf.mxu0  ;;  %v9886_v23 = vpop.f32.mrf.mxu1  ;;  %v14247_v34 = vrot.slane %v9761_v6, 1  ;;  %v2931_v28 = vrot.slane %v9813_v0, 6  ;;  %v9893_v9 = vadd.f32 %v9739_v5, %v3296_v21  ;;  %v9896_v2 = vadd.f32 %v9747_v12, %v3297_v1 }
 0x214   : > { %14246 = vst [vmem:[#allocation12_spill] sm:$0xff] %v9883_v56  ;;  %v1655_v47 = vrot.slane %v1471_v51, 2  ;;  %v1656_v43 = vrot.slane %v1471_v51, 4  ;;  %v1657_v27 = vrot.slane %v1471_v51, 6  ;;  %v1309_v49 = vadd.f32 %v9728_v15, %v1175_v61 }
 0x215   : > { %1899 = vst [vmem:[#allocation1 + $0x20] ss:$4 sm:$0xff] %v1471_v51  ;;  %v2362_v39 = vmax.f32 %v9761_v6, %v14247_v34  ;;  %v9900_v10 = vsel %vm1931_vm1, 0.0, %v1992_v8  ;;  %v2625_v15 = vrot.slane %v9867_v30, 1  ;;  %v2680_v51 = vrot.slane %v9844_v54, 2 }
 0x216   : > { %14248 = vst [vmem:[#allocation13_spill] sm:$0xff] %v9893_v9  ;;  %v1370_v19 = vmul.f32 %v9535_v14, %v1309_v49  ;;  %v2988_v21 = vsel %vm1931_vm1, %v9844_v54, %v2624_v55  ;;  %v9910_v1 = vsel %vm2381_vm3, %v3103_v59, %v2931_v28  ;;  %v9917_v49 = vadd.f32 %v9756_v57, %v3299_v50 }
 0x217   : > { %1900 = vst [vmem:[#allocation1 + $0x21] ss:$4 sm:$0xff] %v1655_v47  ;;  %v9904_v61 = vld.sshfl [vmem:[#allocation1] sm:$0xff pattern:$0x73625140]  ;;  %v9913_v47 = vadd.f32 %v9753_v32, %v3298_v62  ;;  %v2245_v0 = vrot.slane %v9900_v10, 1  ;;  %v3017_v50 = vsel %vm2998_vm4, %v2988_v21, %v2680_v51 }
 0x218   : > { %1901 = vst [vmem:[#allocation1 + $0x22] ss:$4 sm:$0xff] %v1656_v43  ;;  %v1423_v8 = vadd.f32 %v9556_v42, %v1370_v19  ;;  %v14249_v55 = vrot.slane %v9761_v6, 2  ;;  %v3164_v19 = vmax.f32 %v3150_v48, %v9910_v1  ;;  %v14250_v43 = vrot.slane %v9878_v13, 1 }
 0x219   : > { %1904 = vst [vmem:[#allocation1] ss:$4 sm:$0xff] %v1657_v27  ;;  %v2736_v27 = vrot.slane %v9844_v54, 3  ;;  %v14251_v6 = vrot.slane %v9777_v40, 1  ;;  %v14040_v56 = vrot.slane %v9878_v13, 2 }
 0x21a   : > { %v9924_v58 = vmax.f32 %v2362_v39, %v14249_v55  ;;  %v1472_v59 = vmax.f32 %v1423_v8, 0.0  ;;  %v2247_v17 = vsel %vm2100_vm2, %v2245_v0, %v14250_v43  ;;  %v2681_v55 = vrot.slane %v9867_v30, 2 }
 0x21b   : > { %v1177_v34 = vpop.f32.mrf.mxu0  ;;  %v2364_v39 = vmax.f32 %v9777_v40, %v14251_v6  ;;  %v2989_v8 = vsel %vm1931_vm1, %v9867_v30, %v2625_v15  ;;  %v9941_v51 = vpop.f32.mrf.mxu1  ;;  %v3046_v0 = vsel %vm3027_vm5, %v3017_v50, %v2736_v27  ;;  %v1996_v50 = vrot.slane %v9677_v44, 7 }
 0x21c   : > { %v1658_v62 = vrot.slane %v1472_v59, 2  ;;  %v1659_v54 = vrot.slane %v1472_v59, 4  ;;  %v1660_v28 = vrot.slane %v1472_v59, 6  ;;  %1905 = vst [vmem:[#allocation1 + $0x1] ss:$4 sm:$0xff] %v1472_v59  ;;  %v1311_v48 = vadd.f32 %v9782_v7, %v1177_v34 }
 0x21d   : > { %v2820_v21 = vrot.slane %v9924_v58, 4  ;;  %v14252_v59 = vmax.f32 %v9119_v22, 0.0  ;;  %v14254_v34 = vrot.slane %v9611_v45, 4  ;;  %v2365_v6 = vmax.f32 %v9900_v10, %v2247_v17 }
 0x21e   : > { %1906 = vst [vmem:[#allocation1 + $0x2] ss:$4 sm:$0xff] %v1658_v62  ;;  %v1371_v15 = vmul.f32 %v9535_v14, %v1311_v48  ;;  %v14256_v62 = vrot.slane %v9777_v40, 2  ;;  %v3018_v43 = vsel %vm2998_vm4, %v2989_v8, %v2681_v55  ;;  %v2876_v44 = vrot.slane %v9924_v58, 5 }
 0x21f   : > { %v9947_v9 = vld.sshfl [vmem:[#allocation1 + $0x20] sm:$0xff pattern:$0x73625140]  ;;  %v9953_v7 = vmax.f32 %v14252_v59, %v3164_v19  ;;  %v9959_v27 = vsel %vm3056_vm6, %v9770_v38, %v14254_v34  ;;  %1907 = vst [vmem:[#allocation1 + $0x3] ss:$4 sm:$0xff] %v1659_v54  ;;  %v2442_v19 = vrot.slane %v9900_v10, 2  ;;  %v3075_v38 = vsel %vm3056_vm6, %v3046_v0, %v2820_v21 }
 0x220   : > { %14255 = vst [vmem:[#allocation15_spill] sm:$0xff] %v9959_v27  ;;  %v2561_v48 = vmax.f32 %v2364_v39, %v14256_v62  ;;  %v1424_v22 = vadd.f32 %v9556_v42, %v1371_v15  ;;  %v2737_v59 = vrot.slane %v9867_v30, 3  ;;  %v1995_v54 = vrot.slane %v9635_v37, 7 }
 0x221   : > { %14253 = vst [vmem:[#allocation14_spill] sm:$0xff] %v9953_v7  ;;  %v2932_v17 = vrot.slane %v9924_v58, 6  ;;  %v14037_v10 = vrot.slane %v9953_v7, 1  ;;  %v3104_v0 = vsel %vm3085_vm7, %v3075_v38, %v2876_v44 }
 0x222   : > { %1908 = vst [vmem:[#allocation1 + $0x20] ss:$4 sm:$0xff] %v1660_v28  ;;  %v1473_v39 = vmax.f32 %v1424_v22, 0.0  ;;  %v2444_v28 = vsel %vm2381_vm3, %v2442_v19, %v14040_v56  ;;  %v3047_v55 = vsel %vm3027_vm5, %v3018_v43, %v2737_v59  ;;  %v1997_v8 = vsel %vm1931_vm1, %v1995_v54, %v1996_v50 }
 0x223   : > { %v1180_v30 = vpop.f32.mrf.mxu0  ;;  %v9980_v21 = vmax.f32 %v2365_v6, %v2444_v28  ;;  %v2821_v37 = vrot.slane %v2561_v48, 4  ;;  %v1320_v22 = vpop.f32.mrf.mxu1  ;;  %v14038_v43 = vrot.slane %v9953_v7, 2  ;;  %v14039_v59 = vrot.slane %v9953_v7, 3 }
 0x224   : > { %v1661_v58 = vrot.slane %v1473_v39, 2  ;;  %v1662_v15 = vrot.slane %v1473_v39, 4  ;;  %v1663_v34 = vrot.slane %v1473_v39, 6  ;;  %1909 = vst [vmem:[#allocation1 + $0x21] ss:$4 sm:$0xff] %v1473_v39  ;;  %v1314_v62 = vadd.f32 %v9831_v24, %v1180_v30 }
 0x225   : > { %v3076_v19 = vsel %vm3056_vm6, %v3047_v55, %v2821_v37  ;;  %v14041_v50 = vrot.slane %v9953_v7, 4  ;;  %v2877_v44 = vrot.slane %v2561_v48, 5  ;;  %v3132_v28 = vsel %vm2381_vm3, %v3104_v0, %v2932_v17 }
 0x226   : > { %v9988_v6 = vld.sshfl [vmem:[#allocation1] sm:$0xff pattern:$0x73625140]  ;;  %1910 = vst [vmem:[#allocation1 + $0x22] ss:$4 sm:$0xff] %v1661_v58  ;;  %v1372_v38 = vmul.f32 %v9535_v14, %v1314_v62  ;;  %v3300_v24 = vmul.f32 %v9800_v53, %v9953_v7  ;;  %v9995_v39 = vsel %vm2100_vm2, %v1997_v8, 0.0  ;;  %v3301_v0 = vmul.f32 %v9632_v60, %v14037_v10 }
 0x227   : > { %1913 = vst [vmem:[#allocation1] ss:$4 sm:$0xff] %v1662_v15  ;;  %v2626_v55 = vrot.slane %v9980_v21, 1  ;;  %v14042_v30 = vrot.slane %v9953_v7, 5  ;;  %v14043_v37 = vrot.slane %v9953_v7, 6  ;;  %v2093_v62 = vsel %vm1931_vm1, 0.0, %v1995_v54 }
 0x228   : > { %1914 = vst [vmem:[#allocation1 + $0x1] ss:$4 sm:$0xff] %v1663_v34  ;;  %v1425_v58 = vadd.f32 %v9556_v42, %v1372_v38  ;;  %v3105_v17 = vsel %vm3085_vm7, %v3076_v19, %v2877_v44  ;;  %v2933_v15 = vrot.slane %v2561_v48, 6  ;;  %v3151_v8 = vmax.f32 %v9910_v1, %v3132_v28 }
 0x229   : > { %v3302_v22 = vmul.f32 %v9663_v36, %v14038_v43  ;;  %v3303_v34 = vmul.f32 %v9680_v11, %v14039_v59  ;;  %v14257_v19 = vrot.slane %v9878_v13, 1  ;;  %v3304_v48 = vmul.f32 %v9683_v33, %v14041_v50 }
 0x22a   : > { %v1474_v38 = vmax.f32 %v1425_v58, 0.0  ;;  %v2248_v28 = vrot.slane %v2093_v62, 1  ;;  %v2682_v10 = vrot.slane %v9980_v21, 2  ;;  %v2990_v43 = vsel %vm1931_vm1, %v9980_v21, %v2626_v55 }
 0x22b   : > { %v2366_v44 = vmax.f32 %v9878_v13, %v14257_v19  ;;  %v1182_v1 = vpop.f32.mrf.mxu0  ;;  %v10024_v59 = vsel %vm2381_vm3, %v3105_v17, %v2933_v15  ;;  %v3305_v50 = vmul.f32 %v9686_v18, %v14042_v30  ;;  %v3306_v27 = vmul.f32 %v9699_v4, %v14043_v37 }
 0x22c   : > { %v1664_v58 = vrot.slane %v1474_v38, 2  ;;  %v1665_v40 = vrot.slane %v1474_v38, 4  ;;  %v1666_v56 = vrot.slane %v1474_v38, 6  ;;  %1915 = vst [vmem:[#allocation1 + $0x2] ss:$4 sm:$0xff] %v1474_v38  ;;  %v1316_v19 = vadd.f32 %v9886_v23, %v1182_v1 }
 0x22d   : > { %v10027_v54 = vld.sshfl [vmem:[#allocation1 + $0x20] sm:$0xff pattern:$0x73625140]  ;;  %v10036_v55 = vadd.f32 %v9870_v46, %v3300_v24  ;;  %v10039_v17 = vadd.f32 %v9672_v63, %v3301_v0  ;;  %v14258_v23 = vrot.slane %v9995_v39, 1  ;;  %v3165_v1 = vmax.f32 %v3151_v8, %v10024_v59 }
 0x22e   : > { %1916 = vst [vmem:[#allocation1 + $0x3] ss:$4 sm:$0xff] %v1664_v58  ;;  %v1373_v15 = vmul.f32 %v9535_v14, %v1316_v19  ;;  %v10047_v30 = vadd.f32 %v9711_v29, %v3302_v22  ;;  %v1999_v37 = vrot.slane %v9784_v20, 7  ;;  %v14046_v24 = vrot.slane %v9995_v39, 2 }
 0x22f   : > { %v2250_v38 = vsel %vm2100_vm2, %v2248_v28, %v14258_v23  ;;  %1917 = vst [vmem:[#allocation1 + $0x20] ss:$4 sm:$0xff] %v1665_v40  ;;  %v14259_v0 = vrot.slane %v9878_v13, 2  ;;  %v3019_v58 = vsel %vm2998_vm4, %v2990_v43, %v2682_v10  ;;  %v2738_v28 = vrot.slane %v9980_v21, 3 }
 0x230   : > { %1918 = vst [vmem:[#allocation1 + $0x21] ss:$4 sm:$0xff] %v1666_v56  ;;  %v1426_v19 = vadd.f32 %v9556_v42, %v1373_v15  ;;  %v10057_v8 = vadd.f32 %v9716_v26, %v3303_v34  ;;  %v10060_v22 = vadd.f32 %v9739_v5, %v3304_v48  ;;  %v1998_v20 = vrot.slane %v9730_v25, 7 }
 0x231   : > { %v2563_v7 = vmax.f32 %v2366_v44, %v14259_v0  ;;  %v2002_v40 = vrot.slane %v9875_v16, 7  ;;  %v2367_v23 = vmax.f32 %v2093_v62, %v2250_v38  ;;  %v2445_v13 = vrot.slane %v2093_v62, 2 }
 0x232   : > { %v1475_v44 = vmax.f32 %v1426_v19, 0.0  ;;  %v3048_v10 = vsel %vm3027_vm5, %v3019_v58, %v2738_v28  ;;  %v14260_v56 = vmax.f32 %v9282_v41, 0.0  ;;  %v10070_v21 = vadd.f32 %v9747_v12, %v3305_v50 }
 0x233   : > { %v1185_v34 = vpop.f32.mrf.mxu0  ;;  %v2000_v48 = vsel %vm1931_vm1, %v1998_v20, %v1999_v37  ;;  %v2001_v15 = vrot.slane %v9823_v3, 7  ;;  %v2447_v25 = vsel %vm2381_vm3, %v2445_v13, %v14046_v24  ;;  %v2822_v16 = vrot.slane %v2563_v7, 4 }
 0x234   : > { %v10067_v43 = vmax.f32 %v14260_v56, %v3165_v1  ;;  %v1667_v62 = vrot.slane %v1475_v44, 2  ;;  %v1668_v38 = vrot.slane %v1475_v44, 4  ;;  %v1669_v0 = vrot.slane %v1475_v44, 6  ;;  %1919 = vst [vmem:[#allocation1 + $0x22] ss:$4 sm:$0xff] %v1475_v44 }
 0x235   : > { %v1319_v41 = vadd.f32 %v9941_v51, %v1185_v34  ;;  %v10078_v1 = vld.sshfl [vmem:[#allocation1] sm:$0xff pattern:$0x73625140]  ;;  %v2003_v50 = vsel %vm1931_vm1, %v2001_v15, %v2002_v40  ;;  %v10081_v58 = vmax.f32 %v2367_v23, %v2447_v25  ;;  %v3077_v37 = vsel %vm3056_vm6, %v3048_v10, %v2822_v16 }
 0x236   : > { %14261 = vst [vmem:[#allocation16_spill] sm:$0xff] %v10067_v43  ;;  %v10085_v3 = vadd.f32 %v9753_v32, %v3306_v27  ;;  %v2878_v28 = vrot.slane %v2563_v7, 5  ;;  %v10091_v51 = vsel %vm2100_vm2, %v2000_v48, 0.0  ;;  %v2934_v40 = vrot.slane %v2563_v7, 6 }
 0x237   : > { %1922 = vst [vmem:[#allocation1] ss:$4 sm:$0xff] %v1667_v62  ;;  %v1374_v19 = vmul.f32 %v9535_v14, %v1319_v41  ;;  %v14047_v23 = vrot.slane %v10067_v43, 1  ;;  %v2094_v56 = vsel %vm1931_vm1, 0.0, %v1998_v20  ;;  %v10098_v14 = vsel %vm2100_vm2, %v2003_v50, 0.0 }
 0x238   : > { %1923 = vst [vmem:[#allocation1 + $0x1] ss:$4 sm:$0xff] %v1668_v38  ;;  %v3106_v34 = vsel %vm3085_vm7, %v3077_v37, %v2878_v28  ;;  %v2627_v25 = vrot.slane %v10081_v58, 1  ;;  %v14049_v48 = vrot.slane %v10067_v43, 2  ;;  %v14050_v7 = vrot.slane %v10067_v43, 3 }
 0x239   : > { %1924 = vst [vmem:[#allocation1 + $0x2] ss:$4 sm:$0xff] %v1669_v0  ;;  %v1427_v27 = vadd.f32 %v9556_v42, %v1374_v19  ;;  %v2095_v38 = vsel %vm1931_vm1, 0.0, %v2001_v15  ;;  %v14048_v42 = vrot.slane %v10091_v51, 1  ;;  %v2251_v0 = vrot.slane %v2094_v56, 1 }
 0x23a   : > { %v14051_v41 = vrot.slane %v10098_v14, 1  ;;  %v14262_v50 = vrot.slane %v9995_v39, 1  ;;  %v10113_v19 = vsel %vm2381_vm3, %v3106_v34, %v2934_v40  ;;  %v2683_v15 = vrot.slane %v10081_v58, 2 }
 0x23b   : > { %v1476_v62 = vmax.f32 %v1427_v27, 0.0  ;;  %v1187_v28 = vpop.f32.mrf.mxu0  ;;  %v10116_v13 = vld.sshfl [vmem:[#allocation1 + $0x20] sm:$0xff pattern:$0x73625140]  ;;  %v2254_v24 = vrot.slane %v2095_v38, 1  ;;  %v2991_v20 = vsel %vm1931_vm1, %v10081_v58, %v2627_v25  ;;  %v2253_v40 = vsel %vm2100_vm2, %v2251_v0, %v14048_v42 }
 0x23c   : > { %v2368_v37 = vmax.f32 %v9995_v39, %v14262_v50  ;;  %v3307_v50 = vmul.f32 %v9702_v35, %v10067_v43  ;;  %v3308_v34 = vmul.f32 %v9800_v53, %v14047_v23  ;;  %v3310_v25 = vmul.f32 %v9663_v36, %v14050_v7 }
 0x23d   : > { %v1670_v10 = vrot.slane %v1476_v62, 2  ;;  %v1671_v44 = vrot.slane %v1476_v62, 4  ;;  %v1672_v27 = vrot.slane %v1476_v62, 6  ;;  %1925 = vst [vmem:[#allocation1 + $0x3] ss:$4 sm:$0xff] %v1476_v62  ;;  %v3309_v62 = vmul.f32 %v9632_v60, %v14049_v48 }
 0x23e   : > { %v14263_v28 = vrot.slane %v10067_v43, 4  ;;  %v14264_v42 = vrot.slane %v10067_v43, 5  ;;  %v3020_v16 = vsel %vm2998_vm4, %v2991_v20, %v2683_v15  ;;  %v2452_v0 = vrot.slane %v10098_v14, 2 }
 0x23f   : > { %1926 = vst [vmem:[#allocation1 + $0x20] ss:$4 sm:$0xff] %v1670_v10  ;;  %v2256_v10 = vsel %vm2100_vm2, %v2254_v24, %v14051_v41  ;;  %v2005_v24 = vrot.slane %v9947_v9, 7  ;;  %v2369_v41 = vmax.f32 %v2094_v56, %v2253_v40  ;;  %v2739_v45 = vrot.slane %v10081_v58, 3 }
 0x240   : > { %1927 = vst [vmem:[#allocation1 + $0x21] ss:$4 sm:$0xff] %v1671_v44  ;;  %v3311_v23 = vmul.f32 %v9680_v11, %v14263_v28  ;;  %v3312_v60 = vmul.f32 %v9683_v33, %v14264_v42  ;;  %v14265_v44 = vrot.slane %v9995_v39, 2  ;;  %v14266_v28 = vrot.slane %v10067_v43, 6 }
 0x241   : > { %1928 = vst [vmem:[#allocation1 + $0x22] ss:$4 sm:$0xff] %v1672_v27  ;;  %v2371_v42 = vmax.f32 %v2095_v38, %v2256_v10  ;;  %v2448_v27 = vrot.slane %v2094_v56, 2  ;;  %v2004_v48 = vrot.slane %v9904_v61, 7  ;;  %v2008_v39 = vrot.slane %v10027_v54, 7 }
 0x242   : > { %v2565_v7 = vmax.f32 %v2368_v37, %v14265_v44  ;;  %v3313_v11 = vmul.f32 %v9686_v18, %v14266_v28  ;;  %v2451_v20 = vrot.slane %v2095_v38, 2  ;;  %v3049_v9 = vsel %vm3027_vm5, %v3020_v16, %v2739_v45 }
 0x243   : > { %v10162_v15 = vadd.f32 %v9756_v57, %v3307_v50  ;;  %v10165_v58 = vadd.f32 %v9870_v46, %v3308_v34  ;;  %v14267_v40 = vrot.slane %v10091_v51, 2  ;;  %v14268_v61 = vmax.f32 %v9896_v2, 0.0 }
 0x244   : > { %v10158_v37 = vld.sshfl [vmem:[#allocation1] sm:$0xff pattern:$0x73625140]  ;;  %v2823_v56 = vrot.slane %v2565_v7, 4  ;;  %v2006_v54 = vsel %vm1931_vm1, %v2004_v48, %v2005_v24  ;;  %v2007_v38 = vrot.slane %v9988_v6, 7  ;;  %v2453_v45 = vsel %vm2381_vm3, %v2451_v20, %v2452_v0 }
 0x245   : > { %v2450_v10 = vsel %vm2381_vm3, %v2448_v27, %v14267_v40  ;;  %3515 = vst [vmem:[#allocation1 + $0x4] ss:$9 sm:$0xff] %v14268_v61  ;;  %v10180_v50 = vadd.f32 %v9672_v63, %v3309_v62  ;;  %v10183_v34 = vadd.f32 %v9711_v29, %v3310_v25  ;;  %v10185_v44 = vmax.f32 %v2371_v42, %v2453_v45 }
 0x246   : > { %v10177_v16 = vmax.f32 %v2369_v41, %v2450_v10  ;;  %v3078_v2 = vsel %vm3056_vm6, %v3049_v9, %v2823_v56  ;;  %v10189_v24 = vadd.f32 %v9716_v26, %v3311_v23  ;;  %v2009_v6 = vsel %vm1931_vm1, %v2007_v38, %v2008_v39 }
 0x247   : > { %v2879_v27 = vrot.slane %v2565_v7, 5  ;;  %v10195_v41 = vadd.f32 %v9739_v5, %v3312_v60  ;;  %v10198_v63 = vadd.f32 %v9747_v12, %v3313_v11  ;;  %v10201_v62 = vsel %vm2100_vm2, %v2006_v54, 0.0 }
 0x248   : > { %v10192_v28 = vld.sshfl [vmem:[#allocation1 + $0x20] sm:$0xff pattern:$0x73625140]  ;;  %v2935_v25 = vrot.slane %v2565_v7, 6  ;;  %v3419_v42 = vmax.f32 %v10057_v8, 0.0  ;;  %v14269_v39 = vmax.f32 %v9865_v31, 0.0 }
 0x249   : > { %v2628_v9 = vrot.slane %v10177_v16, 1  ;;  %v3107_v60 = vsel %vm3085_vm7, %v3078_v2, %v2879_v27  ;;  %v14270_v11 = vmax.f32 %v9873_v52, 0.0  ;;  %v2096_v40 = vsel %vm1931_vm1, 0.0, %v2004_v48  ;;  %v14271_v31 = vld [vmem:[#allocation12_spill] sm:$0xff]  ;;  %v14274_v27 = vld [vmem:[#allocation13_spill] sm:$0xff] }
 0x24a   : > { %3507 = vst [vmem:[#allocation1] ss:$9 sm:$0xff] %v14269_v39  ;;  %v10214_v7 = vsel %vm2100_vm2, %v2009_v6, 0.0  ;;  %v2629_v10 = vrot.slane %v10185_v44, 1  ;;  %v14272_v54 = vmax.f32 %v14271_v31, 0.0  ;;  %v2258_v45 = vrot.slane %v10201_v62, 1 }
 0x24b   : > { %3509 = vst [vmem:[#allocation1 + $0x1] ss:$9 sm:$0xff] %v14270_v11  ;;  %v14273_v2 = vrot.slane %v10091_v51, 1  ;;  %v14275_v39 = vmax.f32 %v14274_v27, 0.0  ;;  %v2097_v11 = vsel %vm1931_vm1, 0.0, %v2007_v38  ;;  %v10231_v61 = vsel %vm2381_vm3, %v3107_v60, %v2935_v25 }
 0x24c   : > { %3511 = vst [vmem:[#allocation1 + $0x2] ss:$9 sm:$0xff] %v14272_v54  ;;  %v14276_v54 = vmax.f32 %v9913_v47, 0.0  ;;  %v2257_v56 = vrot.slane %v2096_v40, 1  ;;  %v14277_v48 = vrot.slane %v10098_v14, 1  ;;  %v2684_v27 = vrot.slane %v10177_v16, 2 }
 0x24d   : > { %v2370_v52 = vmax.f32 %v10091_v51, %v14273_v2  ;;  %3513 = vst [vmem:[#allocation1 + $0x3] ss:$9 sm:$0xff] %v14275_v39  ;;  %v14056_v2 = vrot.slane %v10214_v7, 1  ;;  %v2685_v39 = vrot.slane %v10185_v44, 2  ;;  %v2992_v38 = vsel %vm1931_vm1, %v10177_v16, %v2628_v9 }
 0x24e   : > { %3517 = vst [vmem:[#allocation1 + $0x5] ss:$9 sm:$0xff] %v14276_v54  ;;  %v2372_v6 = vmax.f32 %v10098_v14, %v14277_v48  ;;  %v14278_v25 = vmax.f32 %v9917_v49, 0.0  ;;  %v2993_v47 = vsel %vm1931_vm1, %v10185_v44, %v2629_v10  ;;  %v14279_v60 = vmax.f32 %v10036_v55, 0.0 }
 0x24f   : > { %v2011_v54 = vrot.slane %v10116_v13, 7  ;;  %v2259_v48 = vsel %vm2100_vm2, %v2257_v56, %v2258_v45  ;;  %v2260_v31 = vrot.slane %v2097_v11, 1  ;;  %v14280_v20 = vrot.slane %v10091_v51, 2 }
 0x250   : > { %3519 = vst [vmem:[#allocation1 + $0x6] ss:$9 sm:$0xff] %v14278_v25  ;;  %v2740_v49 = vrot.slane %v10177_v16, 3  ;;  %v14281_v9 = vmax.f32 %v10024_v59, %v10113_v19  ;;  %v2010_v13 = vrot.slane %v10078_v1, 7  ;;  %v2014_v25 = vrot.slane %v10192_v28, 7 }
 0x251   : > { %3521 = vst [vmem:[#allocation1 + $0x7] ss:$9 sm:$0xff] %v14279_v60  ;;  %v10256_v23 = vmax.f32 %v2370_v52, %v14280_v20  ;;  %v2262_v56 = vsel %vm2100_vm2, %v2260_v31, %v14056_v2  ;;  %v2455_v51 = vrot.slane %v10201_v62, 2  ;;  %v10272_v16 = vmax.f32 %v2372_v6, %v2452_v0 }
 0x252   : > { %v3166_v10 = vmax.f32 %v14281_v9, %v10231_v61  ;;  %v3021_v20 = vsel %vm2998_vm4, %v2992_v38, %v2684_v27  ;;  %v3022_v59 = vsel %vm2998_vm4, %v2993_v47, %v2685_v39  ;;  %v2373_v19 = vmax.f32 %v2096_v40, %v2259_v48  ;;  %v14282_v9 = vld [vmem:[#allocation3_spill] sm:$0xff] }
 0x253   : > { %v2012_v52 = vsel %vm1931_vm1, %v2010_v13, %v2011_v54  ;;  %v2013_v1 = vrot.slane %v10158_v37, 7  ;;  %v2454_v28 = vrot.slane %v2096_v40, 2  ;;  %v2458_v60 = vrot.slane %v10214_v7, 2 }
 0x254   : > { %v2741_v31 = vrot.slane %v10185_v44, 3  ;;  %v14283_v55 = vmax.f32 %v14282_v9, 0.0  ;;  %v3428_v14 = vmax.f32 %v10195_v41, 0.0  ;;  %v2375_v0 = vmax.f32 %v2097_v11, %v2262_v56 }
 0x255   : > { %v3050_v6 = vsel %vm3027_vm5, %v3021_v20, %v2740_v49  ;;  %v2015_v27 = vsel %vm1931_vm1, %v2013_v1, %v2014_v25  ;;  %v2456_v37 = vsel %vm2381_vm3, %v2454_v28, %v2455_v51  ;;  %v2457_v40 = vrot.slane %v2097_v11, 2 }
 0x256   : > { %v10282_v2 = vmax.f32 %v14283_v55, %v3166_v10  ;;  %v2824_v39 = vrot.slane %v10256_v23, 4  ;;  %v3051_v44 = vsel %vm3027_vm5, %v3022_v59, %v2741_v31  ;;  %v10295_v47 = vsel %vm2100_vm2, %v2012_v52, 0.0 }
 0x257   : > { %v10297_v54 = vmax.f32 %v2373_v19, %v2456_v37  ;;  %v2825_v48 = vrot.slane %v10272_v16, 4  ;;  %v2880_v49 = vrot.slane %v10256_v23, 5  ;;  %v3429_v10 = vmax.f32 %v10198_v63, 0.0 }
 0x258   : > { %14284 = vst [vmem:[#allocation12_spill] sm:$0xff] %v10282_v2  ;;  %v10292_v38 = vld [vmem:[#allocation1] sm:$0xff]  ;;  %v14285_v55 = vmax.f32 %v10039_v17, 0.0  ;;  %v2459_v11 = vsel %vm2381_vm3, %v2457_v40, %v2458_v60  ;;  %v3079_v25 = vsel %vm3056_vm6, %v3050_v6, %v2824_v39  ;;  %v14286_v56 = vmax.f32 %v10047_v30, 0.0 }
 0x259   : > { %v2098_v20 = vsel %vm1931_vm1, 0.0, %v2010_v13  ;;  %v10312_v59 = vsel %vm2100_vm2, %v2015_v27, 0.0  ;;  %v10314_v19 = vmax.f32 %v2375_v0, %v2459_v11  ;;  %v2936_v52 = vrot.slane %v10256_v23, 6  ;;  %3525 = vst [vmem:[#allocation1 + $0x2] ss:$9 sm:$0xff] %v3419_v42  ;;  %v8201_v23 = vld [vmem:[%s14006_s6 + $0x8] sm:$0xff] }
 0x25a   : > { %3523 = vst [vmem:[#allocation1] ss:$9 sm:$0xff] %v14285_v55  ;;  %v3080_v17 = vsel %vm3056_vm6, %v3051_v44, %v2825_v48  ;;  %v14080_v28 = vrot.slane %v10282_v2, 1  ;;  %v2264_v31 = vrot.slane %v10295_v47, 1  ;;  %v2881_v30 = vrot.slane %v10272_v16, 5  ;;  %3615 = vmatpush.bf16.msra.mxu2 %v8201_v23  ;;  %v8200_v48 = vld [vmem:[%s14006_s6] sm:$0xff] }
 0x25b   : > { %3524 = vst [vmem:[#allocation1 + $0x1] ss:$9 sm:$0xff] %v14286_v56  ;;  %v3314_v13 = vmul.f32 %v9699_v4, %v10282_v2  ;;  %v14287_v9 = vmax.f32 %v10060_v22, 0.0  ;;  %v2099_v0 = vsel %vm1931_vm1, 0.0, %v2013_v1  ;;  %v2630_v6 = vrot.slane %v10297_v54, 1 }
 0x25c   : > { %v3108_v8 = vsel %vm3085_vm7, %v3079_v25, %v2880_v49  ;;  %v14079_v42 = vrot.slane %v10282_v2, 2  ;;  %v14288_v27 = vmax.f32 %v10070_v21, 0.0  ;;  %v2263_v37 = vrot.slane %v2098_v20, 1 }
 0x25d   : > { %3526 = vst [vmem:[#allocation1 + $0x3] ss:$9 sm:$0xff] %v14287_v9  ;;  %v2267_v40 = vrot.slane %v10312_v59, 1  ;;  %v3109_v22 = vsel %vm3085_vm7, %v3080_v17, %v2881_v30  ;;  %v14078_v39 = vrot.slane %v10282_v2, 3  ;;  %v14077_v44 = vrot.slane %v10282_v2, 4 }
 0x25e   : > { %3527 = vst [vmem:[#allocation1 + $0x4] ss:$9 sm:$0xff] %v14288_v27  ;;  %v14289_v1 = vmax.f32 %v10085_v3, 0.0  ;;  %v2631_v21 = vrot.slane %v10314_v19, 1  ;;  %v14290_v49 = vmax.f32 %v10162_v15, 0.0  ;;  %v2265_v55 = vsel %vm2100_vm2, %v2263_v37, %v2264_v31  ;;  %3616 = vmatpush.bf16.msra.mxu2 %v8200_v48 }
 0x25f   : > { %v2266_v11 = vrot.slane %v2099_v0, 1  ;;  %v2374_v3 = vmax.f32 %v10201_v62, %v2258_v45  ;;  %v2686_v25 = vrot.slane %v10297_v54, 2  ;;  %v2937_v56 = vrot.slane %v10272_v16, 6 }
 0x260   : > { %3528 = vst [vmem:[#allocation1 + $0x5] ss:$9 sm:$0xff] %v14289_v1  ;;  %v3136_v17 = vsel %vm2381_vm3, %v3108_v8, %v2936_v52  ;;  %v14076_v30 = vrot.slane %v10282_v2, 5  ;;  %v14291_v15 = vmax.f32 %v10165_v58, 0.0  ;;  %v2994_v9 = vsel %vm1931_vm1, %v10297_v54, %v2630_v6 }
 0x261   : > { %3529 = vst [vmem:[#allocation1 + $0x6] ss:$9 sm:$0xff] %v14290_v49  ;;  %v2268_v23 = vsel %vm2100_vm2, %v2266_v11, %v2267_v40  ;;  %v14292_v45 = vrot.slane %v10214_v7, 1  ;;  %v2461_v16 = vrot.slane %v10295_v47, 2  ;;  %v2687_v52 = vrot.slane %v10314_v19, 2 }
 0x262   : > { %3530 = vst [vmem:[#allocation1 + $0x7] ss:$9 sm:$0xff] %v14291_v15  ;;  %v10371_v8 = vsel %vm2381_vm3, %v3109_v22, %v2937_v56  ;;  %v3315_v58 = vmul.f32 %v9702_v35, %v14080_v28  ;;  %v2377_v6 = vmax.f32 %v2098_v20, %v2265_v55  ;;  %v2995_v37 = vsel %vm1931_vm1, %v10314_v19, %v2631_v21 }
 0x263   : > { %v2376_v27 = vmax.f32 %v10214_v7, %v14292_v45  ;;  %v2460_v1 = vrot.slane %v2098_v20, 2  ;;  %v2464_v49 = vrot.slane %v10312_v59, 2  ;;  %v2571_v11 = vmax.f32 %v2374_v3, %v2455_v51 }
 0x264   : > { %v3023_v15 = vsel %vm2998_vm4, %v2994_v9, %v2686_v25  ;;  %v3153_v22 = vmax.f32 %v10231_v61, %v3136_v17  ;;  %v3316_v56 = vmul.f32 %v9800_v53, %v14079_v42  ;;  %v2379_v45 = vmax.f32 %v2099_v0, %v2268_v23 }
 0x265   : > { %v2742_v48 = vrot.slane %v10297_v54, 3  ;;  %v2462_v20 = vsel %vm2381_vm3, %v2460_v1, %v2461_v16  ;;  %v2463_v21 = vrot.slane %v2099_v0, 2  ;;  %v10392_v62 = vmax.f32 %v2376_v27, %v2458_v60  ;;  %v14295_v1 = vld [vmem:[#allocation4_spill] sm:$0xff] }
 0x266   : > { %v3024_v51 = vsel %vm2998_vm4, %v2995_v37, %v2687_v52  ;;  %v3167_v61 = vmax.f32 %v3153_v22, %v10371_v8  ;;  %v10396_v55 = vmax.f32 %v2377_v6, %v2462_v20  ;;  %v2743_v3 = vrot.slane %v10314_v19, 3  ;;  %v14299_v20 = vld [vmem:[#allocation10_spill] sm:$0xff] }
 0x267   : > { %v3052_v25 = vsel %vm3027_vm5, %v3023_v15, %v2742_v48  ;;  %v14075_v54 = vrot.slane %v10282_v2, 6  ;;  %v3381_v17 = vadd.f32 %v9753_v32, %v3314_v13  ;;  %v2465_v7 = vsel %vm2381_vm3, %v2463_v21, %v2464_v49  ;;  %v10415_v13 = vld [vmem:[%s14235_s27] ss:$0 sm:$0xff] }
 0x268   : > { %v2826_v60 = vrot.slane %v2571_v11, 4  ;;  %v3382_v0 = vadd.f32 %v9756_v57, %v3315_v58  ;;  %v14293_v23 = vmax.f32 %v10180_v50, 0.0  ;;  %v10409_v19 = vmax.f32 %v2379_v45, %v2465_v7 }
 0x269   : > { %v3531_v9 = vld [vmem:[#allocation1] sm:$0xff]  ;;  %v3053_v52 = vsel %vm3027_vm5, %v3024_v51, %v2743_v3  ;;  %v3317_v6 = vmul.f32 %v10415_v13, %v14078_v39  ;;  %v3383_v58 = vadd.f32 %v9870_v46, %v3316_v56  ;;  %v14294_v50 = vmax.f32 %v10183_v34, 0.0 }
 0x26a   : > { %3532 = vst [vmem:[#allocation1] ss:$9 sm:$0xff] %v14293_v23  ;;  %v3577_v27 = vpack.c.bf16 %v3531_v9, %v10292_v38  ;;  %v2827_v38 = vrot.slane %v10392_v62, 4  ;;  %v3081_v37 = vsel %vm3056_vm6, %v3052_v25, %v2826_v60  ;;  %v14296_v15 = vmax.f32 %v14295_v1, 0.0 }
 0x26b   : > { %3533 = vst [vmem:[#allocation1 + $0x1] ss:$9 sm:$0xff] %v14294_v50  ;;  %v3318_v45 = vmul.f32 %v9663_v36, %v14077_v44  ;;  %v14298_v48 = vmax.f32 %v10189_v24, 0.0  ;;  %v2632_v34 = vrot.slane %v10396_v55, 1  ;;  %v2882_v56 = vrot.slane %v2571_v11, 5 }
 0x26c   : > { %v10427_v22 = vmax.f32 %v14296_v15, %v3167_v61  ;;  %7824 = vmatmul.msk.bf16.vlgmr.msra.gmra.mxu2 %vm980_vm0, %v3577_v27  ;;  %v3319_v21 = vmul.f32 %v14299_v20, %v14076_v30  ;;  %v3320_v51 = vmul.f32 %v9683_v33, %v14075_v54  ;;  %v3430_v61 = vmax.f32 %v3381_v17, 0.0  ;;  %3535 = vst [vmem:[#allocation1 + $0x3] ss:$9 sm:$0xff] %v3428_v14  ;;  %v10469_v50 = vld [vmem:[%s14005_s5] ss:$0 sm:$0xff] }
 0x26d   : > { %3534 = vst [vmem:[#allocation1 + $0x2] ss:$9 sm:$0xff] %v14298_v48  ;;  %v3082_v24 = vsel %vm3056_vm6, %v3053_v52, %v2827_v38  ;;  %v3431_v3 = vmax.f32 %v3382_v0, 0.0  ;;  %v2633_v25 = vrot.slane %v10409_v19, 1  ;;  %v2883_v9 = vrot.slane %v10392_v62, 5 }
 0x26e   : > { %14297 = vst [vmem:[#allocation13_spill] sm:$0xff] %v10427_v22  ;;  %v3110_v7 = vsel %vm3085_vm7, %v3081_v37, %v2882_v56  ;;  %v3432_v60 = vmax.f32 %v3383_v58, 0.0  ;;  %v2378_v17 = vmax.f32 %v10295_v47, %v2264_v31  ;;  %v2688_v41 = vrot.slane %v10396_v55, 2 }
 0x26f   : > { %3536 = vst [vmem:[#allocation1 + $0x4] ss:$9 sm:$0xff] %v3429_v10  ;;  %v2938_v14 = vrot.slane %v2571_v11, 6  ;;  %v14074_v0 = vrot.slane %v10427_v22, 1  ;;  %v14073_v63 = vrot.slane %v10427_v22, 2  ;;  %v2996_v10 = vsel %vm1931_vm1, %v10396_v55, %v2632_v34 }
 0x270   : > { %3537 = vst [vmem:[#allocation1 + $0x5] ss:$9 sm:$0xff] %v3430_v61  ;;  %v3111_v23 = vsel %vm3085_vm7, %v3082_v24, %v2883_v9  ;;  %v2380_v27 = vmax.f32 %v10312_v59, %v2267_v40  ;;  %v2689_v31 = vrot.slane %v10409_v19, 2  ;;  %v2939_v52 = vrot.slane %v10392_v62, 6  ;;  %v14302_v59 = vld [vmem:[#allocation15_spill] sm:$0xff] }
 0x271   : > { %3538 = vst [vmem:[#allocation1 + $0x6] ss:$9 sm:$0xff] %v3431_v3  ;;  %v3138_v11 = vsel %vm2381_vm3, %v3110_v7, %v2938_v14  ;;  %v14072_v58 = vrot.slane %v10427_v22, 3  ;;  %v3384_v38 = vadd.f32 %v10469_v50, %v3317_v6  ;;  %v3385_v37 = vadd.f32 %v9711_v29, %v3318_v45 }
 0x272   : > { %3539 = vst [vmem:[#allocation1 + $0x7] ss:$9 sm:$0xff] %v3432_v60  ;;  %v2997_v40 = vsel %vm1931_vm1, %v10409_v19, %v2633_v25  ;;  %v3321_v1 = vmul.f32 %v9686_v18, %v10427_v22  ;;  %v2575_v62 = vmax.f32 %v2378_v17, %v2461_v16  ;;  %v3025_v15 = vsel %vm2998_vm4, %v2996_v10, %v2688_v41 }
 0x273   : > { %v10481_v48 = vsel %vm2381_vm3, %v3111_v23, %v2939_v52  ;;  %v3322_v6 = vmul.f32 %v9699_v4, %v14074_v0  ;;  %v3386_v45 = vadd.f32 %v9716_v26, %v3319_v21  ;;  %v2744_v34 = vrot.slane %v10396_v55, 3 }
 0x274   : > { %v3154_v56 = vmax.f32 %v10371_v8, %v3138_v11  ;;  %v3323_v47 = vmul.f32 %v9702_v35, %v14073_v63  ;;  %v3387_v16 = vadd.f32 %v9739_v5, %v3320_v51  ;;  %v2577_v61 = vmax.f32 %v2380_v27, %v2464_v49  ;;  %v14300_v51 = vld [vmem:[#allocation8_spill] sm:$0xff] }
 0x275   : > { %v3026_v24 = vsel %vm2998_vm4, %v2997_v40, %v2689_v31  ;;  %v3324_v3 = vmul.f32 %v9800_v53, %v14072_v58  ;;  %v2745_v21 = vrot.slane %v10409_v19, 3  ;;  %v3054_v55 = vsel %vm3027_vm5, %v3025_v15, %v2744_v34 }
 0x276   : > { %v3168_v8 = vmax.f32 %v3154_v56, %v10481_v48  ;;  %v3388_v25 = vadd.f32 %v9747_v12, %v3321_v1  ;;  %v3433_v9 = vmax.f32 %v3384_v38, 0.0  ;;  %v2828_v7 = vrot.slane %v2575_v62, 4  ;;  %v14303_v1 = vld [vmem:[#allocation7_spill] sm:$0xff] }
 0x277   : > { %v14301_v60 = vrot.slane %v14300_v51, 5  ;;  %v3389_v17 = vadd.f32 %v9753_v32, %v3322_v6  ;;  %v3434_v41 = vmax.f32 %v3385_v37, 0.0  ;;  %v3435_v14 = vmax.f32 %v3386_v45, 0.0 }
 0x278   : > { %v3055_v19 = vsel %vm3027_vm5, %v3026_v24, %v2745_v21  ;;  %v3390_v23 = vadd.f32 %v9756_v57, %v3323_v47  ;;  %v3436_v27 = vmax.f32 %v3387_v16, 0.0  ;;  %v2829_v31 = vrot.slane %v2577_v61, 4 }
 0x279   : > { %v3099_v49 = vsel %vm3085_vm7, %v14302_v59, %v14301_v60  ;;  %v10508_v10 = vld [vmem:[#allocation1] sm:$0xff]  ;;  %v3083_v52 = vsel %vm3056_vm6, %v3054_v55, %v2828_v7  ;;  %v14071_v11 = vrot.slane %v10427_v22, 4  ;;  %v3391_v38 = vadd.f32 %v9870_v46, %v3324_v3 }
 0x27a   : > { %3541 = vst [vmem:[#allocation1] ss:$9 sm:$0xff] %v3433_v9  ;;  %v2884_v40 = vrot.slane %v2575_v62, 5  ;;  %v14304_v37 = vmax.f32 %v14303_v1, 0.0  ;;  %v14070_v6 = vrot.slane %v10427_v22, 5  ;;  %v3437_v45 = vmax.f32 %v3388_v25, 0.0 }
 0x27b   : > { %3542 = vst [vmem:[#allocation1 + $0x1] ss:$9 sm:$0xff] %v3434_v41  ;;  %v2927_v34 = vrot.slane %v14300_v51, 6  ;;  %v3084_v56 = vsel %vm3056_vm6, %v3055_v19, %v2829_v31  ;;  %v14069_v47 = vrot.slane %v10427_v22, 6  ;;  %v3438_v16 = vmax.f32 %v3389_v17, 0.0  ;;  %v14308_v7 = vld [vmem:[#allocation9_spill] sm:$0xff] }
 0x27c   : > { %v10517_v15 = vmax.f32 %v14304_v37, %v3168_v8  ;;  %3543 = vst [vmem:[#allocation1 + $0x2] ss:$9 sm:$0xff] %v3435_v14  ;;  %v2885_v24 = vrot.slane %v2577_v61, 5  ;;  %v3112_v3 = vsel %vm3085_vm7, %v3083_v52, %v2884_v40  ;;  %v3439_v21 = vmax.f32 %v3390_v23, 0.0  ;;  %v14306_v8 = vld [vmem:[#allocation5_spill] sm:$0xff] }
 0x27d   : > { %3544 = vst [vmem:[#allocation1 + $0x3] ss:$9 sm:$0xff] %v3436_v27  ;;  %v2940_v55 = vrot.slane %v2575_v62, 6  ;;  %v14307_v9 = vrot.slane %v14306_v8, 6  ;;  %v3127_v60 = vsel %vm2381_vm3, %v3099_v49, %v2927_v34  ;;  %v3325_v51 = vmul.f32 %v10415_v13, %v14071_v11  ;;  %v14309_v27 = vld [vmem:[#allocation6_spill] sm:$0xff] }
 0x27e   : > { %14305 = vst [vmem:[#allocation3_spill] sm:$0xff] %v10517_v15  ;;  %v3440_v59 = vmax.f32 %v3391_v38, 0.0  ;;  %v3113_v17 = vsel %vm3085_vm7, %v3084_v56, %v2885_v24  ;;  %v14068_v41 = vrot.slane %v10517_v15, 1  ;;  %v3326_v62 = vmul.f32 %v9663_v36, %v14070_v6 }
 0x27f   : > { %3545 = vst [vmem:[#allocation1 + $0x4] ss:$9 sm:$0xff] %v3437_v45  ;;  %v3126_v25 = vsel %vm2381_vm3, %v14308_v7, %v14307_v9  ;;  %v2941_v14 = vrot.slane %v2577_v61, 6  ;;  %v3140_v19 = vsel %vm2381_vm3, %v3112_v3, %v2940_v55  ;;  %v14067_v49 = vrot.slane %v10517_v15, 2 }
 0x280   : > { %3546 = vst [vmem:[#allocation1 + $0x5] ss:$9 sm:$0xff] %v3438_v16  ;;  %v3327_v23 = vmul.f32 %v14299_v20, %v14069_v47  ;;  %v3148_v31 = vmax.f32 %v14309_v27, %v3126_v25  ;;  %v14066_v52 = vrot.slane %v10517_v15, 3  ;;  %v14065_v40 = vrot.slane %v10517_v15, 4 }
 0x281   : > { %3547 = vst [vmem:[#allocation1 + $0x6] ss:$9 sm:$0xff] %v3439_v21  ;;  %v3141_v38 = vsel %vm2381_vm3, %v3113_v17, %v2941_v14  ;;  %v3328_v61 = vmul.f32 %v9683_v33, %v10517_v15  ;;  %v3392_v1 = vadd.f32 %v10469_v50, %v3325_v51  ;;  %v3155_v37 = vmax.f32 %v10481_v48, %v3140_v19 }
 0x282   : > { %3548 = vst [vmem:[#allocation1 + $0x7] ss:$9 sm:$0xff] %v3440_v59  ;;  %v3162_v45 = vmax.f32 %v3148_v31, %v3127_v60  ;;  %v3329_v34 = vmul.f32 %v9686_v18, %v14068_v41  ;;  %v3393_v56 = vadd.f32 %v9711_v29, %v3326_v62  ;;  %v3330_v16 = vmul.f32 %v9699_v4, %v14067_v49 }
 0x283   : > { %v3394_v24 = vadd.f32 %v9716_v26, %v3327_v23  ;;  %v3169_v3 = vmax.f32 %v3155_v37, %v3141_v38  ;;  %v3331_v21 = vmul.f32 %v9702_v35, %v14066_v52  ;;  %v3332_v48 = vmul.f32 %v9800_v53, %v14065_v40 }
 0x284   : > { %v3395_v55 = vadd.f32 %v9739_v5, %v3328_v61  ;;  %v3441_v8 = vmax.f32 %v3392_v1, 0.0  ;;  %v3176_v9 = vmax.f32 %v3162_v45, 0.0  ;;  %v3396_v7 = vadd.f32 %v9747_v12, %v3329_v34 }
 0x285   : > { %v3442_v25 = vmax.f32 %v3393_v56, 0.0  ;;  %v3397_v51 = vadd.f32 %v9753_v32, %v3330_v16  ;;  %v3443_v59 = vmax.f32 %v3394_v24, 0.0  ;;  %v3398_v14 = vadd.f32 %v9756_v57, %v3331_v21 }
 0x286   : > { %v10568_v62 = vmax.f32 %v3176_v9, %v3169_v3  ;;  %v14064_v19 = vrot.slane %v10517_v15, 5  ;;  %v3399_v23 = vadd.f32 %v9870_v46, %v3332_v48  ;;  %v3444_v27 = vmax.f32 %v3395_v55, 0.0 }
 0x287   : > { %v14063_v31 = vrot.slane %v10517_v15, 6  ;;  %v3445_v38 = vmax.f32 %v3396_v7, 0.0  ;;  %v3446_v61 = vmax.f32 %v3397_v51, 0.0  ;;  %v3447_v1 = vmax.f32 %v3398_v14, 0.0 }
 0x288   : > { %14310 = vst [vmem:[#allocation4_spill] sm:$0xff] %v10568_v62  ;;  %v14061_v37 = vrot.slane %v10568_v62, 2  ;;  %v3333_v45 = vmul.f32 %v10415_v13, %v14064_v19  ;;  %v3448_v34 = vmax.f32 %v3399_v23, 0.0  ;;  %v14060_v56 = vrot.slane %v10568_v62, 3 }
 0x289   : > { %v3549_v60 = vld [vmem:[#allocation1] sm:$0xff]  ;;  %v3334_v16 = vmul.f32 %v9663_v36, %v14063_v31  ;;  %v14059_v24 = vrot.slane %v10568_v62, 4  ;;  %v3335_v3 = vmul.f32 %v14299_v20, %v10568_v62  ;;  %v14058_v21 = vrot.slane %v10568_v62, 5 }
 0x28a   : > { %v3578_v17 = vpack.c.bf16 %v3549_v60, %v10508_v10  ;;  %3550 = vst [vmem:[#allocation1] ss:$9 sm:$0xff] %v3441_v8  ;;  %v14062_v10 = vrot.slane %v10568_v62, 1  ;;  %v3337_v55 = vmul.f32 %v9686_v18, %v14061_v37  ;;  %v3400_v8 = vadd.f32 %v10469_v50, %v3333_v45  ;;  %v10626_v45 = vld [vmem:[%s14008_s8] ss:$0 sm:$0xff] }
 0x28b   : > { %3551 = vst [vmem:[#allocation1 + $0x1] ss:$9 sm:$0xff] %v3442_v25  ;;  %v3338_v36 = vmul.f32 %v9699_v4, %v14060_v56  ;;  %v3401_v9 = vadd.f32 %v9711_v29, %v3334_v16  ;;  %v3339_v20 = vmul.f32 %v9702_v35, %v14059_v24  ;;  %v3402_v7 = vadd.f32 %v9716_v26, %v3335_v3 }
 0x28c   : > { %7825 = vmatmul.msk.bf16.gmra.mxu2 %vm980_vm0, %v3578_v17  ;;  %3552 = vst [vmem:[#allocation1 + $0x2] ss:$9 sm:$0xff] %v3443_v59  ;;  %v3336_v48 = vmul.f32 %v9683_v33, %v14062_v10  ;;  %v3340_v33 = vmul.f32 %v9800_v53, %v14058_v21  ;;  %v3404_v25 = vadd.f32 %v9747_v12, %v3337_v55  ;;  %v3449_v60 = vmax.f32 %v3400_v8, 0.0 }
 0x28d   : > { %3553 = vst [vmem:[#allocation1 + $0x3] ss:$9 sm:$0xff] %v3444_v27  ;;  %v3405_v51 = vadd.f32 %v9753_v32, %v3338_v36  ;;  %v3450_v4 = vmax.f32 %v3401_v9, 0.0  ;;  %v3406_v29 = vadd.f32 %v9756_v57, %v3339_v20  ;;  %v3451_v17 = vmax.f32 %v3402_v7, 0.0 }
 0x28e   : > { %3554 = vst [vmem:[#allocation1 + $0x4] ss:$9 sm:$0xff] %v3445_v38  ;;  %v3403_v18 = vadd.f32 %v9739_v5, %v3336_v48  ;;  %v14057_v35 = vrot.slane %v10568_v62, 6  ;;  %v3407_v26 = vadd.f32 %v9870_v46, %v3340_v33  ;;  %v3453_v53 = vmax.f32 %v3404_v25, 0.0 }
 0x28f   : > { %3555 = vst [vmem:[#allocation1 + $0x5] ss:$9 sm:$0xff] %v3446_v61  ;;  %v3454_v5 = vmax.f32 %v3405_v51, 0.0  ;;  %v3455_v12 = vmax.f32 %v3406_v29, 0.0  ;;  %v14322_v43 = vmov 0.0  }
 0x290   : > { %3556 = vst [vmem:[#allocation1 + $0x6] ss:$9 sm:$0xff] %v3447_v1  ;;  %v3452_v14 = vmax.f32 %v3403_v18, 0.0  ;;  %v3341_v32 = vmul.f32 %v10415_v13, %v14057_v35  ;;  %v3456_v23 = vmax.f32 %v3407_v26, 0.0  ;;  %v10621_v13 = vld [vmem:[%s14007_s7] ss:$0 sm:$0xff] }
 0x291   : > { %3557 = vst [vmem:[#allocation1 + $0x7] ss:$9 sm:$0xff] %v3448_v34 }
 0x292   : > { %v3408_v57 = vadd.f32 %v10469_v50, %v3341_v32 }
 0x294   : > { %v3457_v27 = vmax.f32 %v3408_v57, 0.0 }
 0x298   : > { %v3558_v59 = vld [vmem:[#allocation1] sm:$0xff] }
 0x299   : > { %3559 = vst [vmem:[#allocation1] ss:$9 sm:$0xff] %v3449_v60 }
 0x29a   : > { %3560 = vst [vmem:[#allocation1 + $0x1] ss:$9 sm:$0xff] %v3450_v4 }
 0x29b   : > { %3561 = vst [vmem:[#allocation1 + $0x2] ss:$9 sm:$0xff] %v3451_v17 }
 0x29c   : > { %3562 = vst [vmem:[#allocation1 + $0x3] ss:$9 sm:$0xff] %v3452_v14 }
 0x29d   : > { %3563 = vst [vmem:[#allocation1 + $0x4] ss:$9 sm:$0xff] %v3453_v53 }
 0x29e   : > { %3564 = vst [vmem:[#allocation1 + $0x5] ss:$9 sm:$0xff] %v3454_v5 }
 0x29f   : > { %3565 = vst [vmem:[#allocation1 + $0x6] ss:$9 sm:$0xff] %v3455_v12 }
 0x2a0   : > { %3566 = vst [vmem:[#allocation1 + $0x7] ss:$9 sm:$0xff] %v3456_v23 }
 0x2a7   : > { %v3567_v46 = vld [vmem:[#allocation1] sm:$0xff] }
 0x2a8   : > { %v3579_v38 = vpack.c.bf16 %v3567_v46, %v3558_v59  ;;  %3568 = vst [vmem:[#allocation1] ss:$9 sm:$0xff] %v3457_v27 }
 0x2aa   : > { %7826 = vmatmul.msk.bf16.gmra.mxu2 %vm980_vm0, %v3579_v38 }
 0x2af   : > { %v3569_v61 = vld [vmem:[#allocation1] sm:$0xff] }
 0x2b0   : > { %v3580_v1 = vpack.c.bf16 %v3569_v61, %v3569_v61 }
 0x2ba   : > { %7827 = vmatmul.msk.bf16.gmra.mxu2 %vm980_vm0, %v3580_v1 }
 0x2ef   : > { %v3618_v50 = vpop.f32.mrf.mxu2 }
 0x2f0   : > { %v3641_v34 = vmul.f32 %v10621_v13, %v3618_v50 }
 0x2f2   : > { %v3652_v16 = vadd.f32 %v10626_v45, %v3641_v34 }
 0x2f4   : > { %v3659_v3 = vmax.f32 %v3652_v16, 0.0 }
 0x2f6   : > { %v3673_v48 = vrot.slane %v3659_v3, 1  ;;  %v3674_v55 = vrot.slane %v3659_v3, 2  ;;  %v3675_v8 = vrot.slane %v3659_v3, 3  ;;  %3715 = vst [vmem:[#allocation1] ss:$9 sm:$0xff] %v3659_v3  ;;  %v3676_v36 = vrot.slane %v3659_v3, 4 }
 0x2f7   : > { %v3620_v9 = vpop.f32.mrf.mxu2  ;;  %v3677_v20 = vrot.slane %v3659_v3, 5  ;;  %v3678_v33 = vrot.slane %v3659_v3, 6  ;;  %v3679_v60 = vrot.slane %v3659_v3, 7 }
 0x2f8   : > { %3717 = vst [vmem:[#allocation1 + $0x1] ss:$9 sm:$0xff] %v3673_v48  ;;  %v3642_v7 = vmul.f32 %v10621_v13, %v3620_v9 }
 0x2f9   : > { %3719 = vst [vmem:[#allocation1 + $0x2] ss:$9 sm:$0xff] %v3674_v55 }
 0x2fa   : > { %3721 = vst [vmem:[#allocation1 + $0x3] ss:$9 sm:$0xff] %v3675_v8  ;;  %v3653_v18 = vadd.f32 %v10626_v45, %v3642_v7 }
 0x2fb   : > { %3723 = vst [vmem:[#allocation1 + $0x4] ss:$9 sm:$0xff] %v3676_v36 }
 0x2fc   : > { %3725 = vst [vmem:[#allocation1 + $0x5] ss:$9 sm:$0xff] %v3677_v20  ;;  %v3660_v25 = vmax.f32 %v3653_v18, 0.0 }
 0x2fd   : > { %3727 = vst [vmem:[#allocation1 + $0x6] ss:$9 sm:$0xff] %v3678_v33 }
 0x2fe   : > { %v3680_v51 = vrot.slane %v3660_v25, 1  ;;  %v3681_v59 = vrot.slane %v3660_v25, 2  ;;  %v3682_v29 = vrot.slane %v3660_v25, 3  ;;  %v3683_v17 = vrot.slane %v3660_v25, 4 }
 0x2ff   : > { %v3684_v26 = vrot.slane %v3660_v25, 5  ;;  %v3685_v12 = vrot.slane %v3660_v25, 6  ;;  %v3686_v32 = vrot.slane %v3660_v25, 7 }
 0x304   : > { %v10632_v4 = vld [vmem:[#allocation1] sm:$0xff] }
 0x305   : > { %3729 = vst [vmem:[#allocation1] ss:$9 sm:$0xff] %v3679_v60 }
 0x306   : > { %3730 = vst [vmem:[#allocation1 + $0x1] ss:$9 sm:$0xff] %v3660_v25 }
 0x307   : > { %3731 = vst [vmem:[#allocation1 + $0x2] ss:$9 sm:$0xff] %v3680_v51 }
 0x308   : > { %3732 = vst [vmem:[#allocation1 + $0x3] ss:$9 sm:$0xff] %v3681_v59 }
 0x309   : > { %3733 = vst [vmem:[#allocation1 + $0x4] ss:$9 sm:$0xff] %v3682_v29 }
 0x30a   : > { %3734 = vst [vmem:[#allocation1 + $0x5] ss:$9 sm:$0xff] %v3683_v17 }
 0x30b   : > { %3735 = vst [vmem:[#allocation1 + $0x6] ss:$9 sm:$0xff] %v3684_v26 }
 0x30f   : > { %v3623_v14 = vpop.f32.mrf.mxu2 }
 0x310   : > { %v3643_v53 = vmul.f32 %v10621_v13, %v3623_v14 }
 0x312   : > { %v3654_v5 = vadd.f32 %v10626_v45, %v3643_v53  ;;  %v10636_v23 = vld [vmem:[#allocation1] sm:$0xff] }
 0x313   : > { %3737 = vst [vmem:[#allocation1] ss:$9 sm:$0xff] %v3685_v12 }
 0x314   : > { %v3661_v57 = vmax.f32 %v3654_v5, 0.0  ;;  %3738 = vst [vmem:[#allocation1 + $0x1] ss:$9 sm:$0xff] %v3686_v32 }
 0x316   : > { %v3687_v27 = vrot.slane %v3661_v57, 1  ;;  %v3688_v46 = vrot.slane %v3661_v57, 2  ;;  %v3689_v38 = vrot.slane %v3661_v57, 3  ;;  %v3690_v61 = vrot.slane %v3661_v57, 4  ;;  %3739 = vst [vmem:[#allocation1 + $0x2] ss:$9 sm:$0xff] %v3661_v57 }
 0x317   : > { %v3625_v1 = vpop.f32.mrf.mxu2  ;;  %v3691_v3 = vrot.slane %v3661_v57, 5  ;;  %v3692_v48 = vrot.slane %v3661_v57, 6  ;;  %v3693_v8 = vrot.slane %v3661_v57, 7 }
 0x318   : > { %3740 = vst [vmem:[#allocation1 + $0x3] ss:$9 sm:$0xff] %v3687_v27  ;;  %v3644_v50 = vmul.f32 %v10621_v13, %v3625_v1 }
 0x319   : > { %3741 = vst [vmem:[#allocation1 + $0x4] ss:$9 sm:$0xff] %v3688_v46 }
 0x31a   : > { %3742 = vst [vmem:[#allocation1 + $0x5] ss:$9 sm:$0xff] %v3689_v38  ;;  %v3655_v34 = vadd.f32 %v10626_v45, %v3644_v50 }
 0x31b   : > { %3743 = vst [vmem:[#allocation1 + $0x6] ss:$9 sm:$0xff] %v3690_v61 }
 0x31c   : > { %v3662_v16 = vmax.f32 %v3655_v34, 0.0 }
 0x31e   : > { %v3694_v36 = vrot.slane %v3662_v16, 1  ;;  %v3695_v9 = vrot.slane %v3662_v16, 2  ;;  %v3696_v20 = vrot.slane %v3662_v16, 3  ;;  %v3697_v18 = vrot.slane %v3662_v16, 4 }
 0x31f   : > { %v3698_v25 = vrot.slane %v3662_v16, 5  ;;  %v3699_v59 = vrot.slane %v3662_v16, 6  ;;  %v3700_v29 = vrot.slane %v3662_v16, 7 }
 0x322   : > { %v10640_v55 = vld [vmem:[#allocation1] sm:$0xff] }
 0x323   : > { %3745 = vst [vmem:[#allocation1] ss:$9 sm:$0xff] %v3691_v3 }
 0x324   : > { %3746 = vst [vmem:[#allocation1 + $0x1] ss:$9 sm:$0xff] %v3692_v48 }
 0x325   : > { %3747 = vst [vmem:[#allocation1 + $0x2] ss:$9 sm:$0xff] %v3693_v8 }
 0x326   : > { %3748 = vst [vmem:[#allocation1 + $0x3] ss:$9 sm:$0xff] %v3662_v16 }
 0x327   : > { %3749 = vst [vmem:[#allocation1 + $0x4] ss:$9 sm:$0xff] %v3694_v36 }
 0x328   : > { %3750 = vst [vmem:[#allocation1 + $0x5] ss:$9 sm:$0xff] %v3695_v9 }
 0x329   : > { %3751 = vst [vmem:[#allocation1 + $0x6] ss:$9 sm:$0xff] %v3696_v20 }
 0x32d   : > { %v3628_v7 = vpop.f32.mrf.mxu2 }
 0x32e   : > { %v3645_v33 = vmul.f32 %v10621_v13, %v3628_v7 }
 0x330   : > { %v10643_v60 = vld [vmem:[#allocation1] sm:$0xff]  ;;  %v3656_v51 = vadd.f32 %v10626_v45, %v3645_v33 }
 0x331   : > { %3753 = vst [vmem:[#allocation1] ss:$9 sm:$0xff] %v3697_v18 }
 0x332   : > { %3754 = vst [vmem:[#allocation1 + $0x1] ss:$9 sm:$0xff] %v3698_v25  ;;  %v3663_v17 = vmax.f32 %v3656_v51, 0.0  ;;  %v14081_v51 = vmov 0.0  }
 0x333   : > { %3755 = vst [vmem:[#allocation1 + $0x2] ss:$9 sm:$0xff] %v3699_v59 }
 0x334   : > { %3756 = vst [vmem:[#allocation1 + $0x3] ss:$9 sm:$0xff] %v3700_v29  ;;  %v3701_v26 = vrot.slane %v3663_v17, 1  ;;  %v3702_v14 = vrot.slane %v3663_v17, 2  ;;  %v3703_v57 = vrot.slane %v3663_v17, 3  ;;  %v3704_v46 = vrot.slane %v3663_v17, 4 }
 0x335   : > { %3757 = vst [vmem:[#allocation1 + $0x4] ss:$9 sm:$0xff] %v3663_v17  ;;  %v3630_v53 = vpop.f32.mrf.mxu2  ;;  %v3705_v61 = vrot.slane %v3663_v17, 5  ;;  %v3706_v1 = vrot.slane %v3663_v17, 6  ;;  %v3707_v50 = vrot.slane %v3663_v17, 7 }
 0x336   : > { %3758 = vst [vmem:[#allocation1 + $0x5] ss:$9 sm:$0xff] %v3701_v26  ;;  %v3646_v5 = vmul.f32 %v10621_v13, %v3630_v53 }
 0x337   : > { %3759 = vst [vmem:[#allocation1 + $0x6] ss:$9 sm:$0xff] %v3702_v14 }
 0x338   : > { %v3657_v12 = vadd.f32 %v10626_v45, %v3646_v5 }
 0x33a   : > { %v3664_v27 = vmax.f32 %v3657_v12, 0.0 }
 0x33c   : > { %v3708_v34 = vrot.slane %v3664_v27, 1  ;;  %v3709_v48 = vrot.slane %v3664_v27, 2  ;;  %v3710_v8 = vrot.slane %v3664_v27, 3  ;;  %v3711_v9 = vrot.slane %v3664_v27, 4 }
 0x33d   : > { %v3633_v32 = vpop.f32.mrf.mxu2  ;;  %v3712_v7 = vrot.slane %v3664_v27, 5  ;;  %v3713_v33 = vrot.slane %v3664_v27, 6  ;;  %v3714_v18 = vrot.slane %v3664_v27, 7 }
 0x33e   : > { %v10648_v38 = vld [vmem:[#allocation1] sm:$0xff]  ;;  %v3647_v3 = vmul.f32 %v10621_v13, %v3633_v32  ;;  %v3778_v13 = vrot.slane %v14081_v51, 7 }
 0x33f   : > { %3761 = vst [vmem:[#allocation1] ss:$9 sm:$0xff] %v3703_v57 }
 0x340   : > { %3762 = vst [vmem:[#allocation1 + $0x1] ss:$9 sm:$0xff] %v3704_v46  ;;  %v3658_v20 = vadd.f32 %v10626_v45, %v3647_v3  ;;  %v10656_v59 = vsel %vm1931_vm1, 0.0, %v3778_v13  ;;  %v3779_v45 = vrot.slane %v10632_v4, 7  ;;  %v3780_v4 = vrot.slane %v10636_v23, 7 }
 0x341   : > { %3763 = vst [vmem:[#allocation1 + $0x2] ss:$9 sm:$0xff] %v3705_v61  ;;  %v3781_v23 = vrot.slane %v10640_v55, 7  ;;  %v3782_v55 = vrot.slane %v10643_v60, 7  ;;  %v3783_v60 = vrot.slane %v10648_v38, 7 }
 0x342   : > { %3764 = vst [vmem:[#allocation1 + $0x3] ss:$9 sm:$0xff] %v3706_v1  ;;  %v3665_v25 = vmax.f32 %v3658_v20, 0.0  ;;  %v10675_v32 = vsel %vm1931_vm1, 0.0, %v3779_v45 }
 0x343   : > { %3765 = vst [vmem:[#allocation1 + $0x4] ss:$9 sm:$0xff] %v3707_v50 }
 0x344   : > { %3766 = vst [vmem:[#allocation1 + $0x5] ss:$9 sm:$0xff] %v3664_v27 }
 0x345   : > { %v3635_v16 = vpop.f32.mrf.mxu2  ;;  %3767 = vst [vmem:[#allocation1 + $0x6] ss:$9 sm:$0xff] %v3708_v34 }
 0x346   : > { %14311 = vst [vmem:[#allocation10_spill] sm:$0xff] %v10656_v59  ;;  %v10694_v16 = vsel %vm1931_vm1, 0.0, %v3780_v4 }
 0x34c   : > { %v10651_v36 = vld [vmem:[#allocation1] sm:$0xff] }
 0x34d   : > { %3769 = vst [vmem:[#allocation1] ss:$9 sm:$0xff] %v3709_v48  ;;  %v3784_v38 = vrot.slane %v10651_v36, 7 }
 0x34e   : > { %3770 = vst [vmem:[#allocation1 + $0x1] ss:$9 sm:$0xff] %v3710_v8 }
 0x34f   : > { %3771 = vst [vmem:[#allocation1 + $0x2] ss:$9 sm:$0xff] %v3711_v9 }
 0x350   : > { %3772 = vst [vmem:[#allocation1 + $0x3] ss:$9 sm:$0xff] %v3712_v7 }
 0x351   : > { %3773 = vst [vmem:[#allocation1 + $0x4] ss:$9 sm:$0xff] %v3713_v33 }
 0x352   : > { %3774 = vst [vmem:[#allocation1 + $0x5] ss:$9 sm:$0xff] %v3714_v18  ;;  %v10713_v18 = vsel %vm1931_vm1, 0.0, %v3781_v23  ;;  %v10732_v23 = vsel %vm1931_vm1, 0.0, %v3782_v55  ;;  %v10751_v55 = vsel %vm1931_vm1, 0.0, %v3783_v60  ;;  %v10770_v60 = vsel %vm1931_vm1, 0.0, %v3784_v38 }
 0x353   : > { %3775 = vst [vmem:[#allocation1 + $0x6] ss:$9 sm:$0xff] %v3665_v25 }
 0x35a   : > { %v10658_v29 = vld [vmem:[#allocation1] sm:$0xff] }
 0x35b   : > { %3851 = vst [vmem:[#allocation1] sm:$0xff] %v10656_v59 }
 0x362   : > { %v10662_v17 = vld [vmem:[#allocation1 + $0x1] ss:$9 sm:$0xff]  ;;  %v10666_v14 = vld [vmem:[#allocation1 + $0x3] ss:$9 sm:$0xff] }
 0x363   : > { %v10664_v26 = vld [vmem:[#allocation1 + $0x2] ss:$9 sm:$0xff]  ;;  %v10668_v53 = vld [vmem:[#allocation1 + $0x4] ss:$9 sm:$0xff] }
 0x364   : > { %v10670_v5 = vld [vmem:[#allocation1 + $0x5] ss:$9 sm:$0xff]  ;;  %v10677_v57 = vld [vmem:[#allocation1 + $0x7] ss:$9 sm:$0xff] }
 0x365   : > { %v10672_v12 = vld [vmem:[#allocation1 + $0x6] ss:$9 sm:$0xff] }
 0x366   : > { %3866 = vst [vmem:[#allocation1] sm:$0xff] %v10675_v32 }
 0x36d   : > { %v10681_v27 = vld [vmem:[#allocation1 + $0x1] ss:$9 sm:$0xff]  ;;  %v10685_v61 = vld [vmem:[#allocation1 + $0x3] ss:$9 sm:$0xff] }
 0x36e   : > { %v10683_v46 = vld [vmem:[#allocation1 + $0x2] ss:$9 sm:$0xff]  ;;  %v10687_v1 = vld [vmem:[#allocation1 + $0x4] ss:$9 sm:$0xff] }
 0x36f   : > { %v10689_v50 = vld [vmem:[#allocation1 + $0x5] ss:$9 sm:$0xff]  ;;  %v10696_v3 = vld [vmem:[#allocation1 + $0x7] ss:$9 sm:$0xff] }
 0x370   : > { %v10691_v34 = vld [vmem:[#allocation1 + $0x6] ss:$9 sm:$0xff] }
 0x371   : > { %3874 = vst [vmem:[#allocation1] sm:$0xff] %v10694_v16 }
 0x378   : > { %v10700_v48 = vld [vmem:[#allocation1 + $0x1] ss:$9 sm:$0xff]  ;;  %v10704_v9 = vld [vmem:[#allocation1 + $0x3] ss:$9 sm:$0xff] }
 0x379   : > { %v10702_v8 = vld [vmem:[#allocation1 + $0x2] ss:$9 sm:$0xff]  ;;  %v10706_v20 = vld [vmem:[#allocation1 + $0x4] ss:$9 sm:$0xff] }
 0x37a   : > { %v10708_v7 = vld [vmem:[#allocation1 + $0x5] ss:$9 sm:$0xff]  ;;  %v10715_v25 = vld [vmem:[#allocation1 + $0x7] ss:$9 sm:$0xff] }
 0x37b   : > { %v10710_v33 = vld [vmem:[#allocation1 + $0x6] ss:$9 sm:$0xff] }
 0x37c   : > { %3882 = vst [vmem:[#allocation1] sm:$0xff] %v10713_v18 }
 0x383   : > { %v10719_v13 = vld [vmem:[#allocation1 + $0x1] ss:$9 sm:$0xff]  ;;  %v10723_v4 = vld [vmem:[#allocation1 + $0x3] ss:$9 sm:$0xff] }
 0x384   : > { %v10721_v45 = vld [vmem:[#allocation1 + $0x2] ss:$9 sm:$0xff]  ;;  %v10725_v35 = vld [vmem:[#allocation1 + $0x4] ss:$9 sm:$0xff] }
 0x385   : > { %v10727_v21 = vld [vmem:[#allocation1 + $0x5] ss:$9 sm:$0xff]  ;;  %v10734_v56 = vld [vmem:[#allocation1 + $0x7] ss:$9 sm:$0xff] }
 0x386   : > { %v10729_v24 = vld [vmem:[#allocation1 + $0x6] ss:$9 sm:$0xff] }
 0x387   : > { %3890 = vst [vmem:[#allocation1] sm:$0xff] %v10732_v23 }
 0x38e   : > { %v10738_v37 = vld [vmem:[#allocation1 + $0x1] ss:$9 sm:$0xff]  ;;  %v10742_v31 = vld [vmem:[#allocation1 + $0x3] ss:$9 sm:$0xff] }
 0x38f   : > { %v10740_v10 = vld [vmem:[#allocation1 + $0x2] ss:$9 sm:$0xff]  ;;  %v10744_v19 = vld [vmem:[#allocation1 + $0x4] ss:$9 sm:$0xff] }
 0x390   : > { %v10746_v40 = vld [vmem:[#allocation1 + $0x5] ss:$9 sm:$0xff]  ;;  %v10753_v49 = vld [vmem:[#allocation1 + $0x7] ss:$9 sm:$0xff] }
 0x391   : > { %v10748_v52 = vld [vmem:[#allocation1 + $0x6] ss:$9 sm:$0xff] }
 0x392   : > { %3898 = vst [vmem:[#allocation1] sm:$0xff] %v10751_v55 }
 0x399   : > { %v10757_v41 = vld [vmem:[#allocation1 + $0x1] ss:$9 sm:$0xff]  ;;  %v10761_v6 = vld [vmem:[#allocation1 + $0x3] ss:$9 sm:$0xff] }
 0x39a   : > { %v10759_v47 = vld [vmem:[#allocation1 + $0x2] ss:$9 sm:$0xff]  ;;  %v10763_v11 = vld [vmem:[#allocation1 + $0x4] ss:$9 sm:$0xff] }
 0x39b   : > { %v10765_v58 = vld [vmem:[#allocation1 + $0x5] ss:$9 sm:$0xff]  ;;  %v10772_v0 = vld [vmem:[#allocation1 + $0x7] ss:$9 sm:$0xff] }
 0x39c   : > { %v10767_v63 = vld [vmem:[#allocation1 + $0x6] ss:$9 sm:$0xff] }
 0x39d   : > { %3906 = vst [vmem:[#allocation1] sm:$0xff] %v10770_v60 }
 0x3a4   : > { %v10775_v36 = vld [vmem:[#allocation1 + $0x1] ss:$9 sm:$0xff]  ;;  %v10779_v30 = vld [vmem:[#allocation1 + $0x3] ss:$9 sm:$0xff] }
 0x3a5   : > { %v10777_v54 = vld [vmem:[#allocation1 + $0x2] ss:$9 sm:$0xff]  ;;  %v10781_v44 = vld [vmem:[#allocation1 + $0x4] ss:$9 sm:$0xff] }
 0x3a6   : > { %14312 = vst [vmem:[#allocation8_spill] sm:$0xff] %v10781_v44  ;;  %v10783_v39 = vld [vmem:[#allocation1 + $0x5] ss:$9 sm:$0xff]  ;;  %v10787_v28 = vld [vmem:[#allocation1 + $0x7] ss:$9 sm:$0xff] }
 0x3a7   : > { %14313 = vst [vmem:[#allocation15_spill] sm:$0xff] %v10783_v39  ;;  %v10785_v42 = vld [vmem:[#allocation1 + $0x6] ss:$9 sm:$0xff] }
 0x3a8   : > { %14314 = vst [vmem:[#allocation7_spill] sm:$0xff] %v10785_v42 }
 0x3a9   : > { %14315 = vst [vmem:[#allocation5_spill] sm:$0xff] %v10787_v28 }
 0x3aa   : > { %3914 = vst [vmem:[#allocation1] sm:$0xff] %v10656_v59 }
 0x3b1   : > { %v10790_v38 = vld [vmem:[#allocation1 + $0x2] ss:$9 sm:$0xff]  ;;  %v10794_v62 = vld [vmem:[#allocation1 + $0x4] ss:$9 sm:$0xff] }
 0x3b2   : > { %14316 = vst [vmem:[#allocation9_spill] sm:$0xff] %v10790_v38  ;;  %v10792_v51 = vld [vmem:[#allocation1 + $0x3] ss:$9 sm:$0xff]  ;;  %v10796_v15 = vld [vmem:[#allocation1 + $0x5] ss:$9 sm:$0xff] }
 0x3b3   : > { %14317 = vst [vmem:[#allocation6_spill] sm:$0xff] %v10792_v51  ;;  %v10798_v22 = vld [vmem:[#allocation1 + $0x6] ss:$9 sm:$0xff] }
 0x3b4   : > { %14318 = vst [vmem:[#allocation17_spill] sm:$0xff] %v10794_v62  ;;  %v10800_v2 = vld [vmem:[#allocation1 + $0x7] ss:$9 sm:$0xff] }
 0x3b5   : > { %14319 = vst [vmem:[#allocation18_spill] sm:$0xff] %v10796_v15 }
 0x3b6   : > { %14320 = vst [vmem:[#allocation19_spill] sm:$0xff] %v10798_v22 }
 0x3b7   : > { %14321 = vst [vmem:[#allocation20_spill] sm:$0xff] %v10800_v2 }
 0x3b8   : > { %3927 = vst [vmem:[#allocation1] sm:$0xff] %v14322_v43 }
 0x3bf   : > { %v10803_v39 = vld [vmem:[#allocation1] ss:$9 sm:$0xff] }
 0x3c0   : > { %14323 = vst [vmem:[#allocation21_spill] sm:$0xff] %v10803_v39 }
 0x3c1   : > { %3929 = vst [vmem:[#allocation1] sm:$0xff] %v10675_v32 }
 0x3c8   : > { %v10806_v28 = vld [vmem:[#allocation1 + $0x2] ss:$9 sm:$0xff]  ;;  %v10810_v38 = vld [vmem:[#allocation1 + $0x4] ss:$9 sm:$0xff] }
 0x3c9   : > { %14324 = vst [vmem:[#allocation22_spill] sm:$0xff] %v10806_v28  ;;  %v10808_v42 = vld [vmem:[#allocation1 + $0x3] ss:$9 sm:$0xff]  ;;  %v10812_v51 = vld [vmem:[#allocation1 + $0x5] ss:$9 sm:$0xff] }
 0x3ca   : > { %14325 = vst [vmem:[#allocation23_spill] sm:$0xff] %v10808_v42  ;;  %v10814_v62 = vld [vmem:[#allocation1 + $0x6] ss:$9 sm:$0xff] }
 0x3cb   : > { %14326 = vst [vmem:[#allocation24_spill] sm:$0xff] %v10810_v38  ;;  %v10816_v15 = vld [vmem:[#allocation1 + $0x7] ss:$9 sm:$0xff] }
 0x3cc   : > { %14327 = vst [vmem:[#allocation25_spill] sm:$0xff] %v10812_v51 }
 0x3cd   : > { %14328 = vst [vmem:[#allocation26_spill] sm:$0xff] %v10814_v62 }
 0x3ce   : > { %14329 = vst [vmem:[#allocation27_spill] sm:$0xff] %v10816_v15 }
 0x3cf   : > { %3936 = vst [vmem:[#allocation1] sm:$0xff] %v14322_v43 }
 0x3d6   : > { %v10819_v2 = vld [vmem:[#allocation1] ss:$9 sm:$0xff] }
 0x3d7   : > { %14330 = vst [vmem:[#allocation28_spill] sm:$0xff] %v10819_v2 }
 0x3d8   : > { %3938 = vst [vmem:[#allocation1] sm:$0xff] %v10694_v16 }
 0x3df   : > { %v10822_v39 = vld [vmem:[#allocation1 + $0x2] ss:$9 sm:$0xff]  ;;  %v10826_v28 = vld [vmem:[#allocation1 + $0x4] ss:$9 sm:$0xff] }
 0x3e0   : > { %14331 = vst [vmem:[#allocation29_spill] sm:$0xff] %v10822_v39  ;;  %v10824_v22 = vld [vmem:[#allocation1 + $0x3] ss:$9 sm:$0xff]  ;;  %v10828_v42 = vld [vmem:[#allocation1 + $0x5] ss:$9 sm:$0xff] }
 0x3e1   : > { %14332 = vst [vmem:[#allocation30_spill] sm:$0xff] %v10824_v22  ;;  %v10830_v38 = vld [vmem:[#allocation1 + $0x6] ss:$9 sm:$0xff] }
 0x3e2   : > { %14333 = vst [vmem:[#allocation31_spill] sm:$0xff] %v10826_v28  ;;  %v10832_v51 = vld [vmem:[#allocation1 + $0x7] ss:$9 sm:$0xff] }
 0x3e3   : > { %14334 = vst [vmem:[#allocation32_spill] sm:$0xff] %v10828_v42 }
 0x3e4   : > { %14335 = vst [vmem:[#allocation33_spill] sm:$0xff] %v10830_v38 }
 0x3e5   : > { %14336 = vst [vmem:[#allocation34_spill] sm:$0xff] %v10832_v51 }
 0x3e6   : > { %3945 = vst [vmem:[#allocation1] sm:$0xff] %v14322_v43 }
 0x3ed   : > { %v10835_v15 = vld [vmem:[#allocation1] ss:$9 sm:$0xff] }
 0x3ee   : > { %14337 = vst [vmem:[#allocation35_spill] sm:$0xff] %v10835_v15 }
 0x3ef   : > { %3947 = vst [vmem:[#allocation1] sm:$0xff] %v10713_v18 }
 0x3f6   : > { %v10838_v2 = vld [vmem:[#allocation1 + $0x2] ss:$9 sm:$0xff]  ;;  %v10842_v39 = vld [vmem:[#allocation1 + $0x4] ss:$9 sm:$0xff] }
 0x3f7   : > { %14338 = vst [vmem:[#allocation36_spill] sm:$0xff] %v10838_v2  ;;  %v10840_v62 = vld [vmem:[#allocation1 + $0x3] ss:$9 sm:$0xff]  ;;  %v10844_v22 = vld [vmem:[#allocation1 + $0x5] ss:$9 sm:$0xff] }
 0x3f8   : > { %14339 = vst [vmem:[#allocation37_spill] sm:$0xff] %v10840_v62  ;;  %v10846_v28 = vld [vmem:[#allocation1 + $0x6] ss:$9 sm:$0xff] }
 0x3f9   : > { %14340 = vst [vmem:[#allocation38_spill] sm:$0xff] %v10842_v39  ;;  %v10848_v42 = vld [vmem:[#allocation1 + $0x7] ss:$9 sm:$0xff] }
 0x3fa   : > { %14341 = vst [vmem:[#allocation39_spill] sm:$0xff] %v10844_v22 }
 0x3fb   : > { %14342 = vst [vmem:[#allocation40_spill] sm:$0xff] %v10846_v28 }
 0x3fc   : > { %14343 = vst [vmem:[#allocation41_spill] sm:$0xff] %v10848_v42 }
 0x3fd   : > { %3954 = vst [vmem:[#allocation1] sm:$0xff] %v14322_v43 }
 0x404   : > { %v10851_v51 = vld [vmem:[#allocation1] ss:$9 sm:$0xff] }
 0x405   : > { %14344 = vst [vmem:[#allocation42_spill] sm:$0xff] %v10851_v51 }
 0x406   : > { %3956 = vst [vmem:[#allocation1] sm:$0xff] %v10732_v23 }
 0x40d   : > { %v10854_v15 = vld [vmem:[#allocation1 + $0x2] ss:$9 sm:$0xff]  ;;  %v10858_v2 = vld [vmem:[#allocation1 + $0x4] ss:$9 sm:$0xff] }
 0x40e   : > { %14345 = vst [vmem:[#allocation43_spill] sm:$0xff] %v10854_v15  ;;  %v10856_v38 = vld [vmem:[#allocation1 + $0x3] ss:$9 sm:$0xff]  ;;  %v10860_v62 = vld [vmem:[#allocation1 + $0x5] ss:$9 sm:$0xff] }
 0x40f   : > { %14346 = vst [vmem:[#allocation44_spill] sm:$0xff] %v10856_v38  ;;  %v10862_v39 = vld [vmem:[#allocation1 + $0x6] ss:$9 sm:$0xff] }
 0x410   : > { %14347 = vst [vmem:[#allocation45_spill] sm:$0xff] %v10858_v2  ;;  %v10864_v22 = vld [vmem:[#allocation1 + $0x7] ss:$9 sm:$0xff] }
 0x411   : > { %14348 = vst [vmem:[#allocation46_spill] sm:$0xff] %v10860_v62 }
 0x412   : > { %14349 = vst [vmem:[#allocation47_spill] sm:$0xff] %v10862_v39 }
 0x413   : > { %14350 = vst [vmem:[#allocation48_spill] sm:$0xff] %v10864_v22 }
 0x414   : > { %3963 = vst [vmem:[#allocation1] sm:$0xff] %v14322_v43 }
 0x41b   : > { %v10867_v42 = vld [vmem:[#allocation1] ss:$9 sm:$0xff] }
 0x41c   : > { %14351 = vst [vmem:[#allocation49_spill] sm:$0xff] %v10867_v42 }
 0x41d   : > { %3965 = vst [vmem:[#allocation1] sm:$0xff] %v10751_v55 }
 0x424   : > { %v10870_v51 = vld [vmem:[#allocation1 + $0x2] ss:$9 sm:$0xff]  ;;  %v10874_v15 = vld [vmem:[#allocation1 + $0x4] ss:$9 sm:$0xff] }
 0x425   : > { %14352 = vst [vmem:[#allocation50_spill] sm:$0xff] %v10870_v51  ;;  %v10872_v28 = vld [vmem:[#allocation1 + $0x3] ss:$9 sm:$0xff]  ;;  %v10876_v38 = vld [vmem:[#allocation1 + $0x5] ss:$9 sm:$0xff] }
 0x426   : > { %14353 = vst [vmem:[#allocation51_spill] sm:$0xff] %v10872_v28  ;;  %v10878_v2 = vld [vmem:[#allocation1 + $0x6] ss:$9 sm:$0xff] }
 0x427   : > { %14354 = vst [vmem:[#allocation52_spill] sm:$0xff] %v10874_v15  ;;  %v10880_v62 = vld [vmem:[#allocation1 + $0x7] ss:$9 sm:$0xff] }
 0x428   : > { %14355 = vst [vmem:[#allocation53_spill] sm:$0xff] %v10876_v38 }
 0x429   : > { %14356 = vst [vmem:[#allocation54_spill] sm:$0xff] %v10878_v2 }
 0x42a   : > { %14357 = vst [vmem:[#allocation55_spill] sm:$0xff] %v10880_v62 }
 0x42b   : > { %3972 = vst [vmem:[#allocation1] sm:$0xff] %v14322_v43 }
 0x432   : > { %v10883_v22 = vld [vmem:[#allocation1] ss:$9 sm:$0xff] }
 0x433   : > { %14358 = vst [vmem:[#allocation56_spill] sm:$0xff] %v10883_v22 }
 0x434   : > { %3974 = vst [vmem:[#allocation1] sm:$0xff] %v10770_v60 }
 0x43b   : > { %v10886_v42 = vld [vmem:[#allocation1 + $0x2] ss:$9 sm:$0xff]  ;;  %v10890_v51 = vld [vmem:[#allocation1 + $0x4] ss:$9 sm:$0xff] }
 0x43c   : > { %14359 = vst [vmem:[#allocation57_spill] sm:$0xff] %v10886_v42  ;;  %v10888_v39 = vld [vmem:[#allocation1 + $0x3] ss:$9 sm:$0xff]  ;;  %v10892_v28 = vld [vmem:[#allocation1 + $0x5] ss:$9 sm:$0xff] }
 0x43d   : > { %14360 = vst [vmem:[#allocation58_spill] sm:$0xff] %v10888_v39  ;;  %v10894_v15 = vld [vmem:[#allocation1 + $0x6] ss:$9 sm:$0xff] }
 0x43e   : > { %14361 = vst [vmem:[#allocation59_spill] sm:$0xff] %v10890_v51  ;;  %v10896_v38 = vld [vmem:[#allocation1 + $0x7] ss:$9 sm:$0xff] }
 0x43f   : > { %14362 = vst [vmem:[#allocation60_spill] sm:$0xff] %v10892_v28 }
 0x440   : > { %14363 = vst [vmem:[#allocation61_spill] sm:$0xff] %v10894_v15 }
 0x441   : > { %14364 = vst [vmem:[#allocation62_spill] sm:$0xff] %v10896_v38 }
 0x442   : > { %3981 = vst [vmem:[#allocation1] sm:$0xff] %v14322_v43 }
 0x449   : > { %v10899_v62 = vld [vmem:[#allocation1] ss:$9 sm:$0xff] }
 0x44a   : > { %14365 = vst [vmem:[#allocation63_spill] sm:$0xff] %v10899_v62 }
 0x44b   : > { %3990 = vst [vmem:[#allocation1] sm:$0xff] %v10675_v32 }
 0x452   : > { %v10902_v22 = vld [vmem:[#allocation1 + $0x1] ss:$9 sm:$0xff]  ;;  %v10906_v42 = vld [vmem:[#allocation1 + $0x3] ss:$9 sm:$0xff] }
 0x453   : > { %14366 = vst [vmem:[#allocation64_spill] sm:$0xff] %v10902_v22  ;;  %v10904_v2 = vld [vmem:[#allocation1 + $0x2] ss:$9 sm:$0xff]  ;;  %v10908_v39 = vld [vmem:[#allocation1 + $0x4] ss:$9 sm:$0xff] }
 0x454   : > { %14367 = vst [vmem:[#allocation65_spill] sm:$0xff] %v10904_v2  ;;  %v10910_v51 = vld [vmem:[#allocation1 + $0x5] ss:$9 sm:$0xff]  ;;  %v10914_v15 = vld [vmem:[#allocation1 + $0x7] ss:$9 sm:$0xff] }
 0x455   : > { %14368 = vst [vmem:[#allocation66_spill] sm:$0xff] %v10906_v42  ;;  %v10912_v28 = vld [vmem:[#allocation1 + $0x6] ss:$9 sm:$0xff] }
 0x456   : > { %14369 = vst [vmem:[#allocation67_spill] sm:$0xff] %v10908_v39 }
 0x457   : > { %14370 = vst [vmem:[#allocation68_spill] sm:$0xff] %v10910_v51 }
 0x458   : > { %14371 = vst [vmem:[#allocation69_spill] sm:$0xff] %v10912_v28 }
 0x459   : > { %14372 = vst [vmem:[#allocation70_spill] sm:$0xff] %v10914_v15 }
 0x45a   : > { %4005 = vst [vmem:[#allocation1] sm:$0xff] %v10694_v16 }
 0x461   : > { %v10917_v38 = vld [vmem:[#allocation1 + $0x1] ss:$9 sm:$0xff]  ;;  %v10921_v44 = vld [vmem:[#allocation1 + $0x3] ss:$9 sm:$0xff] }
 0x462   : > { %14373 = vst [vmem:[#allocation71_spill] sm:$0xff] %v10917_v38  ;;  %v10919_v62 = vld [vmem:[#allocation1 + $0x2] ss:$9 sm:$0xff]  ;;  %v10923_v22 = vld [vmem:[#allocation1 + $0x4] ss:$9 sm:$0xff] }
 0x463   : > { %14374 = vst [vmem:[#allocation72_spill] sm:$0xff] %v10919_v62  ;;  %v10925_v2 = vld [vmem:[#allocation1 + $0x5] ss:$9 sm:$0xff]  ;;  %v10929_v39 = vld [vmem:[#allocation1 + $0x7] ss:$9 sm:$0xff] }
 0x464   : > { %14375 = vst [vmem:[#allocation73_spill] sm:$0xff] %v10921_v44  ;;  %v10927_v42 = vld [vmem:[#allocation1 + $0x6] ss:$9 sm:$0xff] }
 0x465   : > { %14376 = vst [vmem:[#allocation74_spill] sm:$0xff] %v10923_v22 }
 0x466   : > { %14377 = vst [vmem:[#allocation75_spill] sm:$0xff] %v10925_v2 }
 0x467   : > { %14378 = vst [vmem:[#allocation76_spill] sm:$0xff] %v10927_v42 }
 0x468   : > { %14379 = vst [vmem:[#allocation77_spill] sm:$0xff] %v10929_v39 }
 0x469   : > { %4013 = vst [vmem:[#allocation1] sm:$0xff] %v10713_v18 }
 0x470   : > { %v10932_v28 = vld [vmem:[#allocation1 + $0x1] ss:$9 sm:$0xff]  ;;  %v10936_v51 = vld [vmem:[#allocation1 + $0x3] ss:$9 sm:$0xff] }
 0x471   : > { %14380 = vst [vmem:[#allocation78_spill] sm:$0xff] %v10932_v28  ;;  %v10934_v15 = vld [vmem:[#allocation1 + $0x2] ss:$9 sm:$0xff]  ;;  %v10938_v38 = vld [vmem:[#allocation1 + $0x4] ss:$9 sm:$0xff] }
 0x472   : > { %14381 = vst [vmem:[#allocation79_spill] sm:$0xff] %v10934_v15  ;;  %v10940_v62 = vld [vmem:[#allocation1 + $0x5] ss:$9 sm:$0xff]  ;;  %v10944_v22 = vld [vmem:[#allocation1 + $0x7] ss:$9 sm:$0xff] }
 0x473   : > { %14382 = vst [vmem:[#allocation80_spill] sm:$0xff] %v10936_v51  ;;  %v10942_v44 = vld [vmem:[#allocation1 + $0x6] ss:$9 sm:$0xff] }
 0x474   : > { %14383 = vst [vmem:[#allocation81_spill] sm:$0xff] %v10938_v38 }
 0x475   : > { %14384 = vst [vmem:[#allocation82_spill] sm:$0xff] %v10940_v62 }
 0x476   : > { %14385 = vst [vmem:[#allocation83_spill] sm:$0xff] %v10942_v44 }
 0x477   : > { %14386 = vst [vmem:[#allocation84_spill] sm:$0xff] %v10944_v22 }
 0x478   : > { %4021 = vst [vmem:[#allocation1] sm:$0xff] %v10732_v23 }
 0x47f   : > { %v10947_v42 = vld [vmem:[#allocation1 + $0x1] ss:$9 sm:$0xff]  ;;  %v10951_v2 = vld [vmem:[#allocation1 + $0x3] ss:$9 sm:$0xff] }
 0x480   : > { %14387 = vst [vmem:[#allocation85_spill] sm:$0xff] %v10947_v42  ;;  %v10949_v39 = vld [vmem:[#allocation1 + $0x2] ss:$9 sm:$0xff]  ;;  %v10953_v28 = vld [vmem:[#allocation1 + $0x4] ss:$9 sm:$0xff] }
 0x481   : > { %14388 = vst [vmem:[#allocation86_spill] sm:$0xff] %v10949_v39  ;;  %v10955_v15 = vld [vmem:[#allocation1 + $0x5] ss:$9 sm:$0xff]  ;;  %v10959_v38 = vld [vmem:[#allocation1 + $0x7] ss:$9 sm:$0xff] }
 0x482   : > { %14389 = vst [vmem:[#allocation87_spill] sm:$0xff] %v10951_v2  ;;  %v10957_v51 = vld [vmem:[#allocation1 + $0x6] ss:$9 sm:$0xff] }
 0x483   : > { %14390 = vst [vmem:[#allocation88_spill] sm:$0xff] %v10953_v28 }
 0x484   : > { %14391 = vst [vmem:[#allocation89_spill] sm:$0xff] %v10955_v15 }
 0x485   : > { %14392 = vst [vmem:[#allocation90_spill] sm:$0xff] %v10957_v51 }
 0x486   : > { %14393 = vst [vmem:[#allocation91_spill] sm:$0xff] %v10959_v38  ;;  %v3785_v38 = vrot.slane %v10658_v29, 7 }
 0x487   : > { %4029 = vst [vmem:[#allocation1] sm:$0xff] %v10751_v55 }
 0x48e   : > { %v10962_v44 = vld [vmem:[#allocation1 + $0x1] ss:$9 sm:$0xff]  ;;  %v10966_v62 = vld [vmem:[#allocation1 + $0x3] ss:$9 sm:$0xff] }
 0x48f   : > { %14394 = vst [vmem:[#allocation92_spill] sm:$0xff] %v10962_v44  ;;  %v10964_v22 = vld [vmem:[#allocation1 + $0x2] ss:$9 sm:$0xff]  ;;  %v10968_v42 = vld [vmem:[#allocation1 + $0x4] ss:$9 sm:$0xff] }
 0x490   : > { %14395 = vst [vmem:[#allocation93_spill] sm:$0xff] %v10964_v22  ;;  %v10970_v39 = vld [vmem:[#allocation1 + $0x5] ss:$9 sm:$0xff]  ;;  %v10974_v28 = vld [vmem:[#allocation1 + $0x7] ss:$9 sm:$0xff] }
 0x491   : > { %14396 = vst [vmem:[#allocation94_spill] sm:$0xff] %v10966_v62  ;;  %v10972_v2 = vld [vmem:[#allocation1 + $0x6] ss:$9 sm:$0xff] }
 0x492   : > { %14397 = vst [vmem:[#allocation95_spill] sm:$0xff] %v10968_v42 }
 0x493   : > { %14398 = vst [vmem:[#allocation96_spill] sm:$0xff] %v10970_v39 }
 0x494   : > { %14399 = vst [vmem:[#allocation97_spill] sm:$0xff] %v10972_v2  ;;  %v10991_v2 = vsel %vm1931_vm1, 0.0, %v3785_v38 }
 0x495   : > { %14400 = vst [vmem:[#allocation98_spill] sm:$0xff] %v10974_v28 }
 0x496   : > { %4037 = vst [vmem:[#allocation1] sm:$0xff] %v10770_v60 }
 0x497   : > { %14407 = vst [vmem:[#allocation105_spill] sm:$0xff] %v10991_v2 }
 0x49d   : > { %v10978_v51 = vld [vmem:[#allocation1 + $0x1] ss:$9 sm:$0xff]  ;;  %v10982_v44 = vld [vmem:[#allocation1 + $0x3] ss:$9 sm:$0xff] }
 0x49e   : > { %14401 = vst [vmem:[#allocation99_spill] sm:$0xff] %v10978_v51  ;;  %v10980_v15 = vld [vmem:[#allocation1 + $0x2] ss:$9 sm:$0xff]  ;;  %v10984_v22 = vld [vmem:[#allocation1 + $0x4] ss:$9 sm:$0xff] }
 0x49f   : > { %14402 = vst [vmem:[#allocation100_spill] sm:$0xff] %v10980_v15  ;;  %v10986_v62 = vld [vmem:[#allocation1 + $0x5] ss:$9 sm:$0xff]  ;;  %v10993_v28 = vld [vmem:[#allocation1 + $0x7] ss:$9 sm:$0xff] }
 0x4a0   : > { %14403 = vst [vmem:[#allocation101_spill] sm:$0xff] %v10982_v44  ;;  %v10988_v42 = vld [vmem:[#allocation1 + $0x6] ss:$9 sm:$0xff] }
 0x4a1   : > { %14404 = vst [vmem:[#allocation102_spill] sm:$0xff] %v10984_v22 }
 0x4a2   : > { %14405 = vst [vmem:[#allocation103_spill] sm:$0xff] %v10986_v62 }
 0x4a3   : > { %14406 = vst [vmem:[#allocation104_spill] sm:$0xff] %v10988_v42 }
 0x4a4   : > { %14408 = vst [vmem:[#allocation106_spill] sm:$0xff] %v10993_v28 }
 0x4a5   : > { %4045 = vst [vmem:[#allocation1] sm:$0xff] %v10991_v2 }
 0x4ac   : > { %v10996_v29 = vld [vmem:[#allocation1 + $0x1] ss:$9 sm:$0xff]  ;;  %v11000_v15 = vld [vmem:[#allocation1 + $0x3] ss:$9 sm:$0xff] }
 0x4ad   : > { %14409 = vst [vmem:[#allocation107_spill] sm:$0xff] %v10996_v29  ;;  %v10998_v51 = vld [vmem:[#allocation1 + $0x2] ss:$9 sm:$0xff]  ;;  %v11002_v44 = vld [vmem:[#allocation1 + $0x4] ss:$9 sm:$0xff] }
 0x4ae   : > { %14410 = vst [vmem:[#allocation108_spill] sm:$0xff] %v10998_v51  ;;  %v11004_v22 = vld [vmem:[#allocation1 + $0x5] ss:$9 sm:$0xff]  ;;  %v11008_v42 = vld [vmem:[#allocation1 + $0x7] ss:$9 sm:$0xff] }
 0x4af   : > { %14411 = vst [vmem:[#allocation109_spill] sm:$0xff] %v11000_v15  ;;  %v11006_v62 = vld [vmem:[#allocation1 + $0x6] ss:$9 sm:$0xff] }
 0x4b0   : > { %14412 = vst [vmem:[#allocation110_spill] sm:$0xff] %v11002_v44 }
 0x4b1   : > { %14413 = vst [vmem:[#allocation111_spill] sm:$0xff] %v11004_v22 }
 0x4b2   : > { %14414 = vst [vmem:[#allocation112_spill] sm:$0xff] %v11006_v62 }
 0x4b3   : > { %14415 = vst [vmem:[#allocation113_spill] sm:$0xff] %v11008_v42 }
 0x4b4   : > { %4053 = vst [vmem:[#allocation1] sm:$0xff] %v10675_v32 }
 0x4bb   : > { %v11011_v38 = vld [vmem:[#allocation1 + $0x2] ss:$9 sm:$0xff]  ;;  %v11015_v39 = vld [vmem:[#allocation1 + $0x4] ss:$9 sm:$0xff] }
 0x4bc   : > { %14416 = vst [vmem:[#allocation114_spill] sm:$0xff] %v11011_v38  ;;  %v11013_v28 = vld [vmem:[#allocation1 + $0x3] ss:$9 sm:$0xff]  ;;  %v11017_v29 = vld [vmem:[#allocation1 + $0x5] ss:$9 sm:$0xff] }
 0x4bd   : > { %14417 = vst [vmem:[#allocation115_spill] sm:$0xff] %v11013_v28  ;;  %v11019_v51 = vld [vmem:[#allocation1 + $0x6] ss:$9 sm:$0xff] }
 0x4be   : > { %14418 = vst [vmem:[#allocation116_spill] sm:$0xff] %v11015_v39  ;;  %v11021_v15 = vld [vmem:[#allocation1 + $0x7] ss:$9 sm:$0xff] }
 0x4bf   : > { %14419 = vst [vmem:[#allocation117_spill] sm:$0xff] %v11017_v29 }
 0x4c0   : > { %14420 = vst [vmem:[#allocation118_spill] sm:$0xff] %v11019_v51 }
 0x4c1   : > { %14421 = vst [vmem:[#allocation119_spill] sm:$0xff] %v11021_v15 }
 0x4c2   : > { %4066 = vst [vmem:[#allocation1] sm:$0xff] %v14322_v43 }
 0x4c9   : > { %v11024_v22 = vld [vmem:[#allocation1] ss:$9 sm:$0xff] }
 0x4ca   : > { %14422 = vst [vmem:[#allocation120_spill] sm:$0xff] %v11024_v22 }
 0x4cb   : > { %4068 = vst [vmem:[#allocation1] sm:$0xff] %v10694_v16 }
 0x4d2   : > { %v11027_v42 = vld [vmem:[#allocation1 + $0x2] ss:$9 sm:$0xff]  ;;  %v11031_v38 = vld [vmem:[#allocation1 + $0x4] ss:$9 sm:$0xff] }
 0x4d3   : > { %14423 = vst [vmem:[#allocation121_spill] sm:$0xff] %v11027_v42  ;;  %v11029_v62 = vld [vmem:[#allocation1 + $0x3] ss:$9 sm:$0xff]  ;;  %v11033_v28 = vld [vmem:[#allocation1 + $0x5] ss:$9 sm:$0xff] }
 0x4d4   : > { %14424 = vst [vmem:[#allocation122_spill] sm:$0xff] %v11029_v62  ;;  %v11035_v39 = vld [vmem:[#allocation1 + $0x6] ss:$9 sm:$0xff] }
 0x4d5   : > { %14425 = vst [vmem:[#allocation123_spill] sm:$0xff] %v11031_v38  ;;  %v11037_v29 = vld [vmem:[#allocation1 + $0x7] ss:$9 sm:$0xff] }
 0x4d6   : > { %14426 = vst [vmem:[#allocation124_spill] sm:$0xff] %v11033_v28 }
 0x4d7   : > { %14427 = vst [vmem:[#allocation125_spill] sm:$0xff] %v11035_v39 }
 0x4d8   : > { %14428 = vst [vmem:[#allocation126_spill] sm:$0xff] %v11037_v29 }
 0x4d9   : > { %4075 = vst [vmem:[#allocation1] sm:$0xff] %v14322_v43 }
 0x4e0   : > { %v11040_v15 = vld [vmem:[#allocation1] ss:$9 sm:$0xff] }
 0x4e1   : > { %14429 = vst [vmem:[#allocation127_spill] sm:$0xff] %v11040_v15 }
 0x4e2   : > { %4077 = vst [vmem:[#allocation1] sm:$0xff] %v10713_v18 }
 0x4e9   : > { %v11043_v22 = vld [vmem:[#allocation1 + $0x2] ss:$9 sm:$0xff]  ;;  %v11047_v42 = vld [vmem:[#allocation1 + $0x4] ss:$9 sm:$0xff] }
 0x4ea   : > { %14430 = vst [vmem:[#allocation128_spill] sm:$0xff] %v11043_v22  ;;  %v11045_v51 = vld [vmem:[#allocation1 + $0x3] ss:$9 sm:$0xff]  ;;  %v11049_v62 = vld [vmem:[#allocation1 + $0x5] ss:$9 sm:$0xff] }
 0x4eb   : > { %14431 = vst [vmem:[#allocation129_spill] sm:$0xff] %v11045_v51  ;;  %v11051_v38 = vld [vmem:[#allocation1 + $0x6] ss:$9 sm:$0xff] }
 0x4ec   : > { %14432 = vst [vmem:[#allocation130_spill] sm:$0xff] %v11047_v42  ;;  %v11053_v28 = vld [vmem:[#allocation1 + $0x7] ss:$9 sm:$0xff] }
 0x4ed   : > { %14433 = vst [vmem:[#allocation131_spill] sm:$0xff] %v11049_v62 }
 0x4ee   : > { %14434 = vst [vmem:[#allocation132_spill] sm:$0xff] %v11051_v38 }
 0x4ef   : > { %14435 = vst [vmem:[#allocation133_spill] sm:$0xff] %v11053_v28 }
 0x4f0   : > { %4084 = vst [vmem:[#allocation1] sm:$0xff] %v14322_v43 }
 0x4f7   : > { %v11056_v29 = vld [vmem:[#allocation1] ss:$9 sm:$0xff] }
 0x4f8   : > { %14436 = vst [vmem:[#allocation134_spill] sm:$0xff] %v11056_v29 }
 0x4f9   : > { %4086 = vst [vmem:[#allocation1] sm:$0xff] %v10732_v23 }
 0x500   : > { %v11059_v15 = vld [vmem:[#allocation1 + $0x2] ss:$9 sm:$0xff]  ;;  %v11063_v22 = vld [vmem:[#allocation1 + $0x4] ss:$9 sm:$0xff] }
 0x501   : > { %14437 = vst [vmem:[#allocation135_spill] sm:$0xff] %v11059_v15  ;;  %v11061_v39 = vld [vmem:[#allocation1 + $0x3] ss:$9 sm:$0xff]  ;;  %v11065_v51 = vld [vmem:[#allocation1 + $0x5] ss:$9 sm:$0xff] }
 0x502   : > { %14438 = vst [vmem:[#allocation136_spill] sm:$0xff] %v11061_v39  ;;  %v11067_v42 = vld [vmem:[#allocation1 + $0x6] ss:$9 sm:$0xff] }
 0x503   : > { %14439 = vst [vmem:[#allocation137_spill] sm:$0xff] %v11063_v22  ;;  %v11069_v62 = vld [vmem:[#allocation1 + $0x7] ss:$9 sm:$0xff] }
 0x504   : > { %14440 = vst [vmem:[#allocation138_spill] sm:$0xff] %v11065_v51 }
 0x505   : > { %14441 = vst [vmem:[#allocation139_spill] sm:$0xff] %v11067_v42 }
 0x506   : > { %14442 = vst [vmem:[#allocation140_spill] sm:$0xff] %v11069_v62 }
 0x507   : > { %4093 = vst [vmem:[#allocation1] sm:$0xff] %v14322_v43 }
 0x50e   : > { %v11072_v28 = vld [vmem:[#allocation1] ss:$9 sm:$0xff] }
 0x50f   : > { %14443 = vst [vmem:[#allocation141_spill] sm:$0xff] %v11072_v28 }
 0x510   : > { %4095 = vst [vmem:[#allocation1] sm:$0xff] %v10751_v55 }
 0x517   : > { %v11075_v29 = vld [vmem:[#allocation1 + $0x2] ss:$9 sm:$0xff]  ;;  %v11079_v15 = vld [vmem:[#allocation1 + $0x4] ss:$9 sm:$0xff] }
 0x518   : > { %14444 = vst [vmem:[#allocation142_spill] sm:$0xff] %v11075_v29  ;;  %v11077_v38 = vld [vmem:[#allocation1 + $0x3] ss:$9 sm:$0xff]  ;;  %v11081_v39 = vld [vmem:[#allocation1 + $0x5] ss:$9 sm:$0xff] }
 0x519   : > { %14445 = vst [vmem:[#allocation143_spill] sm:$0xff] %v11077_v38  ;;  %v11083_v22 = vld [vmem:[#allocation1 + $0x6] ss:$9 sm:$0xff] }
 0x51a   : > { %14446 = vst [vmem:[#allocation144_spill] sm:$0xff] %v11079_v15  ;;  %v11085_v51 = vld [vmem:[#allocation1 + $0x7] ss:$9 sm:$0xff] }
 0x51b   : > { %14447 = vst [vmem:[#allocation145_spill] sm:$0xff] %v11081_v39 }
 0x51c   : > { %14448 = vst [vmem:[#allocation146_spill] sm:$0xff] %v11083_v22 }
 0x51d   : > { %14449 = vst [vmem:[#allocation147_spill] sm:$0xff] %v11085_v51 }
 0x51e   : > { %4102 = vst [vmem:[#allocation1] sm:$0xff] %v14322_v43 }
 0x525   : > { %v11088_v62 = vld [vmem:[#allocation1] ss:$9 sm:$0xff] }
 0x526   : > { %14450 = vst [vmem:[#allocation148_spill] sm:$0xff] %v11088_v62 }
 0x527   : > { %4104 = vst [vmem:[#allocation1] sm:$0xff] %v10770_v60 }
 0x52e   : > { %v11091_v28 = vld [vmem:[#allocation1 + $0x2] ss:$9 sm:$0xff]  ;;  %v11095_v29 = vld [vmem:[#allocation1 + $0x4] ss:$9 sm:$0xff] }
 0x52f   : > { %14451 = vst [vmem:[#allocation149_spill] sm:$0xff] %v11091_v28  ;;  %v11093_v42 = vld [vmem:[#allocation1 + $0x3] ss:$9 sm:$0xff]  ;;  %v11097_v38 = vld [vmem:[#allocation1 + $0x5] ss:$9 sm:$0xff] }
 0x530   : > { %14452 = vst [vmem:[#allocation150_spill] sm:$0xff] %v11093_v42  ;;  %v11099_v15 = vld [vmem:[#allocation1 + $0x6] ss:$9 sm:$0xff] }
 0x531   : > { %14453 = vst [vmem:[#allocation151_spill] sm:$0xff] %v11095_v29  ;;  %v11101_v39 = vld [vmem:[#allocation1 + $0x7] ss:$9 sm:$0xff] }
 0x532   : > { %14454 = vst [vmem:[#allocation152_spill] sm:$0xff] %v11097_v38 }
 0x533   : > { %14455 = vst [vmem:[#allocation153_spill] sm:$0xff] %v11099_v15 }
 0x534   : > { %14456 = vst [vmem:[#allocation154_spill] sm:$0xff] %v11101_v39 }
 0x535   : > { %4111 = vst [vmem:[#allocation1] sm:$0xff] %v14322_v43 }
 0x53c   : > { %v11104_v51 = vld [vmem:[#allocation1] ss:$9 sm:$0xff] }
 0x53d   : > { %14457 = vst [vmem:[#allocation155_spill] sm:$0xff] %v11104_v51 }
 0x53e   : > { %4113 = vst [vmem:[#allocation1] sm:$0xff] %v10991_v2 }
 0x545   : > { %v11107_v62 = vld [vmem:[#allocation1 + $0x2] ss:$9 sm:$0xff]  ;;  %v11111_v28 = vld [vmem:[#allocation1 + $0x4] ss:$9 sm:$0xff] }
 0x546   : > { %14458 = vst [vmem:[#allocation156_spill] sm:$0xff] %v11107_v62  ;;  %v11109_v22 = vld [vmem:[#allocation1 + $0x3] ss:$9 sm:$0xff]  ;;  %v11113_v42 = vld [vmem:[#allocation1 + $0x5] ss:$9 sm:$0xff] }
 0x547   : > { %14459 = vst [vmem:[#allocation157_spill] sm:$0xff] %v11109_v22  ;;  %v11115_v29 = vld [vmem:[#allocation1 + $0x6] ss:$9 sm:$0xff] }
 0x548   : > { %14460 = vst [vmem:[#allocation158_spill] sm:$0xff] %v11111_v28  ;;  %v11117_v38 = vld [vmem:[#allocation1 + $0x7] ss:$9 sm:$0xff] }
 0x549   : > { %14461 = vst [vmem:[#allocation159_spill] sm:$0xff] %v11113_v42 }
 0x54a   : > { %14462 = vst [vmem:[#allocation160_spill] sm:$0xff] %v11115_v29 }
 0x54b   : > { %14463 = vst [vmem:[#allocation161_spill] sm:$0xff] %v11117_v38 }
 0x54c   : > { %4120 = vst [vmem:[#allocation1] sm:$0xff] %v14322_v43 }
 0x553   : > { %v11120_v39 = vld [vmem:[#allocation1] ss:$9 sm:$0xff] }
 0x554   : > { %14464 = vst [vmem:[#allocation162_spill] sm:$0xff] %v11120_v39 }
 0x555   : > { %4122 = vst [vmem:[#allocation1] sm:$0xff] %v10694_v16 }
 0x55c   : > { %v11123_v51 = vld [vmem:[#allocation1 + $0x1] ss:$9 sm:$0xff]  ;;  %v11127_v62 = vld [vmem:[#allocation1 + $0x3] ss:$9 sm:$0xff] }
 0x55d   : > { %14465 = vst [vmem:[#allocation163_spill] sm:$0xff] %v11123_v51  ;;  %v11125_v15 = vld [vmem:[#allocation1 + $0x2] ss:$9 sm:$0xff]  ;;  %v11129_v22 = vld [vmem:[#allocation1 + $0x4] ss:$9 sm:$0xff] }
 0x55e   : > { %14466 = vst [vmem:[#allocation164_spill] sm:$0xff] %v11125_v15  ;;  %v11131_v28 = vld [vmem:[#allocation1 + $0x5] ss:$9 sm:$0xff]  ;;  %v11135_v29 = vld [vmem:[#allocation1 + $0x7] ss:$9 sm:$0xff] }
 0x55f   : > { %14467 = vst [vmem:[#allocation165_spill] sm:$0xff] %v11127_v62  ;;  %v11133_v42 = vld [vmem:[#allocation1 + $0x6] ss:$9 sm:$0xff] }
 0x560   : > { %14468 = vst [vmem:[#allocation166_spill] sm:$0xff] %v11129_v22 }
 0x561   : > { %14469 = vst [vmem:[#allocation167_spill] sm:$0xff] %v11131_v28 }
 0x562   : > { %14470 = vst [vmem:[#allocation168_spill] sm:$0xff] %v11133_v42 }
 0x563   : > { %14471 = vst [vmem:[#allocation169_spill] sm:$0xff] %v11135_v29 }
 0x564   : > { %4137 = vst [vmem:[#allocation1] sm:$0xff] %v10713_v18 }
 0x56b   : > { %v11138_v38 = vld [vmem:[#allocation1 + $0x1] ss:$9 sm:$0xff]  ;;  %v11142_v44 = vld [vmem:[#allocation1 + $0x3] ss:$9 sm:$0xff] }
 0x56c   : > { %14472 = vst [vmem:[#allocation170_spill] sm:$0xff] %v11138_v38  ;;  %v11140_v39 = vld [vmem:[#allocation1 + $0x2] ss:$9 sm:$0xff]  ;;  %v11144_v51 = vld [vmem:[#allocation1 + $0x4] ss:$9 sm:$0xff] }
 0x56d   : > { %14473 = vst [vmem:[#allocation171_spill] sm:$0xff] %v11140_v39  ;;  %v11146_v15 = vld [vmem:[#allocation1 + $0x5] ss:$9 sm:$0xff]  ;;  %v11150_v22 = vld [vmem:[#allocation1 + $0x7] ss:$9 sm:$0xff] }
 0x56e   : > { %14474 = vst [vmem:[#allocation172_spill] sm:$0xff] %v11142_v44  ;;  %v11148_v62 = vld [vmem:[#allocation1 + $0x6] ss:$9 sm:$0xff] }
 0x56f   : > { %14475 = vst [vmem:[#allocation173_spill] sm:$0xff] %v11144_v51 }
 0x570   : > { %14476 = vst [vmem:[#allocation174_spill] sm:$0xff] %v11146_v15 }
 0x571   : > { %14477 = vst [vmem:[#allocation175_spill] sm:$0xff] %v11148_v62 }
 0x572   : > { %14478 = vst [vmem:[#allocation176_spill] sm:$0xff] %v11150_v22 }
 0x573   : > { %4145 = vst [vmem:[#allocation1] sm:$0xff] %v10732_v23 }
 0x57a   : > { %v11153_v42 = vld [vmem:[#allocation1 + $0x1] ss:$9 sm:$0xff]  ;;  %v11157_v28 = vld [vmem:[#allocation1 + $0x3] ss:$9 sm:$0xff] }
 0x57b   : > { %14479 = vst [vmem:[#allocation177_spill] sm:$0xff] %v11153_v42  ;;  %v11155_v29 = vld [vmem:[#allocation1 + $0x2] ss:$9 sm:$0xff]  ;;  %v11159_v38 = vld [vmem:[#allocation1 + $0x4] ss:$9 sm:$0xff] }
 0x57c   : > { %14480 = vst [vmem:[#allocation178_spill] sm:$0xff] %v11155_v29  ;;  %v11161_v39 = vld [vmem:[#allocation1 + $0x5] ss:$9 sm:$0xff]  ;;  %v11165_v51 = vld [vmem:[#allocation1 + $0x7] ss:$9 sm:$0xff] }
 0x57d   : > { %14481 = vst [vmem:[#allocation179_spill] sm:$0xff] %v11157_v28  ;;  %v11163_v44 = vld [vmem:[#allocation1 + $0x6] ss:$9 sm:$0xff] }
 0x57e   : > { %14482 = vst [vmem:[#allocation180_spill] sm:$0xff] %v11159_v38 }
 0x57f   : > { %14483 = vst [vmem:[#allocation181_spill] sm:$0xff] %v11161_v39 }
 0x580   : > { %14484 = vst [vmem:[#allocation182_spill] sm:$0xff] %v11163_v44 }
 0x581   : > { %14485 = vst [vmem:[#allocation183_spill] sm:$0xff] %v11165_v51 }
 0x582   : > { %4153 = vst [vmem:[#allocation1] sm:$0xff] %v10751_v55 }
 0x589   : > { %v11168_v62 = vld [vmem:[#allocation1 + $0x1] ss:$9 sm:$0xff]  ;;  %v11172_v15 = vld [vmem:[#allocation1 + $0x3] ss:$9 sm:$0xff] }
 0x58a   : > { %14486 = vst [vmem:[#allocation184_spill] sm:$0xff] %v11168_v62  ;;  %v11170_v22 = vld [vmem:[#allocation1 + $0x2] ss:$9 sm:$0xff]  ;;  %v11174_v42 = vld [vmem:[#allocation1 + $0x4] ss:$9 sm:$0xff] }
 0x58b   : > { %14487 = vst [vmem:[#allocation185_spill] sm:$0xff] %v11170_v22  ;;  %v11176_v29 = vld [vmem:[#allocation1 + $0x5] ss:$9 sm:$0xff]  ;;  %v11180_v38 = vld [vmem:[#allocation1 + $0x7] ss:$9 sm:$0xff] }
 0x58c   : > { %14488 = vst [vmem:[#allocation186_spill] sm:$0xff] %v11172_v15  ;;  %v11178_v28 = vld [vmem:[#allocation1 + $0x6] ss:$9 sm:$0xff] }
 0x58d   : > { %14489 = vst [vmem:[#allocation187_spill] sm:$0xff] %v11174_v42 }
 0x58e   : > { %14490 = vst [vmem:[#allocation188_spill] sm:$0xff] %v11176_v29 }
 0x58f   : > { %14491 = vst [vmem:[#allocation189_spill] sm:$0xff] %v11178_v28 }
 0x590   : > { %14492 = vst [vmem:[#allocation190_spill] sm:$0xff] %v11180_v38 }
 0x591   : > { %4161 = vst [vmem:[#allocation1] sm:$0xff] %v10770_v60 }
 0x598   : > { %v11183_v44 = vld [vmem:[#allocation1 + $0x1] ss:$9 sm:$0xff]  ;;  %v11187_v39 = vld [vmem:[#allocation1 + $0x3] ss:$9 sm:$0xff] }
 0x599   : > { %14493 = vst [vmem:[#allocation191_spill] sm:$0xff] %v11183_v44  ;;  %v11185_v51 = vld [vmem:[#allocation1 + $0x2] ss:$9 sm:$0xff]  ;;  %v11189_v62 = vld [vmem:[#allocation1 + $0x4] ss:$9 sm:$0xff] }
 0x59a   : > { %14494 = vst [vmem:[#allocation192_spill] sm:$0xff] %v11185_v51  ;;  %v11191_v22 = vld [vmem:[#allocation1 + $0x5] ss:$9 sm:$0xff]  ;;  %v11195_v42 = vld [vmem:[#allocation1 + $0x7] ss:$9 sm:$0xff] }
 0x59b   : > { %14495 = vst [vmem:[#allocation193_spill] sm:$0xff] %v11187_v39  ;;  %v11193_v15 = vld [vmem:[#allocation1 + $0x6] ss:$9 sm:$0xff] }
 0x59c   : > { %14496 = vst [vmem:[#allocation194_spill] sm:$0xff] %v11189_v62 }
 0x59d   : > { %14497 = vst [vmem:[#allocation195_spill] sm:$0xff] %v11191_v22 }
 0x59e   : > { %14498 = vst [vmem:[#allocation196_spill] sm:$0xff] %v11193_v15 }
 0x59f   : > { %14499 = vst [vmem:[#allocation197_spill] sm:$0xff] %v11195_v42 }
 0x5a0   : > { %4169 = vst [vmem:[#allocation1] sm:$0xff] %v10991_v2 }
 0x5a7   : > { %v11198_v28 = vld [vmem:[#allocation1 + $0x1] ss:$9 sm:$0xff]  ;;  %v11202_v29 = vld [vmem:[#allocation1 + $0x3] ss:$9 sm:$0xff] }
 0x5a8   : > { %14500 = vst [vmem:[#allocation198_spill] sm:$0xff] %v11198_v28  ;;  %v11200_v38 = vld [vmem:[#allocation1 + $0x2] ss:$9 sm:$0xff]  ;;  %v11204_v44 = vld [vmem:[#allocation1 + $0x4] ss:$9 sm:$0xff] }
 0x5a9   : > { %14501 = vst [vmem:[#allocation199_spill] sm:$0xff] %v11200_v38  ;;  %v11206_v51 = vld [vmem:[#allocation1 + $0x5] ss:$9 sm:$0xff]  ;;  %v11210_v62 = vld [vmem:[#allocation1 + $0x7] ss:$9 sm:$0xff] }
 0x5aa   : > { %14502 = vst [vmem:[#allocation200_spill] sm:$0xff] %v11202_v29  ;;  %v11208_v39 = vld [vmem:[#allocation1 + $0x6] ss:$9 sm:$0xff] }
 0x5ab   : > { %14503 = vst [vmem:[#allocation201_spill] sm:$0xff] %v11204_v44 }
 0x5ac   : > { %14504 = vst [vmem:[#allocation202_spill] sm:$0xff] %v11206_v51 }
 0x5ad   : > { %14505 = vst [vmem:[#allocation203_spill] sm:$0xff] %v11208_v39 }
 0x5ae   : > { %14506 = vst [vmem:[#allocation204_spill] sm:$0xff] %v11210_v62 }
 0x5af   : > { %4177 = vst [vmem:[#allocation1] sm:$0xff] %v10656_v59 }
 0x5b6   : > { %v11213_v15 = vld [vmem:[#allocation1 + $0x1] ss:$9 sm:$0xff]  ;;  %v11217_v22 = vld [vmem:[#allocation1 + $0x3] ss:$9 sm:$0xff] }
 0x5b7   : > { %14507 = vst [vmem:[#allocation205_spill] sm:$0xff] %v11213_v15  ;;  %v11215_v42 = vld [vmem:[#allocation1 + $0x2] ss:$9 sm:$0xff]  ;;  %v11219_v28 = vld [vmem:[#allocation1 + $0x4] ss:$9 sm:$0xff] }
 0x5b8   : > { %14508 = vst [vmem:[#allocation206_spill] sm:$0xff] %v11215_v42  ;;  %v11221_v38 = vld [vmem:[#allocation1 + $0x5] ss:$9 sm:$0xff]  ;;  %v11225_v44 = vld [vmem:[#allocation1 + $0x7] ss:$9 sm:$0xff] }
 0x5b9   : > { %14509 = vst [vmem:[#allocation207_spill] sm:$0xff] %v11217_v22  ;;  %v11223_v29 = vld [vmem:[#allocation1 + $0x6] ss:$9 sm:$0xff] }
 0x5ba   : > { %14510 = vst [vmem:[#allocation208_spill] sm:$0xff] %v11219_v28  ;;  %v11346_v28 = vrot.slane %v10656_v59, 4 }
 0x5bb   : > { %14511 = vst [vmem:[#allocation209_spill] sm:$0xff] %v11221_v38 }
 0x5bc   : > { %14512 = vst [vmem:[#allocation210_spill] sm:$0xff] %v11223_v29 }
 0x5bd   : > { %14513 = vst [vmem:[#allocation211_spill] sm:$0xff] %v11225_v44 }
 0x5be   : > { %4185 = vst [vmem:[#allocation1] sm:$0xff] %v10694_v16 }
 0x5bf   : > { %14565 = vst [vmem:[#allocation263_spill] sm:$0xff] %v11346_v28 }
 0x5c5   : > { %v11228_v39 = vld [vmem:[#allocation1 + $0x2] ss:$9 sm:$0xff]  ;;  %v11232_v51 = vld [vmem:[#allocation1 + $0x4] ss:$9 sm:$0xff] }
 0x5c6   : > { %14514 = vst [vmem:[#allocation212_spill] sm:$0xff] %v11228_v39  ;;  %v11230_v62 = vld [vmem:[#allocation1 + $0x3] ss:$9 sm:$0xff]  ;;  %v11234_v15 = vld [vmem:[#allocation1 + $0x5] ss:$9 sm:$0xff] }
 0x5c7   : > { %14515 = vst [vmem:[#allocation213_spill] sm:$0xff] %v11230_v62  ;;  %v11236_v42 = vld [vmem:[#allocation1 + $0x6] ss:$9 sm:$0xff] }
 0x5c8   : > { %14516 = vst [vmem:[#allocation214_spill] sm:$0xff] %v11232_v51  ;;  %v11238_v22 = vld [vmem:[#allocation1 + $0x7] ss:$9 sm:$0xff] }
 0x5c9   : > { %14517 = vst [vmem:[#allocation215_spill] sm:$0xff] %v11234_v15 }
 0x5ca   : > { %14518 = vst [vmem:[#allocation216_spill] sm:$0xff] %v11236_v42 }
 0x5cb   : > { %14519 = vst [vmem:[#allocation217_spill] sm:$0xff] %v11238_v22 }
 0x5cc   : > { %4198 = vst [vmem:[#allocation1] sm:$0xff] %v14322_v43 }
 0x5d3   : > { %v11241_v38 = vld [vmem:[#allocation1] ss:$9 sm:$0xff] }
 0x5d4   : > { %14520 = vst [vmem:[#allocation218_spill] sm:$0xff] %v11241_v38 }
 0x5d5   : > { %4200 = vst [vmem:[#allocation1] sm:$0xff] %v10713_v18 }
 0x5dc   : > { %v11244_v44 = vld [vmem:[#allocation1 + $0x2] ss:$9 sm:$0xff]  ;;  %v11248_v39 = vld [vmem:[#allocation1 + $0x4] ss:$9 sm:$0xff] }
 0x5dd   : > { %14521 = vst [vmem:[#allocation219_spill] sm:$0xff] %v11244_v44  ;;  %v11246_v29 = vld [vmem:[#allocation1 + $0x3] ss:$9 sm:$0xff]  ;;  %v11250_v62 = vld [vmem:[#allocation1 + $0x5] ss:$9 sm:$0xff] }
 0x5de   : > { %14522 = vst [vmem:[#allocation220_spill] sm:$0xff] %v11246_v29  ;;  %v11252_v51 = vld [vmem:[#allocation1 + $0x6] ss:$9 sm:$0xff] }
 0x5df   : > { %14523 = vst [vmem:[#allocation221_spill] sm:$0xff] %v11248_v39  ;;  %v11254_v15 = vld [vmem:[#allocation1 + $0x7] ss:$9 sm:$0xff] }
 0x5e0   : > { %14524 = vst [vmem:[#allocation222_spill] sm:$0xff] %v11250_v62 }
 0x5e1   : > { %14525 = vst [vmem:[#allocation223_spill] sm:$0xff] %v11252_v51 }
 0x5e2   : > { %14526 = vst [vmem:[#allocation224_spill] sm:$0xff] %v11254_v15 }
 0x5e3   : > { %4207 = vst [vmem:[#allocation1] sm:$0xff] %v14322_v43 }
 0x5ea   : > { %v11257_v22 = vld [vmem:[#allocation1] ss:$9 sm:$0xff] }
 0x5eb   : > { %14527 = vst [vmem:[#allocation225_spill] sm:$0xff] %v11257_v22 }
 0x5ec   : > { %4209 = vst [vmem:[#allocation1] sm:$0xff] %v10732_v23 }
 0x5f3   : > { %v11260_v38 = vld [vmem:[#allocation1 + $0x2] ss:$9 sm:$0xff]  ;;  %v11264_v44 = vld [vmem:[#allocation1 + $0x4] ss:$9 sm:$0xff] }
 0x5f4   : > { %14528 = vst [vmem:[#allocation226_spill] sm:$0xff] %v11260_v38  ;;  %v11262_v42 = vld [vmem:[#allocation1 + $0x3] ss:$9 sm:$0xff]  ;;  %v11266_v29 = vld [vmem:[#allocation1 + $0x5] ss:$9 sm:$0xff] }
 0x5f5   : > { %14529 = vst [vmem:[#allocation227_spill] sm:$0xff] %v11262_v42  ;;  %v11268_v39 = vld [vmem:[#allocation1 + $0x6] ss:$9 sm:$0xff] }
 0x5f6   : > { %14530 = vst [vmem:[#allocation228_spill] sm:$0xff] %v11264_v44  ;;  %v11270_v62 = vld [vmem:[#allocation1 + $0x7] ss:$9 sm:$0xff] }
 0x5f7   : > { %14531 = vst [vmem:[#allocation229_spill] sm:$0xff] %v11266_v29 }
 0x5f8   : > { %14532 = vst [vmem:[#allocation230_spill] sm:$0xff] %v11268_v39 }
 0x5f9   : > { %14533 = vst [vmem:[#allocation231_spill] sm:$0xff] %v11270_v62 }
 0x5fa   : > { %4216 = vst [vmem:[#allocation1] sm:$0xff] %v14322_v43 }
 0x601   : > { %v11273_v15 = vld [vmem:[#allocation1] ss:$9 sm:$0xff] }
 0x602   : > { %14534 = vst [vmem:[#allocation232_spill] sm:$0xff] %v11273_v15 }
 0x603   : > { %4218 = vst [vmem:[#allocation1] sm:$0xff] %v10751_v55 }
 0x60a   : > { %v11276_v22 = vld [vmem:[#allocation1 + $0x2] ss:$9 sm:$0xff]  ;;  %v11280_v38 = vld [vmem:[#allocation1 + $0x4] ss:$9 sm:$0xff] }
 0x60b   : > { %14535 = vst [vmem:[#allocation233_spill] sm:$0xff] %v11276_v22  ;;  %v11278_v51 = vld [vmem:[#allocation1 + $0x3] ss:$9 sm:$0xff]  ;;  %v11282_v42 = vld [vmem:[#allocation1 + $0x5] ss:$9 sm:$0xff] }
 0x60c   : > { %14536 = vst [vmem:[#allocation234_spill] sm:$0xff] %v11278_v51  ;;  %v11284_v44 = vld [vmem:[#allocation1 + $0x6] ss:$9 sm:$0xff] }
 0x60d   : > { %14537 = vst [vmem:[#allocation235_spill] sm:$0xff] %v11280_v38  ;;  %v11286_v29 = vld [vmem:[#allocation1 + $0x7] ss:$9 sm:$0xff] }
 0x60e   : > { %14538 = vst [vmem:[#allocation236_spill] sm:$0xff] %v11282_v42 }
 0x60f   : > { %14539 = vst [vmem:[#allocation237_spill] sm:$0xff] %v11284_v44 }
 0x610   : > { %14540 = vst [vmem:[#allocation238_spill] sm:$0xff] %v11286_v29 }
 0x611   : > { %4225 = vst [vmem:[#allocation1] sm:$0xff] %v14322_v43 }
 0x618   : > { %v11289_v62 = vld [vmem:[#allocation1] ss:$9 sm:$0xff] }
 0x619   : > { %14541 = vst [vmem:[#allocation239_spill] sm:$0xff] %v11289_v62 }
 0x61a   : > { %4227 = vst [vmem:[#allocation1] sm:$0xff] %v10770_v60 }
 0x621   : > { %v11292_v15 = vld [vmem:[#allocation1 + $0x2] ss:$9 sm:$0xff]  ;;  %v11296_v22 = vld [vmem:[#allocation1 + $0x4] ss:$9 sm:$0xff] }
 0x622   : > { %14542 = vst [vmem:[#allocation240_spill] sm:$0xff] %v11292_v15  ;;  %v11294_v39 = vld [vmem:[#allocation1 + $0x3] ss:$9 sm:$0xff]  ;;  %v11298_v51 = vld [vmem:[#allocation1 + $0x5] ss:$9 sm:$0xff] }
 0x623   : > { %14543 = vst [vmem:[#allocation241_spill] sm:$0xff] %v11294_v39  ;;  %v11300_v38 = vld [vmem:[#allocation1 + $0x6] ss:$9 sm:$0xff] }
 0x624   : > { %14544 = vst [vmem:[#allocation242_spill] sm:$0xff] %v11296_v22  ;;  %v11302_v42 = vld [vmem:[#allocation1 + $0x7] ss:$9 sm:$0xff] }
 0x625   : > { %14545 = vst [vmem:[#allocation243_spill] sm:$0xff] %v11298_v51 }
 0x626   : > { %14546 = vst [vmem:[#allocation244_spill] sm:$0xff] %v11300_v38 }
 0x627   : > { %14547 = vst [vmem:[#allocation245_spill] sm:$0xff] %v11302_v42 }
 0x628   : > { %4234 = vst [vmem:[#allocation1] sm:$0xff] %v14322_v43 }
 0x62f   : > { %v11305_v29 = vld [vmem:[#allocation1] ss:$9 sm:$0xff] }
 0x630   : > { %14548 = vst [vmem:[#allocation246_spill] sm:$0xff] %v11305_v29  ;;  %v11325_v29 = vrot.slane %v10656_v59, 1 }
 0x631   : > { %4236 = vst [vmem:[#allocation1] sm:$0xff] %v10991_v2  ;;  %v11350_v2 = vrot.slane %v10656_v59, 5 }
 0x632   : > { %14556 = vst [vmem:[#allocation254_spill] sm:$0xff] %v11325_v29 }
 0x633   : > { %14566 = vst [vmem:[#allocation264_spill] sm:$0xff] %v11350_v2 }
 0x638   : > { %v11308_v62 = vld [vmem:[#allocation1 + $0x2] ss:$9 sm:$0xff]  ;;  %v11312_v15 = vld [vmem:[#allocation1 + $0x4] ss:$9 sm:$0xff] }
 0x639   : > { %14549 = vst [vmem:[#allocation247_spill] sm:$0xff] %v11308_v62  ;;  %v11310_v44 = vld [vmem:[#allocation1 + $0x3] ss:$9 sm:$0xff]  ;;  %v11314_v39 = vld [vmem:[#allocation1 + $0x5] ss:$9 sm:$0xff]  ;;  %v11328_v62 = vrot.slane %v10656_v59, 2 }
 0x63a   : > { %14550 = vst [vmem:[#allocation248_spill] sm:$0xff] %v11310_v44  ;;  %v11316_v22 = vld [vmem:[#allocation1 + $0x6] ss:$9 sm:$0xff] }
 0x63b   : > { %14551 = vst [vmem:[#allocation249_spill] sm:$0xff] %v11312_v15  ;;  %v11318_v51 = vld [vmem:[#allocation1 + $0x7] ss:$9 sm:$0xff]  ;;  %v11331_v15 = vrot.slane %v10656_v59, 3 }
 0x63c   : > { %14552 = vst [vmem:[#allocation250_spill] sm:$0xff] %v11314_v39 }
 0x63d   : > { %14553 = vst [vmem:[#allocation251_spill] sm:$0xff] %v11316_v22 }
 0x63e   : > { %14554 = vst [vmem:[#allocation252_spill] sm:$0xff] %v11318_v51 }
 0x63f   : > { %4243 = vst [vmem:[#allocation1] sm:$0xff] %v14322_v43 }
 0x640   : > { %14557 = vst [vmem:[#allocation255_spill] sm:$0xff] %v11328_v62 }
 0x641   : > { %14558 = vst [vmem:[#allocation256_spill] sm:$0xff] %v11331_v15 }
 0x646   : > { %v11321_v42 = vld [vmem:[#allocation1] ss:$9 sm:$0xff] }
 0x647   : > { %14555 = vst [vmem:[#allocation253_spill] sm:$0xff] %v11321_v42 }
 0x648   : > { %4245 = vst [vmem:[#allocation1] sm:$0xff] %v10656_v59 }
 0x64f   : > { %v11333_v39 = vld [vmem:[#allocation1 + $0x2] ss:$9 sm:$0xff]  ;;  %v11337_v51 = vld [vmem:[#allocation1 + $0x4] ss:$9 sm:$0xff] }
 0x650   : > { %14559 = vst [vmem:[#allocation257_spill] sm:$0xff] %v11333_v39  ;;  %v11335_v22 = vld [vmem:[#allocation1 + $0x3] ss:$9 sm:$0xff]  ;;  %v11339_v44 = vld [vmem:[#allocation1 + $0x5] ss:$9 sm:$0xff]  ;;  %v14101_v39 = vrot.slane %v10675_v32, 4 }
 0x651   : > { %14560 = vst [vmem:[#allocation258_spill] sm:$0xff] %v11335_v22  ;;  %v11341_v42 = vld [vmem:[#allocation1 + $0x6] ss:$9 sm:$0xff]  ;;  %v11354_v22 = vrot.slane %v10656_v59, 6 }
 0x652   : > { %14561 = vst [vmem:[#allocation259_spill] sm:$0xff] %v11337_v51  ;;  %v11343_v38 = vld [vmem:[#allocation1 + $0x7] ss:$9 sm:$0xff]  ;;  %v14099_v51 = vrot.slane %v10675_v32, 3 }
 0x653   : > { %14562 = vst [vmem:[#allocation260_spill] sm:$0xff] %v11339_v44 }
 0x654   : > { %14563 = vst [vmem:[#allocation261_spill] sm:$0xff] %v11341_v42  ;;  %v14100_v42 = vrot.slane %v10675_v32, 2 }
 0x655   : > { %14564 = vst [vmem:[#allocation262_spill] sm:$0xff] %v11343_v38 }
 0x656   : > { %4252 = vst [vmem:[#allocation1] sm:$0xff] %v14322_v43  ;;  %v14098_v43 = vrot.slane %v10675_v32, 1 }
 0x657   : > { %4256 = vst [vmem:[#allocation1 + $0x1] ss:$9 sm:$0xff] %v11325_v29  ;;  %v11425_v29 = vrot.slane %v10713_v18, 4 }
 0x658   : > { %14567 = vst [vmem:[#allocation265_spill] sm:$0xff] %v11354_v22 }
 0x659   : > { %4258 = vst [vmem:[#allocation1 + $0x2] ss:$9 sm:$0xff] %v11328_v62  ;;  %v11422_v62 = vrot.slane %v10713_v18, 3 }
 0x65a   : > { %4260 = vst [vmem:[#allocation1 + $0x3] ss:$9 sm:$0xff] %v11331_v15  ;;  %v11416_v15 = vrot.slane %v10713_v18, 2 }
 0x65b   : > { %4262 = vst [vmem:[#allocation1 + $0x4] ss:$9 sm:$0xff] %v11346_v28  ;;  %v11412_v28 = vrot.slane %v10713_v18, 1 }
 0x65c   : > { %4264 = vst [vmem:[#allocation1 + $0x5] ss:$9 sm:$0xff] %v11350_v2  ;;  %v11403_v2 = vrot.slane %v10694_v16, 5 }
 0x65d   : > { %4266 = vst [vmem:[#allocation1 + $0x6] ss:$9 sm:$0xff] %v11354_v22  ;;  %v11361_v38 = vld [vmem:[#allocation1] ss:$9 sm:$0xff]  ;;  %v14105_v22 = vrot.slane %v10675_v32, 6 }
 0x65e   : > { %14568 = vst [vmem:[#allocation266_spill] sm:$0xff] %v11361_v38  ;;  %v14102_v38 = vrot.slane %v10675_v32, 5 }
 0x65f   : > { %4268 = vst [vmem:[#allocation1 + $0x7] ss:$9 sm:$0xff] %v10675_v32 }
 0x660   : > { %4254 = vst [vmem:[#allocation1] ss:$9 sm:$0xff] %v10656_v59 }
 0x661   : > { %14571 = vst [vmem:[#allocation269_spill] sm:$0xff] %v11412_v28 }
 0x662   : > { %14572 = vst [vmem:[#allocation270_spill] sm:$0xff] %v11416_v15 }
 0x663   : > { %14573 = vst [vmem:[#allocation271_spill] sm:$0xff] %v11422_v62 }
 0x664   : > { %14574 = vst [vmem:[#allocation272_spill] sm:$0xff] %v11425_v29 }
 0x667   : > { %v11367_v44 = vld [vmem:[#allocation1] sm:$0xff] }
 0x668   : > { %14569 = vst [vmem:[#allocation267_spill] sm:$0xff] %v11367_v44  ;;  %v11434_v44 = vrot.slane %v10713_v18, 6 }
 0x669   : > { %4270 = vst [vmem:[#allocation1] ss:$9 sm:$0xff] %v14098_v43  ;;  %v11384_v43 = vrot.slane %v10694_v16, 1 }
 0x66a   : > { %4271 = vst [vmem:[#allocation1 + $0x1] ss:$9 sm:$0xff] %v14100_v42  ;;  %v11394_v42 = vrot.slane %v10694_v16, 3 }
 0x66b   : > { %4272 = vst [vmem:[#allocation1 + $0x2] ss:$9 sm:$0xff] %v14099_v51  ;;  %v11391_v51 = vrot.slane %v10694_v16, 2 }
 0x66c   : > { %4273 = vst [vmem:[#allocation1 + $0x3] ss:$9 sm:$0xff] %v14101_v39 }
 0x66d   : > { %4274 = vst [vmem:[#allocation1 + $0x4] ss:$9 sm:$0xff] %v14102_v38  ;;  %v11399_v38 = vrot.slane %v10694_v16, 4 }
 0x66e   : > { %4275 = vst [vmem:[#allocation1 + $0x5] ss:$9 sm:$0xff] %v14105_v22  ;;  %v11407_v22 = vrot.slane %v10694_v16, 6 }
 0x66f   : > { %4276 = vst [vmem:[#allocation1 + $0x6] ss:$9 sm:$0xff] %v10694_v16 }
 0x670   : > { %4277 = vst [vmem:[#allocation1 + $0x7] ss:$9 sm:$0xff] %v11384_v43 }
 0x671   : > { %14577 = vst [vmem:[#allocation275_spill] sm:$0xff] %v11434_v44 }
 0x677   : > { %v11396_v39 = vld [vmem:[#allocation1] sm:$0xff] }
 0x678   : > { %14570 = vst [vmem:[#allocation268_spill] sm:$0xff] %v11396_v39  ;;  %v11430_v39 = vrot.slane %v10713_v18, 5 }
 0x679   : > { %4279 = vst [vmem:[#allocation1] ss:$9 sm:$0xff] %v11391_v51 }
 0x67a   : > { %4280 = vst [vmem:[#allocation1 + $0x1] ss:$9 sm:$0xff] %v11394_v42 }
 0x67b   : > { %4281 = vst [vmem:[#allocation1 + $0x2] ss:$9 sm:$0xff] %v11399_v38 }
 0x67c   : > { %4282 = vst [vmem:[#allocation1 + $0x3] ss:$9 sm:$0xff] %v11403_v2 }
 0x67d   : > { %4283 = vst [vmem:[#allocation1 + $0x4] ss:$9 sm:$0xff] %v11407_v22 }
 0x67e   : > { %4284 = vst [vmem:[#allocation1 + $0x5] ss:$9 sm:$0xff] %v10713_v18 }
 0x67f   : > { %4285 = vst [vmem:[#allocation1 + $0x6] ss:$9 sm:$0xff] %v11412_v28  ;;  %v11443_v28 = vrot.slane %v10732_v23, 2 }
 0x680   : > { %4286 = vst [vmem:[#allocation1 + $0x7] ss:$9 sm:$0xff] %v11416_v15  ;;  %v11439_v15 = vrot.slane %v10732_v23, 1 }
 0x681   : > { %14576 = vst [vmem:[#allocation274_spill] sm:$0xff] %v11430_v39 }
 0x682   : > { %14578 = vst [vmem:[#allocation276_spill] sm:$0xff] %v11439_v15 }
 0x683   : > { %14579 = vst [vmem:[#allocation277_spill] sm:$0xff] %v11443_v28 }
 0x687   : > { %v11427_v59 = vld [vmem:[#allocation1] sm:$0xff] }
 0x688   : > { %14575 = vst [vmem:[#allocation273_spill] sm:$0xff] %v11427_v59  ;;  %v11447_v59 = vrot.slane %v10732_v23, 3 }
 0x689   : > { %4288 = vst [vmem:[#allocation1] ss:$9 sm:$0xff] %v11422_v62  ;;  %v11461_v62 = vrot.slane %v10732_v23, 6 }
 0x68a   : > { %4289 = vst [vmem:[#allocation1 + $0x1] ss:$9 sm:$0xff] %v11425_v29  ;;  %v11456_v29 = vrot.slane %v10732_v23, 5 }
 0x68b   : > { %4290 = vst [vmem:[#allocation1 + $0x2] ss:$9 sm:$0xff] %v11430_v39  ;;  %v11453_v39 = vrot.slane %v10732_v23, 4 }
 0x68c   : > { %4291 = vst [vmem:[#allocation1 + $0x3] ss:$9 sm:$0xff] %v11434_v44 }
 0x68d   : > { %4292 = vst [vmem:[#allocation1 + $0x4] ss:$9 sm:$0xff] %v10732_v23 }
 0x68e   : > { %14580 = vst [vmem:[#allocation278_spill] sm:$0xff] %v11447_v59 }
 0x68f   : > { %4293 = vst [vmem:[#allocation1 + $0x5] ss:$9 sm:$0xff] %v11439_v15  ;;  %v11466_v15 = vrot.slane %v10751_v55, 1 }
 0x690   : > { %4294 = vst [vmem:[#allocation1 + $0x6] ss:$9 sm:$0xff] %v11443_v28  ;;  %v11474_v28 = vrot.slane %v10751_v55, 3 }
 0x691   : > { %4295 = vst [vmem:[#allocation1 + $0x7] ss:$9 sm:$0xff] %v11447_v59  ;;  %v11470_v59 = vrot.slane %v10751_v55, 2 }
 0x692   : > { %14581 = vst [vmem:[#allocation279_spill] sm:$0xff] %v11453_v39 }
 0x693   : > { %14582 = vst [vmem:[#allocation280_spill] sm:$0xff] %v11456_v29 }
 0x694   : > { %14584 = vst [vmem:[#allocation282_spill] sm:$0xff] %v11461_v62 }
 0x695   : > { %14585 = vst [vmem:[#allocation283_spill] sm:$0xff] %v11466_v15 }
 0x696   : > { %14586 = vst [vmem:[#allocation284_spill] sm:$0xff] %v11470_v59 }
 0x697   : > { %14587 = vst [vmem:[#allocation285_spill] sm:$0xff] %v11474_v28 }
 0x698   : > { %v11458_v44 = vld [vmem:[#allocation1] sm:$0xff] }
 0x699   : > { %14583 = vst [vmem:[#allocation281_spill] sm:$0xff] %v11458_v44  ;;  %v11478_v44 = vrot.slane %v10751_v55, 4 }
 0x69a   : > { %4297 = vst [vmem:[#allocation1] ss:$9 sm:$0xff] %v11453_v39 }
 0x69b   : > { %4298 = vst [vmem:[#allocation1 + $0x1] ss:$9 sm:$0xff] %v11456_v29  ;;  %v11487_v29 = vrot.slane %v10751_v55, 6 }
 0x69c   : > { %4299 = vst [vmem:[#allocation1 + $0x2] ss:$9 sm:$0xff] %v11461_v62  ;;  %v11484_v62 = vrot.slane %v10751_v55, 5 }
 0x69d   : > { %4300 = vst [vmem:[#allocation1 + $0x3] ss:$9 sm:$0xff] %v10751_v55 }
 0x69e   : > { %4301 = vst [vmem:[#allocation1 + $0x4] ss:$9 sm:$0xff] %v11466_v15  ;;  %v11493_v15 = vrot.slane %v10770_v60, 1 }
 0x69f   : > { %14588 = vst [vmem:[#allocation286_spill] sm:$0xff] %v11478_v44 }
 0x6a0   : > { %4302 = vst [vmem:[#allocation1 + $0x5] ss:$9 sm:$0xff] %v11470_v59  ;;  %v11497_v59 = vrot.slane %v10770_v60, 2 }
 0x6a1   : > { %4303 = vst [vmem:[#allocation1 + $0x6] ss:$9 sm:$0xff] %v11474_v28  ;;  %v11505_v28 = vrot.slane %v10770_v60, 4 }
 0x6a2   : > { %4304 = vst [vmem:[#allocation1 + $0x7] ss:$9 sm:$0xff] %v11478_v44  ;;  %v11501_v44 = vrot.slane %v10770_v60, 3 }
 0x6a3   : > { %14589 = vst [vmem:[#allocation287_spill] sm:$0xff] %v11484_v62 }
 0x6a4   : > { %14590 = vst [vmem:[#allocation288_spill] sm:$0xff] %v11487_v29 }
 0x6a5   : > { %14592 = vst [vmem:[#allocation290_spill] sm:$0xff] %v11493_v15 }
 0x6a9   : > { %v11489_v39 = vld [vmem:[#allocation1] sm:$0xff] }
 0x6aa   : > { %14591 = vst [vmem:[#allocation289_spill] sm:$0xff] %v11489_v39  ;;  %v11509_v39 = vrot.slane %v10770_v60, 5 }
 0x6ab   : > { %4306 = vst [vmem:[#allocation1] ss:$9 sm:$0xff] %v11484_v62 }
 0x6ac   : > { %4307 = vst [vmem:[#allocation1 + $0x1] ss:$9 sm:$0xff] %v11487_v29  ;;  %v11515_v29 = vrot.slane %v10770_v60, 6 }
 0x6ad   : > { %4308 = vst [vmem:[#allocation1 + $0x2] ss:$9 sm:$0xff] %v10770_v60 }
 0x6ae   : > { %4309 = vst [vmem:[#allocation1 + $0x3] ss:$9 sm:$0xff] %v11493_v15 }
 0x6af   : > { %4310 = vst [vmem:[#allocation1 + $0x4] ss:$9 sm:$0xff] %v11497_v59 }
 0x6b0   : > { %4311 = vst [vmem:[#allocation1 + $0x5] ss:$9 sm:$0xff] %v11501_v44 }
 0x6b1   : > { %4312 = vst [vmem:[#allocation1 + $0x6] ss:$9 sm:$0xff] %v11505_v28 }
 0x6b2   : > { %4313 = vst [vmem:[#allocation1 + $0x7] ss:$9 sm:$0xff] %v11509_v39 }
 0x6b9   : > { %v11517_v62 = vld [vmem:[#allocation1] sm:$0xff] }
 0x6ba   : > { %14593 = vst [vmem:[#allocation291_spill] sm:$0xff] %v11517_v62 }
 0x6bb   : > { %4315 = vst [vmem:[#allocation1] ss:$9 sm:$0xff] %v11515_v29 }
 0x6c2   : > { %v11520_v15 = vld [vmem:[#allocation1] sm:$0xff] }
 0x6c3   : > { %4324 = vst [vmem:[#allocation1] ss:$9 sm:$0xff] %v10662_v17 }
 0x6c4   : > { %4326 = vst [vmem:[#allocation1 + $0x1] ss:$9 sm:$0xff] %v10664_v26 }
 0x6c5   : > { %4328 = vst [vmem:[#allocation1 + $0x2] ss:$9 sm:$0xff] %v10666_v14 }
 0x6c6   : > { %4330 = vst [vmem:[#allocation1 + $0x3] ss:$9 sm:$0xff] %v10668_v53 }
 0x6c7   : > { %4332 = vst [vmem:[#allocation1 + $0x4] ss:$9 sm:$0xff] %v10670_v5  ;;  %v14609_v5 = vld [vmem:[#allocation26_spill] sm:$0xff] }
 0x6c8   : > { %4334 = vst [vmem:[#allocation1 + $0x5] ss:$9 sm:$0xff] %v10672_v12  ;;  %v14610_v12 = vld [vmem:[#allocation27_spill] sm:$0xff] }
 0x6c9   : > { %4336 = vst [vmem:[#allocation1 + $0x6] ss:$9 sm:$0xff] %v10677_v57  ;;  %v14611_v57 = vld [vmem:[#allocation28_spill] sm:$0xff] }
 0x6ca   : > { %4338 = vst [vmem:[#allocation1 + $0x7] ss:$9 sm:$0xff] %v10681_v27  ;;  %v14612_v27 = vld [vmem:[#allocation29_spill] sm:$0xff] }
 0x6d1   : > { %v4339_v62 = vld [vmem:[#allocation1] sm:$0xff] }
 0x6d2   : > { %4340 = vst [vmem:[#allocation1] ss:$9 sm:$0xff] %v10683_v46  ;;  %v14613_v46 = vld [vmem:[#allocation30_spill] sm:$0xff] }
 0x6d3   : > { %4341 = vst [vmem:[#allocation1 + $0x1] ss:$9 sm:$0xff] %v10685_v61 }
 0x6d4   : > { %4342 = vst [vmem:[#allocation1 + $0x2] ss:$9 sm:$0xff] %v10687_v1  ;;  %v14614_v1 = vld [vmem:[#allocation31_spill] sm:$0xff] }
 0x6d5   : > { %4343 = vst [vmem:[#allocation1 + $0x3] ss:$9 sm:$0xff] %v10689_v50  ;;  %v14615_v50 = vld [vmem:[#allocation32_spill] sm:$0xff] }
 0x6d6   : > { %4344 = vst [vmem:[#allocation1 + $0x4] ss:$9 sm:$0xff] %v10691_v34  ;;  %v14616_v34 = vld [vmem:[#allocation33_spill] sm:$0xff] }
 0x6d7   : > { %4345 = vst [vmem:[#allocation1 + $0x5] ss:$9 sm:$0xff] %v10696_v3  ;;  %v14617_v3 = vld [vmem:[#allocation34_spill] sm:$0xff] }
 0x6d8   : > { %4346 = vst [vmem:[#allocation1 + $0x6] ss:$9 sm:$0xff] %v10700_v48  ;;  %v14618_v48 = vld [vmem:[#allocation35_spill] sm:$0xff] }
 0x6d9   : > { %4347 = vst [vmem:[#allocation1 + $0x7] ss:$9 sm:$0xff] %v10702_v8  ;;  %v14619_v8 = vld [vmem:[#allocation36_spill] sm:$0xff] }
 0x6e0   : > { %v4348_v17 = vld [vmem:[#allocation1] sm:$0xff] }
 0x6e1   : > { %v8290_v26 = vpack.i.bf16 %v4348_v17, %v4339_v62  ;;  %4349 = vst [vmem:[#allocation1] ss:$9 sm:$0xff] %v10704_v9  ;;  %v14620_v9 = vld [vmem:[#allocation37_spill] sm:$0xff] }
 0x6e2   : > { %4350 = vst [vmem:[#allocation1 + $0x1] ss:$9 sm:$0xff] %v10706_v20  ;;  %v14621_v20 = vld [vmem:[#allocation38_spill] sm:$0xff]  ;;  %v14628_v17 = vld [vmem:[#allocation45_spill] sm:$0xff] }
 0x6e3   : > { %8291 = vrot.lane.b32.xlu0 %v8290_v26, %s8447_s25  ;;  %4351 = vst [vmem:[#allocation1 + $0x2] ss:$9 sm:$0xff] %v10708_v7  ;;  %v14629_v26 = vld [vmem:[#allocation46_spill] sm:$0xff] }
 0x6e4   : > { %4352 = vst [vmem:[#allocation1 + $0x3] ss:$9 sm:$0xff] %v10710_v33  ;;  %v14622_v33 = vld [vmem:[#allocation39_spill] sm:$0xff] }
 0x6e5   : > { %4353 = vst [vmem:[#allocation1 + $0x4] ss:$9 sm:$0xff] %v10715_v25  ;;  %v14623_v25 = vld [vmem:[#allocation40_spill] sm:$0xff] }
 0x6e6   : > { %4354 = vst [vmem:[#allocation1 + $0x5] ss:$9 sm:$0xff] %v10719_v13  ;;  %v14624_v13 = vld [vmem:[#allocation41_spill] sm:$0xff] }
 0x6e7   : > { %4355 = vst [vmem:[#allocation1 + $0x6] ss:$9 sm:$0xff] %v10721_v45  ;;  %v14625_v45 = vld [vmem:[#allocation42_spill] sm:$0xff] }
 0x6e8   : > { %4356 = vst [vmem:[#allocation1 + $0x7] ss:$9 sm:$0xff] %v10723_v4  ;;  %v14626_v4 = vld [vmem:[#allocation43_spill] sm:$0xff] }
 0x6ef   : > { %v4357_v62 = vld [vmem:[#allocation1] sm:$0xff] }
 0x6f0   : > { %4358 = vst [vmem:[#allocation1] ss:$9 sm:$0xff] %v10725_v35  ;;  %v14608_v35 = vld [vmem:[#allocation25_spill] sm:$0xff] }
 0x6f1   : > { %4359 = vst [vmem:[#allocation1 + $0x1] ss:$9 sm:$0xff] %v10727_v21  ;;  %v14607_v21 = vld [vmem:[#allocation24_spill] sm:$0xff] }
 0x6f2   : > { %4360 = vst [vmem:[#allocation1 + $0x2] ss:$9 sm:$0xff] %v10729_v24  ;;  %v14606_v24 = vld [vmem:[#allocation23_spill] sm:$0xff] }
 0x6f3   : > { %4361 = vst [vmem:[#allocation1 + $0x3] ss:$9 sm:$0xff] %v10734_v56 }
 0x6f4   : > { %4362 = vst [vmem:[#allocation1 + $0x4] ss:$9 sm:$0xff] %v10738_v37  ;;  %v14605_v37 = vld [vmem:[#allocation22_spill] sm:$0xff] }
 0x6f5   : > { %4363 = vst [vmem:[#allocation1 + $0x5] ss:$9 sm:$0xff] %v10740_v10  ;;  %v14604_v10 = vld [vmem:[#allocation21_spill] sm:$0xff] }
 0x6f6   : > { %4364 = vst [vmem:[#allocation1 + $0x6] ss:$9 sm:$0xff] %v10742_v31  ;;  %v14603_v31 = vld [vmem:[#allocation20_spill] sm:$0xff] }
 0x6f7   : > { %4365 = vst [vmem:[#allocation1 + $0x7] ss:$9 sm:$0xff] %v10744_v19 }
 0x6fe   : > { %v4366_v14 = vld [vmem:[#allocation1] sm:$0xff] }
 0x6ff   : > { %v8295_v53 = vpack.i.bf16 %v4366_v14, %v4357_v62  ;;  %4367 = vst [vmem:[#allocation1] ss:$9 sm:$0xff] %v10746_v40  ;;  %v14602_v40 = vld [vmem:[#allocation19_spill] sm:$0xff] }
 0x700   : > { %4368 = vst [vmem:[#allocation1 + $0x1] ss:$9 sm:$0xff] %v10748_v52  ;;  %v14599_v52 = vld [vmem:[#allocation6_spill] sm:$0xff]  ;;  %v14630_v14 = vld [vmem:[#allocation47_spill] sm:$0xff] }
 0x701   : > { %8296 = vrot.lane.b32.xlu0 %v8295_v53, %s8447_s25  ;;  %4369 = vst [vmem:[#allocation1 + $0x2] ss:$9 sm:$0xff] %v10753_v49  ;;  %v14631_v53 = vld [vmem:[#allocation48_spill] sm:$0xff] }
 0x702   : > { %4370 = vst [vmem:[#allocation1 + $0x3] ss:$9 sm:$0xff] %v10757_v41  ;;  %v14594_v41 = vld [vmem:[#allocation8_spill] sm:$0xff] }
 0x703   : > { %4371 = vst [vmem:[#allocation1 + $0x4] ss:$9 sm:$0xff] %v10759_v47  ;;  %v14595_v47 = vld [vmem:[#allocation15_spill] sm:$0xff] }
 0x704   : > { %4372 = vst [vmem:[#allocation1 + $0x5] ss:$9 sm:$0xff] %v10761_v6  ;;  %v14596_v6 = vld [vmem:[#allocation7_spill] sm:$0xff] }
 0x705   : > { %4373 = vst [vmem:[#allocation1 + $0x6] ss:$9 sm:$0xff] %v10763_v11 }
 0x706   : > { %4374 = vst [vmem:[#allocation1 + $0x7] ss:$9 sm:$0xff] %v10765_v58  ;;  %v14597_v58 = vld [vmem:[#allocation5_spill] sm:$0xff] }
 0x70d   : > { %v4375_v19 = vld [vmem:[#allocation1] sm:$0xff] }
 0x70e   : > { %4376 = vst [vmem:[#allocation1] ss:$9 sm:$0xff] %v10767_v63 }
 0x70f   : > { %4377 = vst [vmem:[#allocation1 + $0x1] ss:$9 sm:$0xff] %v10772_v0  ;;  %v14598_v0 = vld [vmem:[#allocation9_spill] sm:$0xff] }
 0x710   : > { %4378 = vst [vmem:[#allocation1 + $0x2] ss:$9 sm:$0xff] %v10775_v36  ;;  %v14627_v36 = vld [vmem:[#allocation44_spill] sm:$0xff] }
 0x711   : > { %4379 = vst [vmem:[#allocation1 + $0x3] ss:$9 sm:$0xff] %v10777_v54  ;;  %v14601_v54 = vld [vmem:[#allocation18_spill] sm:$0xff] }
 0x712   : > { %4380 = vst [vmem:[#allocation1 + $0x4] ss:$9 sm:$0xff] %v10779_v30  ;;  %v14600_v30 = vld [vmem:[#allocation17_spill] sm:$0xff] }
 0x713   : > { %4381 = vst [vmem:[#allocation1 + $0x5] ss:$9 sm:$0xff] %v14594_v41  ;;  %v14633_v41 = vld [vmem:[#allocation50_spill] sm:$0xff] }
 0x714   : > { %4382 = vst [vmem:[#allocation1 + $0x6] ss:$9 sm:$0xff] %v14595_v47  ;;  %v14634_v47 = vld [vmem:[#allocation51_spill] sm:$0xff] }
 0x715   : > { %4383 = vst [vmem:[#allocation1 + $0x7] ss:$9 sm:$0xff] %v14596_v6  ;;  %v14635_v6 = vld [vmem:[#allocation52_spill] sm:$0xff] }
 0x71c   : > { %v4384_v11 = vld [vmem:[#allocation1] sm:$0xff] }
 0x71d   : > { %v8300_v49 = vpack.i.bf16 %v4384_v11, %v4375_v19  ;;  %4385 = vst [vmem:[#allocation1] ss:$9 sm:$0xff] %v14597_v58  ;;  %v14632_v19 = vld [vmem:[#allocation49_spill] sm:$0xff] }
 0x71e   : > { %v14636_v11 = vld [vmem:[#allocation53_spill] sm:$0xff] }
 0x71f   : > { %8301 = vrot.lane.b32.xlu1 %v8300_v49, %s8447_s25  ;;  %v14637_v49 = vld [vmem:[#allocation54_spill] sm:$0xff] }
 0x724   : > { %v4386_v63 = vld [vmem:[#allocation1] sm:$0xff] }
 0x725   : > { %4408 = vst [vmem:[#allocation1] ss:$9 sm:$0xff] %v14598_v0  ;;  %v14639_v0 = vld [vmem:[#allocation56_spill] sm:$0xff] }
 0x726   : > { %4410 = vst [vmem:[#allocation1 + $0x1] ss:$9 sm:$0xff] %v14599_v52  ;;  %v14640_v52 = vld [vmem:[#allocation57_spill] sm:$0xff] }
 0x727   : > { %4399 = vrot.lane.b32.xlu1 %v4386_v63, %s8447_s25  ;;  %4412 = vst [vmem:[#allocation1 + $0x2] ss:$9 sm:$0xff] %v14600_v30  ;;  %v14638_v63 = vld [vmem:[#allocation55_spill] sm:$0xff]  ;;  %v14641_v30 = vld [vmem:[#allocation58_spill] sm:$0xff] }
 0x728   : > { %4414 = vst [vmem:[#allocation1 + $0x3] ss:$9 sm:$0xff] %v14601_v54  ;;  %v14642_v54 = vld [vmem:[#allocation59_spill] sm:$0xff] }
 0x729   : > { %4416 = vst [vmem:[#allocation1 + $0x4] ss:$9 sm:$0xff] %v14602_v40  ;;  %v14643_v40 = vld [vmem:[#allocation60_spill] sm:$0xff] }
 0x72a   : > { %4418 = vst [vmem:[#allocation1 + $0x5] ss:$9 sm:$0xff] %v14603_v31  ;;  %v14644_v31 = vld [vmem:[#allocation61_spill] sm:$0xff] }
 0x72b   : > { %4420 = vst [vmem:[#allocation1 + $0x6] ss:$9 sm:$0xff] %v14604_v10  ;;  %v14645_v10 = vld [vmem:[#allocation62_spill] sm:$0xff] }
 0x72c   : > { %4422 = vst [vmem:[#allocation1 + $0x7] ss:$9 sm:$0xff] %v14605_v37 }
 0x733   : > { %v11583_v56 = vld [vmem:[#allocation1] sm:$0xff] }
 0x734   : > { %4424 = vst [vmem:[#allocation1] ss:$9 sm:$0xff] %v14606_v24  ;;  %v14646_v24 = vld [vmem:[#allocation63_spill] sm:$0xff] }
 0x735   : > { %4425 = vst [vmem:[#allocation1 + $0x1] ss:$9 sm:$0xff] %v14607_v21 }
 0x736   : > { %4426 = vst [vmem:[#allocation1 + $0x2] ss:$9 sm:$0xff] %v14608_v35  ;;  %v14648_v35 = vrot.slane %v10675_v32, 1 }
 0x737   : > { %4427 = vst [vmem:[#allocation1 + $0x3] ss:$9 sm:$0xff] %v14609_v5  ;;  %v14649_v5 = vrot.slane %v10675_v32, 2 }
 0x738   : > { %4428 = vst [vmem:[#allocation1 + $0x4] ss:$9 sm:$0xff] %v14610_v12  ;;  %v14650_v12 = vrot.slane %v10675_v32, 3 }
 0x739   : > { %4429 = vst [vmem:[#allocation1 + $0x5] ss:$9 sm:$0xff] %v14611_v57  ;;  %v14651_v57 = vrot.slane %v10675_v32, 4 }
 0x73a   : > { %4430 = vst [vmem:[#allocation1 + $0x6] ss:$9 sm:$0xff] %v14612_v27  ;;  %v14652_v27 = vrot.slane %v10675_v32, 5 }
 0x73b   : > { %4431 = vst [vmem:[#allocation1 + $0x7] ss:$9 sm:$0xff] %v14613_v46  ;;  %v14653_v46 = vrot.slane %v10675_v32, 6 }
 0x742   : > { %v11593_v61 = vld [vmem:[#allocation1] sm:$0xff] }
 0x743   : > { %4433 = vst [vmem:[#allocation1] ss:$9 sm:$0xff] %v14614_v1 }
 0x744   : > { %4434 = vst [vmem:[#allocation1 + $0x1] ss:$9 sm:$0xff] %v14615_v50 }
 0x745   : > { %4435 = vst [vmem:[#allocation1 + $0x2] ss:$9 sm:$0xff] %v14616_v34  ;;  %v14655_v34 = vld [vmem:[#allocation270_spill] sm:$0xff] }
 0x746   : > { %4436 = vst [vmem:[#allocation1 + $0x3] ss:$9 sm:$0xff] %v14617_v3  ;;  %v14656_v3 = vld [vmem:[#allocation271_spill] sm:$0xff] }
 0x747   : > { %4437 = vst [vmem:[#allocation1 + $0x4] ss:$9 sm:$0xff] %v14618_v48  ;;  %v14657_v48 = vld [vmem:[#allocation272_spill] sm:$0xff] }
 0x748   : > { %4438 = vst [vmem:[#allocation1 + $0x5] ss:$9 sm:$0xff] %v14619_v8  ;;  %v14658_v8 = vld [vmem:[#allocation274_spill] sm:$0xff] }
 0x749   : > { %4439 = vst [vmem:[#allocation1 + $0x6] ss:$9 sm:$0xff] %v14620_v9  ;;  %v14659_v9 = vld [vmem:[#allocation275_spill] sm:$0xff] }
 0x74a   : > { %4440 = vst [vmem:[#allocation1 + $0x7] ss:$9 sm:$0xff] %v14621_v20  ;;  %v14660_v20 = vld [vmem:[#allocation276_spill] sm:$0xff] }
 0x751   : > { %v11603_v7 = vld [vmem:[#allocation1] sm:$0xff] }
 0x752   : > { %4442 = vst [vmem:[#allocation1] ss:$9 sm:$0xff] %v14622_v33  ;;  %v14661_v33 = vld [vmem:[#allocation277_spill] sm:$0xff] }
 0x753   : > { %4443 = vst [vmem:[#allocation1 + $0x1] ss:$9 sm:$0xff] %v14623_v25 }
 0x754   : > { %4444 = vst [vmem:[#allocation1 + $0x2] ss:$9 sm:$0xff] %v14624_v13  ;;  %v14662_v13 = vld [vmem:[#allocation278_spill] sm:$0xff] }
 0x755   : > { %4445 = vst [vmem:[#allocation1 + $0x3] ss:$9 sm:$0xff] %v14625_v45  ;;  %v14663_v45 = vld [vmem:[#allocation279_spill] sm:$0xff] }
 0x756   : > { %4446 = vst [vmem:[#allocation1 + $0x4] ss:$9 sm:$0xff] %v14626_v4  ;;  %v14664_v4 = vld [vmem:[#allocation280_spill] sm:$0xff] }
 0x757   : > { %4447 = vst [vmem:[#allocation1 + $0x5] ss:$9 sm:$0xff] %v14627_v36  ;;  %v14665_v36 = vld [vmem:[#allocation282_spill] sm:$0xff] }
 0x758   : > { %4448 = vst [vmem:[#allocation1 + $0x6] ss:$9 sm:$0xff] %v14628_v17  ;;  %v14666_v17 = vld [vmem:[#allocation283_spill] sm:$0xff] }
 0x759   : > { %4449 = vst [vmem:[#allocation1 + $0x7] ss:$9 sm:$0xff] %v14629_v26  ;;  %v14667_v26 = vld [vmem:[#allocation284_spill] sm:$0xff] }
 0x760   : > { %v11613_v62 = vld [vmem:[#allocation1] sm:$0xff] }
 0x761   : > { %4451 = vst [vmem:[#allocation1] ss:$9 sm:$0xff] %v14630_v14  ;;  %v14668_v14 = vld [vmem:[#allocation285_spill] sm:$0xff] }
 0x762   : > { %4452 = vst [vmem:[#allocation1 + $0x1] ss:$9 sm:$0xff] %v14631_v53 }
 0x763   : > { %4453 = vst [vmem:[#allocation1 + $0x2] ss:$9 sm:$0xff] %v14632_v19  ;;  %v14669_v19 = vld [vmem:[#allocation286_spill] sm:$0xff] }
 0x764   : > { %4454 = vst [vmem:[#allocation1 + $0x3] ss:$9 sm:$0xff] %v14633_v41  ;;  %v14670_v41 = vld [vmem:[#allocation287_spill] sm:$0xff] }
 0x765   : > { %4455 = vst [vmem:[#allocation1 + $0x4] ss:$9 sm:$0xff] %v14634_v47  ;;  %v14671_v47 = vld [vmem:[#allocation288_spill] sm:$0xff] }
 0x766   : > { %4456 = vst [vmem:[#allocation1 + $0x5] ss:$9 sm:$0xff] %v14635_v6  ;;  %v14672_v6 = vld [vmem:[#allocation290_spill] sm:$0xff] }
 0x767   : > { %4457 = vst [vmem:[#allocation1 + $0x6] ss:$9 sm:$0xff] %v14636_v11 }
 0x768   : > { %4458 = vst [vmem:[#allocation1 + $0x7] ss:$9 sm:$0xff] %v14637_v49  ;;  %v14673_v49 = vld [vmem:[#allocation105_spill] sm:$0xff] }
 0x76f   : > { %v11623_v58 = vld [vmem:[#allocation1] sm:$0xff] }
 0x770   : > { %4460 = vst [vmem:[#allocation1] ss:$9 sm:$0xff] %v14638_v63  ;;  %v14159_v63 = vrot.slane %v14673_v49, 1 }
 0x771   : > { %4461 = vst [vmem:[#allocation1 + $0x1] ss:$9 sm:$0xff] %v14639_v0  ;;  %v14158_v0 = vrot.slane %v14673_v49, 2 }
 0x772   : > { %4462 = vst [vmem:[#allocation1 + $0x2] ss:$9 sm:$0xff] %v14640_v52  ;;  %v14157_v52 = vrot.slane %v14673_v49, 3 }
 0x773   : > { %4463 = vst [vmem:[#allocation1 + $0x3] ss:$9 sm:$0xff] %v14641_v30  ;;  %v14155_v30 = vrot.slane %v14673_v49, 4 }
 0x774   : > { %4464 = vst [vmem:[#allocation1 + $0x4] ss:$9 sm:$0xff] %v14642_v54  ;;  %v14154_v54 = vrot.slane %v14673_v49, 5 }
 0x775   : > { %4465 = vst [vmem:[#allocation1 + $0x5] ss:$9 sm:$0xff] %v14643_v40  ;;  %v14156_v40 = vrot.slane %v14673_v49, 6 }
 0x776   : > { %4466 = vst [vmem:[#allocation1 + $0x6] ss:$9 sm:$0xff] %v14644_v31 }
 0x777   : > { %4467 = vst [vmem:[#allocation1 + $0x7] ss:$9 sm:$0xff] %v14645_v10 }
 0x77e   : > { %v11633_v37 = vld [vmem:[#allocation1] sm:$0xff] }
 0x77f   : > { %4469 = vst [vmem:[#allocation1] ss:$9 sm:$0xff] %v14646_v24  ;;  %v14674_v24 = vld [vmem:[#allocation64_spill] sm:$0xff] }
 0x786   : > { %v11636_v21 = vld [vmem:[#allocation1] sm:$0xff] }
 0x787   : > { %14647 = vst [vmem:[#allocation8_spill] sm:$0xff] %v11636_v21 }
 0x788   : > { %4478 = vst [vmem:[#allocation1] ss:$9 sm:$0xff] %v10675_v32  ;;  %v14654_v32 = vld [vmem:[#allocation269_spill] sm:$0xff] }
 0x789   : > { %4480 = vst [vmem:[#allocation1 + $0x1] ss:$9 sm:$0xff] %v14648_v35  ;;  %v14675_v35 = vld [vmem:[#allocation65_spill] sm:$0xff] }
 0x78a   : > { %4482 = vst [vmem:[#allocation1 + $0x2] ss:$9 sm:$0xff] %v14649_v5  ;;  %v14676_v5 = vld [vmem:[#allocation66_spill] sm:$0xff] }
 0x78b   : > { %4484 = vst [vmem:[#allocation1 + $0x3] ss:$9 sm:$0xff] %v14650_v12  ;;  %v14677_v12 = vld [vmem:[#allocation67_spill] sm:$0xff] }
 0x78c   : > { %4486 = vst [vmem:[#allocation1 + $0x4] ss:$9 sm:$0xff] %v14651_v57  ;;  %v14678_v57 = vld [vmem:[#allocation68_spill] sm:$0xff] }
 0x78d   : > { %4488 = vst [vmem:[#allocation1 + $0x5] ss:$9 sm:$0xff] %v14652_v27  ;;  %v14679_v27 = vld [vmem:[#allocation69_spill] sm:$0xff] }
 0x78e   : > { %4490 = vst [vmem:[#allocation1 + $0x6] ss:$9 sm:$0xff] %v14653_v46  ;;  %v14680_v46 = vld [vmem:[#allocation70_spill] sm:$0xff] }
 0x78f   : > { %4492 = vst [vmem:[#allocation1 + $0x7] ss:$9 sm:$0xff] %v10694_v16 }
 0x796   : > { %v11652_v1 = vld [vmem:[#allocation1] sm:$0xff] }
 0x797   : > { %4494 = vst [vmem:[#allocation1] ss:$9 sm:$0xff] %v11384_v43 }
 0x798   : > { %4495 = vst [vmem:[#allocation1 + $0x1] ss:$9 sm:$0xff] %v11391_v51 }
 0x799   : > { %4496 = vst [vmem:[#allocation1 + $0x2] ss:$9 sm:$0xff] %v11394_v42 }
 0x79a   : > { %4497 = vst [vmem:[#allocation1 + $0x3] ss:$9 sm:$0xff] %v11399_v38 }
 0x79b   : > { %4498 = vst [vmem:[#allocation1 + $0x4] ss:$9 sm:$0xff] %v11403_v2 }
 0x79c   : > { %4499 = vst [vmem:[#allocation1 + $0x5] ss:$9 sm:$0xff] %v11407_v22 }
 0x79d   : > { %4500 = vst [vmem:[#allocation1 + $0x6] ss:$9 sm:$0xff] %v10713_v18 }
 0x79e   : > { %4501 = vst [vmem:[#allocation1 + $0x7] ss:$9 sm:$0xff] %v14654_v32 }
 0x7a5   : > { %v11662_v50 = vld [vmem:[#allocation1] sm:$0xff] }
 0x7a6   : > { %4503 = vst [vmem:[#allocation1] ss:$9 sm:$0xff] %v14655_v34 }
 0x7a7   : > { %4504 = vst [vmem:[#allocation1 + $0x1] ss:$9 sm:$0xff] %v14656_v3 }
 0x7a8   : > { %4505 = vst [vmem:[#allocation1 + $0x2] ss:$9 sm:$0xff] %v14657_v48 }
 0x7a9   : > { %4506 = vst [vmem:[#allocation1 + $0x3] ss:$9 sm:$0xff] %v14658_v8 }
 0x7aa   : > { %4507 = vst [vmem:[#allocation1 + $0x4] ss:$9 sm:$0xff] %v14659_v9 }
 0x7ab   : > { %4508 = vst [vmem:[#allocation1 + $0x5] ss:$9 sm:$0xff] %v10732_v23 }
 0x7ac   : > { %4509 = vst [vmem:[#allocation1 + $0x6] ss:$9 sm:$0xff] %v14660_v20 }
 0x7ad   : > { %4510 = vst [vmem:[#allocation1 + $0x7] ss:$9 sm:$0xff] %v14661_v33 }
 0x7b4   : > { %v11672_v25 = vld [vmem:[#allocation1] sm:$0xff] }
 0x7b5   : > { %4512 = vst [vmem:[#allocation1] ss:$9 sm:$0xff] %v14662_v13 }
 0x7b6   : > { %4513 = vst [vmem:[#allocation1 + $0x1] ss:$9 sm:$0xff] %v14663_v45 }
 0x7b7   : > { %4514 = vst [vmem:[#allocation1 + $0x2] ss:$9 sm:$0xff] %v14664_v4 }
 0x7b8   : > { %4515 = vst [vmem:[#allocation1 + $0x3] ss:$9 sm:$0xff] %v14665_v36 }
 0x7b9   : > { %4516 = vst [vmem:[#allocation1 + $0x4] ss:$9 sm:$0xff] %v10751_v55 }
 0x7ba   : > { %4517 = vst [vmem:[#allocation1 + $0x5] ss:$9 sm:$0xff] %v14666_v17 }
 0x7bb   : > { %4518 = vst [vmem:[#allocation1 + $0x6] ss:$9 sm:$0xff] %v14667_v26 }
 0x7bc   : > { %4519 = vst [vmem:[#allocation1 + $0x7] ss:$9 sm:$0xff] %v14668_v14 }
 0x7c3   : > { %v11682_v53 = vld [vmem:[#allocation1] sm:$0xff] }
 0x7c4   : > { %4521 = vst [vmem:[#allocation1] ss:$9 sm:$0xff] %v14669_v19 }
 0x7c5   : > { %4522 = vst [vmem:[#allocation1 + $0x1] ss:$9 sm:$0xff] %v14670_v41 }
 0x7c6   : > { %4523 = vst [vmem:[#allocation1 + $0x2] ss:$9 sm:$0xff] %v14671_v47 }
 0x7c7   : > { %4524 = vst [vmem:[#allocation1 + $0x3] ss:$9 sm:$0xff] %v10770_v60 }
 0x7c8   : > { %4525 = vst [vmem:[#allocation1 + $0x4] ss:$9 sm:$0xff] %v14672_v6 }
 0x7c9   : > { %4526 = vst [vmem:[#allocation1 + $0x5] ss:$9 sm:$0xff] %v11497_v59 }
 0x7ca   : > { %4527 = vst [vmem:[#allocation1 + $0x6] ss:$9 sm:$0xff] %v11501_v44 }
 0x7cb   : > { %4528 = vst [vmem:[#allocation1 + $0x7] ss:$9 sm:$0xff] %v11505_v28 }
 0x7d2   : > { %v11692_v11 = vld [vmem:[#allocation1] sm:$0xff] }
 0x7d3   : > { %4530 = vst [vmem:[#allocation1] ss:$9 sm:$0xff] %v11509_v39 }
 0x7d4   : > { %4531 = vst [vmem:[#allocation1 + $0x1] ss:$9 sm:$0xff] %v11515_v29 }
 0x7d5   : > { %4532 = vst [vmem:[#allocation1 + $0x2] ss:$9 sm:$0xff] %v14673_v49 }
 0x7d6   : > { %4533 = vst [vmem:[#allocation1 + $0x3] ss:$9 sm:$0xff] %v14159_v63 }
 0x7d7   : > { %4534 = vst [vmem:[#allocation1 + $0x4] ss:$9 sm:$0xff] %v14158_v0  ;;  %v14691_v0 = vld [vmem:[#allocation81_spill] sm:$0xff] }
 0x7d8   : > { %4535 = vst [vmem:[#allocation1 + $0x5] ss:$9 sm:$0xff] %v14157_v52  ;;  %v14683_v52 = vld [vmem:[#allocation73_spill] sm:$0xff] }
 0x7d9   : > { %4536 = vst [vmem:[#allocation1 + $0x6] ss:$9 sm:$0xff] %v14155_v30 }
 0x7da   : > { %4537 = vst [vmem:[#allocation1 + $0x7] ss:$9 sm:$0xff] %v14154_v54  ;;  %v14681_v54 = vld [vmem:[#allocation71_spill] sm:$0xff] }
 0x7e1   : > { %v11713_v31 = vld [vmem:[#allocation1] sm:$0xff] }
 0x7e2   : > { %4539 = vst [vmem:[#allocation1] ss:$9 sm:$0xff] %v14156_v40  ;;  %v14682_v40 = vld [vmem:[#allocation72_spill] sm:$0xff] }
 0x7e9   : > { %v11717_v10 = vld [vmem:[#allocation1] sm:$0xff] }
 0x7ea   : > { %4562 = vst [vmem:[#allocation1] ss:$9 sm:$0xff] %v14674_v24  ;;  %v14684_v24 = vld [vmem:[#allocation74_spill] sm:$0xff] }
 0x7eb   : > { %4564 = vst [vmem:[#allocation1 + $0x1] ss:$9 sm:$0xff] %v14675_v35  ;;  %v14685_v35 = vld [vmem:[#allocation75_spill] sm:$0xff] }
 0x7ec   : > { %4566 = vst [vmem:[#allocation1 + $0x2] ss:$9 sm:$0xff] %v14676_v5  ;;  %v14686_v5 = vld [vmem:[#allocation76_spill] sm:$0xff] }
 0x7ed   : > { %4568 = vst [vmem:[#allocation1 + $0x3] ss:$9 sm:$0xff] %v14677_v12  ;;  %v14687_v12 = vld [vmem:[#allocation77_spill] sm:$0xff] }
 0x7ee   : > { %4570 = vst [vmem:[#allocation1 + $0x4] ss:$9 sm:$0xff] %v14678_v57  ;;  %v14688_v57 = vld [vmem:[#allocation78_spill] sm:$0xff] }
 0x7ef   : > { %4572 = vst [vmem:[#allocation1 + $0x5] ss:$9 sm:$0xff] %v14679_v27  ;;  %v14689_v27 = vld [vmem:[#allocation79_spill] sm:$0xff] }
 0x7f0   : > { %4574 = vst [vmem:[#allocation1 + $0x6] ss:$9 sm:$0xff] %v14680_v46 }
 0x7f1   : > { %4576 = vst [vmem:[#allocation1 + $0x7] ss:$9 sm:$0xff] %v14681_v54  ;;  %v14690_v54 = vld [vmem:[#allocation80_spill] sm:$0xff] }
 0x7f8   : > { %v11727_v30 = vld [vmem:[#allocation1] sm:$0xff] }
 0x7f9   : > { %4578 = vst [vmem:[#allocation1] ss:$9 sm:$0xff] %v14682_v40  ;;  %v14692_v40 = vld [vmem:[#allocation82_spill] sm:$0xff] }
 0x7fa   : > { %4579 = vst [vmem:[#allocation1 + $0x1] ss:$9 sm:$0xff] %v14683_v52  ;;  %v8209_v52 = vld [vmem:[%s14009_s9 + $0x38] sm:$0xff] }
 0x7fb   : > { %4580 = vst [vmem:[#allocation1 + $0x2] ss:$9 sm:$0xff] %v14684_v24  ;;  %v14693_v24 = vld [vmem:[#allocation83_spill] sm:$0xff]  ;;  %5289 = vmatpush.bf16.msra.mxu3 %v8209_v52 }
 0x7fc   : > { %4581 = vst [vmem:[#allocation1 + $0x3] ss:$9 sm:$0xff] %v14685_v35  ;;  %v14694_v35 = vld [vmem:[#allocation84_spill] sm:$0xff]  ;;  %v8207_v52 = vld [vmem:[%s14009_s9 + $0x28] sm:$0xff] }
 0x7fd   : > { %4582 = vst [vmem:[#allocation1 + $0x4] ss:$9 sm:$0xff] %v14686_v5  ;;  %v14695_v5 = vld [vmem:[#allocation85_spill] sm:$0xff] }
 0x7fe   : > { %4583 = vst [vmem:[#allocation1 + $0x5] ss:$9 sm:$0xff] %v14687_v12  ;;  %v14696_v12 = vld [vmem:[#allocation86_spill] sm:$0xff] }
 0x7ff   : > { %4584 = vst [vmem:[#allocation1 + $0x6] ss:$9 sm:$0xff] %v14688_v57  ;;  %v14697_v57 = vld [vmem:[#allocation87_spill] sm:$0xff] }
 0x800   : > { %4585 = vst [vmem:[#allocation1 + $0x7] ss:$9 sm:$0xff] %v14689_v27 }
 0x807   : > { %v11737_v46 = vld [vmem:[#allocation1] sm:$0xff] }
 0x808   : > { %4587 = vst [vmem:[#allocation1] ss:$9 sm:$0xff] %v14690_v54  ;;  %v14699_v54 = vld [vmem:[#allocation88_spill] sm:$0xff] }
 0x809   : > { %4588 = vst [vmem:[#allocation1 + $0x1] ss:$9 sm:$0xff] %v14691_v0  ;;  %v8208_v0 = vld [vmem:[%s14009_s9 + $0x30] sm:$0xff] }
 0x80a   : > { %4589 = vst [vmem:[#allocation1 + $0x2] ss:$9 sm:$0xff] %v14692_v40  ;;  %5290 = vmatpush.bf16.msra.mxu3 %v8208_v0  ;;  %v14700_v40 = vld [vmem:[#allocation89_spill] sm:$0xff]  ;;  %v14705_v0 = vld [vmem:[#allocation94_spill] sm:$0xff] }
 0x80b   : > { %4590 = vst [vmem:[#allocation1 + $0x3] ss:$9 sm:$0xff] %v14693_v24  ;;  %v14701_v24 = vld [vmem:[#allocation90_spill] sm:$0xff] }
 0x80c   : > { %4591 = vst [vmem:[#allocation1 + $0x4] ss:$9 sm:$0xff] %v14694_v35  ;;  %v14702_v35 = vld [vmem:[#allocation91_spill] sm:$0xff] }
 0x80d   : > { %4592 = vst [vmem:[#allocation1 + $0x5] ss:$9 sm:$0xff] %v14695_v5  ;;  %v14703_v5 = vld [vmem:[#allocation92_spill] sm:$0xff] }
 0x80e   : > { %4593 = vst [vmem:[#allocation1 + $0x6] ss:$9 sm:$0xff] %v14696_v12  ;;  %5291 = vmatpush.bf16.msra.mxu3 %v8207_v52  ;;  %v14704_v12 = vld [vmem:[#allocation93_spill] sm:$0xff]  ;;  %v8204_v52 = vld [vmem:[%s14009_s9 + $0x10] sm:$0xff] }
 0x80f   : > { %4594 = vst [vmem:[#allocation1 + $0x7] ss:$9 sm:$0xff] %v14697_v57  ;;  %v8206_v57 = vld [vmem:[%s14009_s9 + $0x20] sm:$0xff] }
 0x812   : > { %5292 = vmatpush.bf16.msra.mxu3 %v8206_v57  ;;  %v14710_v57 = vld [vmem:[#allocation98_spill] sm:$0xff] }
 0x816   : > { %v11753_v27 = vld [vmem:[#allocation1] sm:$0xff] }
 0x817   : > { %14698 = vst [vmem:[#allocation15_spill] sm:$0xff] %v11753_v27  ;;  %v14723_v27 = vld [vmem:[#allocation109_spill] sm:$0xff] }
 0x818   : > { %4596 = vst [vmem:[#allocation1] ss:$9 sm:$0xff] %v14699_v54  ;;  %v14706_v54 = vld [vmem:[#allocation95_spill] sm:$0xff] }
 0x819   : > { %4597 = vst [vmem:[#allocation1 + $0x1] ss:$9 sm:$0xff] %v14700_v40  ;;  %v8205_v40 = vld [vmem:[%s14009_s9 + $0x18] sm:$0xff] }
 0x81a   : > { %4598 = vst [vmem:[#allocation1 + $0x2] ss:$9 sm:$0xff] %v14701_v24  ;;  %5293 = vmatpush.bf16.msra.mxu3 %v8205_v40  ;;  %v14712_v40 = vld [vmem:[#allocation100_spill] sm:$0xff] }
 0x81b   : > { %4599 = vst [vmem:[#allocation1 + $0x3] ss:$9 sm:$0xff] %v14702_v35  ;;  %v14708_v35 = vld [vmem:[#allocation96_spill] sm:$0xff] }
 0x81c   : > { %4600 = vst [vmem:[#allocation1 + $0x4] ss:$9 sm:$0xff] %v14703_v5  ;;  %v14709_v5 = vld [vmem:[#allocation97_spill] sm:$0xff] }
 0x81d   : > { %4601 = vst [vmem:[#allocation1 + $0x5] ss:$9 sm:$0xff] %v14704_v12  ;;  %v8305_v12 = vpack.i.bf16 %v11662_v50, %v11652_v1  ;;  %v8202_v50 = vld [vmem:[%s14009_s9] sm:$0xff] }
 0x81e   : > { %4602 = vst [vmem:[#allocation1 + $0x6] ss:$9 sm:$0xff] %v14705_v0  ;;  %5294 = vmatpush.bf16.msra.mxu3 %v8204_v52  ;;  %v8203_v0 = vld [vmem:[%s14009_s9 + $0x8] sm:$0xff]  ;;  %v8292_v52 = vpop.permute.xlu0 %8291 }
 0x81f   : > { %4603 = vst [vmem:[#allocation1 + $0x7] ss:$9 sm:$0xff] %v14706_v54  ;;  %v14711_v54 = vld [vmem:[#allocation99_spill] sm:$0xff]  ;;  %8306 = vrot.lane.b32.xlu2 %v8305_v12, %s8447_s25  ;;  %v8294_v63 = vunpack.i.h.bf16 %v8292_v52  ;;  %v8293_v1 = vunpack.i.l.bf16 %v8292_v52  ;;  %v14720_v52 = vld [vmem:[#allocation106_spill] sm:$0xff] }
 0x822   : > { %5295 = vmatpush.bf16.msra.mxu3 %v8203_v0 }
 0x826   : > { %v11775_v24 = vld [vmem:[#allocation1] sm:$0xff]  ;;  %5296 = vmatpush.bf16.msra.mxu3 %v8202_v50  ;;  %v14722_v50 = vld [vmem:[#allocation108_spill] sm:$0xff] }
 0x827   : > { %14707 = vst [vmem:[#allocation7_spill] sm:$0xff] %v11775_v24  ;;  %v14721_v24 = vld [vmem:[#allocation107_spill] sm:$0xff] }
 0x828   : > { %4605 = vst [vmem:[#allocation1] ss:$9 sm:$0xff] %v14708_v35  ;;  %v14713_v35 = vld [vmem:[#allocation101_spill] sm:$0xff] }
 0x829   : > { %4606 = vst [vmem:[#allocation1 + $0x1] ss:$9 sm:$0xff] %v14709_v5  ;;  %v14714_v5 = vld [vmem:[#allocation102_spill] sm:$0xff] }
 0x82a   : > { %4607 = vst [vmem:[#allocation1 + $0x2] ss:$9 sm:$0xff] %v14710_v57  ;;  %v14715_v57 = vld [vmem:[#allocation103_spill] sm:$0xff] }
 0x82b   : > { %4608 = vst [vmem:[#allocation1 + $0x3] ss:$9 sm:$0xff] %v14711_v54  ;;  %v14716_v54 = vld [vmem:[#allocation267_spill] sm:$0xff] }
 0x82c   : > { %4609 = vst [vmem:[#allocation1 + $0x4] ss:$9 sm:$0xff] %v14712_v40  ;;  %v4941_v12 = vsel %vm4940_vm8, %v14716_v54, %v8293_v1  ;;  %v14717_v40 = vld [vmem:[#allocation268_spill] sm:$0xff]  ;;  %v14725_v1 = vld [vmem:[#allocation111_spill] sm:$0xff]  ;;  %v8297_v54 = vpop.permute.xlu0 %8296 }
 0x82d   : > { %4610 = vst [vmem:[#allocation1 + $0x5] ss:$9 sm:$0xff] %v14713_v35  ;;  %v4942_v0 = vsel %vm4940_vm8, %v14717_v40, %v8294_v63  ;;  %v14724_v63 = vld [vmem:[#allocation110_spill] sm:$0xff]  ;;  %v8299_v40 = vunpack.i.h.bf16 %v8297_v54 }
 0x82e   : > { %4611 = vst [vmem:[#allocation1 + $0x6] ss:$9 sm:$0xff] %v14714_v5  ;;  %v4969_v35 = vpack.c.bf16 %v4942_v0, %v4941_v12  ;;  %v14719_v5 = vld [vmem:[#allocation104_spill] sm:$0xff]  ;;  %v8298_v0 = vunpack.i.l.bf16 %v8297_v54  ;;  %v14732_v54 = vld [vmem:[#allocation115_spill] sm:$0xff] }
 0x82f   : > { %4612 = vst [vmem:[#allocation1 + $0x7] ss:$9 sm:$0xff] %v14715_v57  ;;  %v8315_v57 = vpack.i.bf16 %v11682_v53, %v11672_v25  ;;  %v14726_v12 = vld [vmem:[#allocation112_spill] sm:$0xff] }
 0x830   : > { %5297 = vmatmul.bf16.vlgmr.msra.gmra.mxu3 %v4969_v35  ;;  %v14727_v35 = vld [vmem:[#allocation273_spill] sm:$0xff] }
 0x831   : > { %8316 = vrot.lane.b32.xlu0 %v8315_v57, %s8447_s25 }
 0x836   : > { %v11798_v21 = vld [vmem:[#allocation1] sm:$0xff] }
 0x837   : > { %14718 = vst [vmem:[#allocation5_spill] sm:$0xff] %v11798_v21  ;;  %v14733_v21 = vld [vmem:[#allocation116_spill] sm:$0xff] }
 0x838   : > { %4614 = vst [vmem:[#allocation1] ss:$9 sm:$0xff] %v14719_v5  ;;  %v14728_v5 = vld [vmem:[#allocation281_spill] sm:$0xff] }
 0x839   : > { %4615 = vst [vmem:[#allocation1 + $0x1] ss:$9 sm:$0xff] %v14720_v52  ;;  %v4944_v25 = vsel %vm4940_vm8, %v14728_v5, %v8299_v40  ;;  %v14729_v52 = vld [vmem:[#allocation113_spill] sm:$0xff] }
 0x83a   : > { %4616 = vst [vmem:[#allocation1 + $0x2] ss:$9 sm:$0xff] %v14721_v24  ;;  %v4943_v24 = vsel %vm4940_vm8, %v14727_v35, %v8298_v0  ;;  %v14734_v0 = vld [vmem:[#allocation289_spill] sm:$0xff]  ;;  %v14735_v35 = vld [vmem:[#allocation291_spill] sm:$0xff] }
 0x83b   : > { %4617 = vst [vmem:[#allocation1 + $0x3] ss:$9 sm:$0xff] %v14722_v50  ;;  %v4974_v53 = vpack.c.bf16 %v4944_v25, %v4943_v24  ;;  %v8302_v50 = vpop.permute.xlu1 %8301  ;;  %v14736_v5 = vld [vmem:[#allocation117_spill] sm:$0xff] }
 0x83c   : > { %4618 = vst [vmem:[#allocation1 + $0x4] ss:$9 sm:$0xff] %v14723_v27 }
 0x83d   : > { %4619 = vst [vmem:[#allocation1 + $0x5] ss:$9 sm:$0xff] %v14724_v63  ;;  %v14731_v63 = vld [vmem:[#allocation114_spill] sm:$0xff] }
 0x83e   : > { %4620 = vst [vmem:[#allocation1 + $0x6] ss:$9 sm:$0xff] %v14725_v1  ;;  %v8304_v1 = vunpack.i.h.bf16 %v8302_v50 }
 0x83f   : > { %4621 = vst [vmem:[#allocation1 + $0x7] ss:$9 sm:$0xff] %v14726_v12  ;;  %v8303_v12 = vunpack.i.l.bf16 %v8302_v50  ;;  %v14740_v50 = vld [vmem:[#allocation121_spill] sm:$0xff] }
 0x840   : > { %5302 = vmatmul.bf16.gmra.mxu3 %v4974_v53  ;;  %v4946_v24 = vsel %vm4940_vm8, %v14735_v35, %v8304_v1  ;;  %v14737_v53 = vld [vmem:[#allocation118_spill] sm:$0xff] }
 0x841   : > { %v4945_v40 = vsel %vm4940_vm8, %v14734_v0, %v8303_v12  ;;  %v14742_v12 = vld [vmem:[#allocation123_spill] sm:$0xff]  ;;  %v14743_v0 = vld [vmem:[#allocation124_spill] sm:$0xff]  ;;  %v14745_v35 = vld [vmem:[#allocation126_spill] sm:$0xff] }
 0x842   : > { %v4979_v25 = vpack.c.bf16 %v4946_v24, %v4945_v40  ;;  %v14744_v40 = vld [vmem:[#allocation125_spill] sm:$0xff] }
 0x846   : > { %v11815_v27 = vld [vmem:[#allocation1] sm:$0xff] }
 0x847   : > { %4623 = vst [vmem:[#allocation1] ss:$9 sm:$0xff] %v14729_v52  ;;  %v14738_v52 = vld [vmem:[#allocation119_spill] sm:$0xff] }
 0x84e   : > { %v11818_v57 = vld [vmem:[#allocation1] sm:$0xff] }
 0x84f   : > { %14730 = vst [vmem:[#allocation9_spill] sm:$0xff] %v11818_v57  ;;  %v14741_v57 = vld [vmem:[#allocation122_spill] sm:$0xff] }
 0x850   : > { %4632 = vst [vmem:[#allocation1] ss:$9 sm:$0xff] %v14731_v63  ;;  %5307 = vmatmul.bf16.gmra.mxu3 %v4979_v25  ;;  %v14739_v63 = vld [vmem:[#allocation120_spill] sm:$0xff] }
 0x851   : > { %4634 = vst [vmem:[#allocation1 + $0x1] ss:$9 sm:$0xff] %v14732_v54  ;;  %v4400_v54 = vpop.permute.xlu1 %4399  ;;  %v14747_v25 = vld [vmem:[#allocation128_spill] sm:$0xff] }
 0x852   : > { %4636 = vst [vmem:[#allocation1 + $0x2] ss:$9 sm:$0xff] %v14733_v21  ;;  %v4947_v1 = vsel %vm4940_vm8, %v11520_v15, %v4400_v54  ;;  %v14749_v15 = vld [vmem:[#allocation130_spill] sm:$0xff]  ;;  %v8216_v54 = vld [vmem:[%s14009_s9 + $0x70] sm:$0xff] }
 0x853   : > { %4638 = vst [vmem:[#allocation1 + $0x3] ss:$9 sm:$0xff] %v14736_v5  ;;  %v4984_v24 = vpack.c.bf16 %v4947_v1, %v4947_v1  ;;  %v14746_v5 = vld [vmem:[#allocation127_spill] sm:$0xff]  ;;  %v14753_v1 = vld [vmem:[#allocation134_spill] sm:$0xff] }
 0x854   : > { %4640 = vst [vmem:[#allocation1 + $0x4] ss:$9 sm:$0xff] %v14737_v53  ;;  %v14748_v53 = vld [vmem:[#allocation129_spill] sm:$0xff] }
 0x855   : > { %4642 = vst [vmem:[#allocation1 + $0x5] ss:$9 sm:$0xff] %v14738_v52 }
 0x856   : > { %4644 = vst [vmem:[#allocation1 + $0x6] ss:$9 sm:$0xff] %v14739_v63  ;;  %v14750_v63 = vld [vmem:[#allocation131_spill] sm:$0xff] }
 0x857   : > { %4646 = vst [vmem:[#allocation1 + $0x7] ss:$9 sm:$0xff] %v14740_v50  ;;  %v14751_v50 = vld [vmem:[#allocation132_spill] sm:$0xff] }
 0x85e   : > { %v11832_v21 = vld [vmem:[#allocation1] sm:$0xff] }
 0x85f   : > { %4648 = vst [vmem:[#allocation1] ss:$9 sm:$0xff] %v14741_v57  ;;  %v8217_v57 = vld [vmem:[%s14009_s9 + $0x78] sm:$0xff] }
 0x860   : > { %4649 = vst [vmem:[#allocation1 + $0x1] ss:$9 sm:$0xff] %v14742_v12  ;;  %5312 = vmatmul.bf16.gmra.mxu3 %v4984_v24  ;;  %5317 = vmatpush.bf16.msrb.mxu2 %v8217_v57  ;;  %v14752_v12 = vld [vmem:[#allocation133_spill] sm:$0xff]  ;;  %v14757_v57 = vld [vmem:[#allocation138_spill] sm:$0xff] }
 0x861   : > { %4650 = vst [vmem:[#allocation1 + $0x2] ss:$9 sm:$0xff] %v14743_v0  ;;  %v14754_v0 = vld [vmem:[#allocation135_spill] sm:$0xff]  ;;  %v14756_v24 = vld [vmem:[#allocation137_spill] sm:$0xff] }
 0x862   : > { %4651 = vst [vmem:[#allocation1 + $0x3] ss:$9 sm:$0xff] %v14744_v40  ;;  %v14755_v40 = vld [vmem:[#allocation136_spill] sm:$0xff] }
 0x863   : > { %4652 = vst [vmem:[#allocation1 + $0x4] ss:$9 sm:$0xff] %v14745_v35  ;;  %v8215_v35 = vld [vmem:[%s14009_s9 + $0x68] sm:$0xff] }
 0x864   : > { %4653 = vst [vmem:[#allocation1 + $0x5] ss:$9 sm:$0xff] %v14746_v5  ;;  %5318 = vmatpush.bf16.msrb.mxu2 %v8216_v54  ;;  %v8214_v5 = vld [vmem:[%s14009_s9 + $0x60] sm:$0xff]  ;;  %v8212_v54 = vld [vmem:[%s14009_s9 + $0x50] sm:$0xff] }
 0x865   : > { %4654 = vst [vmem:[#allocation1 + $0x6] ss:$9 sm:$0xff] %v14747_v25 }
 0x866   : > { %4655 = vst [vmem:[#allocation1 + $0x7] ss:$9 sm:$0xff] %v14748_v53  ;;  %v8213_v53 = vld [vmem:[%s14009_s9 + $0x58] sm:$0xff] }
 0x868   : > { %5319 = vmatpush.bf16.msrb.mxu2 %v8215_v35  ;;  %v8211_v35 = vld [vmem:[%s14009_s9 + $0x48] sm:$0xff] }
 0x86c   : > { %5320 = vmatpush.bf16.msrb.mxu2 %v8214_v5 }
 0x86d   : > { %v4656_v52 = vld [vmem:[#allocation1] sm:$0xff] }
 0x86e   : > { %4657 = vst [vmem:[#allocation1] ss:$9 sm:$0xff] %v14749_v15  ;;  %v14758_v15 = vld [vmem:[#allocation139_spill] sm:$0xff] }
 0x86f   : > { %4658 = vst [vmem:[#allocation1 + $0x1] ss:$9 sm:$0xff] %v14750_v63  ;;  %v14759_v63 = vld [vmem:[#allocation140_spill] sm:$0xff] }
 0x870   : > { %4659 = vst [vmem:[#allocation1 + $0x2] ss:$9 sm:$0xff] %v14751_v50  ;;  %5321 = vmatpush.bf16.msrb.mxu2 %v8213_v53  ;;  %v14760_v50 = vld [vmem:[#allocation141_spill] sm:$0xff] }
 0x871   : > { %4660 = vst [vmem:[#allocation1 + $0x3] ss:$9 sm:$0xff] %v14752_v12  ;;  %v14761_v12 = vld [vmem:[#allocation142_spill] sm:$0xff] }
 0x872   : > { %4661 = vst [vmem:[#allocation1 + $0x4] ss:$9 sm:$0xff] %v14753_v1  ;;  %v14762_v1 = vld [vmem:[#allocation143_spill] sm:$0xff] }
 0x873   : > { %4662 = vst [vmem:[#allocation1 + $0x5] ss:$9 sm:$0xff] %v14754_v0  ;;  %v14763_v0 = vld [vmem:[#allocation144_spill] sm:$0xff] }
 0x874   : > { %4663 = vst [vmem:[#allocation1 + $0x6] ss:$9 sm:$0xff] %v14755_v40  ;;  %5322 = vmatpush.bf16.msrb.mxu2 %v8212_v54  ;;  %v14764_v40 = vld [vmem:[#allocation145_spill] sm:$0xff] }
 0x875   : > { %4664 = vst [vmem:[#allocation1 + $0x7] ss:$9 sm:$0xff] %v14756_v24 }
 0x878   : > { %5323 = vmatpush.bf16.msrb.mxu2 %v8211_v35  ;;  %v14769_v35 = vld [vmem:[#allocation150_spill] sm:$0xff] }
 0x879   : > { %v8307_v24 = vpop.permute.xlu2 %8306 }
 0x87a   : > { %v8309_v5 = vunpack.i.h.bf16 %v8307_v24  ;;  %v8308_v53 = vunpack.i.l.bf16 %v8307_v24  ;;  %v14770_v24 = vld [vmem:[#allocation151_spill] sm:$0xff] }
 0x87c   : > { %v4665_v25 = vld [vmem:[#allocation1] sm:$0xff] }
 0x87d   : > { %4666 = vst [vmem:[#allocation1] ss:$9 sm:$0xff] %v14757_v57  ;;  %v8210_v57 = vld [vmem:[%s14009_s9 + $0x40] sm:$0xff] }
 0x87e   : > { %4667 = vst [vmem:[#allocation1 + $0x1] ss:$9 sm:$0xff] %v14758_v15  ;;  %5324 = vmatpush.bf16.msrb.mxu2 %v8210_v57  ;;  %v4948_v15 = vsel %vm4940_vm8, %v11583_v56, %v8308_v53  ;;  %v14771_v57 = vld [vmem:[#allocation152_spill] sm:$0xff]  ;;  %v14772_v56 = vld [vmem:[#allocation153_spill] sm:$0xff]  ;;  %v8310_v53 = vpack.i.bf16 %v4656_v52, %v11832_v21  ;;  %v14781_v52 = vld [vmem:[#allocation162_spill] sm:$0xff] }
 0x87f   : > { %4668 = vst [vmem:[#allocation1 + $0x2] ss:$9 sm:$0xff] %v14759_v63  ;;  %v4949_v63 = vsel %vm4940_vm8, %v11593_v61, %v8309_v5  ;;  %v14773_v5 = vld [vmem:[#allocation154_spill] sm:$0xff] }
 0x880   : > { %4669 = vst [vmem:[#allocation1 + $0x3] ss:$9 sm:$0xff] %v14760_v50  ;;  %v4970_v54 = vpack.c.bf16 %v4949_v63, %v4948_v15  ;;  %v14774_v15 = vld [vmem:[#allocation155_spill] sm:$0xff]  ;;  %v14775_v63 = vld [vmem:[#allocation156_spill] sm:$0xff]  ;;  %8311 = vrot.lane.b32.xlu2 %v8310_v53, %s8447_s25 }
 0x881   : > { %4670 = vst [vmem:[#allocation1 + $0x4] ss:$9 sm:$0xff] %v14761_v12  ;;  %v14765_v12 = vld [vmem:[#allocation146_spill] sm:$0xff] }
 0x882   : > { %4671 = vst [vmem:[#allocation1 + $0x5] ss:$9 sm:$0xff] %v14762_v1  ;;  %v14766_v1 = vld [vmem:[#allocation147_spill] sm:$0xff]  ;;  %5325 = vmatmul.bf16.vlgmr.msrb.gmra.mxu2 %v4970_v54  ;;  %v14776_v54 = vld [vmem:[#allocation157_spill] sm:$0xff] }
 0x883   : > { %4672 = vst [vmem:[#allocation1 + $0x6] ss:$9 sm:$0xff] %v14763_v0  ;;  %v14767_v0 = vld [vmem:[#allocation148_spill] sm:$0xff] }
 0x884   : > { %4673 = vst [vmem:[#allocation1 + $0x7] ss:$9 sm:$0xff] %v14764_v40  ;;  %v14768_v40 = vld [vmem:[#allocation149_spill] sm:$0xff] }
 0x88b   : > { %v4674_v50 = vld [vmem:[#allocation1] sm:$0xff] }
 0x88c   : > { %4675 = vst [vmem:[#allocation1] ss:$9 sm:$0xff] %v14765_v12  ;;  %v14777_v12 = vld [vmem:[#allocation158_spill] sm:$0xff] }
 0x88d   : > { %4676 = vst [vmem:[#allocation1 + $0x1] ss:$9 sm:$0xff] %v14766_v1  ;;  %v14778_v1 = vld [vmem:[#allocation159_spill] sm:$0xff] }
 0x88e   : > { %4677 = vst [vmem:[#allocation1 + $0x2] ss:$9 sm:$0xff] %v14767_v0  ;;  %v14779_v0 = vld [vmem:[#allocation160_spill] sm:$0xff] }
 0x88f   : > { %4678 = vst [vmem:[#allocation1 + $0x3] ss:$9 sm:$0xff] %v14768_v40  ;;  %v14780_v40 = vld [vmem:[#allocation161_spill] sm:$0xff] }
 0x890   : > { %4679 = vst [vmem:[#allocation1 + $0x4] ss:$9 sm:$0xff] %v14769_v35  ;;  %v8325_v35 = vpack.i.bf16 %v11713_v31, %v11692_v11 }
 0x891   : > { %4680 = vst [vmem:[#allocation1 + $0x5] ss:$9 sm:$0xff] %v14770_v24  ;;  %v8320_v24 = vpack.i.bf16 %v4674_v50, %v4665_v25  ;;  %v14790_v50 = vld [vmem:[#allocation255_spill] sm:$0xff] }
 0x892   : > { %4681 = vst [vmem:[#allocation1 + $0x6] ss:$9 sm:$0xff] %v14771_v57  ;;  %8326 = vrot.lane.b32.xlu2 %v8325_v35, %s8447_s25  ;;  %v14795_v35 = vld [vmem:[#allocation163_spill] sm:$0xff] }
 0x893   : > { %4682 = vst [vmem:[#allocation1 + $0x7] ss:$9 sm:$0xff] %v14772_v56  ;;  %8321 = vrot.lane.b32.xlu1 %v8320_v24, %s8447_s25  ;;  %v14800_v24 = vld [vmem:[#allocation168_spill] sm:$0xff] }
 0x89a   : > { %v4683_v61 = vld [vmem:[#allocation1] sm:$0xff] }
 0x89b   : > { %4684 = vst [vmem:[#allocation1] ss:$9 sm:$0xff] %v14773_v5 }
 0x89c   : > { %4685 = vst [vmem:[#allocation1 + $0x1] ss:$9 sm:$0xff] %v14774_v15 }
 0x89d   : > { %4686 = vst [vmem:[#allocation1 + $0x2] ss:$9 sm:$0xff] %v14775_v63 }
 0x89e   : > { %4687 = vst [vmem:[#allocation1 + $0x3] ss:$9 sm:$0xff] %v14776_v54  ;;  %v14792_v54 = vld [vmem:[#allocation263_spill] sm:$0xff] }
 0x89f   : > { %4688 = vst [vmem:[#allocation1 + $0x4] ss:$9 sm:$0xff] %v14777_v12  ;;  %v14793_v12 = vld [vmem:[#allocation264_spill] sm:$0xff] }
 0x8a0   : > { %4689 = vst [vmem:[#allocation1 + $0x5] ss:$9 sm:$0xff] %v14778_v1 }
 0x8a1   : > { %4690 = vst [vmem:[#allocation1 + $0x6] ss:$9 sm:$0xff] %v14779_v0  ;;  %v14794_v0 = vld [vmem:[#allocation265_spill] sm:$0xff] }
 0x8a2   : > { %4691 = vst [vmem:[#allocation1 + $0x7] ss:$9 sm:$0xff] %v14780_v40 }
 0x8a3   : > { %v8317_v57 = vpop.permute.xlu0 %8316 }
 0x8a4   : > { %v8319_v56 = vunpack.i.h.bf16 %v8317_v57  ;;  %v8318_v5 = vunpack.i.l.bf16 %v8317_v57  ;;  %v14801_v57 = vld [vmem:[#allocation169_spill] sm:$0xff] }
 0x8a6   : > { %v4950_v15 = vsel %vm4940_vm8, %v11603_v7, %v8318_v5  ;;  %v4951_v11 = vsel %vm4940_vm8, %v11613_v62, %v8319_v56  ;;  %v14802_v56 = vld [vmem:[#allocation170_spill] sm:$0xff] }
 0x8a7   : > { %v4975_v31 = vpack.c.bf16 %v4951_v11, %v4950_v15  ;;  %v14804_v15 = vld [vmem:[#allocation172_spill] sm:$0xff]  ;;  %v14805_v11 = vld [vmem:[#allocation173_spill] sm:$0xff] }
 0x8a9   : > { %v4692_v21 = vld [vmem:[#allocation1] sm:$0xff]  ;;  %5330 = vmatmul.bf16.gmra.mxu2 %v4975_v31 }
 0x8aa   : > { %4693 = vst [vmem:[#allocation1] ss:$9 sm:$0xff] %v14781_v52  ;;  %v8330_v7 = vpack.i.bf16 %v4692_v21, %v4683_v61  ;;  %v14796_v21 = vld [vmem:[#allocation164_spill] sm:$0xff]  ;;  %v14798_v52 = vld [vmem:[#allocation166_spill] sm:$0xff] }
 0x8ab   : > { %v14806_v31 = vld [vmem:[#allocation174_spill] sm:$0xff] }
 0x8ac   : > { %8331 = vrot.lane.b32.xlu0 %v8330_v7, %s8447_s25  ;;  %v14807_v7 = vld [vmem:[#allocation175_spill] sm:$0xff] }
 0x8b1   : > { %v4694_v53 = vld [vmem:[#allocation1] sm:$0xff] }
 0x8b2   : > { %4716 = vst [vmem:[#allocation1] ss:$9 sm:$0xff] %v10694_v16 }
 0x8b3   : > { %4718 = vst [vmem:[#allocation1 + $0x1] ss:$9 sm:$0xff] %v11384_v43  ;;  %v11922_v16 = vpop.f32.mrf.mxu3 }
 0x8b4   : > { %4720 = vst [vmem:[#allocation1 + $0x2] ss:$9 sm:$0xff] %v11391_v51 }
 0x8b5   : > { %4722 = vst [vmem:[#allocation1 + $0x3] ss:$9 sm:$0xff] %v11394_v42 }
 0x8b6   : > { %4724 = vst [vmem:[#allocation1 + $0x4] ss:$9 sm:$0xff] %v11399_v38 }
 0x8b7   : > { %4726 = vst [vmem:[#allocation1 + $0x5] ss:$9 sm:$0xff] %v11403_v2  ;;  %v8335_v2 = vpack.i.bf16 %v4694_v53, %v11717_v10  ;;  %v14789_v10 = vld [vmem:[#allocation254_spill] sm:$0xff]  ;;  %v14803_v53 = vld [vmem:[#allocation171_spill] sm:$0xff] }
 0x8b8   : > { %4728 = vst [vmem:[#allocation1 + $0x6] ss:$9 sm:$0xff] %v11407_v22 }
 0x8b9   : > { %4730 = vst [vmem:[#allocation1 + $0x7] ss:$9 sm:$0xff] %v10713_v18  ;;  %8336 = vrot.lane.b32.xlu1 %v8335_v2, %s8447_s25  ;;  %v14808_v2 = vld [vmem:[#allocation176_spill] sm:$0xff] }
 0x8bb   : > { %v11928_v62 = vpop.f32.mrf.mxu3 }
 0x8c0   : > { %v11926_v43 = vld [vmem:[#allocation1] sm:$0xff] }
 0x8c1   : > { %4732 = vst [vmem:[#allocation1] ss:$9 sm:$0xff] %v14654_v32 }
 0x8c2   : > { %4733 = vst [vmem:[#allocation1 + $0x1] ss:$9 sm:$0xff] %v14655_v34  ;;  %v8223_v34 = vld [vmem:[%s14009_s9 + $0xa8] sm:$0xff] }
 0x8c3   : > { %4734 = vst [vmem:[#allocation1 + $0x2] ss:$9 sm:$0xff] %v14656_v3  ;;  %v11940_v42 = vpop.f32.mrf.mxu3 }
 0x8c4   : > { %4735 = vst [vmem:[#allocation1 + $0x3] ss:$9 sm:$0xff] %v14657_v48  ;;  %v8222_v48 = vld [vmem:[%s14009_s9 + $0xa0] sm:$0xff] }
 0x8c5   : > { %4736 = vst [vmem:[#allocation1 + $0x4] ss:$9 sm:$0xff] %v14658_v8 }
 0x8c6   : > { %4737 = vst [vmem:[#allocation1 + $0x5] ss:$9 sm:$0xff] %v14659_v9  ;;  %v14782_v9 = vrot.slane %v14673_v49, 1 }
 0x8c7   : > { %4738 = vst [vmem:[#allocation1 + $0x6] ss:$9 sm:$0xff] %v10732_v23  ;;  %v8225_v23 = vld [vmem:[%s14009_s9 + $0xb8] sm:$0xff] }
 0x8c8   : > { %4739 = vst [vmem:[#allocation1 + $0x7] ss:$9 sm:$0xff] %v14660_v20  ;;  %5345 = vmatpush.bf16.msrb.mxu3 %v8225_v23  ;;  %v14783_v20 = vrot.slane %v14673_v49, 2  ;;  %v14809_v23 = vld [vmem:[#allocation177_spill] sm:$0xff] }
 0x8cb   : > { %v11945_v51 = vpop.f32.mrf.mxu3 }
 0x8cf   : > { %v11942_v22 = vld [vmem:[#allocation1] sm:$0xff] }
 0x8d0   : > { %4741 = vst [vmem:[#allocation1] ss:$9 sm:$0xff] %v14661_v33 }
 0x8d1   : > { %4742 = vst [vmem:[#allocation1 + $0x1] ss:$9 sm:$0xff] %v14662_v13 }
 0x8d2   : > { %4743 = vst [vmem:[#allocation1 + $0x2] ss:$9 sm:$0xff] %v14663_v45 }
 0x8d3   : > { %4744 = vst [vmem:[#allocation1 + $0x3] ss:$9 sm:$0xff] %v14664_v4  ;;  %v11954_v18 = vpop.f32.mrf.mxu3  ;;  %v8218_v4 = vld [vmem:[%s14009_s9 + $0x80] sm:$0xff] }
 0x8d4   : > { %4745 = vst [vmem:[#allocation1 + $0x4] ss:$9 sm:$0xff] %v14665_v36 }
 0x8d5   : > { %4746 = vst [vmem:[#allocation1 + $0x5] ss:$9 sm:$0xff] %v10751_v55  ;;  %v8224_v55 = vld [vmem:[%s14009_s9 + $0xb0] sm:$0xff] }
 0x8d6   : > { %4747 = vst [vmem:[#allocation1 + $0x6] ss:$9 sm:$0xff] %v14666_v17  ;;  %5346 = vmatpush.bf16.msrb.mxu3 %v8224_v55  ;;  %v14810_v55 = vld [vmem:[#allocation178_spill] sm:$0xff] }
 0x8d7   : > { %4748 = vst [vmem:[#allocation1 + $0x7] ss:$9 sm:$0xff] %v14667_v26 }
 0x8da   : > { %5347 = vmatpush.bf16.msrb.mxu3 %v8223_v34  ;;  %v8312_v33 = vpop.permute.xlu2 %8311 }
 0x8db   : > { %v11963_v32 = vpop.f32.mrf.mxu3  ;;  %v8314_v13 = vunpack.i.h.bf16 %v8312_v33  ;;  %v8313_v45 = vunpack.i.l.bf16 %v8312_v33 }
 0x8dd   : > { %v4955_v36 = vsel %vm4940_vm8, %v11727_v30, %v8313_v45  ;;  %v4956_v17 = vsel %vm4940_vm8, %v11737_v46, %v8314_v13  ;;  %v14791_v46 = vld [vmem:[#allocation256_spill] sm:$0xff]  ;;  %v14818_v45 = vld [vmem:[#allocation186_spill] sm:$0xff] }
 0x8de   : > { %v11959_v38 = vld [vmem:[#allocation1] sm:$0xff]  ;;  %5348 = vmatpush.bf16.msrb.mxu3 %v8222_v48  ;;  %v4971_v26 = vpack.c.bf16 %v4956_v17, %v4955_v36  ;;  %v14820_v17 = vld [vmem:[#allocation7_spill] sm:$0xff] }
 0x8df   : > { %4750 = vst [vmem:[#allocation1] ss:$9 sm:$0xff] %v14668_v14 }
 0x8e0   : > { %4751 = vst [vmem:[#allocation1 + $0x1] ss:$9 sm:$0xff] %v14669_v19  ;;  %v14786_v19 = vrot.slane %v14673_v49, 5 }
 0x8e1   : > { %4752 = vst [vmem:[#allocation1 + $0x2] ss:$9 sm:$0xff] %v14670_v41  ;;  %v14787_v41 = vrot.slane %v14673_v49, 6 }
 0x8e2   : > { %4753 = vst [vmem:[#allocation1 + $0x3] ss:$9 sm:$0xff] %v14671_v47  ;;  %v14788_v47 = vld [vmem:[#allocation10_spill] sm:$0xff] }
 0x8e3   : > { %4754 = vst [vmem:[#allocation1 + $0x4] ss:$9 sm:$0xff] %v10770_v60  ;;  %v11977_v3 = vpop.f32.mrf.mxu3  ;;  %v8221_v60 = vld [vmem:[%s14009_s9 + $0x98] sm:$0xff] }
 0x8e4   : > { %4755 = vst [vmem:[#allocation1 + $0x5] ss:$9 sm:$0xff] %v14672_v6  ;;  %5349 = vmatpush.bf16.msrb.mxu3 %v8221_v60  ;;  %v14811_v60 = vld [vmem:[#allocation179_spill] sm:$0xff] }
 0x8e5   : > { %4756 = vst [vmem:[#allocation1 + $0x6] ss:$9 sm:$0xff] %v11497_v59  ;;  %v8220_v59 = vld [vmem:[%s14009_s9 + $0x90] sm:$0xff] }
 0x8e6   : > { %4757 = vst [vmem:[#allocation1 + $0x7] ss:$9 sm:$0xff] %v11501_v44 }
 0x8e8   : > { %5350 = vmatpush.bf16.msrb.mxu3 %v8220_v59  ;;  %v14813_v59 = vld [vmem:[#allocation181_spill] sm:$0xff] }
 0x8eb   : > { %v5315_v44 = vpop.f32.mrf.mxu3 }
 0x8ec   : > { %v8327_v6 = vpop.permute.xlu2 %8326  ;;  %v14812_v44 = vld [vmem:[#allocation180_spill] sm:$0xff] }
 0x8ed   : > { %v11985_v8 = vld [vmem:[#allocation1] sm:$0xff]  ;;  %v8329_v25 = vunpack.i.h.bf16 %v8327_v6  ;;  %v8328_v30 = vunpack.i.l.bf16 %v8327_v6  ;;  %v14821_v6 = vld [vmem:[#allocation187_spill] sm:$0xff] }
 0x8ee   : > { %4759 = vst [vmem:[#allocation1] ss:$9 sm:$0xff] %v11505_v28  ;;  %v14784_v28 = vrot.slane %v14673_v49, 3 }
 0x8ef   : > { %4760 = vst [vmem:[#allocation1 + $0x1] ss:$9 sm:$0xff] %v11509_v39  ;;  %v8219_v39 = vld [vmem:[%s14009_s9 + $0x88] sm:$0xff]  ;;  %v4952_v61 = vsel %vm4940_vm8, %v11623_v58, %v8328_v30  ;;  %v4953_v63 = vsel %vm4940_vm8, %v11633_v37, %v8329_v25  ;;  %v14797_v58 = vld [vmem:[#allocation165_spill] sm:$0xff]  ;;  %v14822_v25 = vld [vmem:[#allocation188_spill] sm:$0xff] }
 0x8f0   : > { %4761 = vst [vmem:[#allocation1 + $0x2] ss:$9 sm:$0xff] %v11515_v29  ;;  %v14785_v29 = vrot.slane %v14673_v49, 4  ;;  %5351 = vmatpush.bf16.msrb.mxu3 %v8219_v39  ;;  %v14799_v37 = vld [vmem:[#allocation167_spill] sm:$0xff]  ;;  %v14823_v30 = vld [vmem:[#allocation189_spill] sm:$0xff] }
 0x8f1   : > { %4762 = vst [vmem:[#allocation1 + $0x3] ss:$9 sm:$0xff] %v14673_v49  ;;  %v4980_v49 = vpack.c.bf16 %v4953_v63, %v4952_v61  ;;  %v14824_v61 = vld [vmem:[#allocation190_spill] sm:$0xff]  ;;  %v14825_v63 = vld [vmem:[#allocation191_spill] sm:$0xff] }
 0x8f2   : > { %4763 = vst [vmem:[#allocation1 + $0x4] ss:$9 sm:$0xff] %v14782_v9  ;;  %v14814_v9 = vld [vmem:[#allocation182_spill] sm:$0xff] }
 0x8f3   : > { %4764 = vst [vmem:[#allocation1 + $0x5] ss:$9 sm:$0xff] %v14783_v20  ;;  %5335 = vmatmul.bf16.gmra.mxu2 %v4980_v49  ;;  %v14815_v20 = vld [vmem:[#allocation183_spill] sm:$0xff]  ;;  %v14826_v49 = vld [vmem:[#allocation192_spill] sm:$0xff] }
 0x8f4   : > { %4765 = vst [vmem:[#allocation1 + $0x6] ss:$9 sm:$0xff] %v14784_v28  ;;  %5352 = vmatpush.bf16.msrb.mxu3 %v8218_v4  ;;  %v14816_v28 = vld [vmem:[#allocation184_spill] sm:$0xff]  ;;  %v14819_v4 = vld [vmem:[#allocation15_spill] sm:$0xff] }
 0x8f5   : > { %4766 = vst [vmem:[#allocation1 + $0x7] ss:$9 sm:$0xff] %v14785_v29  ;;  %v14817_v29 = vld [vmem:[#allocation185_spill] sm:$0xff] }
 0x8f7   : > { %5353 = vmatmul.bf16.vlgmr.msrb.gmra.mxu3 %v4971_v26 }
 0x8fc   : > { %v12012_v14 = vld [vmem:[#allocation1] sm:$0xff] }
 0x8fd   : > { %4768 = vst [vmem:[#allocation1] ss:$9 sm:$0xff] %v14786_v19 }
 0x8fe   : > { %4769 = vst [vmem:[#allocation1 + $0x1] ss:$9 sm:$0xff] %v14787_v41 }
 0x8ff   : > { %4770 = vst [vmem:[#allocation1 + $0x2] ss:$9 sm:$0xff] %v14788_v47 }
 0x900   : > { %4771 = vst [vmem:[#allocation1 + $0x3] ss:$9 sm:$0xff] %v14789_v10 }
 0x901   : > { %4772 = vst [vmem:[#allocation1 + $0x4] ss:$9 sm:$0xff] %v14790_v50 }
 0x902   : > { %4773 = vst [vmem:[#allocation1 + $0x5] ss:$9 sm:$0xff] %v14791_v46 }
 0x903   : > { %4774 = vst [vmem:[#allocation1 + $0x6] ss:$9 sm:$0xff] %v14792_v54 }
 0x904   : > { %4775 = vst [vmem:[#allocation1 + $0x7] ss:$9 sm:$0xff] %v14793_v12 }
 0x905   : > { %v8322_v39 = vpop.permute.xlu1 %8321 }
 0x906   : > { %v8324_v33 = vunpack.i.h.bf16 %v8322_v39  ;;  %v8323_v13 = vunpack.i.l.bf16 %v8322_v39  ;;  %v14839_v39 = vld [vmem:[#allocation204_spill] sm:$0xff] }
 0x908   : > { %v4957_v36 = vsel %vm4940_vm8, %v14819_v4, %v8323_v13  ;;  %v4958_v26 = vsel %vm4940_vm8, %v14820_v17, %v8324_v33  ;;  %v8236_v33 = vld [vmem:[%s14009_s9 + $0x110] sm:$0xff] }
 0x909   : > { %v4976_v19 = vpack.c.bf16 %v4958_v26, %v4957_v36  ;;  %v8232_v13 = vld [vmem:[%s14009_s9 + $0xf0] sm:$0xff]  ;;  %v14842_v36 = vld [vmem:[#allocation206_spill] sm:$0xff] }
 0x90a   : > { %v14843_v17 = vld [vmem:[#allocation207_spill] sm:$0xff]  ;;  %v14844_v26 = vld [vmem:[#allocation208_spill] sm:$0xff] }
 0x90b   : > { %v12028_v1 = vld [vmem:[#allocation1] sm:$0xff]  ;;  %5358 = vmatmul.bf16.gmra.mxu3 %v4976_v19  ;;  %v8235_v19 = vld [vmem:[%s14009_s9 + $0x108] sm:$0xff] }
 0x90c   : > { %4777 = vst [vmem:[#allocation1] ss:$9 sm:$0xff] %v14794_v0 }
 0x913   : > { %v12031_v40 = vld [vmem:[#allocation1] sm:$0xff] }
 0x914   : > { %4786 = vst [vmem:[#allocation1] ss:$9 sm:$0xff] %v14795_v35  ;;  %v14827_v35 = vld [vmem:[#allocation193_spill] sm:$0xff] }
 0x915   : > { %4788 = vst [vmem:[#allocation1 + $0x1] ss:$9 sm:$0xff] %v14796_v21  ;;  %v14828_v21 = vld [vmem:[#allocation194_spill] sm:$0xff] }
 0x916   : > { %4790 = vst [vmem:[#allocation1 + $0x2] ss:$9 sm:$0xff] %v14797_v58 }
 0x917   : > { %4792 = vst [vmem:[#allocation1 + $0x3] ss:$9 sm:$0xff] %v14798_v52 }
 0x918   : > { %4794 = vst [vmem:[#allocation1 + $0x4] ss:$9 sm:$0xff] %v14799_v37  ;;  %v14829_v37 = vld [vmem:[#allocation195_spill] sm:$0xff] }
 0x919   : > { %4796 = vst [vmem:[#allocation1 + $0x5] ss:$9 sm:$0xff] %v14800_v24  ;;  %v14830_v24 = vld [vmem:[#allocation196_spill] sm:$0xff] }
 0x91a   : > { %4798 = vst [vmem:[#allocation1 + $0x6] ss:$9 sm:$0xff] %v14801_v57  ;;  %v14831_v57 = vld [vmem:[#allocation197_spill] sm:$0xff] }
 0x91b   : > { %4800 = vst [vmem:[#allocation1 + $0x7] ss:$9 sm:$0xff] %v14802_v56  ;;  %v14832_v56 = vld [vmem:[#allocation198_spill] sm:$0xff] }
 0x922   : > { %v4801_v5 = vld [vmem:[#allocation1] sm:$0xff] }
 0x923   : > { %4802 = vst [vmem:[#allocation1] ss:$9 sm:$0xff] %v14803_v53  ;;  %v14834_v53 = vld [vmem:[#allocation200_spill] sm:$0xff] }
 0x924   : > { %4803 = vst [vmem:[#allocation1 + $0x1] ss:$9 sm:$0xff] %v14804_v15  ;;  %v8332_v15 = vpop.permute.xlu0 %8331 }
 0x925   : > { %4804 = vst [vmem:[#allocation1 + $0x2] ss:$9 sm:$0xff] %v14805_v11  ;;  %v14835_v11 = vld [vmem:[#allocation201_spill] sm:$0xff] }
 0x926   : > { %4805 = vst [vmem:[#allocation1 + $0x3] ss:$9 sm:$0xff] %v14806_v31  ;;  %v14836_v31 = vld [vmem:[#allocation202_spill] sm:$0xff] }
 0x927   : > { %4806 = vst [vmem:[#allocation1 + $0x4] ss:$9 sm:$0xff] %v14807_v7  ;;  %v8334_v7 = vunpack.i.h.bf16 %v8332_v15 }
 0x928   : > { %4807 = vst [vmem:[#allocation1 + $0x5] ss:$9 sm:$0xff] %v14808_v2  ;;  %v8333_v2 = vunpack.i.l.bf16 %v8332_v15  ;;  %v14854_v15 = vld [vmem:[#allocation217_spill] sm:$0xff] }
 0x929   : > { %4808 = vst [vmem:[#allocation1 + $0x6] ss:$9 sm:$0xff] %v14809_v23  ;;  %v14837_v23 = vld [vmem:[#allocation5_spill] sm:$0xff] }
 0x92a   : > { %4809 = vst [vmem:[#allocation1 + $0x7] ss:$9 sm:$0xff] %v14810_v55  ;;  %v4959_v55 = vsel %vm4940_vm8, %v14837_v23, %v8333_v2  ;;  %v8229_v2 = vld [vmem:[%s14009_s9 + $0xd8] sm:$0xff]  ;;  %v8228_v23 = vld [vmem:[%s14009_s9 + $0xd0] sm:$0xff] }
 0x931   : > { %v4810_v34 = vld [vmem:[#allocation1] sm:$0xff] }
 0x932   : > { %v8340_v48 = vpack.i.bf16 %v4810_v34, %v4801_v5  ;;  %4811 = vst [vmem:[#allocation1] ss:$9 sm:$0xff] %v14811_v60  ;;  %v14833_v5 = vld [vmem:[#allocation199_spill] sm:$0xff]  ;;  %v4960_v34 = vsel %vm4940_vm8, %v11815_v27, %v8334_v7  ;;  %v8337_v60 = vpop.permute.xlu1 %8336 }
 0x933   : > { %4812 = vst [vmem:[#allocation1 + $0x1] ss:$9 sm:$0xff] %v14812_v44  ;;  %v8233_v44 = vld [vmem:[%s14009_s9 + $0xf8] sm:$0xff]  ;;  %v14856_v7 = vld [vmem:[#allocation219_spill] sm:$0xff] }
 0x934   : > { %8341 = vrot.lane.b32.xlu2 %v8340_v48, %s8447_s25  ;;  %4813 = vst [vmem:[#allocation1 + $0x2] ss:$9 sm:$0xff] %v14813_v59  ;;  %v4981_v48 = vpack.c.bf16 %v4960_v34, %v4959_v55  ;;  %v8237_v59 = vld [vmem:[%s14009_s9 + $0x118] sm:$0xff]  ;;  %5373 = vmatpush.bf16.msra.mxu2 %v8233_v44  ;;  %v14860_v44 = vld [vmem:[#allocation223_spill] sm:$0xff] }
 0x935   : > { %4814 = vst [vmem:[#allocation1 + $0x3] ss:$9 sm:$0xff] %v14814_v9  ;;  %5405 = vmatpush.bf16.msra.mxu3 %v8237_v59  ;;  %v14857_v34 = vld [vmem:[#allocation220_spill] sm:$0xff] }
 0x936   : > { %4815 = vst [vmem:[#allocation1 + $0x4] ss:$9 sm:$0xff] %v14815_v20  ;;  %v8338_v20 = vunpack.i.l.bf16 %v8337_v60  ;;  %5363 = vmatmul.bf16.gmra.mxu3 %v4981_v48  ;;  %v14858_v48 = vld [vmem:[#allocation221_spill] sm:$0xff]  ;;  %v14861_v59 = vld [vmem:[#allocation224_spill] sm:$0xff] }
 0x937   : > { %4816 = vst [vmem:[#allocation1 + $0x5] ss:$9 sm:$0xff] %v14816_v28  ;;  %v14838_v28 = vld [vmem:[#allocation203_spill] sm:$0xff] }
 0x938   : > { %4817 = vst [vmem:[#allocation1 + $0x6] ss:$9 sm:$0xff] %v14817_v29  ;;  %v14840_v29 = vld [vmem:[#allocation8_spill] sm:$0xff]  ;;  %5374 = vmatpush.bf16.msra.mxu2 %v8232_v13  ;;  %v14867_v13 = vld [vmem:[#allocation230_spill] sm:$0xff] }
 0x939   : > { %4818 = vst [vmem:[#allocation1 + $0x7] ss:$9 sm:$0xff] %v14818_v45  ;;  %v4954_v27 = vsel %vm4940_vm8, %v14840_v29, %v8338_v20  ;;  %v14841_v45 = vld [vmem:[#allocation205_spill] sm:$0xff]  ;;  %5406 = vmatpush.bf16.msra.mxu3 %v8236_v33  ;;  %v14863_v20 = vld [vmem:[#allocation226_spill] sm:$0xff] }
 0x93a   : > { %v4985_v4 = vpack.c.bf16 %v4954_v27, %v4954_v27  ;;  %v14865_v27 = vld [vmem:[#allocation228_spill] sm:$0xff]  ;;  %v14866_v33 = vld [vmem:[#allocation229_spill] sm:$0xff] }
 0x93c   : > { %5340 = vmatmul.bf16.gmra.mxu2 %v4985_v4  ;;  %v14869_v4 = vld [vmem:[#allocation232_spill] sm:$0xff] }
 0x93d   : > { %5407 = vmatpush.bf16.msra.mxu3 %v8235_v19  ;;  %v14871_v19 = vld [vmem:[#allocation234_spill] sm:$0xff] }
 0x940   : > { %v4819_v41 = vld [vmem:[#allocation1] sm:$0xff] }
 0x941   : > { %4820 = vst [vmem:[#allocation1] ss:$9 sm:$0xff] %v14821_v6  ;;  %v14845_v6 = vld [vmem:[#allocation209_spill] sm:$0xff] }
 0x942   : > { %4821 = vst [vmem:[#allocation1 + $0x1] ss:$9 sm:$0xff] %v14822_v25  ;;  %v14846_v25 = vld [vmem:[#allocation210_spill] sm:$0xff] }
 0x943   : > { %4822 = vst [vmem:[#allocation1 + $0x2] ss:$9 sm:$0xff] %v14823_v30  ;;  %v8339_v30 = vunpack.i.h.bf16 %v8337_v60  ;;  %v14859_v60 = vld [vmem:[#allocation222_spill] sm:$0xff] }
 0x944   : > { %4823 = vst [vmem:[#allocation1 + $0x3] ss:$9 sm:$0xff] %v14824_v61  ;;  %v8234_v61 = vld [vmem:[%s14009_s9 + $0x100] sm:$0xff] }
 0x945   : > { %4824 = vst [vmem:[#allocation1 + $0x4] ss:$9 sm:$0xff] %v14825_v63  ;;  %v14847_v63 = vld [vmem:[#allocation9_spill] sm:$0xff]  ;;  %5408 = vmatpush.bf16.msra.mxu3 %v8234_v61 }
 0x946   : > { %4825 = vst [vmem:[#allocation1 + $0x5] ss:$9 sm:$0xff] %v14826_v49  ;;  %v4961_v49 = vsel %vm4940_vm8, %v14847_v63, %v8339_v30  ;;  %v8226_v30 = vld [vmem:[%s14009_s9 + $0xc0] sm:$0xff] }
 0x947   : > { %4826 = vst [vmem:[#allocation1 + $0x6] ss:$9 sm:$0xff] %v14827_v35 }
 0x948   : > { %4827 = vst [vmem:[#allocation1 + $0x7] ss:$9 sm:$0xff] %v14828_v21  ;;  %v4986_v21 = vpack.c.bf16 %v4961_v49, %v4961_v49 }
 0x94a   : > { %5368 = vmatmul.bf16.gmra.mxu3 %v4986_v21  ;;  %v14873_v21 = vld [vmem:[#allocation236_spill] sm:$0xff] }
 0x94f   : > { %v4828_v58 = vld [vmem:[#allocation1] sm:$0xff] }
 0x950   : > { %v8345_v52 = vpack.i.bf16 %v4828_v58, %v4819_v41  ;;  %4829 = vst [vmem:[#allocation1] ss:$9 sm:$0xff] %v14829_v37  ;;  %v8231_v41 = vld [vmem:[%s14009_s9 + $0xe8] sm:$0xff] }
 0x951   : > { %4830 = vst [vmem:[#allocation1 + $0x1] ss:$9 sm:$0xff] %v14830_v24  ;;  %5375 = vmatpush.bf16.msra.mxu2 %v8231_v41  ;;  %v14849_v24 = vld [vmem:[#allocation212_spill] sm:$0xff] }
 0x952   : > { %8346 = vrot.lane.b32.xlu0 %v8345_v52, %s8447_s25  ;;  %4831 = vst [vmem:[#allocation1 + $0x2] ss:$9 sm:$0xff] %v14831_v57  ;;  %v14848_v52 = vld [vmem:[#allocation211_spill] sm:$0xff]  ;;  %v14850_v57 = vld [vmem:[#allocation213_spill] sm:$0xff] }
 0x953   : > { %4832 = vst [vmem:[#allocation1 + $0x3] ss:$9 sm:$0xff] %v14832_v56  ;;  %v14851_v56 = vld [vmem:[#allocation214_spill] sm:$0xff] }
 0x954   : > { %4833 = vst [vmem:[#allocation1 + $0x4] ss:$9 sm:$0xff] %v14833_v5  ;;  %v14852_v5 = vld [vmem:[#allocation215_spill] sm:$0xff] }
 0x955   : > { %4834 = vst [vmem:[#allocation1 + $0x5] ss:$9 sm:$0xff] %v14834_v53  ;;  %v14853_v53 = vld [vmem:[#allocation216_spill] sm:$0xff] }
 0x956   : > { %4835 = vst [vmem:[#allocation1 + $0x6] ss:$9 sm:$0xff] %v14835_v11  ;;  %v8230_v11 = vld [vmem:[%s14009_s9 + $0xe0] sm:$0xff] }
 0x957   : > { %4836 = vst [vmem:[#allocation1 + $0x7] ss:$9 sm:$0xff] %v14836_v31  ;;  %v14855_v31 = vld [vmem:[#allocation218_spill] sm:$0xff]  ;;  %5376 = vmatpush.bf16.msra.mxu2 %v8230_v11  ;;  %v14881_v11 = vld [vmem:[#allocation244_spill] sm:$0xff] }
 0x95b   : > { %5377 = vmatpush.bf16.msra.mxu2 %v8229_v2 }
 0x95e   : > { %v4837_v9 = vld [vmem:[#allocation1] sm:$0xff] }
 0x95f   : > { %4838 = vst [vmem:[#allocation1] ss:$9 sm:$0xff] %v14838_v28  ;;  %5378 = vmatpush.bf16.msra.mxu2 %v8228_v23  ;;  %v14864_v28 = vld [vmem:[#allocation227_spill] sm:$0xff]  ;;  %v14883_v23 = vld [vmem:[#allocation246_spill] sm:$0xff] }
 0x960   : > { %4839 = vst [vmem:[#allocation1 + $0x1] ss:$9 sm:$0xff] %v14839_v39 }
 0x961   : > { %4840 = vst [vmem:[#allocation1 + $0x2] ss:$9 sm:$0xff] %v14841_v45  ;;  %v14868_v45 = vld [vmem:[#allocation231_spill] sm:$0xff] }
 0x962   : > { %4841 = vst [vmem:[#allocation1 + $0x3] ss:$9 sm:$0xff] %v14842_v36  ;;  %v14870_v36 = vld [vmem:[#allocation233_spill] sm:$0xff] }
 0x963   : > { %4842 = vst [vmem:[#allocation1 + $0x4] ss:$9 sm:$0xff] %v14843_v17  ;;  %v8227_v17 = vld [vmem:[%s14009_s9 + $0xc8] sm:$0xff] }
 0x964   : > { %4843 = vst [vmem:[#allocation1 + $0x5] ss:$9 sm:$0xff] %v14844_v26  ;;  %5379 = vmatpush.bf16.msra.mxu2 %v8227_v17  ;;  %v14895_v17 = vld [vmem:[#allocation261_spill] sm:$0xff] }
 0x965   : > { %4844 = vst [vmem:[#allocation1 + $0x6] ss:$9 sm:$0xff] %v14845_v6 }
 0x966   : > { %4845 = vst [vmem:[#allocation1 + $0x7] ss:$9 sm:$0xff] %v14846_v25  ;;  %v14872_v25 = vld [vmem:[#allocation235_spill] sm:$0xff] }
 0x968   : > { %5380 = vmatpush.bf16.msra.mxu2 %v8226_v30 }
 0x96d   : > { %v4846_v35 = vld [vmem:[#allocation1] sm:$0xff] }
 0x96e   : > { %v8350_v58 = vpack.i.bf16 %v4846_v35, %v4837_v9  ;;  %4847 = vst [vmem:[#allocation1] ss:$9 sm:$0xff] %v14848_v52  ;;  %v14862_v9 = vld [vmem:[#allocation225_spill] sm:$0xff]  ;;  %v14875_v52 = vld [vmem:[#allocation238_spill] sm:$0xff] }
 0x970   : > { %8351 = vrot.lane.b32.xlu1 %v8350_v58, %s8447_s25  ;;  %v14874_v58 = vld [vmem:[#allocation237_spill] sm:$0xff] }
 0x975   : > { %v4848_v37 = vld [vmem:[#allocation1] sm:$0xff] }
 0x976   : > { %4861 = vrot.lane.b32.xlu2 %v4848_v37, %s8447_s25  ;;  %4870 = vst [vmem:[#allocation1] ss:$9 sm:$0xff] %v14849_v24  ;;  %v14876_v37 = vld [vmem:[#allocation239_spill] sm:$0xff]  ;;  %v14877_v24 = vld [vmem:[#allocation240_spill] sm:$0xff] }
 0x977   : > { %4872 = vst [vmem:[#allocation1 + $0x1] ss:$9 sm:$0xff] %v14850_v57  ;;  %v14878_v57 = vld [vmem:[#allocation241_spill] sm:$0xff] }
 0x978   : > { %4874 = vst [vmem:[#allocation1 + $0x2] ss:$9 sm:$0xff] %v14851_v56  ;;  %v14880_v56 = vld [vmem:[#allocation243_spill] sm:$0xff] }
 0x979   : > { %4876 = vst [vmem:[#allocation1 + $0x3] ss:$9 sm:$0xff] %v14852_v5 }
 0x97a   : > { %4878 = vst [vmem:[#allocation1 + $0x4] ss:$9 sm:$0xff] %v14853_v53 }
 0x97b   : > { %4880 = vst [vmem:[#allocation1 + $0x5] ss:$9 sm:$0xff] %v14854_v15 }
 0x97c   : > { %4882 = vst [vmem:[#allocation1 + $0x6] ss:$9 sm:$0xff] %v14855_v31  ;;  %v5354_v31 = vpop.f32.mrf.mxu3 }
 0x97d   : > { %4884 = vst [vmem:[#allocation1 + $0x7] ss:$9 sm:$0xff] %v14856_v7  ;;  %v14882_v7 = vld [vmem:[#allocation245_spill] sm:$0xff] }
 0x984   : > { %v4885_v55 = vld [vmem:[#allocation1] sm:$0xff] }
 0x985   : > { %4886 = vst [vmem:[#allocation1] ss:$9 sm:$0xff] %v14857_v34  ;;  %v14885_v34 = vld [vmem:[#allocation248_spill] sm:$0xff] }
 0x986   : > { %4887 = vst [vmem:[#allocation1 + $0x1] ss:$9 sm:$0xff] %v14858_v48  ;;  %v14886_v48 = vld [vmem:[#allocation249_spill] sm:$0xff] }
 0x987   : > { %4888 = vst [vmem:[#allocation1 + $0x2] ss:$9 sm:$0xff] %v14859_v60  ;;  %v14888_v60 = vld [vmem:[#allocation251_spill] sm:$0xff] }
 0x988   : > { %4889 = vst [vmem:[#allocation1 + $0x3] ss:$9 sm:$0xff] %v14860_v44 }
 0x989   : > { %4890 = vst [vmem:[#allocation1 + $0x4] ss:$9 sm:$0xff] %v14861_v59 }
 0x98a   : > { %4891 = vst [vmem:[#allocation1 + $0x5] ss:$9 sm:$0xff] %v14862_v9  ;;  %v14889_v9 = vld [vmem:[#allocation252_spill] sm:$0xff] }
 0x98b   : > { %4892 = vst [vmem:[#allocation1 + $0x6] ss:$9 sm:$0xff] %v14863_v20 }
 0x98c   : > { %4893 = vst [vmem:[#allocation1 + $0x7] ss:$9 sm:$0xff] %v14864_v28  ;;  %v14890_v28 = vld [vmem:[#allocation253_spill] sm:$0xff] }
 0x98e   : > { %v8342_v26 = vpop.permute.xlu2 %8341 }
 0x98f   : > { %v8344_v41 = vunpack.i.h.bf16 %v8342_v26  ;;  %v8343_v6 = vunpack.i.l.bf16 %v8342_v26 }
 0x991   : > { %v4963_v61 = vsel %vm4940_vm8, %v11942_v22, %v8344_v41  ;;  %v4962_v63 = vsel %vm4940_vm8, %v11926_v43, %v8343_v6  ;;  %v14879_v22 = vld [vmem:[#allocation242_spill] sm:$0xff]  ;;  %v5326_v43 = vpop.f32.mrf.mxu2 }
 0x992   : > { %v4972_v49 = vpack.c.bf16 %v4963_v61, %v4962_v63  ;;  %v5327_v5 = vadd.f32 %v5326_v43, %v11922_v16  ;;  %v14887_v16 = vld [vmem:[#allocation250_spill] sm:$0xff] }
 0x993   : > { %v4894_v39 = vld [vmem:[#allocation1] sm:$0xff] }
 0x994   : > { %v4973_v29 = vpack.c.bf16 %v4894_v39, %v4885_v55  ;;  %4895 = vst [vmem:[#allocation1] ss:$9 sm:$0xff] %v14865_v27  ;;  %5381 = vmatmul.bf16.vlgmr.msra.gmra.mxu2 %v4972_v49  ;;  %v12174_v2 = vadd.f32 %v5354_v31, %v5327_v5  ;;  %v14884_v55 = vld [vmem:[#allocation247_spill] sm:$0xff]  ;;  %v12187_v39 = vpop.f32.mrf.mxu3  ;;  %v14892_v27 = vld [vmem:[#allocation258_spill] sm:$0xff] }
 0x995   : > { %4896 = vst [vmem:[#allocation1 + $0x1] ss:$9 sm:$0xff] %v14866_v33  ;;  %v14896_v41 = vld [vmem:[#allocation262_spill] sm:$0xff] }
 0x996   : > { %7972 = vmatmul.msk.bf16.vlgmr.msra.gmra.mxu3 %vm4940_vm8, %v4973_v29  ;;  %4897 = vst [vmem:[#allocation1 + $0x2] ss:$9 sm:$0xff] %v14867_v13  ;;  %v14891_v29 = vld [vmem:[#allocation257_spill] sm:$0xff]  ;;  %v14893_v13 = vld [vmem:[#allocation259_spill] sm:$0xff]  ;;  %v14905_v5 = vld [vmem:[#allocation14_spill] sm:$0xff] }
 0x997   : > { %4898 = vst [vmem:[#allocation1 + $0x3] ss:$9 sm:$0xff] %v14868_v45 }
 0x998   : > { %4899 = vst [vmem:[#allocation1 + $0x4] ss:$9 sm:$0xff] %v14869_v4 }
 0x999   : > { %4900 = vst [vmem:[#allocation1 + $0x5] ss:$9 sm:$0xff] %v14870_v36  ;;  %v12183_v44 = vpop.f32.mrf.mxu2  ;;  %v14894_v36 = vld [vmem:[#allocation260_spill] sm:$0xff] }
 0x99a   : > { %4901 = vst [vmem:[#allocation1 + $0x6] ss:$9 sm:$0xff] %v14871_v19 }
 0x99b   : > { %4902 = vst [vmem:[#allocation1 + $0x7] ss:$9 sm:$0xff] %v14872_v25 }
 0x99c   : > { %v5359_v30 = vpop.f32.mrf.mxu3 }
 0x9a1   : > { %v5331_v20 = vpop.f32.mrf.mxu2 }
 0x9a2   : > { %v4903_v35 = vld [vmem:[#allocation1] sm:$0xff]  ;;  %v5332_v25 = vadd.f32 %v5331_v20, %v11940_v42  ;;  %v14908_v20 = vrot.slane %v14905_v5, 3 }
 0x9a3   : > { %4904 = vst [vmem:[#allocation1] ss:$9 sm:$0xff] %v14873_v21  ;;  %v14897_v21 = vld [vmem:[#allocation266_spill] sm:$0xff] }
 0x9a4   : > { %4905 = vst [vmem:[#allocation1 + $0x1] ss:$9 sm:$0xff] %v14874_v58  ;;  %v12200_v61 = vadd.f32 %v5359_v30, %v5332_v25 }
 0x9a5   : > { %4906 = vst [vmem:[#allocation1 + $0x2] ss:$9 sm:$0xff] %v14875_v52  ;;  %v12207_v52 = vpop.f32.mrf.mxu3 }
 0x9a6   : > { %4907 = vst [vmem:[#allocation1 + $0x3] ss:$9 sm:$0xff] %v14876_v37 }
 0x9a7   : > { %4908 = vst [vmem:[#allocation1 + $0x4] ss:$9 sm:$0xff] %v14877_v24 }
 0x9a8   : > { %4909 = vst [vmem:[#allocation1 + $0x5] ss:$9 sm:$0xff] %v14878_v57 }
 0x9a9   : > { %4910 = vst [vmem:[#allocation1 + $0x6] ss:$9 sm:$0xff] %v14879_v22  ;;  %v12202_v63 = vpop.f32.mrf.mxu2 }
 0x9aa   : > { %4911 = vst [vmem:[#allocation1 + $0x7] ss:$9 sm:$0xff] %v14880_v56 }
 0x9b1   : > { %v4912_v53 = vld [vmem:[#allocation1] sm:$0xff] }
 0x9b2   : > { %v4978_v15 = vpack.c.bf16 %v4912_v53, %v4903_v35  ;;  %4913 = vst [vmem:[#allocation1] ss:$9 sm:$0xff] %v14881_v11 }
 0x9b3   : > { %4914 = vst [vmem:[#allocation1 + $0x1] ss:$9 sm:$0xff] %v14882_v7 }
 0x9b4   : > { %7973 = vmatmul.msk.bf16.gmra.mxu3 %vm4940_vm8, %v4978_v15  ;;  %4915 = vst [vmem:[#allocation1 + $0x2] ss:$9 sm:$0xff] %v14883_v23 }
 0x9b5   : > { %4916 = vst [vmem:[#allocation1 + $0x3] ss:$9 sm:$0xff] %v14884_v55 }
 0x9b6   : > { %4917 = vst [vmem:[#allocation1 + $0x4] ss:$9 sm:$0xff] %v14885_v34 }
 0x9b7   : > { %4918 = vst [vmem:[#allocation1 + $0x5] ss:$9 sm:$0xff] %v14886_v48 }
 0x9b8   : > { %4919 = vst [vmem:[#allocation1 + $0x6] ss:$9 sm:$0xff] %v14887_v16 }
 0x9b9   : > { %4920 = vst [vmem:[#allocation1 + $0x7] ss:$9 sm:$0xff] %v14888_v60  ;;  %v5364_v31 = vpop.f32.mrf.mxu3 }
 0x9c0   : > { %v4921_v59 = vld [vmem:[#allocation1] sm:$0xff] }
 0x9c1   : > { %4922 = vst [vmem:[#allocation1] ss:$9 sm:$0xff] %v14889_v9  ;;  %v14907_v9 = vrot.slane %v14905_v5, 2 }
 0x9c2   : > { %4923 = vst [vmem:[#allocation1 + $0x1] ss:$9 sm:$0xff] %v14890_v28  ;;  %v12240_v28 = vpop.f32.mrf.mxu3 }
 0x9c3   : > { %4924 = vst [vmem:[#allocation1 + $0x2] ss:$9 sm:$0xff] %v14891_v29  ;;  %v14911_v29 = vrot.slane %v14905_v5, 6 }
 0x9c4   : > { %4925 = vst [vmem:[#allocation1 + $0x3] ss:$9 sm:$0xff] %v14892_v27  ;;  %v8347_v33 = vpop.permute.xlu0 %8346  ;;  %v14912_v27 = vld [vmem:[#allocation16_spill] sm:$0xff] }
 0x9c5   : > { %4926 = vst [vmem:[#allocation1 + $0x4] ss:$9 sm:$0xff] %v14893_v13  ;;  %v8349_v45 = vunpack.i.h.bf16 %v8347_v33  ;;  %v8348_v4 = vunpack.i.l.bf16 %v8347_v33  ;;  %v14913_v13 = vrot.slane %v14912_v27, 1  ;;  %v14915_v25 = vrot.slane %v14912_v27, 3 }
 0x9c6   : > { %4927 = vst [vmem:[#allocation1 + $0x5] ss:$9 sm:$0xff] %v14894_v36  ;;  %v14916_v30 = vrot.slane %v14912_v27, 4 }
 0x9c7   : > { %4928 = vst [vmem:[#allocation1 + $0x6] ss:$9 sm:$0xff] %v14895_v17  ;;  %v4964_v26 = vsel %vm4940_vm8, %v11959_v38, %v8348_v4  ;;  %v4965_v19 = vsel %vm4940_vm8, %v11985_v8, %v8349_v45  ;;  %v5336_v38 = vpop.f32.mrf.mxu2  ;;  %v14898_v8 = vld [vmem:[#allocation11_spill] sm:$0xff] }
 0x9c8   : > { %4929 = vst [vmem:[#allocation1 + $0x7] ss:$9 sm:$0xff] %v14896_v41  ;;  %v4977_v6 = vpack.c.bf16 %v4965_v19, %v4964_v26  ;;  %v14899_v42 = vrot.slane %v14898_v8, 1  ;;  %v14900_v37 = vrot.slane %v14898_v8, 2  ;;  %v14901_v24 = vrot.slane %v14898_v8, 3 }
 0x9c9   : > { %v14902_v57 = vrot.slane %v14898_v8, 4  ;;  %v14903_v22 = vrot.slane %v14898_v8, 5  ;;  %v14904_v56 = vrot.slane %v14898_v8, 6  ;;  %v5337_v15 = vadd.f32 %v5336_v38, %v11954_v18 }
 0x9ca   : > { %5386 = vmatmul.bf16.gmra.mxu2 %v4977_v6  ;;  %v14906_v18 = vrot.slane %v14905_v5, 1  ;;  %v14914_v6 = vrot.slane %v14912_v27, 2 }
 0x9cb   : > { %v12226_v55 = vadd.f32 %v5364_v31, %v5337_v15 }
 0x9cd   : > { %v5369_v36 = vpop.f32.mrf.mxu3 }
 0x9cf   : > { %v4930_v49 = vld [vmem:[#allocation1] sm:$0xff]  ;;  %v12221_v43 = vpop.f32.mrf.mxu2 }
 0x9d0   : > { %v4983_v35 = vpack.c.bf16 %v4930_v49, %v4921_v59  ;;  %4931 = vst [vmem:[#allocation1] ss:$9 sm:$0xff] %v14897_v21  ;;  %v4862_v45 = vpop.permute.xlu2 %4861 }
 0x9d1   : > { %v4968_v17 = vsel %vm4940_vm8, %v12031_v40, %v4862_v45  ;;  %v14918_v40 = vrot.slane %v14912_v27, 6 }
 0x9d2   : > { %7974 = vmatmul.msk.bf16.gmra.mxu3 %vm4940_vm8, %v4983_v35  ;;  %v4987_v41 = vpack.c.bf16 %v4968_v17, %v4968_v17  ;;  %v14919_v35 = vld [vmem:[#allocation12_spill] sm:$0xff] }
 0x9d3   : > { %v14920_v21 = vrot.slane %v14919_v35, 1  ;;  %v14921_v38 = vrot.slane %v14919_v35, 2 }
 0x9d5   : > { %v5371_v49 = vpop.f32.mrf.mxu3 }
 0x9d7   : > { %v4932_v58 = vld [vmem:[#allocation1] sm:$0xff]  ;;  %v5341_v60 = vpop.f32.mrf.mxu2 }
 0x9d8   : > { %5429 = vst [vmem:[#allocation1] ss:$9 sm:$0xff] %v14898_v8  ;;  %v4988_v53 = vpack.c.bf16 %v4932_v58, %v4932_v58  ;;  %v5342_v4 = vadd.f32 %v5341_v60, %v11977_v3  ;;  %v14917_v3 = vrot.slane %v14912_v27, 5  ;;  %v14922_v8 = vrot.slane %v14919_v35, 3 }
 0x9d9   : > { %5431 = vst [vmem:[#allocation1 + $0x1] ss:$9 sm:$0xff] %v14899_v42  ;;  %v14923_v42 = vrot.slane %v14919_v35, 4 }
 0x9da   : > { %5433 = vst [vmem:[#allocation1 + $0x2] ss:$9 sm:$0xff] %v14900_v37  ;;  %v12254_v26 = vadd.f32 %v5369_v36, %v5342_v4  ;;  %v14924_v37 = vrot.slane %v14919_v35, 5  ;;  %v5329_v36 = vadd.f32 %v12183_v44, %v11928_v62 }
 0x9db   : > { %5435 = vst [vmem:[#allocation1 + $0x3] ss:$9 sm:$0xff] %v14901_v24  ;;  %v14925_v24 = vrot.slane %v14919_v35, 6 }
 0x9dc   : > { %5437 = vst [vmem:[#allocation1 + $0x4] ss:$9 sm:$0xff] %v14902_v57  ;;  %v14926_v57 = vld [vmem:[#allocation13_spill] sm:$0xff]  ;;  %v5357_v17 = vadd.f32 %v12187_v39, %v5329_v36  ;;  %v5334_v39 = vadd.f32 %v12202_v63, %v11945_v51  ;;  %v8239_v51 = vld [vmem:[%s14012_s12 + $0x8] sm:$0xff] }
 0x9dd   : > { %5439 = vst [vmem:[#allocation1 + $0x5] ss:$9 sm:$0xff] %v14903_v22  ;;  %v14927_v22 = vrot.slane %v14926_v57, 1  ;;  %v14930_v15 = vrot.slane %v14926_v57, 4  ;;  %v14932_v31 = vrot.slane %v14926_v57, 6 }
 0x9de   : > { %5441 = vst [vmem:[#allocation1 + $0x6] ss:$9 sm:$0xff] %v14904_v56  ;;  %v14928_v56 = vrot.slane %v14926_v57, 2 }
 0x9df   : > { %5443 = vst [vmem:[#allocation1 + $0x7] ss:$9 sm:$0xff] %v14905_v5  ;;  %v5343_v33 = vpop.f32.mrf.mxu2 }
 0x9e2   : > { %7975 = vmatmul.msk.bf16.gmra.mxu3 %vm4940_vm8, %v4988_v53  ;;  %v8352_v11 = vpop.permute.xlu1 %8351 }
 0x9e3   : > { %v8354_v7 = vunpack.i.h.bf16 %v8352_v11  ;;  %v8353_v23 = vunpack.i.l.bf16 %v8352_v11  ;;  %v14931_v11 = vrot.slane %v14926_v57, 5 }
 0x9e5   : > { %v4966_v34 = vsel %vm4940_vm8, %v12012_v14, %v8353_v23  ;;  %v4967_v48 = vsel %vm4940_vm8, %v12028_v1, %v8354_v7  ;;  %v14909_v14 = vrot.slane %v14905_v5, 4  ;;  %v14910_v1 = vrot.slane %v14905_v5, 5  ;;  %v14933_v7 = vld [vmem:[#allocation3_spill] sm:$0xff] }
 0x9e6   : > { %v4982_v16 = vpack.c.bf16 %v4967_v48, %v4966_v34  ;;  %v12232_v59 = vld [vmem:[#allocation1] sm:$0xff]  ;;  %v14929_v5 = vrot.slane %v14926_v57, 3  ;;  %v14934_v23 = vrot.slane %v14933_v7, 1  ;;  %v14935_v34 = vrot.slane %v14933_v7, 2 }
 0x9e7   : > { %5445 = vst [vmem:[#allocation1] ss:$9 sm:$0xff] %v14906_v18  ;;  %v14936_v48 = vrot.slane %v14933_v7, 3  ;;  %v14938_v18 = vrot.slane %v14933_v7, 5 }
 0x9e8   : > { %5391 = vmatmul.bf16.gmra.mxu2 %v4982_v16  ;;  %5446 = vst [vmem:[#allocation1 + $0x1] ss:$9 sm:$0xff] %v14907_v9  ;;  %v14937_v16 = vrot.slane %v14933_v7, 4  ;;  %v14939_v9 = vrot.slane %v14933_v7, 6 }
 0x9e9   : > { %5447 = vst [vmem:[#allocation1 + $0x2] ss:$9 sm:$0xff] %v14908_v20 }
 0x9ea   : > { %5448 = vst [vmem:[#allocation1 + $0x3] ss:$9 sm:$0xff] %v14909_v14 }
 0x9eb   : > { %5449 = vst [vmem:[#allocation1 + $0x4] ss:$9 sm:$0xff] %v14910_v1  ;;  %v14940_v1 = vld [vmem:[#allocation4_spill] sm:$0xff] }
 0x9ec   : > { %5450 = vst [vmem:[#allocation1 + $0x5] ss:$9 sm:$0xff] %v14911_v29  ;;  %v14942_v33 = vrot.slane %v14940_v1, 2  ;;  %v14943_v45 = vrot.slane %v14940_v1, 3  ;;  %v14944_v4 = vrot.slane %v14940_v1, 4  ;;  %v14946_v49 = vrot.slane %v14940_v1, 6 }
 0x9ed   : > { %5451 = vst [vmem:[#allocation1 + $0x6] ss:$9 sm:$0xff] %v14912_v27  ;;  %v14941_v27 = vrot.slane %v14940_v1, 1 }
 0x9ee   : > { %5452 = vst [vmem:[#allocation1 + $0x7] ss:$9 sm:$0xff] %v14913_v13 }
 0x9f5   : > { %v12256_v19 = vld [vmem:[#allocation1] sm:$0xff] }
 0x9f6   : > { %5454 = vst [vmem:[#allocation1] ss:$9 sm:$0xff] %v14914_v6 }
 0x9f7   : > { %5455 = vst [vmem:[#allocation1 + $0x1] ss:$9 sm:$0xff] %v14915_v25 }
 0x9f8   : > { %5396 = vmatmul.bf16.gmra.mxu2 %v4987_v41  ;;  %5456 = vst [vmem:[#allocation1 + $0x2] ss:$9 sm:$0xff] %v14916_v30 }
 0x9f9   : > { %5457 = vst [vmem:[#allocation1 + $0x3] ss:$9 sm:$0xff] %v14917_v3 }
 0x9fa   : > { %5458 = vst [vmem:[#allocation1 + $0x4] ss:$9 sm:$0xff] %v14918_v40 }
 0x9fb   : > { %5459 = vst [vmem:[#allocation1 + $0x5] ss:$9 sm:$0xff] %v14919_v35 }
 0x9fc   : > { %5460 = vst [vmem:[#allocation1 + $0x6] ss:$9 sm:$0xff] %v14920_v21 }
 0x9fd   : > { %5461 = vst [vmem:[#allocation1 + $0x7] ss:$9 sm:$0xff] %v14921_v38  ;;  %v5362_v38 = vadd.f32 %v12207_v52, %v5334_v39 }
 0xa04   : > { %v12273_v58 = vld [vmem:[#allocation1] sm:$0xff] }
 0xa05   : > { %5463 = vst [vmem:[#allocation1] ss:$9 sm:$0xff] %v14922_v8 }
 0xa06   : > { %5464 = vst [vmem:[#allocation1 + $0x1] ss:$9 sm:$0xff] %v14923_v42 }
 0xa07   : > { %5465 = vst [vmem:[#allocation1 + $0x2] ss:$9 sm:$0xff] %v14924_v37 }
 0xa08   : > { %5466 = vst [vmem:[#allocation1 + $0x3] ss:$9 sm:$0xff] %v14925_v24 }
 0xa09   : > { %5467 = vst [vmem:[#allocation1 + $0x4] ss:$9 sm:$0xff] %v14926_v57 }
 0xa0a   : > { %5468 = vst [vmem:[#allocation1 + $0x5] ss:$9 sm:$0xff] %v14927_v22  ;;  %v8240_v22 = vld [vmem:[%s14012_s12 + $0x10] sm:$0xff] }
 0xa0b   : > { %5469 = vst [vmem:[#allocation1 + $0x6] ss:$9 sm:$0xff] %v14928_v56  ;;  %5609 = vmatpush.bf16.msrb.mxu2 %v8240_v22 }
 0xa0c   : > { %5470 = vst [vmem:[#allocation1 + $0x7] ss:$9 sm:$0xff] %v14929_v5 }
 0xa0f   : > { %5610 = vmatpush.bf16.msrb.mxu2 %v8239_v51  ;;  %v12404_v51 = vld [vmem:[%s14013_s13] ss:$0 sm:$0xff] }
 0xa13   : > { %v12290_v53 = vld [vmem:[#allocation1] sm:$0xff] }
 0xa14   : > { %5472 = vst [vmem:[#allocation1] ss:$9 sm:$0xff] %v14930_v15  ;;  %v5339_v15 = vadd.f32 %v12221_v43, %v11963_v32  ;;  %v8238_v32 = vld [vmem:[%s14012_s12] sm:$0xff] }
 0xa15   : > { %5473 = vst [vmem:[#allocation1 + $0x1] ss:$9 sm:$0xff] %v14931_v11  ;;  %5611 = vmatpush.bf16.msrb.mxu2 %v8238_v32 }
 0xa16   : > { %5474 = vst [vmem:[#allocation1 + $0x2] ss:$9 sm:$0xff] %v14932_v31  ;;  %v5367_v11 = vadd.f32 %v12240_v28, %v5339_v15  ;;  %v8426_v28 = vld [vmem:[%s14010_s10] ss:$0 sm:$0xff] }
 0xa17   : > { %5475 = vst [vmem:[#allocation1 + $0x3] ss:$9 sm:$0xff] %v14933_v7  ;;  %v5382_v14 = vpop.f32.mrf.mxu2 }
 0xa18   : > { %5476 = vst [vmem:[#allocation1 + $0x4] ss:$9 sm:$0xff] %v14934_v23  ;;  %v5383_v29 = vadd.f32 %v5382_v14, %v12174_v2  ;;  %v14945_v2 = vrot.slane %v14940_v1, 5 }
 0xa19   : > { %5477 = vst [vmem:[#allocation1 + $0x5] ss:$9 sm:$0xff] %v14935_v34  ;;  %v5410_v20 = vpop.f32.mrf.mxu3 }
 0xa1a   : > { %5478 = vst [vmem:[#allocation1 + $0x6] ss:$9 sm:$0xff] %v14936_v48  ;;  %v5411_v13 = vadd.f32 %v5410_v20, %v5383_v29 }
 0xa1b   : > { %5479 = vst [vmem:[#allocation1 + $0x7] ss:$9 sm:$0xff] %v14937_v16 }
 0xa1c   : > { %5506 = vrot.lane.b32.xlu0 %v5411_v13, %s8448_s21 }
 0xa1f   : > { %v5384_v41 = vpop.f32.mrf.mxu2 }
 0xa20   : > { %v5385_v6 = vadd.f32 %v5384_v41, %v5357_v17 }
 0xa21   : > { %v5412_v25 = vpop.f32.mrf.mxu3 }
 0xa22   : > { %v12307_v60 = vld [vmem:[#allocation1] sm:$0xff]  ;;  %v5413_v30 = vadd.f32 %v5412_v25, %v5385_v6 }
 0xa23   : > { %5481 = vst [vmem:[#allocation1] ss:$9 sm:$0xff] %v14938_v18 }
 0xa24   : > { %5482 = vst [vmem:[#allocation1 + $0x1] ss:$9 sm:$0xff] %v14939_v9  ;;  %5508 = vrot.lane.b32.xlu1 %v5413_v30, %s8448_s21 }
 0xa25   : > { %5483 = vst [vmem:[#allocation1 + $0x2] ss:$9 sm:$0xff] %v14940_v1 }
 0xa26   : > { %5484 = vst [vmem:[#allocation1 + $0x3] ss:$9 sm:$0xff] %v14941_v27 }
 0xa27   : > { %5485 = vst [vmem:[#allocation1 + $0x4] ss:$9 sm:$0xff] %v14942_v33 }
 0xa28   : > { %5486 = vst [vmem:[#allocation1 + $0x5] ss:$9 sm:$0xff] %v14943_v45 }
 0xa29   : > { %5487 = vst [vmem:[#allocation1 + $0x6] ss:$9 sm:$0xff] %v14944_v4 }
 0xa2a   : > { %5488 = vst [vmem:[#allocation1 + $0x7] ss:$9 sm:$0xff] %v14945_v2 }
 0xa31   : > { %v12329_v3 = vld [vmem:[#allocation1] sm:$0xff] }
 0xa32   : > { %5490 = vst [vmem:[#allocation1] ss:$9 sm:$0xff] %v14946_v49 }
 0xa37   : > { %v5415_v62 = vpop.f32.mrf.mxu3 }
 0xa3f   : > { %v5417_v44 = vpop.f32.mrf.mxu3 }
 0xa4d   : > { %v5387_v40 = vpop.f32.mrf.mxu2 }
 0xa4e   : > { %v5388_v35 = vadd.f32 %v5387_v40, %v12200_v61 }
 0xa50   : > { %v5416_v21 = vadd.f32 %v5415_v62, %v5388_v35 }
 0xa52   : > { %5510 = vrot.lane.b32.xlu2 %v5416_v21, %s8448_s21 }
 0xa55   : > { %v5420_v8 = vpop.f32.mrf.mxu3  ;;  %v5389_v42 = vpop.f32.mrf.mxu2 }
 0xa56   : > { %v5390_v37 = vadd.f32 %v5389_v42, %v5362_v38 }
 0xa58   : > { %v5418_v24 = vadd.f32 %v5417_v44, %v5390_v37  ;;  %v5491_v37 = vld [vmem:[#allocation1] sm:$0xff] }
 0xa5a   : > { %5512 = vrot.lane.b32.xlu0 %v5418_v24, %s8448_s21 }
 0xa5d   : > { %v5422_v57 = vpop.f32.mrf.mxu3 }
 0xa65   : > { %v5425_v61 = vpop.f32.mrf.mxu3 }
 0xa6b   : > { %v5392_v63 = vpop.f32.mrf.mxu2 }
 0xa6c   : > { %v5393_v52 = vadd.f32 %v5392_v63, %v12226_v55  ;;  %v12409_v63 = vld [vmem:[%s14014_s14] ss:$0 sm:$0xff] }
 0xa6d   : > { %v5427_v56 = vpop.f32.mrf.mxu3 }
 0xa6e   : > { %v5421_v5 = vadd.f32 %v5420_v8, %v5393_v52 }
 0xa70   : > { %5514 = vrot.lane.b32.xlu1 %v5421_v5, %s8448_s21 }
 0xa73   : > { %v5394_v31 = vpop.f32.mrf.mxu2 }
 0xa74   : > { %v5395_v7 = vadd.f32 %v5394_v31, %v5367_v11 }
 0xa76   : > { %v5423_v23 = vadd.f32 %v5422_v57, %v5395_v7 }
 0xa78   : > { %5516 = vrot.lane.b32.xlu2 %v5423_v23, %s8448_s21 }
 0xa7b   : > { %v5397_v34 = vpop.f32.mrf.mxu2 }
 0xa7c   : > { %v5398_v48 = vadd.f32 %v5397_v34, %v12254_v26  ;;  %v8427_v26 = vld [vmem:[%s14011_s11] ss:$0 sm:$0xff] }
 0xa7e   : > { %v5426_v16 = vadd.f32 %v5425_v61, %v5398_v48 }
 0xa80   : > { %5518 = vrot.lane.b32.xlu0 %v5426_v16, %s8448_s21 }
 0xa83   : > { %v5399_v55 = vpop.f32.mrf.mxu2 }
 0xa8e   : > { %v5507_v43 = vpop.permute.xlu0 %5506 }
 0xa8f   : > { %v12362_v18 = vsel %vm980_vm0, %v12232_v59, %v5507_v43 }
 0xa90   : > { %14947 = vst [vmem:[#allocation6_spill] sm:$0xff] %v12362_v18  ;;  %v5538_v9 = vmul.f32 %v8426_v28, %v12362_v18 }
 0xa92   : > { %v5549_v1 = vadd.f32 %v8427_v26, %v5538_v9 }
 0xa94   : > { %v5556_v33 = vmax.f32 %v5549_v1, 0.0 }
 0xa96   : > { %v5509_v20 = vpop.permute.xlu1 %5508 }
 0xa97   : > { %v12370_v14 = vsel %vm980_vm0, %v12256_v19, %v5509_v20 }
 0xa98   : > { %14948 = vst [vmem:[#allocation17_spill] sm:$0xff] %v12370_v14  ;;  %v5539_v29 = vmul.f32 %v8426_v28, %v12370_v14 }
 0xa9a   : > { %v5550_v27 = vadd.f32 %v8427_v26, %v5539_v29 }
 0xa9c   : > { %v5557_v13 = vmax.f32 %v5550_v27, 0.0 }
 0xa9e   : > { %v5563_v59 = vpack.c.bf16 %v5557_v13, %v5556_v33 }
 0xaa0   : > { %7988 = vmatmul.msk.bf16.vlgmr.msrb.gmra.mxu2 %vm5591_vm9, %v5563_v59 }
 0xaac   : > { %v5511_v45 = vpop.permute.xlu2 %5510 }
 0xaad   : > { %v12376_v4 = vsel %vm980_vm0, %v12273_v58, %v5511_v45 }
 0xaae   : > { %14949 = vst [vmem:[#allocation18_spill] sm:$0xff] %v12376_v4  ;;  %v5540_v36 = vmul.f32 %v8426_v28, %v12376_v4 }
 0xab0   : > { %v5551_v17 = vadd.f32 %v8427_v26, %v5540_v36 }
 0xab2   : > { %v5558_v25 = vmax.f32 %v5551_v17, 0.0 }
 0xacc   : > { %v5513_v2 = vpop.permute.xlu0 %5512 }
 0xacd   : > { %v12381_v19 = vsel %vm980_vm0, %v12290_v53, %v5513_v2 }
 0xace   : > { %14950 = vst [vmem:[#allocation19_spill] sm:$0xff] %v12381_v19  ;;  %v5541_v41 = vmul.f32 %v8426_v28, %v12381_v19 }
 0xad0   : > { %v5552_v6 = vadd.f32 %v8427_v26, %v5541_v41 }
 0xad2   : > { %v5559_v30 = vmax.f32 %v5552_v6, 0.0  ;;  %v5517_v62 = vpop.permute.xlu2 %5516 }
 0xad3   : > { %v12387_v58 = vsel %vm980_vm0, %v12329_v3, %v5517_v62 }
 0xad4   : > { %v5564_v49 = vpack.c.bf16 %v5559_v30, %v5558_v25  ;;  %14951 = vst [vmem:[#allocation20_spill] sm:$0xff] %v12387_v58  ;;  %v5543_v44 = vmul.f32 %v8426_v28, %v12387_v58 }
 0xad6   : > { %7989 = vmatmul.msk.bf16.gmra.mxu2 %vm5591_vm9, %v5564_v49  ;;  %v5554_v35 = vadd.f32 %v8427_v26, %v5543_v44 }
 0xad8   : > { %v5561_v38 = vmax.f32 %v5554_v35, 0.0 }
 0xae2   : > { %v5515_v40 = vpop.permute.xlu1 %5514 }
 0xae3   : > { %v12392_v53 = vsel %vm980_vm0, %v12307_v60, %v5515_v40 }
 0xae4   : > { %14952 = vst [vmem:[#allocation21_spill] sm:$0xff] %v12392_v53  ;;  %v5542_v21 = vmul.f32 %v8426_v28, %v12392_v53 }
 0xae6   : > { %v5553_v39 = vadd.f32 %v8427_v26, %v5542_v21 }
 0xae8   : > { %v5560_v8 = vmax.f32 %v5553_v39, 0.0 }
 0xaea   : > { %v5565_v42 = vpack.c.bf16 %v5561_v38, %v5560_v8 }
 0xaec   : > { %7990 = vmatmul.msk.bf16.gmra.mxu2 %vm5591_vm9, %v5565_v42 }
 0xaf2   : > { %v5519_v24 = vpop.permute.xlu0 %5518 }
 0xaf3   : > { %v12397_v3 = vsel %vm980_vm0, %v5491_v37, %v5519_v24 }
 0xaf4   : > { %14953 = vst [vmem:[#allocation22_spill] sm:$0xff] %v12397_v3  ;;  %v5544_v57 = vmul.f32 %v8426_v28, %v12397_v3 }
 0xaf6   : > { %v5555_v22 = vadd.f32 %v8427_v26, %v5544_v57 }
 0xaf8   : > { %v5562_v61 = vmax.f32 %v5555_v22, 0.0 }
 0xafa   : > { %v5566_v60 = vpack.c.bf16 %v5562_v61, %v5562_v61 }
 0xafc   : > { %7991 = vmatmul.msk.bf16.gmra.mxu2 %vm5591_vm9, %v5566_v60 }
 0xb23   : > { %v5613_v52 = vpop.f32.mrf.mxu2 }
 0xb24   : > { %v5636_v56 = vmul.f32 %v12404_v51, %v5613_v52 }
 0xb26   : > { %v5647_v5 = vadd.f32 %v12409_v63, %v5636_v56 }
 0xb28   : > { %v5654_v15 = vmax.f32 %v5647_v5, 0.0 }
 0xb2a   : > { %v5668_v11 = vrot.slane %v5654_v15, 1  ;;  %v5669_v31 = vrot.slane %v5654_v15, 2  ;;  %v5670_v7 = vrot.slane %v5654_v15, 3  ;;  %5710 = vst [vmem:[#allocation1] ss:$9 sm:$0xff] %v5654_v15  ;;  %v5671_v23 = vrot.slane %v5654_v15, 4 }
 0xb2b   : > { %v5615_v34 = vpop.f32.mrf.mxu2  ;;  %v5672_v48 = vrot.slane %v5654_v15, 5  ;;  %v5673_v55 = vrot.slane %v5654_v15, 6  ;;  %v5674_v28 = vrot.slane %v5654_v15, 7 }
 0xb2c   : > { %5712 = vst [vmem:[#allocation1 + $0x1] ss:$9 sm:$0xff] %v5668_v11  ;;  %v5637_v16 = vmul.f32 %v12404_v51, %v5615_v34 }
 0xb2d   : > { %5714 = vst [vmem:[#allocation1 + $0x2] ss:$9 sm:$0xff] %v5669_v31 }
 0xb2e   : > { %5716 = vst [vmem:[#allocation1 + $0x3] ss:$9 sm:$0xff] %v5670_v7  ;;  %v5648_v32 = vadd.f32 %v12409_v63, %v5637_v16 }
 0xb2f   : > { %5718 = vst [vmem:[#allocation1 + $0x4] ss:$9 sm:$0xff] %v5671_v23 }
 0xb30   : > { %5720 = vst [vmem:[#allocation1 + $0x5] ss:$9 sm:$0xff] %v5672_v48  ;;  %v5655_v43 = vmax.f32 %v5648_v32, 0.0 }
 0xb31   : > { %5722 = vst [vmem:[#allocation1 + $0x6] ss:$9 sm:$0xff] %v5673_v55 }
 0xb32   : > { %v5675_v26 = vrot.slane %v5655_v43, 1  ;;  %v5676_v20 = vrot.slane %v5655_v43, 2  ;;  %v5677_v1 = vrot.slane %v5655_v43, 3  ;;  %v5678_v29 = vrot.slane %v5655_v43, 4 }
 0xb33   : > { %v5679_v27 = vrot.slane %v5655_v43, 5  ;;  %v5680_v33 = vrot.slane %v5655_v43, 6  ;;  %v5681_v13 = vrot.slane %v5655_v43, 7 }
 0xb38   : > { %v12415_v9 = vld [vmem:[#allocation1] sm:$0xff] }
 0xb39   : > { %5724 = vst [vmem:[#allocation1] ss:$9 sm:$0xff] %v5674_v28 }
 0xb3a   : > { %5725 = vst [vmem:[#allocation1 + $0x1] ss:$9 sm:$0xff] %v5655_v43 }
 0xb3b   : > { %5726 = vst [vmem:[#allocation1 + $0x2] ss:$9 sm:$0xff] %v5675_v26 }
 0xb3c   : > { %5727 = vst [vmem:[#allocation1 + $0x3] ss:$9 sm:$0xff] %v5676_v20 }
 0xb3d   : > { %5728 = vst [vmem:[#allocation1 + $0x4] ss:$9 sm:$0xff] %v5677_v1 }
 0xb3e   : > { %5729 = vst [vmem:[#allocation1 + $0x5] ss:$9 sm:$0xff] %v5678_v29 }
 0xb3f   : > { %5730 = vst [vmem:[#allocation1 + $0x6] ss:$9 sm:$0xff] %v5679_v27 }
 0xb46   : > { %v12417_v59 = vld [vmem:[#allocation1] sm:$0xff] }
 0xb47   : > { %5732 = vst [vmem:[#allocation1] ss:$9 sm:$0xff] %v5680_v33 }
 0xb48   : > { %5733 = vst [vmem:[#allocation1 + $0x1] ss:$9 sm:$0xff] %v5681_v13 }
 0xb59   : > { %v5618_v45 = vpop.f32.mrf.mxu2 }
 0xb5a   : > { %v5638_v36 = vmul.f32 %v12404_v51, %v5618_v45 }
 0xb5c   : > { %v5649_v2 = vadd.f32 %v12409_v63, %v5638_v36 }
 0xb5e   : > { %v5656_v17 = vmax.f32 %v5649_v2, 0.0 }
 0xb60   : > { %v5682_v41 = vrot.slane %v5656_v17, 1  ;;  %v5683_v6 = vrot.slane %v5656_v17, 2  ;;  %v5684_v25 = vrot.slane %v5656_v17, 3  ;;  %5734 = vst [vmem:[#allocation1 + $0x2] ss:$9 sm:$0xff] %v5656_v17  ;;  %v5685_v30 = vrot.slane %v5656_v17, 4 }
 0xb61   : > { %v5620_v49 = vpop.f32.mrf.mxu2  ;;  %v5686_v35 = vrot.slane %v5656_v17, 5  ;;  %v5687_v21 = vrot.slane %v5656_v17, 6  ;;  %v5688_v38 = vrot.slane %v5656_v17, 7 }
 0xb62   : > { %5735 = vst [vmem:[#allocation1 + $0x3] ss:$9 sm:$0xff] %v5682_v41  ;;  %v5639_v62 = vmul.f32 %v12404_v51, %v5620_v49 }
 0xb63   : > { %5736 = vst [vmem:[#allocation1 + $0x4] ss:$9 sm:$0xff] %v5683_v6 }
 0xb64   : > { %5737 = vst [vmem:[#allocation1 + $0x5] ss:$9 sm:$0xff] %v5684_v25  ;;  %v5650_v44 = vadd.f32 %v12409_v63, %v5639_v62 }
 0xb65   : > { %5738 = vst [vmem:[#allocation1 + $0x6] ss:$9 sm:$0xff] %v5685_v30 }
 0xb66   : > { %v5657_v40 = vmax.f32 %v5650_v44, 0.0 }
 0xb68   : > { %v5689_v8 = vrot.slane %v5657_v40, 1  ;;  %v5690_v42 = vrot.slane %v5657_v40, 2  ;;  %v5691_v37 = vrot.slane %v5657_v40, 3  ;;  %v5692_v52 = vrot.slane %v5657_v40, 4 }
 0xb69   : > { %v5693_v56 = vrot.slane %v5657_v40, 5  ;;  %v5694_v15 = vrot.slane %v5657_v40, 6  ;;  %v5695_v11 = vrot.slane %v5657_v40, 7 }
 0xb6c   : > { %v12423_v39 = vld [vmem:[#allocation1] sm:$0xff] }
 0xb6d   : > { %5740 = vst [vmem:[#allocation1] ss:$9 sm:$0xff] %v5686_v35 }
 0xb6e   : > { %5741 = vst [vmem:[#allocation1 + $0x1] ss:$9 sm:$0xff] %v5687_v21 }
 0xb6f   : > { %5742 = vst [vmem:[#allocation1 + $0x2] ss:$9 sm:$0xff] %v5688_v38  ;;  %v5623_v24 = vpop.f32.mrf.mxu2 }
 0xb70   : > { %5743 = vst [vmem:[#allocation1 + $0x3] ss:$9 sm:$0xff] %v5657_v40  ;;  %v5640_v57 = vmul.f32 %v12404_v51, %v5623_v24 }
 0xb71   : > { %5744 = vst [vmem:[#allocation1 + $0x4] ss:$9 sm:$0xff] %v5689_v8 }
 0xb72   : > { %5745 = vst [vmem:[#allocation1 + $0x5] ss:$9 sm:$0xff] %v5690_v42  ;;  %v5651_v22 = vadd.f32 %v12409_v63, %v5640_v57 }
 0xb73   : > { %5746 = vst [vmem:[#allocation1 + $0x6] ss:$9 sm:$0xff] %v5691_v37 }
 0xb74   : > { %v5658_v60 = vmax.f32 %v5651_v22, 0.0 }
 0xb76   : > { %v5696_v31 = vrot.slane %v5658_v60, 1  ;;  %v5697_v7 = vrot.slane %v5658_v60, 2  ;;  %v5698_v16 = vrot.slane %v5658_v60, 3  ;;  %v5699_v43 = vrot.slane %v5658_v60, 4 }
 0xb77   : > { %v5625_v61 = vpop.f32.mrf.mxu2  ;;  %v5700_v26 = vrot.slane %v5658_v60, 5  ;;  %v5701_v20 = vrot.slane %v5658_v60, 6  ;;  %v5702_v1 = vrot.slane %v5658_v60, 7 }
 0xb78   : > { %v5641_v23 = vmul.f32 %v12404_v51, %v5625_v61 }
 0xb7a   : > { %v12427_v5 = vld [vmem:[#allocation1] sm:$0xff]  ;;  %v5652_v48 = vadd.f32 %v12409_v63, %v5641_v23 }
 0xb7b   : > { %5748 = vst [vmem:[#allocation1] ss:$9 sm:$0xff] %v5692_v52 }
 0xb7c   : > { %5749 = vst [vmem:[#allocation1 + $0x1] ss:$9 sm:$0xff] %v5693_v56  ;;  %v5659_v55 = vmax.f32 %v5652_v48, 0.0 }
 0xb7d   : > { %5750 = vst [vmem:[#allocation1 + $0x2] ss:$9 sm:$0xff] %v5694_v15 }
 0xb7e   : > { %5751 = vst [vmem:[#allocation1 + $0x3] ss:$9 sm:$0xff] %v5695_v11  ;;  %v5703_v29 = vrot.slane %v5659_v55, 1  ;;  %v5704_v33 = vrot.slane %v5659_v55, 2  ;;  %v5705_v13 = vrot.slane %v5659_v55, 3  ;;  %v5706_v36 = vrot.slane %v5659_v55, 4 }
 0xb7f   : > { %5752 = vst [vmem:[#allocation1 + $0x4] ss:$9 sm:$0xff] %v5658_v60  ;;  %v5628_v34 = vpop.f32.mrf.mxu2  ;;  %v5707_v17 = vrot.slane %v5659_v55, 5  ;;  %v5708_v41 = vrot.slane %v5659_v55, 6  ;;  %v5709_v6 = vrot.slane %v5659_v55, 7 }
 0xb80   : > { %5753 = vst [vmem:[#allocation1 + $0x5] ss:$9 sm:$0xff] %v5696_v31  ;;  %v5642_v27 = vmul.f32 %v12404_v51, %v5628_v34  ;;  %v5772_v51 = vrot.slane %v12415_v9, 7  ;;  %v5773_v9 = vrot.slane %v12417_v59, 7  ;;  %v5774_v59 = vrot.slane %v12423_v39, 7 }
 0xb81   : > { %5754 = vst [vmem:[#allocation1 + $0x6] ss:$9 sm:$0xff] %v5697_v7  ;;  %v5775_v39 = vrot.slane %v12427_v5, 7 }
 0xb82   : > { %v5653_v2 = vadd.f32 %v12409_v63, %v5642_v27  ;;  %v12454_v21 = vsel %vm1931_vm1, 0.0, %v5772_v51  ;;  %v12473_v61 = vsel %vm1931_vm1, 0.0, %v5773_v9  ;;  %v12492_v23 = vsel %vm1931_vm1, 0.0, %v5774_v59 }
 0xb84   : > { %v5660_v25 = vmax.f32 %v5653_v2, 0.0 }
 0xb87   : > { %v5630_v32 = vpop.f32.mrf.mxu2 }
 0xb88   : > { %v12431_v28 = vld [vmem:[#allocation1] sm:$0xff] }
 0xb89   : > { %5756 = vst [vmem:[#allocation1] ss:$9 sm:$0xff] %v5698_v16  ;;  %v5776_v5 = vrot.slane %v12431_v28, 7 }
 0xb8a   : > { %5757 = vst [vmem:[#allocation1 + $0x1] ss:$9 sm:$0xff] %v5699_v43 }
 0xb8b   : > { %5758 = vst [vmem:[#allocation1 + $0x2] ss:$9 sm:$0xff] %v5700_v26 }
 0xb8c   : > { %5759 = vst [vmem:[#allocation1 + $0x3] ss:$9 sm:$0xff] %v5701_v20  ;;  %v12511_v20 = vsel %vm1931_vm1, 0.0, %v5775_v39 }
 0xb8d   : > { %5760 = vst [vmem:[#allocation1 + $0x4] ss:$9 sm:$0xff] %v5702_v1 }
 0xb8e   : > { %5761 = vst [vmem:[#allocation1 + $0x5] ss:$9 sm:$0xff] %v5659_v55 }
 0xb8f   : > { %5762 = vst [vmem:[#allocation1 + $0x6] ss:$9 sm:$0xff] %v5703_v29 }
 0xb96   : > { %v12434_v45 = vld [vmem:[#allocation1] sm:$0xff] }
 0xb97   : > { %5764 = vst [vmem:[#allocation1] ss:$9 sm:$0xff] %v5704_v33  ;;  %v5777_v28 = vrot.slane %v12434_v45, 7 }
 0xb98   : > { %5765 = vst [vmem:[#allocation1 + $0x1] ss:$9 sm:$0xff] %v5705_v13 }
 0xb99   : > { %5766 = vst [vmem:[#allocation1 + $0x2] ss:$9 sm:$0xff] %v5706_v36 }
 0xb9a   : > { %5767 = vst [vmem:[#allocation1 + $0x3] ss:$9 sm:$0xff] %v5707_v17  ;;  %v12530_v17 = vsel %vm1931_vm1, 0.0, %v5776_v5  ;;  %v12549_v5 = vsel %vm1931_vm1, 0.0, %v5777_v28 }
 0xb9b   : > { %5768 = vst [vmem:[#allocation1 + $0x4] ss:$9 sm:$0xff] %v5708_v41 }
 0xb9c   : > { %5769 = vst [vmem:[#allocation1 + $0x5] ss:$9 sm:$0xff] %v5709_v6 }
 0xb9d   : > { %5770 = vst [vmem:[#allocation1 + $0x6] ss:$9 sm:$0xff] %v5660_v25 }
 0xba4   : > { %v12437_v30 = vld [vmem:[#allocation1] sm:$0xff] }
 0xba5   : > { %5835 = vst [vmem:[#allocation1] sm:$0xff] %v14788_v47 }
 0xbac   : > { %v12441_v49 = vld [vmem:[#allocation1 + $0x1] ss:$9 sm:$0xff]  ;;  %v12445_v63 = vld [vmem:[#allocation1 + $0x3] ss:$9 sm:$0xff] }
 0xbad   : > { %v12443_v62 = vld [vmem:[#allocation1 + $0x2] ss:$9 sm:$0xff]  ;;  %v12447_v44 = vld [vmem:[#allocation1 + $0x4] ss:$9 sm:$0xff] }
 0xbae   : > { %v12449_v40 = vld [vmem:[#allocation1 + $0x5] ss:$9 sm:$0xff]  ;;  %v12456_v38 = vld [vmem:[#allocation1 + $0x7] ss:$9 sm:$0xff] }
 0xbaf   : > { %v12451_v35 = vld [vmem:[#allocation1 + $0x6] ss:$9 sm:$0xff] }
 0xbb0   : > { %5850 = vst [vmem:[#allocation1] sm:$0xff] %v12454_v21 }
 0xbb7   : > { %v12460_v8 = vld [vmem:[#allocation1 + $0x1] ss:$9 sm:$0xff]  ;;  %v12464_v37 = vld [vmem:[#allocation1 + $0x3] ss:$9 sm:$0xff] }
 0xbb8   : > { %v12462_v42 = vld [vmem:[#allocation1 + $0x2] ss:$9 sm:$0xff]  ;;  %v12466_v24 = vld [vmem:[#allocation1 + $0x4] ss:$9 sm:$0xff] }
 0xbb9   : > { %v12468_v57 = vld [vmem:[#allocation1 + $0x5] ss:$9 sm:$0xff]  ;;  %v12475_v60 = vld [vmem:[#allocation1 + $0x7] ss:$9 sm:$0xff] }
 0xbba   : > { %v12470_v22 = vld [vmem:[#allocation1 + $0x6] ss:$9 sm:$0xff] }
 0xbbb   : > { %5858 = vst [vmem:[#allocation1] sm:$0xff] %v12473_v61 }
 0xbc2   : > { %v12479_v52 = vld [vmem:[#allocation1 + $0x1] ss:$9 sm:$0xff]  ;;  %v12483_v15 = vld [vmem:[#allocation1 + $0x3] ss:$9 sm:$0xff] }
 0xbc3   : > { %v12481_v56 = vld [vmem:[#allocation1 + $0x2] ss:$9 sm:$0xff]  ;;  %v12485_v11 = vld [vmem:[#allocation1 + $0x4] ss:$9 sm:$0xff] }
 0xbc4   : > { %v12487_v31 = vld [vmem:[#allocation1 + $0x5] ss:$9 sm:$0xff]  ;;  %v12494_v34 = vld [vmem:[#allocation1 + $0x7] ss:$9 sm:$0xff] }
 0xbc5   : > { %v12489_v7 = vld [vmem:[#allocation1 + $0x6] ss:$9 sm:$0xff] }
 0xbc6   : > { %5866 = vst [vmem:[#allocation1] sm:$0xff] %v12492_v23 }
 0xbcd   : > { %v12498_v48 = vld [vmem:[#allocation1 + $0x1] ss:$9 sm:$0xff]  ;;  %v12502_v55 = vld [vmem:[#allocation1 + $0x3] ss:$9 sm:$0xff] }
 0xbce   : > { %v12500_v16 = vld [vmem:[#allocation1 + $0x2] ss:$9 sm:$0xff]  ;;  %v12504_v32 = vld [vmem:[#allocation1 + $0x4] ss:$9 sm:$0xff] }
 0xbcf   : > { %v12506_v43 = vld [vmem:[#allocation1 + $0x5] ss:$9 sm:$0xff]  ;;  %v12513_v1 = vld [vmem:[#allocation1 + $0x7] ss:$9 sm:$0xff] }
 0xbd0   : > { %v12508_v26 = vld [vmem:[#allocation1 + $0x6] ss:$9 sm:$0xff] }
 0xbd1   : > { %5874 = vst [vmem:[#allocation1] sm:$0xff] %v12511_v20 }
 0xbd8   : > { %v12517_v29 = vld [vmem:[#allocation1 + $0x1] ss:$9 sm:$0xff]  ;;  %v12521_v33 = vld [vmem:[#allocation1 + $0x3] ss:$9 sm:$0xff] }
 0xbd9   : > { %v12519_v27 = vld [vmem:[#allocation1 + $0x2] ss:$9 sm:$0xff]  ;;  %v12523_v13 = vld [vmem:[#allocation1 + $0x4] ss:$9 sm:$0xff] }
 0xbda   : > { %v12525_v36 = vld [vmem:[#allocation1 + $0x5] ss:$9 sm:$0xff]  ;;  %v12532_v41 = vld [vmem:[#allocation1 + $0x7] ss:$9 sm:$0xff] }
 0xbdb   : > { %v12527_v2 = vld [vmem:[#allocation1 + $0x6] ss:$9 sm:$0xff] }
 0xbdc   : > { %5882 = vst [vmem:[#allocation1] sm:$0xff] %v12530_v17 }
 0xbe3   : > { %v12536_v6 = vld [vmem:[#allocation1 + $0x1] ss:$9 sm:$0xff]  ;;  %v12540_v51 = vld [vmem:[#allocation1 + $0x3] ss:$9 sm:$0xff] }
 0xbe4   : > { %v12538_v25 = vld [vmem:[#allocation1 + $0x2] ss:$9 sm:$0xff]  ;;  %v12542_v9 = vld [vmem:[#allocation1 + $0x4] ss:$9 sm:$0xff] }
 0xbe5   : > { %v12544_v59 = vld [vmem:[#allocation1 + $0x5] ss:$9 sm:$0xff]  ;;  %v12551_v3 = vld [vmem:[#allocation1 + $0x7] ss:$9 sm:$0xff] }
 0xbe6   : > { %14954 = vst [vmem:[#allocation23_spill] sm:$0xff] %v12544_v59  ;;  %v12546_v39 = vld [vmem:[#allocation1 + $0x6] ss:$9 sm:$0xff] }
 0xbe7   : > { %14955 = vst [vmem:[#allocation24_spill] sm:$0xff] %v12546_v39 }
 0xbe8   : > { %14956 = vst [vmem:[#allocation25_spill] sm:$0xff] %v12551_v3 }
 0xbe9   : > { %5890 = vst [vmem:[#allocation1] sm:$0xff] %v12549_v5 }
 0xbf0   : > { %v12554_v45 = vld [vmem:[#allocation1 + $0x1] ss:$9 sm:$0xff]  ;;  %v12558_v53 = vld [vmem:[#allocation1 + $0x3] ss:$9 sm:$0xff] }
 0xbf1   : > { %14957 = vst [vmem:[#allocation26_spill] sm:$0xff] %v12554_v45  ;;  %v12556_v58 = vld [vmem:[#allocation1 + $0x2] ss:$9 sm:$0xff]  ;;  %v12560_v19 = vld [vmem:[#allocation1 + $0x4] ss:$9 sm:$0xff] }
 0xbf2   : > { %14958 = vst [vmem:[#allocation27_spill] sm:$0xff] %v12556_v58  ;;  %v12562_v4 = vld [vmem:[#allocation1 + $0x5] ss:$9 sm:$0xff]  ;;  %v12566_v18 = vld [vmem:[#allocation1 + $0x7] ss:$9 sm:$0xff] }
 0xbf3   : > { %14959 = vst [vmem:[#allocation28_spill] sm:$0xff] %v12558_v53  ;;  %v12564_v14 = vld [vmem:[#allocation1 + $0x6] ss:$9 sm:$0xff] }
 0xbf4   : > { %14960 = vst [vmem:[#allocation29_spill] sm:$0xff] %v12560_v19  ;;  %v14970_v19 = vmov 0.0  }
 0xbf5   : > { %14961 = vst [vmem:[#allocation30_spill] sm:$0xff] %v12562_v4 }
 0xbf6   : > { %14962 = vst [vmem:[#allocation31_spill] sm:$0xff] %v12564_v14 }
 0xbf7   : > { %14963 = vst [vmem:[#allocation32_spill] sm:$0xff] %v12566_v18 }
 0xbf8   : > { %5898 = vst [vmem:[#allocation1] sm:$0xff] %v14788_v47 }
 0xbff   : > { %v12569_v28 = vld [vmem:[#allocation1 + $0x2] ss:$9 sm:$0xff]  ;;  %v12573_v39 = vld [vmem:[#allocation1 + $0x4] ss:$9 sm:$0xff] }
 0xc00   : > { %14964 = vst [vmem:[#allocation33_spill] sm:$0xff] %v12569_v28  ;;  %v12571_v3 = vld [vmem:[#allocation1 + $0x3] ss:$9 sm:$0xff]  ;;  %v12575_v45 = vld [vmem:[#allocation1 + $0x5] ss:$9 sm:$0xff] }
 0xc01   : > { %14965 = vst [vmem:[#allocation34_spill] sm:$0xff] %v12571_v3  ;;  %v12577_v58 = vld [vmem:[#allocation1 + $0x6] ss:$9 sm:$0xff] }
 0xc02   : > { %14966 = vst [vmem:[#allocation35_spill] sm:$0xff] %v12573_v39  ;;  %v12579_v53 = vld [vmem:[#allocation1 + $0x7] ss:$9 sm:$0xff] }
 0xc03   : > { %14967 = vst [vmem:[#allocation36_spill] sm:$0xff] %v12575_v45 }
 0xc04   : > { %14968 = vst [vmem:[#allocation37_spill] sm:$0xff] %v12577_v58 }
 0xc05   : > { %14969 = vst [vmem:[#allocation38_spill] sm:$0xff] %v12579_v53 }
 0xc06   : > { %5911 = vst [vmem:[#allocation1] sm:$0xff] %v14970_v19 }
 0xc0d   : > { %v12582_v4 = vld [vmem:[#allocation1] ss:$9 sm:$0xff] }
 0xc0e   : > { %14971 = vst [vmem:[#allocation39_spill] sm:$0xff] %v12582_v4 }
 0xc0f   : > { %5913 = vst [vmem:[#allocation1] sm:$0xff] %v12454_v21 }
 0xc16   : > { %v12585_v18 = vld [vmem:[#allocation1 + $0x2] ss:$9 sm:$0xff]  ;;  %v12589_v28 = vld [vmem:[#allocation1 + $0x4] ss:$9 sm:$0xff] }
 0xc17   : > { %14972 = vst [vmem:[#allocation40_spill] sm:$0xff] %v12585_v18  ;;  %v12587_v14 = vld [vmem:[#allocation1 + $0x3] ss:$9 sm:$0xff]  ;;  %v12591_v3 = vld [vmem:[#allocation1 + $0x5] ss:$9 sm:$0xff] }
 0xc18   : > { %14973 = vst [vmem:[#allocation41_spill] sm:$0xff] %v12587_v14  ;;  %v12593_v39 = vld [vmem:[#allocation1 + $0x6] ss:$9 sm:$0xff] }
 0xc19   : > { %14974 = vst [vmem:[#allocation42_spill] sm:$0xff] %v12589_v28  ;;  %v12595_v45 = vld [vmem:[#allocation1 + $0x7] ss:$9 sm:$0xff] }
 0xc1a   : > { %14975 = vst [vmem:[#allocation43_spill] sm:$0xff] %v12591_v3 }
 0xc1b   : > { %14976 = vst [vmem:[#allocation44_spill] sm:$0xff] %v12593_v39 }
 0xc1c   : > { %14977 = vst [vmem:[#allocation45_spill] sm:$0xff] %v12595_v45 }
 0xc1d   : > { %5920 = vst [vmem:[#allocation1] sm:$0xff] %v14970_v19 }
 0xc24   : > { %v12598_v53 = vld [vmem:[#allocation1] ss:$9 sm:$0xff] }
 0xc25   : > { %14978 = vst [vmem:[#allocation46_spill] sm:$0xff] %v12598_v53 }
 0xc26   : > { %5922 = vst [vmem:[#allocation1] sm:$0xff] %v12473_v61 }
 0xc2d   : > { %v12601_v4 = vld [vmem:[#allocation1 + $0x2] ss:$9 sm:$0xff]  ;;  %v12605_v18 = vld [vmem:[#allocation1 + $0x4] ss:$9 sm:$0xff] }
 0xc2e   : > { %14979 = vst [vmem:[#allocation47_spill] sm:$0xff] %v12601_v4  ;;  %v12603_v58 = vld [vmem:[#allocation1 + $0x3] ss:$9 sm:$0xff]  ;;  %v12607_v14 = vld [vmem:[#allocation1 + $0x5] ss:$9 sm:$0xff] }
 0xc2f   : > { %14980 = vst [vmem:[#allocation48_spill] sm:$0xff] %v12603_v58  ;;  %v12609_v28 = vld [vmem:[#allocation1 + $0x6] ss:$9 sm:$0xff] }
 0xc30   : > { %14981 = vst [vmem:[#allocation49_spill] sm:$0xff] %v12605_v18  ;;  %v12611_v3 = vld [vmem:[#allocation1 + $0x7] ss:$9 sm:$0xff] }
 0xc31   : > { %14982 = vst [vmem:[#allocation50_spill] sm:$0xff] %v12607_v14 }
 0xc32   : > { %14983 = vst [vmem:[#allocation51_spill] sm:$0xff] %v12609_v28 }
 0xc33   : > { %14984 = vst [vmem:[#allocation52_spill] sm:$0xff] %v12611_v3 }
 0xc34   : > { %5929 = vst [vmem:[#allocation1] sm:$0xff] %v14970_v19 }
 0xc3b   : > { %v12614_v45 = vld [vmem:[#allocation1] ss:$9 sm:$0xff] }
 0xc3c   : > { %14985 = vst [vmem:[#allocation53_spill] sm:$0xff] %v12614_v45 }
 0xc3d   : > { %5931 = vst [vmem:[#allocation1] sm:$0xff] %v12492_v23 }
 0xc44   : > { %v12617_v39 = vld [vmem:[#allocation1 + $0x2] ss:$9 sm:$0xff]  ;;  %v12621_v4 = vld [vmem:[#allocation1 + $0x4] ss:$9 sm:$0xff] }
 0xc45   : > { %14986 = vst [vmem:[#allocation54_spill] sm:$0xff] %v12617_v39  ;;  %v12619_v53 = vld [vmem:[#allocation1 + $0x3] ss:$9 sm:$0xff]  ;;  %v12623_v58 = vld [vmem:[#allocation1 + $0x5] ss:$9 sm:$0xff] }
 0xc46   : > { %14987 = vst [vmem:[#allocation55_spill] sm:$0xff] %v12619_v53  ;;  %v12625_v18 = vld [vmem:[#allocation1 + $0x6] ss:$9 sm:$0xff] }
 0xc47   : > { %14988 = vst [vmem:[#allocation56_spill] sm:$0xff] %v12621_v4  ;;  %v12627_v14 = vld [vmem:[#allocation1 + $0x7] ss:$9 sm:$0xff] }
 0xc48   : > { %14989 = vst [vmem:[#allocation57_spill] sm:$0xff] %v12623_v58 }
 0xc49   : > { %14990 = vst [vmem:[#allocation58_spill] sm:$0xff] %v12625_v18 }
 0xc4a   : > { %14991 = vst [vmem:[#allocation59_spill] sm:$0xff] %v12627_v14 }
 0xc4b   : > { %5938 = vst [vmem:[#allocation1] sm:$0xff] %v14970_v19 }
 0xc52   : > { %v12630_v3 = vld [vmem:[#allocation1] ss:$9 sm:$0xff] }
 0xc53   : > { %14992 = vst [vmem:[#allocation60_spill] sm:$0xff] %v12630_v3 }
 0xc54   : > { %5940 = vst [vmem:[#allocation1] sm:$0xff] %v12511_v20 }
 0xc5b   : > { %v12633_v45 = vld [vmem:[#allocation1 + $0x2] ss:$9 sm:$0xff]  ;;  %v12637_v39 = vld [vmem:[#allocation1 + $0x4] ss:$9 sm:$0xff] }
 0xc5c   : > { %14993 = vst [vmem:[#allocation61_spill] sm:$0xff] %v12633_v45  ;;  %v12635_v28 = vld [vmem:[#allocation1 + $0x3] ss:$9 sm:$0xff]  ;;  %v12639_v53 = vld [vmem:[#allocation1 + $0x5] ss:$9 sm:$0xff] }
 0xc5d   : > { %14994 = vst [vmem:[#allocation62_spill] sm:$0xff] %v12635_v28  ;;  %v12641_v4 = vld [vmem:[#allocation1 + $0x6] ss:$9 sm:$0xff] }
 0xc5e   : > { %14995 = vst [vmem:[#allocation63_spill] sm:$0xff] %v12637_v39  ;;  %v12643_v58 = vld [vmem:[#allocation1 + $0x7] ss:$9 sm:$0xff] }
 0xc5f   : > { %14996 = vst [vmem:[#allocation269_spill] sm:$0xff] %v12639_v53 }
 0xc60   : > { %14997 = vst [vmem:[#allocation270_spill] sm:$0xff] %v12641_v4 }
 0xc61   : > { %14998 = vst [vmem:[#allocation271_spill] sm:$0xff] %v12643_v58 }
 0xc62   : > { %5947 = vst [vmem:[#allocation1] sm:$0xff] %v14970_v19 }
 0xc69   : > { %v12646_v14 = vld [vmem:[#allocation1] ss:$9 sm:$0xff] }
 0xc6a   : > { %14999 = vst [vmem:[#allocation272_spill] sm:$0xff] %v12646_v14 }
 0xc6b   : > { %5949 = vst [vmem:[#allocation1] sm:$0xff] %v12530_v17 }
 0xc72   : > { %v12649_v3 = vld [vmem:[#allocation1 + $0x2] ss:$9 sm:$0xff]  ;;  %v12653_v45 = vld [vmem:[#allocation1 + $0x4] ss:$9 sm:$0xff] }
 0xc73   : > { %15000 = vst [vmem:[#allocation274_spill] sm:$0xff] %v12649_v3  ;;  %v12651_v18 = vld [vmem:[#allocation1 + $0x3] ss:$9 sm:$0xff]  ;;  %v12655_v28 = vld [vmem:[#allocation1 + $0x5] ss:$9 sm:$0xff] }
 0xc74   : > { %15001 = vst [vmem:[#allocation275_spill] sm:$0xff] %v12651_v18  ;;  %v12657_v39 = vld [vmem:[#allocation1 + $0x6] ss:$9 sm:$0xff] }
 0xc75   : > { %15002 = vst [vmem:[#allocation276_spill] sm:$0xff] %v12653_v45  ;;  %v12659_v53 = vld [vmem:[#allocation1 + $0x7] ss:$9 sm:$0xff] }
 0xc76   : > { %15003 = vst [vmem:[#allocation277_spill] sm:$0xff] %v12655_v28 }
 0xc77   : > { %15004 = vst [vmem:[#allocation278_spill] sm:$0xff] %v12657_v39 }
 0xc78   : > { %15005 = vst [vmem:[#allocation279_spill] sm:$0xff] %v12659_v53 }
 0xc79   : > { %5956 = vst [vmem:[#allocation1] sm:$0xff] %v14970_v19 }
 0xc80   : > { %v12662_v58 = vld [vmem:[#allocation1] ss:$9 sm:$0xff] }
 0xc81   : > { %15006 = vst [vmem:[#allocation280_spill] sm:$0xff] %v12662_v58 }
 0xc82   : > { %5958 = vst [vmem:[#allocation1] sm:$0xff] %v12549_v5 }
 0xc89   : > { %v12665_v14 = vld [vmem:[#allocation1 + $0x2] ss:$9 sm:$0xff]  ;;  %v12669_v3 = vld [vmem:[#allocation1 + $0x4] ss:$9 sm:$0xff] }
 0xc8a   : > { %15007 = vst [vmem:[#allocation282_spill] sm:$0xff] %v12665_v14  ;;  %v12667_v4 = vld [vmem:[#allocation1 + $0x3] ss:$9 sm:$0xff]  ;;  %v12671_v18 = vld [vmem:[#allocation1 + $0x5] ss:$9 sm:$0xff] }
 0xc8b   : > { %15008 = vst [vmem:[#allocation283_spill] sm:$0xff] %v12667_v4  ;;  %v12673_v45 = vld [vmem:[#allocation1 + $0x6] ss:$9 sm:$0xff] }
 0xc8c   : > { %15009 = vst [vmem:[#allocation284_spill] sm:$0xff] %v12669_v3  ;;  %v12675_v28 = vld [vmem:[#allocation1 + $0x7] ss:$9 sm:$0xff] }
 0xc8d   : > { %15010 = vst [vmem:[#allocation285_spill] sm:$0xff] %v12671_v18 }
 0xc8e   : > { %15011 = vst [vmem:[#allocation286_spill] sm:$0xff] %v12673_v45 }
 0xc8f   : > { %15012 = vst [vmem:[#allocation287_spill] sm:$0xff] %v12675_v28 }
 0xc90   : > { %5965 = vst [vmem:[#allocation1] sm:$0xff] %v14970_v19 }
 0xc97   : > { %v12678_v53 = vld [vmem:[#allocation1] ss:$9 sm:$0xff] }
 0xc98   : > { %15013 = vst [vmem:[#allocation288_spill] sm:$0xff] %v12678_v53 }
 0xc99   : > { %5974 = vst [vmem:[#allocation1] sm:$0xff] %v12454_v21 }
 0xca0   : > { %v12681_v58 = vld [vmem:[#allocation1 + $0x1] ss:$9 sm:$0xff]  ;;  %v12685_v14 = vld [vmem:[#allocation1 + $0x3] ss:$9 sm:$0xff] }
 0xca1   : > { %15014 = vst [vmem:[#allocation290_spill] sm:$0xff] %v12681_v58  ;;  %v12683_v39 = vld [vmem:[#allocation1 + $0x2] ss:$9 sm:$0xff]  ;;  %v12687_v4 = vld [vmem:[#allocation1 + $0x4] ss:$9 sm:$0xff] }
 0xca2   : > { %15015 = vst [vmem:[#allocation105_spill] sm:$0xff] %v12683_v39  ;;  %v12689_v3 = vld [vmem:[#allocation1 + $0x5] ss:$9 sm:$0xff]  ;;  %v12693_v45 = vld [vmem:[#allocation1 + $0x7] ss:$9 sm:$0xff] }
 0xca3   : > { %15016 = vst [vmem:[#allocation64_spill] sm:$0xff] %v12685_v14  ;;  %v12691_v18 = vld [vmem:[#allocation1 + $0x6] ss:$9 sm:$0xff] }
 0xca4   : > { %15017 = vst [vmem:[#allocation65_spill] sm:$0xff] %v12687_v4 }
 0xca5   : > { %15018 = vst [vmem:[#allocation66_spill] sm:$0xff] %v12689_v3 }
 0xca6   : > { %15019 = vst [vmem:[#allocation67_spill] sm:$0xff] %v12691_v18 }
 0xca7   : > { %15020 = vst [vmem:[#allocation68_spill] sm:$0xff] %v12693_v45 }
 0xca8   : > { %5989 = vst [vmem:[#allocation1] sm:$0xff] %v12473_v61 }
 0xcaf   : > { %v12696_v28 = vld [vmem:[#allocation1 + $0x1] ss:$9 sm:$0xff]  ;;  %v12700_v59 = vld [vmem:[#allocation1 + $0x3] ss:$9 sm:$0xff] }
 0xcb0   : > { %15021 = vst [vmem:[#allocation69_spill] sm:$0xff] %v12696_v28  ;;  %v12698_v53 = vld [vmem:[#allocation1 + $0x2] ss:$9 sm:$0xff]  ;;  %v12702_v58 = vld [vmem:[#allocation1 + $0x4] ss:$9 sm:$0xff] }
 0xcb1   : > { %15022 = vst [vmem:[#allocation70_spill] sm:$0xff] %v12698_v53  ;;  %v12704_v39 = vld [vmem:[#allocation1 + $0x5] ss:$9 sm:$0xff]  ;;  %v12708_v4 = vld [vmem:[#allocation1 + $0x7] ss:$9 sm:$0xff] }
 0xcb2   : > { %15023 = vst [vmem:[#allocation71_spill] sm:$0xff] %v12700_v59  ;;  %v12706_v14 = vld [vmem:[#allocation1 + $0x6] ss:$9 sm:$0xff] }
 0xcb3   : > { %15024 = vst [vmem:[#allocation72_spill] sm:$0xff] %v12702_v58 }
 0xcb4   : > { %15025 = vst [vmem:[#allocation73_spill] sm:$0xff] %v12704_v39 }
 0xcb5   : > { %15026 = vst [vmem:[#allocation74_spill] sm:$0xff] %v12706_v14 }
 0xcb6   : > { %15027 = vst [vmem:[#allocation75_spill] sm:$0xff] %v12708_v4 }
 0xcb7   : > { %5997 = vst [vmem:[#allocation1] sm:$0xff] %v12492_v23 }
 0xcbe   : > { %v12711_v18 = vld [vmem:[#allocation1 + $0x1] ss:$9 sm:$0xff]  ;;  %v12715_v3 = vld [vmem:[#allocation1 + $0x3] ss:$9 sm:$0xff] }
 0xcbf   : > { %15028 = vst [vmem:[#allocation76_spill] sm:$0xff] %v12711_v18  ;;  %v12713_v45 = vld [vmem:[#allocation1 + $0x2] ss:$9 sm:$0xff]  ;;  %v12717_v28 = vld [vmem:[#allocation1 + $0x4] ss:$9 sm:$0xff] }
 0xcc0   : > { %15029 = vst [vmem:[#allocation77_spill] sm:$0xff] %v12713_v45  ;;  %v12719_v53 = vld [vmem:[#allocation1 + $0x5] ss:$9 sm:$0xff]  ;;  %v12723_v58 = vld [vmem:[#allocation1 + $0x7] ss:$9 sm:$0xff] }
 0xcc1   : > { %15030 = vst [vmem:[#allocation78_spill] sm:$0xff] %v12715_v3  ;;  %v12721_v59 = vld [vmem:[#allocation1 + $0x6] ss:$9 sm:$0xff] }
 0xcc2   : > { %15031 = vst [vmem:[#allocation79_spill] sm:$0xff] %v12717_v28 }
 0xcc3   : > { %15032 = vst [vmem:[#allocation80_spill] sm:$0xff] %v12719_v53 }
 0xcc4   : > { %15033 = vst [vmem:[#allocation81_spill] sm:$0xff] %v12721_v59 }
 0xcc5   : > { %15034 = vst [vmem:[#allocation82_spill] sm:$0xff] %v12723_v58 }
 0xcc6   : > { %6005 = vst [vmem:[#allocation1] sm:$0xff] %v12511_v20 }
 0xccd   : > { %v12726_v14 = vld [vmem:[#allocation1 + $0x1] ss:$9 sm:$0xff]  ;;  %v12730_v39 = vld [vmem:[#allocation1 + $0x3] ss:$9 sm:$0xff] }
 0xcce   : > { %15035 = vst [vmem:[#allocation83_spill] sm:$0xff] %v12726_v14  ;;  %v12728_v4 = vld [vmem:[#allocation1 + $0x2] ss:$9 sm:$0xff]  ;;  %v12732_v18 = vld [vmem:[#allocation1 + $0x4] ss:$9 sm:$0xff] }
 0xccf   : > { %15036 = vst [vmem:[#allocation84_spill] sm:$0xff] %v12728_v4  ;;  %v12734_v45 = vld [vmem:[#allocation1 + $0x5] ss:$9 sm:$0xff]  ;;  %v12738_v28 = vld [vmem:[#allocation1 + $0x7] ss:$9 sm:$0xff] }
 0xcd0   : > { %15037 = vst [vmem:[#allocation85_spill] sm:$0xff] %v12730_v39  ;;  %v12736_v3 = vld [vmem:[#allocation1 + $0x6] ss:$9 sm:$0xff] }
 0xcd1   : > { %15038 = vst [vmem:[#allocation86_spill] sm:$0xff] %v12732_v18 }
 0xcd2   : > { %15039 = vst [vmem:[#allocation87_spill] sm:$0xff] %v12734_v45 }
 0xcd3   : > { %15040 = vst [vmem:[#allocation88_spill] sm:$0xff] %v12736_v3 }
 0xcd4   : > { %15041 = vst [vmem:[#allocation89_spill] sm:$0xff] %v12738_v28  ;;  %v5778_v28 = vrot.slane %v12437_v30, 7 }
 0xcd5   : > { %6013 = vst [vmem:[#allocation1] sm:$0xff] %v12530_v17 }
 0xcdc   : > { %v12741_v59 = vld [vmem:[#allocation1 + $0x1] ss:$9 sm:$0xff]  ;;  %v12745_v53 = vld [vmem:[#allocation1 + $0x3] ss:$9 sm:$0xff] }
 0xcdd   : > { %15042 = vst [vmem:[#allocation90_spill] sm:$0xff] %v12741_v59  ;;  %v12743_v58 = vld [vmem:[#allocation1 + $0x2] ss:$9 sm:$0xff]  ;;  %v12747_v14 = vld [vmem:[#allocation1 + $0x4] ss:$9 sm:$0xff] }
 0xcde   : > { %15043 = vst [vmem:[#allocation91_spill] sm:$0xff] %v12743_v58  ;;  %v12749_v4 = vld [vmem:[#allocation1 + $0x5] ss:$9 sm:$0xff]  ;;  %v12753_v18 = vld [vmem:[#allocation1 + $0x7] ss:$9 sm:$0xff] }
 0xcdf   : > { %15044 = vst [vmem:[#allocation92_spill] sm:$0xff] %v12745_v53  ;;  %v12751_v39 = vld [vmem:[#allocation1 + $0x6] ss:$9 sm:$0xff] }
 0xce0   : > { %15045 = vst [vmem:[#allocation93_spill] sm:$0xff] %v12747_v14 }
 0xce1   : > { %15046 = vst [vmem:[#allocation94_spill] sm:$0xff] %v12749_v4 }
 0xce2   : > { %15047 = vst [vmem:[#allocation95_spill] sm:$0xff] %v12751_v39  ;;  %v12770_v39 = vsel %vm1931_vm1, 0.0, %v5778_v28 }
 0xce3   : > { %15048 = vst [vmem:[#allocation96_spill] sm:$0xff] %v12753_v18 }
 0xce4   : > { %6021 = vst [vmem:[#allocation1] sm:$0xff] %v12549_v5 }
 0xce5   : > { %15055 = vst [vmem:[#allocation103_spill] sm:$0xff] %v12770_v39 }
 0xceb   : > { %v12757_v3 = vld [vmem:[#allocation1 + $0x1] ss:$9 sm:$0xff]  ;;  %v12761_v59 = vld [vmem:[#allocation1 + $0x3] ss:$9 sm:$0xff] }
 0xcec   : > { %15049 = vst [vmem:[#allocation97_spill] sm:$0xff] %v12757_v3  ;;  %v12759_v45 = vld [vmem:[#allocation1 + $0x2] ss:$9 sm:$0xff]  ;;  %v12763_v58 = vld [vmem:[#allocation1 + $0x4] ss:$9 sm:$0xff] }
 0xced   : > { %15050 = vst [vmem:[#allocation98_spill] sm:$0xff] %v12759_v45  ;;  %v12765_v53 = vld [vmem:[#allocation1 + $0x5] ss:$9 sm:$0xff]  ;;  %v12772_v18 = vld [vmem:[#allocation1 + $0x7] ss:$9 sm:$0xff] }
 0xcee   : > { %15051 = vst [vmem:[#allocation99_spill] sm:$0xff] %v12761_v59  ;;  %v12767_v14 = vld [vmem:[#allocation1 + $0x6] ss:$9 sm:$0xff] }
 0xcef   : > { %15052 = vst [vmem:[#allocation100_spill] sm:$0xff] %v12763_v58 }
 0xcf0   : > { %15053 = vst [vmem:[#allocation101_spill] sm:$0xff] %v12765_v53 }
 0xcf1   : > { %15054 = vst [vmem:[#allocation102_spill] sm:$0xff] %v12767_v14 }
 0xcf2   : > { %15056 = vst [vmem:[#allocation267_spill] sm:$0xff] %v12772_v18 }
 0xcf3   : > { %6029 = vst [vmem:[#allocation1] sm:$0xff] %v12770_v39 }
 0xcfa   : > { %v12775_v30 = vld [vmem:[#allocation1 + $0x1] ss:$9 sm:$0xff]  ;;  %v12779_v45 = vld [vmem:[#allocation1 + $0x3] ss:$9 sm:$0xff] }
 0xcfb   : > { %15057 = vst [vmem:[#allocation268_spill] sm:$0xff] %v12775_v30  ;;  %v12777_v3 = vld [vmem:[#allocation1 + $0x2] ss:$9 sm:$0xff]  ;;  %v12781_v59 = vld [vmem:[#allocation1 + $0x4] ss:$9 sm:$0xff] }
 0xcfc   : > { %15058 = vst [vmem:[#allocation104_spill] sm:$0xff] %v12777_v3  ;;  %v12783_v58 = vld [vmem:[#allocation1 + $0x5] ss:$9 sm:$0xff]  ;;  %v12787_v14 = vld [vmem:[#allocation1 + $0x7] ss:$9 sm:$0xff] }
 0xcfd   : > { %15059 = vst [vmem:[#allocation106_spill] sm:$0xff] %v12779_v45  ;;  %v12785_v53 = vld [vmem:[#allocation1 + $0x6] ss:$9 sm:$0xff] }
 0xcfe   : > { %15060 = vst [vmem:[#allocation107_spill] sm:$0xff] %v12781_v59 }
 0xcff   : > { %15061 = vst [vmem:[#allocation108_spill] sm:$0xff] %v12783_v58 }
 0xd00   : > { %15062 = vst [vmem:[#allocation109_spill] sm:$0xff] %v12785_v53 }
 0xd01   : > { %15063 = vst [vmem:[#allocation110_spill] sm:$0xff] %v12787_v14 }
 0xd02   : > { %6037 = vst [vmem:[#allocation1] sm:$0xff] %v12454_v21 }
 0xd09   : > { %v12790_v28 = vld [vmem:[#allocation1 + $0x2] ss:$9 sm:$0xff]  ;;  %v12794_v4 = vld [vmem:[#allocation1 + $0x4] ss:$9 sm:$0xff] }
 0xd0a   : > { %15064 = vst [vmem:[#allocation111_spill] sm:$0xff] %v12790_v28  ;;  %v12792_v18 = vld [vmem:[#allocation1 + $0x3] ss:$9 sm:$0xff]  ;;  %v12796_v30 = vld [vmem:[#allocation1 + $0x5] ss:$9 sm:$0xff] }
 0xd0b   : > { %15065 = vst [vmem:[#allocation112_spill] sm:$0xff] %v12792_v18  ;;  %v12798_v3 = vld [vmem:[#allocation1 + $0x6] ss:$9 sm:$0xff] }
 0xd0c   : > { %15066 = vst [vmem:[#allocation273_spill] sm:$0xff] %v12794_v4  ;;  %v12800_v45 = vld [vmem:[#allocation1 + $0x7] ss:$9 sm:$0xff] }
 0xd0d   : > { %15067 = vst [vmem:[#allocation281_spill] sm:$0xff] %v12796_v30 }
 0xd0e   : > { %15068 = vst [vmem:[#allocation113_spill] sm:$0xff] %v12798_v3 }
 0xd0f   : > { %15069 = vst [vmem:[#allocation114_spill] sm:$0xff] %v12800_v45 }
 0xd10   : > { %6050 = vst [vmem:[#allocation1] sm:$0xff] %v14970_v19 }
 0xd17   : > { %v12803_v58 = vld [vmem:[#allocation1] ss:$9 sm:$0xff] }
 0xd18   : > { %15070 = vst [vmem:[#allocation115_spill] sm:$0xff] %v12803_v58 }
 0xd19   : > { %6052 = vst [vmem:[#allocation1] sm:$0xff] %v12473_v61 }
 0xd20   : > { %v12806_v14 = vld [vmem:[#allocation1 + $0x2] ss:$9 sm:$0xff]  ;;  %v12810_v28 = vld [vmem:[#allocation1 + $0x4] ss:$9 sm:$0xff] }
 0xd21   : > { %15071 = vst [vmem:[#allocation116_spill] sm:$0xff] %v12806_v14  ;;  %v12808_v53 = vld [vmem:[#allocation1 + $0x3] ss:$9 sm:$0xff]  ;;  %v12812_v18 = vld [vmem:[#allocation1 + $0x5] ss:$9 sm:$0xff] }
 0xd22   : > { %15072 = vst [vmem:[#allocation289_spill] sm:$0xff] %v12808_v53  ;;  %v12814_v4 = vld [vmem:[#allocation1 + $0x6] ss:$9 sm:$0xff] }
 0xd23   : > { %15073 = vst [vmem:[#allocation291_spill] sm:$0xff] %v12810_v28  ;;  %v12816_v30 = vld [vmem:[#allocation1 + $0x7] ss:$9 sm:$0xff] }
 0xd24   : > { %15074 = vst [vmem:[#allocation117_spill] sm:$0xff] %v12812_v18 }
 0xd25   : > { %15075 = vst [vmem:[#allocation118_spill] sm:$0xff] %v12814_v4 }
 0xd26   : > { %15076 = vst [vmem:[#allocation119_spill] sm:$0xff] %v12816_v30 }
 0xd27   : > { %6059 = vst [vmem:[#allocation1] sm:$0xff] %v14970_v19 }
 0xd2e   : > { %v12819_v45 = vld [vmem:[#allocation1] ss:$9 sm:$0xff] }
 0xd2f   : > { %15077 = vst [vmem:[#allocation120_spill] sm:$0xff] %v12819_v45 }
 0xd30   : > { %6061 = vst [vmem:[#allocation1] sm:$0xff] %v12492_v23 }
 0xd37   : > { %v12822_v58 = vld [vmem:[#allocation1 + $0x2] ss:$9 sm:$0xff]  ;;  %v12826_v14 = vld [vmem:[#allocation1 + $0x4] ss:$9 sm:$0xff] }
 0xd38   : > { %15078 = vst [vmem:[#allocation121_spill] sm:$0xff] %v12822_v58  ;;  %v12824_v3 = vld [vmem:[#allocation1 + $0x3] ss:$9 sm:$0xff]  ;;  %v12828_v53 = vld [vmem:[#allocation1 + $0x5] ss:$9 sm:$0xff] }
 0xd39   : > { %15079 = vst [vmem:[#allocation122_spill] sm:$0xff] %v12824_v3  ;;  %v12830_v28 = vld [vmem:[#allocation1 + $0x6] ss:$9 sm:$0xff] }
 0xd3a   : > { %15080 = vst [vmem:[#allocation123_spill] sm:$0xff] %v12826_v14  ;;  %v12832_v18 = vld [vmem:[#allocation1 + $0x7] ss:$9 sm:$0xff] }
 0xd3b   : > { %15081 = vst [vmem:[#allocation124_spill] sm:$0xff] %v12828_v53 }
 0xd3c   : > { %15082 = vst [vmem:[#allocation125_spill] sm:$0xff] %v12830_v28 }
 0xd3d   : > { %15083 = vst [vmem:[#allocation126_spill] sm:$0xff] %v12832_v18 }
 0xd3e   : > { %6068 = vst [vmem:[#allocation1] sm:$0xff] %v14970_v19 }
 0xd45   : > { %v12835_v30 = vld [vmem:[#allocation1] ss:$9 sm:$0xff] }
 0xd46   : > { %15084 = vst [vmem:[#allocation127_spill] sm:$0xff] %v12835_v30 }
 0xd47   : > { %6070 = vst [vmem:[#allocation1] sm:$0xff] %v12511_v20 }
 0xd4e   : > { %v12838_v45 = vld [vmem:[#allocation1 + $0x2] ss:$9 sm:$0xff]  ;;  %v12842_v58 = vld [vmem:[#allocation1 + $0x4] ss:$9 sm:$0xff] }
 0xd4f   : > { %15085 = vst [vmem:[#allocation128_spill] sm:$0xff] %v12838_v45  ;;  %v12840_v4 = vld [vmem:[#allocation1 + $0x3] ss:$9 sm:$0xff]  ;;  %v12844_v3 = vld [vmem:[#allocation1 + $0x5] ss:$9 sm:$0xff] }
 0xd50   : > { %15086 = vst [vmem:[#allocation129_spill] sm:$0xff] %v12840_v4  ;;  %v12846_v14 = vld [vmem:[#allocation1 + $0x6] ss:$9 sm:$0xff] }
 0xd51   : > { %15087 = vst [vmem:[#allocation130_spill] sm:$0xff] %v12842_v58  ;;  %v12848_v53 = vld [vmem:[#allocation1 + $0x7] ss:$9 sm:$0xff] }
 0xd52   : > { %15088 = vst [vmem:[#allocation131_spill] sm:$0xff] %v12844_v3 }
 0xd53   : > { %15089 = vst [vmem:[#allocation132_spill] sm:$0xff] %v12846_v14 }
 0xd54   : > { %15090 = vst [vmem:[#allocation133_spill] sm:$0xff] %v12848_v53 }
 0xd55   : > { %6077 = vst [vmem:[#allocation1] sm:$0xff] %v14970_v19 }
 0xd5c   : > { %v12851_v18 = vld [vmem:[#allocation1] ss:$9 sm:$0xff] }
 0xd5d   : > { %15091 = vst [vmem:[#allocation134_spill] sm:$0xff] %v12851_v18 }
 0xd5e   : > { %6079 = vst [vmem:[#allocation1] sm:$0xff] %v12530_v17 }
 0xd65   : > { %v12854_v30 = vld [vmem:[#allocation1 + $0x2] ss:$9 sm:$0xff]  ;;  %v12858_v45 = vld [vmem:[#allocation1 + $0x4] ss:$9 sm:$0xff] }
 0xd66   : > { %15092 = vst [vmem:[#allocation135_spill] sm:$0xff] %v12854_v30  ;;  %v12856_v28 = vld [vmem:[#allocation1 + $0x3] ss:$9 sm:$0xff]  ;;  %v12860_v4 = vld [vmem:[#allocation1 + $0x5] ss:$9 sm:$0xff] }
 0xd67   : > { %15093 = vst [vmem:[#allocation136_spill] sm:$0xff] %v12856_v28  ;;  %v12862_v58 = vld [vmem:[#allocation1 + $0x6] ss:$9 sm:$0xff] }
 0xd68   : > { %15094 = vst [vmem:[#allocation137_spill] sm:$0xff] %v12858_v45  ;;  %v12864_v3 = vld [vmem:[#allocation1 + $0x7] ss:$9 sm:$0xff] }
 0xd69   : > { %15095 = vst [vmem:[#allocation138_spill] sm:$0xff] %v12860_v4 }
 0xd6a   : > { %15096 = vst [vmem:[#allocation139_spill] sm:$0xff] %v12862_v58 }
 0xd6b   : > { %15097 = vst [vmem:[#allocation140_spill] sm:$0xff] %v12864_v3 }
 0xd6c   : > { %6086 = vst [vmem:[#allocation1] sm:$0xff] %v14970_v19 }
 0xd73   : > { %v12867_v53 = vld [vmem:[#allocation1] ss:$9 sm:$0xff] }
 0xd74   : > { %15098 = vst [vmem:[#allocation141_spill] sm:$0xff] %v12867_v53 }
 0xd75   : > { %6088 = vst [vmem:[#allocation1] sm:$0xff] %v12549_v5 }
 0xd7c   : > { %v12870_v18 = vld [vmem:[#allocation1 + $0x2] ss:$9 sm:$0xff]  ;;  %v12874_v30 = vld [vmem:[#allocation1 + $0x4] ss:$9 sm:$0xff] }
 0xd7d   : > { %15099 = vst [vmem:[#allocation142_spill] sm:$0xff] %v12870_v18  ;;  %v12872_v14 = vld [vmem:[#allocation1 + $0x3] ss:$9 sm:$0xff]  ;;  %v12876_v28 = vld [vmem:[#allocation1 + $0x5] ss:$9 sm:$0xff] }
 0xd7e   : > { %15100 = vst [vmem:[#allocation143_spill] sm:$0xff] %v12872_v14  ;;  %v12878_v45 = vld [vmem:[#allocation1 + $0x6] ss:$9 sm:$0xff] }
 0xd7f   : > { %15101 = vst [vmem:[#allocation144_spill] sm:$0xff] %v12874_v30  ;;  %v12880_v4 = vld [vmem:[#allocation1 + $0x7] ss:$9 sm:$0xff] }
 0xd80   : > { %15102 = vst [vmem:[#allocation145_spill] sm:$0xff] %v12876_v28 }
 0xd81   : > { %15103 = vst [vmem:[#allocation146_spill] sm:$0xff] %v12878_v45 }
 0xd82   : > { %15104 = vst [vmem:[#allocation147_spill] sm:$0xff] %v12880_v4 }
 0xd83   : > { %6095 = vst [vmem:[#allocation1] sm:$0xff] %v14970_v19 }
 0xd8a   : > { %v12883_v3 = vld [vmem:[#allocation1] ss:$9 sm:$0xff] }
 0xd8b   : > { %15105 = vst [vmem:[#allocation148_spill] sm:$0xff] %v12883_v3 }
 0xd8c   : > { %6097 = vst [vmem:[#allocation1] sm:$0xff] %v12770_v39 }
 0xd93   : > { %v12886_v53 = vld [vmem:[#allocation1 + $0x2] ss:$9 sm:$0xff]  ;;  %v12890_v18 = vld [vmem:[#allocation1 + $0x4] ss:$9 sm:$0xff] }
 0xd94   : > { %15106 = vst [vmem:[#allocation149_spill] sm:$0xff] %v12886_v53  ;;  %v12888_v58 = vld [vmem:[#allocation1 + $0x3] ss:$9 sm:$0xff]  ;;  %v12892_v14 = vld [vmem:[#allocation1 + $0x5] ss:$9 sm:$0xff] }
 0xd95   : > { %15107 = vst [vmem:[#allocation150_spill] sm:$0xff] %v12888_v58  ;;  %v12894_v30 = vld [vmem:[#allocation1 + $0x6] ss:$9 sm:$0xff] }
 0xd96   : > { %15108 = vst [vmem:[#allocation151_spill] sm:$0xff] %v12890_v18  ;;  %v12896_v28 = vld [vmem:[#allocation1 + $0x7] ss:$9 sm:$0xff] }
 0xd97   : > { %15109 = vst [vmem:[#allocation152_spill] sm:$0xff] %v12892_v14 }
 0xd98   : > { %15110 = vst [vmem:[#allocation153_spill] sm:$0xff] %v12894_v30 }
 0xd99   : > { %15111 = vst [vmem:[#allocation154_spill] sm:$0xff] %v12896_v28 }
 0xd9a   : > { %6104 = vst [vmem:[#allocation1] sm:$0xff] %v14970_v19 }
 0xda1   : > { %v12899_v4 = vld [vmem:[#allocation1] ss:$9 sm:$0xff] }
 0xda2   : > { %15112 = vst [vmem:[#allocation155_spill] sm:$0xff] %v12899_v4 }
 0xda3   : > { %6106 = vst [vmem:[#allocation1] sm:$0xff] %v12473_v61 }
 0xdaa   : > { %v12902_v3 = vld [vmem:[#allocation1 + $0x1] ss:$9 sm:$0xff]  ;;  %v12906_v53 = vld [vmem:[#allocation1 + $0x3] ss:$9 sm:$0xff] }
 0xdab   : > { %15113 = vst [vmem:[#allocation156_spill] sm:$0xff] %v12902_v3  ;;  %v12904_v45 = vld [vmem:[#allocation1 + $0x2] ss:$9 sm:$0xff]  ;;  %v12908_v58 = vld [vmem:[#allocation1 + $0x4] ss:$9 sm:$0xff] }
 0xdac   : > { %15114 = vst [vmem:[#allocation157_spill] sm:$0xff] %v12904_v45  ;;  %v12910_v18 = vld [vmem:[#allocation1 + $0x5] ss:$9 sm:$0xff]  ;;  %v12914_v30 = vld [vmem:[#allocation1 + $0x7] ss:$9 sm:$0xff] }
 0xdad   : > { %15115 = vst [vmem:[#allocation158_spill] sm:$0xff] %v12906_v53  ;;  %v12912_v14 = vld [vmem:[#allocation1 + $0x6] ss:$9 sm:$0xff] }
 0xdae   : > { %15116 = vst [vmem:[#allocation159_spill] sm:$0xff] %v12908_v58 }
 0xdaf   : > { %15117 = vst [vmem:[#allocation160_spill] sm:$0xff] %v12910_v18 }
 0xdb0   : > { %15118 = vst [vmem:[#allocation161_spill] sm:$0xff] %v12912_v14 }
 0xdb1   : > { %15119 = vst [vmem:[#allocation162_spill] sm:$0xff] %v12914_v30 }
 0xdb2   : > { %6121 = vst [vmem:[#allocation1] sm:$0xff] %v12492_v23 }
 0xdb9   : > { %v12917_v28 = vld [vmem:[#allocation1 + $0x1] ss:$9 sm:$0xff]  ;;  %v12921_v59 = vld [vmem:[#allocation1 + $0x3] ss:$9 sm:$0xff] }
 0xdba   : > { %15120 = vst [vmem:[#allocation163_spill] sm:$0xff] %v12917_v28  ;;  %v12919_v4 = vld [vmem:[#allocation1 + $0x2] ss:$9 sm:$0xff]  ;;  %v12923_v3 = vld [vmem:[#allocation1 + $0x4] ss:$9 sm:$0xff] }
 0xdbb   : > { %15121 = vst [vmem:[#allocation164_spill] sm:$0xff] %v12919_v4  ;;  %v12925_v45 = vld [vmem:[#allocation1 + $0x5] ss:$9 sm:$0xff]  ;;  %v12929_v58 = vld [vmem:[#allocation1 + $0x7] ss:$9 sm:$0xff] }
 0xdbc   : > { %15122 = vst [vmem:[#allocation165_spill] sm:$0xff] %v12921_v59  ;;  %v12927_v53 = vld [vmem:[#allocation1 + $0x6] ss:$9 sm:$0xff] }
 0xdbd   : > { %15123 = vst [vmem:[#allocation166_spill] sm:$0xff] %v12923_v3 }
 0xdbe   : > { %15124 = vst [vmem:[#allocation167_spill] sm:$0xff] %v12925_v45 }
 0xdbf   : > { %15125 = vst [vmem:[#allocation168_spill] sm:$0xff] %v12927_v53 }
 0xdc0   : > { %15126 = vst [vmem:[#allocation169_spill] sm:$0xff] %v12929_v58 }
 0xdc1   : > { %6129 = vst [vmem:[#allocation1] sm:$0xff] %v12511_v20 }
 0xdc8   : > { %v12932_v14 = vld [vmem:[#allocation1 + $0x1] ss:$9 sm:$0xff]  ;;  %v12936_v18 = vld [vmem:[#allocation1 + $0x3] ss:$9 sm:$0xff] }
 0xdc9   : > { %15127 = vst [vmem:[#allocation170_spill] sm:$0xff] %v12932_v14  ;;  %v12934_v30 = vld [vmem:[#allocation1 + $0x2] ss:$9 sm:$0xff]  ;;  %v12938_v28 = vld [vmem:[#allocation1 + $0x4] ss:$9 sm:$0xff] }
 0xdca   : > { %15128 = vst [vmem:[#allocation171_spill] sm:$0xff] %v12934_v30  ;;  %v12940_v4 = vld [vmem:[#allocation1 + $0x5] ss:$9 sm:$0xff]  ;;  %v12944_v3 = vld [vmem:[#allocation1 + $0x7] ss:$9 sm:$0xff] }
 0xdcb   : > { %15129 = vst [vmem:[#allocation172_spill] sm:$0xff] %v12936_v18  ;;  %v12942_v59 = vld [vmem:[#allocation1 + $0x6] ss:$9 sm:$0xff] }
 0xdcc   : > { %15130 = vst [vmem:[#allocation173_spill] sm:$0xff] %v12938_v28 }
 0xdcd   : > { %15131 = vst [vmem:[#allocation174_spill] sm:$0xff] %v12940_v4 }
 0xdce   : > { %15132 = vst [vmem:[#allocation175_spill] sm:$0xff] %v12942_v59 }
 0xdcf   : > { %15133 = vst [vmem:[#allocation176_spill] sm:$0xff] %v12944_v3 }
 0xdd0   : > { %6137 = vst [vmem:[#allocation1] sm:$0xff] %v12530_v17 }
 0xdd7   : > { %v12947_v53 = vld [vmem:[#allocation1 + $0x1] ss:$9 sm:$0xff]  ;;  %v12951_v45 = vld [vmem:[#allocation1 + $0x3] ss:$9 sm:$0xff] }
 0xdd8   : > { %15134 = vst [vmem:[#allocation177_spill] sm:$0xff] %v12947_v53  ;;  %v12949_v58 = vld [vmem:[#allocation1 + $0x2] ss:$9 sm:$0xff]  ;;  %v12953_v14 = vld [vmem:[#allocation1 + $0x4] ss:$9 sm:$0xff] }
 0xdd9   : > { %15135 = vst [vmem:[#allocation178_spill] sm:$0xff] %v12949_v58  ;;  %v12955_v30 = vld [vmem:[#allocation1 + $0x5] ss:$9 sm:$0xff]  ;;  %v12959_v28 = vld [vmem:[#allocation1 + $0x7] ss:$9 sm:$0xff] }
 0xdda   : > { %15136 = vst [vmem:[#allocation179_spill] sm:$0xff] %v12951_v45  ;;  %v12957_v18 = vld [vmem:[#allocation1 + $0x6] ss:$9 sm:$0xff] }
 0xddb   : > { %15137 = vst [vmem:[#allocation180_spill] sm:$0xff] %v12953_v14 }
 0xddc   : > { %15138 = vst [vmem:[#allocation181_spill] sm:$0xff] %v12955_v30 }
 0xddd   : > { %15139 = vst [vmem:[#allocation182_spill] sm:$0xff] %v12957_v18 }
 0xdde   : > { %15140 = vst [vmem:[#allocation183_spill] sm:$0xff] %v12959_v28 }
 0xddf   : > { %6145 = vst [vmem:[#allocation1] sm:$0xff] %v12549_v5 }
 0xde6   : > { %v12962_v59 = vld [vmem:[#allocation1 + $0x1] ss:$9 sm:$0xff]  ;;  %v12966_v4 = vld [vmem:[#allocation1 + $0x3] ss:$9 sm:$0xff] }
 0xde7   : > { %15141 = vst [vmem:[#allocation184_spill] sm:$0xff] %v12962_v59  ;;  %v12964_v3 = vld [vmem:[#allocation1 + $0x2] ss:$9 sm:$0xff]  ;;  %v12968_v53 = vld [vmem:[#allocation1 + $0x4] ss:$9 sm:$0xff] }
 0xde8   : > { %15142 = vst [vmem:[#allocation185_spill] sm:$0xff] %v12964_v3  ;;  %v12970_v58 = vld [vmem:[#allocation1 + $0x5] ss:$9 sm:$0xff]  ;;  %v12974_v14 = vld [vmem:[#allocation1 + $0x7] ss:$9 sm:$0xff] }
 0xde9   : > { %15143 = vst [vmem:[#allocation186_spill] sm:$0xff] %v12966_v4  ;;  %v12972_v45 = vld [vmem:[#allocation1 + $0x6] ss:$9 sm:$0xff] }
 0xdea   : > { %15144 = vst [vmem:[#allocation15_spill] sm:$0xff] %v12968_v53 }
 0xdeb   : > { %15145 = vst [vmem:[#allocation7_spill] sm:$0xff] %v12970_v58 }
 0xdec   : > { %15146 = vst [vmem:[#allocation187_spill] sm:$0xff] %v12972_v45 }
 0xded   : > { %15147 = vst [vmem:[#allocation188_spill] sm:$0xff] %v12974_v14 }
 0xdee   : > { %6153 = vst [vmem:[#allocation1] sm:$0xff] %v12770_v39 }
 0xdf5   : > { %v12977_v18 = vld [vmem:[#allocation1 + $0x1] ss:$9 sm:$0xff]  ;;  %v12981_v30 = vld [vmem:[#allocation1 + $0x3] ss:$9 sm:$0xff] }
 0xdf6   : > { %15148 = vst [vmem:[#allocation189_spill] sm:$0xff] %v12977_v18  ;;  %v12979_v28 = vld [vmem:[#allocation1 + $0x2] ss:$9 sm:$0xff]  ;;  %v12983_v59 = vld [vmem:[#allocation1 + $0x4] ss:$9 sm:$0xff] }
 0xdf7   : > { %15149 = vst [vmem:[#allocation190_spill] sm:$0xff] %v12979_v28  ;;  %v12985_v3 = vld [vmem:[#allocation1 + $0x5] ss:$9 sm:$0xff]  ;;  %v12989_v53 = vld [vmem:[#allocation1 + $0x7] ss:$9 sm:$0xff] }
 0xdf8   : > { %15150 = vst [vmem:[#allocation191_spill] sm:$0xff] %v12981_v30  ;;  %v12987_v4 = vld [vmem:[#allocation1 + $0x6] ss:$9 sm:$0xff] }
 0xdf9   : > { %15151 = vst [vmem:[#allocation192_spill] sm:$0xff] %v12983_v59 }
 0xdfa   : > { %15152 = vst [vmem:[#allocation193_spill] sm:$0xff] %v12985_v3 }
 0xdfb   : > { %15153 = vst [vmem:[#allocation194_spill] sm:$0xff] %v12987_v4 }
 0xdfc   : > { %15154 = vst [vmem:[#allocation195_spill] sm:$0xff] %v12989_v53 }
 0xdfd   : > { %6161 = vst [vmem:[#allocation1] sm:$0xff] %v14788_v47 }
 0xe04   : > { %v12992_v45 = vld [vmem:[#allocation1 + $0x1] ss:$9 sm:$0xff]  ;;  %v12996_v58 = vld [vmem:[#allocation1 + $0x3] ss:$9 sm:$0xff] }
 0xe05   : > { %15155 = vst [vmem:[#allocation196_spill] sm:$0xff] %v12992_v45  ;;  %v12994_v14 = vld [vmem:[#allocation1 + $0x2] ss:$9 sm:$0xff]  ;;  %v12998_v18 = vld [vmem:[#allocation1 + $0x4] ss:$9 sm:$0xff] }
 0xe06   : > { %15156 = vst [vmem:[#allocation197_spill] sm:$0xff] %v12994_v14  ;;  %v13000_v28 = vld [vmem:[#allocation1 + $0x5] ss:$9 sm:$0xff]  ;;  %v13004_v59 = vld [vmem:[#allocation1 + $0x7] ss:$9 sm:$0xff] }
 0xe07   : > { %15157 = vst [vmem:[#allocation198_spill] sm:$0xff] %v12996_v58  ;;  %v13002_v30 = vld [vmem:[#allocation1 + $0x6] ss:$9 sm:$0xff] }
 0xe08   : > { %15158 = vst [vmem:[#allocation199_spill] sm:$0xff] %v12998_v18  ;;  %v13183_v18 = vrot.slane %v12492_v23, 3 }
 0xe09   : > { %15159 = vst [vmem:[#allocation200_spill] sm:$0xff] %v13000_v28 }
 0xe0a   : > { %15160 = vst [vmem:[#allocation201_spill] sm:$0xff] %v13002_v30 }
 0xe0b   : > { %15161 = vst [vmem:[#allocation202_spill] sm:$0xff] %v13004_v59 }
 0xe0c   : > { %6169 = vst [vmem:[#allocation1] sm:$0xff] %v12473_v61 }
 0xe13   : > { %v13007_v4 = vld [vmem:[#allocation1 + $0x2] ss:$9 sm:$0xff]  ;;  %v13011_v3 = vld [vmem:[#allocation1 + $0x4] ss:$9 sm:$0xff] }
 0xe14   : > { %15162 = vst [vmem:[#allocation5_spill] sm:$0xff] %v13007_v4  ;;  %v13009_v53 = vld [vmem:[#allocation1 + $0x3] ss:$9 sm:$0xff]  ;;  %v13013_v45 = vld [vmem:[#allocation1 + $0x5] ss:$9 sm:$0xff] }
 0xe15   : > { %15163 = vst [vmem:[#allocation203_spill] sm:$0xff] %v13009_v53  ;;  %v13015_v14 = vld [vmem:[#allocation1 + $0x6] ss:$9 sm:$0xff] }
 0xe16   : > { %15164 = vst [vmem:[#allocation204_spill] sm:$0xff] %v13011_v3  ;;  %v13017_v58 = vld [vmem:[#allocation1 + $0x7] ss:$9 sm:$0xff] }
 0xe17   : > { %15165 = vst [vmem:[#allocation8_spill] sm:$0xff] %v13013_v45 }
 0xe18   : > { %15166 = vst [vmem:[#allocation205_spill] sm:$0xff] %v13015_v14 }
 0xe19   : > { %15167 = vst [vmem:[#allocation206_spill] sm:$0xff] %v13017_v58 }
 0xe1a   : > { %6182 = vst [vmem:[#allocation1] sm:$0xff] %v14970_v19 }
 0xe21   : > { %v13020_v28 = vld [vmem:[#allocation1] ss:$9 sm:$0xff] }
 0xe22   : > { %15168 = vst [vmem:[#allocation207_spill] sm:$0xff] %v13020_v28 }
 0xe23   : > { %6184 = vst [vmem:[#allocation1] sm:$0xff] %v12492_v23 }
 0xe2a   : > { %v13023_v59 = vld [vmem:[#allocation1 + $0x2] ss:$9 sm:$0xff]  ;;  %v13027_v4 = vld [vmem:[#allocation1 + $0x4] ss:$9 sm:$0xff] }
 0xe2b   : > { %15169 = vst [vmem:[#allocation208_spill] sm:$0xff] %v13023_v59  ;;  %v13025_v30 = vld [vmem:[#allocation1 + $0x3] ss:$9 sm:$0xff]  ;;  %v13029_v53 = vld [vmem:[#allocation1 + $0x5] ss:$9 sm:$0xff] }
 0xe2c   : > { %15170 = vst [vmem:[#allocation209_spill] sm:$0xff] %v13025_v30  ;;  %v13031_v3 = vld [vmem:[#allocation1 + $0x6] ss:$9 sm:$0xff] }
 0xe2d   : > { %15171 = vst [vmem:[#allocation210_spill] sm:$0xff] %v13027_v4  ;;  %v13033_v45 = vld [vmem:[#allocation1 + $0x7] ss:$9 sm:$0xff] }
 0xe2e   : > { %15172 = vst [vmem:[#allocation9_spill] sm:$0xff] %v13029_v53 }
 0xe2f   : > { %15173 = vst [vmem:[#allocation211_spill] sm:$0xff] %v13031_v3 }
 0xe30   : > { %15174 = vst [vmem:[#allocation212_spill] sm:$0xff] %v13033_v45 }
 0xe31   : > { %6191 = vst [vmem:[#allocation1] sm:$0xff] %v14970_v19 }
 0xe38   : > { %v13036_v58 = vld [vmem:[#allocation1] ss:$9 sm:$0xff] }
 0xe39   : > { %15175 = vst [vmem:[#allocation213_spill] sm:$0xff] %v13036_v58 }
 0xe3a   : > { %6193 = vst [vmem:[#allocation1] sm:$0xff] %v12511_v20 }
 0xe41   : > { %v13039_v28 = vld [vmem:[#allocation1 + $0x2] ss:$9 sm:$0xff]  ;;  %v13043_v59 = vld [vmem:[#allocation1 + $0x4] ss:$9 sm:$0xff] }
 0xe42   : > { %15176 = vst [vmem:[#allocation214_spill] sm:$0xff] %v13039_v28  ;;  %v13041_v14 = vld [vmem:[#allocation1 + $0x3] ss:$9 sm:$0xff]  ;;  %v13045_v30 = vld [vmem:[#allocation1 + $0x5] ss:$9 sm:$0xff] }
 0xe43   : > { %15177 = vst [vmem:[#allocation215_spill] sm:$0xff] %v13041_v14  ;;  %v13047_v4 = vld [vmem:[#allocation1 + $0x6] ss:$9 sm:$0xff] }
 0xe44   : > { %15178 = vst [vmem:[#allocation216_spill] sm:$0xff] %v13043_v59  ;;  %v13049_v53 = vld [vmem:[#allocation1 + $0x7] ss:$9 sm:$0xff] }
 0xe45   : > { %15179 = vst [vmem:[#allocation217_spill] sm:$0xff] %v13045_v30 }
 0xe46   : > { %15180 = vst [vmem:[#allocation218_spill] sm:$0xff] %v13047_v4 }
 0xe47   : > { %15181 = vst [vmem:[#allocation219_spill] sm:$0xff] %v13049_v53 }
 0xe48   : > { %6200 = vst [vmem:[#allocation1] sm:$0xff] %v14970_v19 }
 0xe4f   : > { %v13052_v45 = vld [vmem:[#allocation1] ss:$9 sm:$0xff] }
 0xe50   : > { %15182 = vst [vmem:[#allocation220_spill] sm:$0xff] %v13052_v45 }
 0xe51   : > { %6202 = vst [vmem:[#allocation1] sm:$0xff] %v12530_v17 }
 0xe58   : > { %v13055_v58 = vld [vmem:[#allocation1 + $0x2] ss:$9 sm:$0xff]  ;;  %v13059_v28 = vld [vmem:[#allocation1 + $0x4] ss:$9 sm:$0xff] }
 0xe59   : > { %15183 = vst [vmem:[#allocation221_spill] sm:$0xff] %v13055_v58  ;;  %v13057_v3 = vld [vmem:[#allocation1 + $0x3] ss:$9 sm:$0xff]  ;;  %v13061_v14 = vld [vmem:[#allocation1 + $0x5] ss:$9 sm:$0xff] }
 0xe5a   : > { %15184 = vst [vmem:[#allocation222_spill] sm:$0xff] %v13057_v3  ;;  %v13063_v59 = vld [vmem:[#allocation1 + $0x6] ss:$9 sm:$0xff] }
 0xe5b   : > { %15185 = vst [vmem:[#allocation223_spill] sm:$0xff] %v13059_v28  ;;  %v13065_v30 = vld [vmem:[#allocation1 + $0x7] ss:$9 sm:$0xff] }
 0xe5c   : > { %15186 = vst [vmem:[#allocation224_spill] sm:$0xff] %v13061_v14 }
 0xe5d   : > { %15187 = vst [vmem:[#allocation225_spill] sm:$0xff] %v13063_v59 }
 0xe5e   : > { %15188 = vst [vmem:[#allocation226_spill] sm:$0xff] %v13065_v30 }
 0xe5f   : > { %6209 = vst [vmem:[#allocation1] sm:$0xff] %v14970_v19 }
 0xe66   : > { %v13068_v53 = vld [vmem:[#allocation1] ss:$9 sm:$0xff] }
 0xe67   : > { %15189 = vst [vmem:[#allocation227_spill] sm:$0xff] %v13068_v53 }
 0xe68   : > { %6211 = vst [vmem:[#allocation1] sm:$0xff] %v12549_v5 }
 0xe6f   : > { %v13071_v45 = vld [vmem:[#allocation1 + $0x2] ss:$9 sm:$0xff]  ;;  %v13075_v58 = vld [vmem:[#allocation1 + $0x4] ss:$9 sm:$0xff] }
 0xe70   : > { %15190 = vst [vmem:[#allocation228_spill] sm:$0xff] %v13071_v45  ;;  %v13073_v4 = vld [vmem:[#allocation1 + $0x3] ss:$9 sm:$0xff]  ;;  %v13077_v3 = vld [vmem:[#allocation1 + $0x5] ss:$9 sm:$0xff] }
 0xe71   : > { %15191 = vst [vmem:[#allocation229_spill] sm:$0xff] %v13073_v4  ;;  %v13079_v28 = vld [vmem:[#allocation1 + $0x6] ss:$9 sm:$0xff] }
 0xe72   : > { %15192 = vst [vmem:[#allocation230_spill] sm:$0xff] %v13075_v58  ;;  %v13081_v14 = vld [vmem:[#allocation1 + $0x7] ss:$9 sm:$0xff] }
 0xe73   : > { %15193 = vst [vmem:[#allocation231_spill] sm:$0xff] %v13077_v3 }
 0xe74   : > { %15194 = vst [vmem:[#allocation232_spill] sm:$0xff] %v13079_v28 }
 0xe75   : > { %15195 = vst [vmem:[#allocation233_spill] sm:$0xff] %v13081_v14 }
 0xe76   : > { %6218 = vst [vmem:[#allocation1] sm:$0xff] %v14970_v19 }
 0xe7d   : > { %v13084_v30 = vld [vmem:[#allocation1] ss:$9 sm:$0xff] }
 0xe7e   : > { %15196 = vst [vmem:[#allocation234_spill] sm:$0xff] %v13084_v30 }
 0xe7f   : > { %6220 = vst [vmem:[#allocation1] sm:$0xff] %v12770_v39  ;;  %v13214_v39 = vrot.slane %v12511_v20, 4 }
 0xe81   : > { %15217 = vst [vmem:[#allocation258_spill] sm:$0xff] %v13214_v39 }
 0xe86   : > { %v13087_v53 = vld [vmem:[#allocation1 + $0x2] ss:$9 sm:$0xff]  ;;  %v13091_v45 = vld [vmem:[#allocation1 + $0x4] ss:$9 sm:$0xff] }
 0xe87   : > { %15197 = vst [vmem:[#allocation235_spill] sm:$0xff] %v13087_v53  ;;  %v13089_v59 = vld [vmem:[#allocation1 + $0x3] ss:$9 sm:$0xff]  ;;  %v13093_v4 = vld [vmem:[#allocation1 + $0x5] ss:$9 sm:$0xff] }
 0xe88   : > { %15198 = vst [vmem:[#allocation236_spill] sm:$0xff] %v13089_v59  ;;  %v13095_v58 = vld [vmem:[#allocation1 + $0x6] ss:$9 sm:$0xff] }
 0xe89   : > { %15199 = vst [vmem:[#allocation237_spill] sm:$0xff] %v13091_v45  ;;  %v13097_v3 = vld [vmem:[#allocation1 + $0x7] ss:$9 sm:$0xff] }
 0xe8a   : > { %15200 = vst [vmem:[#allocation238_spill] sm:$0xff] %v13093_v4 }
 0xe8b   : > { %15201 = vst [vmem:[#allocation239_spill] sm:$0xff] %v13095_v58  ;;  %v13177_v58 = vrot.slane %v12492_v23, 2 }
 0xe8c   : > { %15202 = vst [vmem:[#allocation240_spill] sm:$0xff] %v13097_v3  ;;  %v13173_v3 = vrot.slane %v12492_v23, 1 }
 0xe8d   : > { %6227 = vst [vmem:[#allocation1] sm:$0xff] %v14970_v19 }
 0xe94   : > { %v13100_v14 = vld [vmem:[#allocation1] ss:$9 sm:$0xff] }
 0xe95   : > { %15203 = vst [vmem:[#allocation241_spill] sm:$0xff] %v13100_v14  ;;  %v13164_v14 = vrot.slane %v12473_v61, 5 }
 0xe96   : > { %6229 = vst [vmem:[#allocation1] sm:$0xff] %v14788_v47 }
 0xe9d   : > { %v13103_v30 = vld [vmem:[#allocation1 + $0x2] ss:$9 sm:$0xff]  ;;  %v13107_v53 = vld [vmem:[#allocation1 + $0x4] ss:$9 sm:$0xff] }
 0xe9e   : > { %15204 = vst [vmem:[#allocation242_spill] sm:$0xff] %v13103_v30  ;;  %v13105_v28 = vld [vmem:[#allocation1 + $0x3] ss:$9 sm:$0xff]  ;;  %v13109_v59 = vld [vmem:[#allocation1 + $0x5] ss:$9 sm:$0xff]  ;;  %v14172_v30 = vrot.slane %v12454_v21, 6 }
 0xe9f   : > { %15205 = vst [vmem:[#allocation243_spill] sm:$0xff] %v13105_v28  ;;  %v13111_v45 = vld [vmem:[#allocation1 + $0x6] ss:$9 sm:$0xff]  ;;  %v14170_v28 = vrot.slane %v12454_v21, 4 }
 0xea0   : > { %15206 = vst [vmem:[#allocation244_spill] sm:$0xff] %v13107_v53  ;;  %v13113_v4 = vld [vmem:[#allocation1 + $0x7] ss:$9 sm:$0xff] }
 0xea1   : > { %15207 = vst [vmem:[#allocation245_spill] sm:$0xff] %v13109_v59  ;;  %v14168_v59 = vrot.slane %v12454_v21, 3 }
 0xea2   : > { %15208 = vst [vmem:[#allocation246_spill] sm:$0xff] %v13111_v45 }
 0xea3   : > { %15209 = vst [vmem:[#allocation247_spill] sm:$0xff] %v13113_v4  ;;  %v14169_v4 = vrot.slane %v12454_v21, 2 }
 0xea4   : > { %6236 = vst [vmem:[#allocation1] sm:$0xff] %v14970_v19  ;;  %v14167_v19 = vrot.slane %v12454_v21, 1 }
 0xea5   : > { %6240 = vst [vmem:[#allocation1 + $0x1] ss:$9 sm:$0xff] %v14789_v10  ;;  %v13204_v10 = vrot.slane %v12511_v20, 2 }
 0xea6   : > { %6242 = vst [vmem:[#allocation1 + $0x2] ss:$9 sm:$0xff] %v14790_v50  ;;  %v13200_v50 = vrot.slane %v12511_v20, 1 }
 0xea7   : > { %6244 = vst [vmem:[#allocation1 + $0x3] ss:$9 sm:$0xff] %v14791_v46  ;;  %v13195_v46 = vrot.slane %v12492_v23, 6 }
 0xea8   : > { %6246 = vst [vmem:[#allocation1 + $0x4] ss:$9 sm:$0xff] %v14792_v54  ;;  %v13191_v54 = vrot.slane %v12492_v23, 5 }
 0xea9   : > { %6248 = vst [vmem:[#allocation1 + $0x5] ss:$9 sm:$0xff] %v14793_v12 }
 0xeaa   : > { %6250 = vst [vmem:[#allocation1 + $0x6] ss:$9 sm:$0xff] %v14794_v0  ;;  %v13186_v0 = vrot.slane %v12492_v23, 4 }
 0xeab   : > { %v13122_v53 = vld [vmem:[#allocation1] ss:$9 sm:$0xff]  ;;  %6252 = vst [vmem:[#allocation1 + $0x7] ss:$9 sm:$0xff] %v12454_v21 }
 0xeac   : > { %15210 = vst [vmem:[#allocation248_spill] sm:$0xff] %v13122_v53  ;;  %v14171_v53 = vrot.slane %v12454_v21, 5 }
 0xead   : > { %6238 = vst [vmem:[#allocation1] ss:$9 sm:$0xff] %v14788_v47  ;;  %v13208_v47 = vrot.slane %v12511_v20, 3 }
 0xeae   : > { %15212 = vst [vmem:[#allocation250_spill] sm:$0xff] %v13191_v54 }
 0xeaf   : > { %15213 = vst [vmem:[#allocation251_spill] sm:$0xff] %v13195_v46 }
 0xeb0   : > { %15214 = vst [vmem:[#allocation252_spill] sm:$0xff] %v13200_v50 }
 0xeb1   : > { %15215 = vst [vmem:[#allocation253_spill] sm:$0xff] %v13204_v10 }
 0xeb2   : > { %15216 = vst [vmem:[#allocation257_spill] sm:$0xff] %v13208_v47 }
 0xeb4   : > { %v13128_v45 = vld [vmem:[#allocation1] sm:$0xff] }
 0xeb5   : > { %6254 = vst [vmem:[#allocation1] ss:$9 sm:$0xff] %v14167_v19  ;;  %v13145_v19 = vrot.slane %v12473_v61, 1 }
 0xeb6   : > { %6255 = vst [vmem:[#allocation1 + $0x1] ss:$9 sm:$0xff] %v14169_v4  ;;  %v13155_v4 = vrot.slane %v12473_v61, 3 }
 0xeb7   : > { %6256 = vst [vmem:[#allocation1 + $0x2] ss:$9 sm:$0xff] %v14168_v59  ;;  %v13152_v59 = vrot.slane %v12473_v61, 2 }
 0xeb8   : > { %6257 = vst [vmem:[#allocation1 + $0x3] ss:$9 sm:$0xff] %v14170_v28 }
 0xeb9   : > { %6258 = vst [vmem:[#allocation1 + $0x4] ss:$9 sm:$0xff] %v14171_v53  ;;  %v13160_v53 = vrot.slane %v12473_v61, 4 }
 0xeba   : > { %6259 = vst [vmem:[#allocation1 + $0x5] ss:$9 sm:$0xff] %v14172_v30  ;;  %v13168_v30 = vrot.slane %v12473_v61, 6 }
 0xebb   : > { %6260 = vst [vmem:[#allocation1 + $0x6] ss:$9 sm:$0xff] %v12473_v61 }
 0xebc   : > { %6261 = vst [vmem:[#allocation1 + $0x7] ss:$9 sm:$0xff] %v13145_v19 }
 0xec3   : > { %v13157_v28 = vld [vmem:[#allocation1] sm:$0xff] }
 0xec4   : > { %6263 = vst [vmem:[#allocation1] ss:$9 sm:$0xff] %v13152_v59 }
 0xec5   : > { %6264 = vst [vmem:[#allocation1 + $0x1] ss:$9 sm:$0xff] %v13155_v4 }
 0xec6   : > { %6265 = vst [vmem:[#allocation1 + $0x2] ss:$9 sm:$0xff] %v13160_v53 }
 0xec7   : > { %6266 = vst [vmem:[#allocation1 + $0x3] ss:$9 sm:$0xff] %v13164_v14 }
 0xec8   : > { %6267 = vst [vmem:[#allocation1 + $0x4] ss:$9 sm:$0xff] %v13168_v30 }
 0xec9   : > { %6268 = vst [vmem:[#allocation1 + $0x5] ss:$9 sm:$0xff] %v12492_v23 }
 0xeca   : > { %6269 = vst [vmem:[#allocation1 + $0x6] ss:$9 sm:$0xff] %v13173_v3 }
 0xecb   : > { %6270 = vst [vmem:[#allocation1 + $0x7] ss:$9 sm:$0xff] %v13177_v58 }
 0xed2   : > { %v13188_v12 = vld [vmem:[#allocation1] sm:$0xff] }
 0xed3   : > { %15211 = vst [vmem:[#allocation249_spill] sm:$0xff] %v13188_v12  ;;  %v13217_v12 = vrot.slane %v12511_v20, 5 }
 0xed4   : > { %6272 = vst [vmem:[#allocation1] ss:$9 sm:$0xff] %v13183_v18 }
 0xed5   : > { %6273 = vst [vmem:[#allocation1 + $0x1] ss:$9 sm:$0xff] %v13186_v0 }
 0xed6   : > { %6274 = vst [vmem:[#allocation1 + $0x2] ss:$9 sm:$0xff] %v13191_v54  ;;  %v13222_v54 = vrot.slane %v12511_v20, 6 }
 0xed7   : > { %6275 = vst [vmem:[#allocation1 + $0x3] ss:$9 sm:$0xff] %v13195_v46 }
 0xed8   : > { %6276 = vst [vmem:[#allocation1 + $0x4] ss:$9 sm:$0xff] %v12511_v20 }
 0xed9   : > { %6277 = vst [vmem:[#allocation1 + $0x5] ss:$9 sm:$0xff] %v13200_v50  ;;  %v13227_v50 = vrot.slane %v12530_v17, 1 }
 0xeda   : > { %6278 = vst [vmem:[#allocation1 + $0x6] ss:$9 sm:$0xff] %v13204_v10  ;;  %v13235_v10 = vrot.slane %v12530_v17, 3 }
 0xedb   : > { %6279 = vst [vmem:[#allocation1 + $0x7] ss:$9 sm:$0xff] %v13208_v47  ;;  %v13231_v47 = vrot.slane %v12530_v17, 2 }
 0xedc   : > { %15218 = vst [vmem:[#allocation259_spill] sm:$0xff] %v13217_v12 }
 0xedd   : > { %15220 = vst [vmem:[#allocation261_spill] sm:$0xff] %v13222_v54 }
 0xede   : > { %15221 = vst [vmem:[#allocation262_spill] sm:$0xff] %v13227_v50 }
 0xedf   : > { %15222 = vst [vmem:[#allocation266_spill] sm:$0xff] %v13231_v47 }
 0xee0   : > { %15223 = vst [vmem:[#allocation11_spill] sm:$0xff] %v13235_v10 }
 0xee2   : > { %v13219_v46 = vld [vmem:[#allocation1] sm:$0xff] }
 0xee3   : > { %15219 = vst [vmem:[#allocation260_spill] sm:$0xff] %v13219_v46  ;;  %v13239_v46 = vrot.slane %v12530_v17, 4 }
 0xee4   : > { %6281 = vst [vmem:[#allocation1] ss:$9 sm:$0xff] %v13214_v39 }
 0xee5   : > { %6282 = vst [vmem:[#allocation1 + $0x1] ss:$9 sm:$0xff] %v13217_v12  ;;  %v13248_v12 = vrot.slane %v12530_v17, 6 }
 0xee6   : > { %6283 = vst [vmem:[#allocation1 + $0x2] ss:$9 sm:$0xff] %v13222_v54  ;;  %v13245_v54 = vrot.slane %v12530_v17, 5 }
 0xee7   : > { %6284 = vst [vmem:[#allocation1 + $0x3] ss:$9 sm:$0xff] %v12530_v17 }
 0xee8   : > { %6285 = vst [vmem:[#allocation1 + $0x4] ss:$9 sm:$0xff] %v13227_v50  ;;  %v13254_v50 = vrot.slane %v12549_v5, 1 }
 0xee9   : > { %15224 = vst [vmem:[#allocation14_spill] sm:$0xff] %v13239_v46 }
 0xeea   : > { %6286 = vst [vmem:[#allocation1 + $0x5] ss:$9 sm:$0xff] %v13231_v47  ;;  %v13258_v47 = vrot.slane %v12549_v5, 2 }
 0xeeb   : > { %6287 = vst [vmem:[#allocation1 + $0x6] ss:$9 sm:$0xff] %v13235_v10  ;;  %v13266_v10 = vrot.slane %v12549_v5, 4 }
 0xeec   : > { %6288 = vst [vmem:[#allocation1 + $0x7] ss:$9 sm:$0xff] %v13239_v46  ;;  %v13262_v46 = vrot.slane %v12549_v5, 3 }
 0xeed   : > { %15225 = vst [vmem:[#allocation16_spill] sm:$0xff] %v13245_v54 }
 0xeee   : > { %15226 = vst [vmem:[#allocation12_spill] sm:$0xff] %v13248_v12 }
 0xeef   : > { %15228 = vst [vmem:[#allocation3_spill] sm:$0xff] %v13254_v50 }
 0xef3   : > { %v13250_v39 = vld [vmem:[#allocation1] sm:$0xff] }
 0xef4   : > { %15227 = vst [vmem:[#allocation13_spill] sm:$0xff] %v13250_v39  ;;  %v13270_v39 = vrot.slane %v12549_v5, 5 }
 0xef5   : > { %6290 = vst [vmem:[#allocation1] ss:$9 sm:$0xff] %v13245_v54 }
 0xef6   : > { %6291 = vst [vmem:[#allocation1 + $0x1] ss:$9 sm:$0xff] %v13248_v12  ;;  %v13276_v12 = vrot.slane %v12549_v5, 6 }
 0xef7   : > { %6292 = vst [vmem:[#allocation1 + $0x2] ss:$9 sm:$0xff] %v12549_v5 }
 0xef8   : > { %6293 = vst [vmem:[#allocation1 + $0x3] ss:$9 sm:$0xff] %v13254_v50 }
 0xef9   : > { %6294 = vst [vmem:[#allocation1 + $0x4] ss:$9 sm:$0xff] %v13258_v47 }
 0xefa   : > { %15229 = vst [vmem:[#allocation4_spill] sm:$0xff] %v13270_v39 }
 0xefb   : > { %6295 = vst [vmem:[#allocation1 + $0x5] ss:$9 sm:$0xff] %v13262_v46 }
 0xefc   : > { %6296 = vst [vmem:[#allocation1 + $0x6] ss:$9 sm:$0xff] %v13266_v10 }
 0xefd   : > { %6297 = vst [vmem:[#allocation1 + $0x7] ss:$9 sm:$0xff] %v13270_v39 }
 0xf04   : > { %v13278_v54 = vld [vmem:[#allocation1] sm:$0xff] }
 0xf05   : > { %6299 = vst [vmem:[#allocation1] ss:$9 sm:$0xff] %v13276_v12 }
 0xf0c   : > { %v13281_v50 = vld [vmem:[#allocation1] sm:$0xff] }
 0xf0d   : > { %6308 = vst [vmem:[#allocation1] ss:$9 sm:$0xff] %v12441_v49 }
 0xf0e   : > { %6310 = vst [vmem:[#allocation1 + $0x1] ss:$9 sm:$0xff] %v12443_v62 }
 0xf0f   : > { %6312 = vst [vmem:[#allocation1 + $0x2] ss:$9 sm:$0xff] %v12445_v63 }
 0xf10   : > { %6314 = vst [vmem:[#allocation1 + $0x3] ss:$9 sm:$0xff] %v12447_v44 }
 0xf11   : > { %6316 = vst [vmem:[#allocation1 + $0x4] ss:$9 sm:$0xff] %v12449_v40 }
 0xf12   : > { %6318 = vst [vmem:[#allocation1 + $0x5] ss:$9 sm:$0xff] %v12451_v35  ;;  %v15230_v35 = vld [vmem:[#allocation23_spill] sm:$0xff] }
 0xf13   : > { %6320 = vst [vmem:[#allocation1 + $0x6] ss:$9 sm:$0xff] %v12456_v38 }
 0xf14   : > { %6322 = vst [vmem:[#allocation1 + $0x7] ss:$9 sm:$0xff] %v12460_v8  ;;  %v15231_v8 = vld [vmem:[#allocation24_spill] sm:$0xff] }
 0xf1b   : > { %v6323_v39 = vld [vmem:[#allocation1] sm:$0xff] }
 0xf1c   : > { %6324 = vst [vmem:[#allocation1] ss:$9 sm:$0xff] %v12462_v42  ;;  %v15232_v42 = vld [vmem:[#allocation25_spill] sm:$0xff] }
 0xf1d   : > { %6325 = vst [vmem:[#allocation1 + $0x1] ss:$9 sm:$0xff] %v12464_v37  ;;  %v15233_v37 = vld [vmem:[#allocation26_spill] sm:$0xff] }
 0xf1e   : > { %6326 = vst [vmem:[#allocation1 + $0x2] ss:$9 sm:$0xff] %v12466_v24  ;;  %v15234_v24 = vld [vmem:[#allocation27_spill] sm:$0xff] }
 0xf1f   : > { %6327 = vst [vmem:[#allocation1 + $0x3] ss:$9 sm:$0xff] %v12468_v57  ;;  %v15235_v57 = vld [vmem:[#allocation28_spill] sm:$0xff] }
 0xf20   : > { %6328 = vst [vmem:[#allocation1 + $0x4] ss:$9 sm:$0xff] %v12470_v22  ;;  %v15236_v22 = vld [vmem:[#allocation29_spill] sm:$0xff] }
 0xf21   : > { %6329 = vst [vmem:[#allocation1 + $0x5] ss:$9 sm:$0xff] %v12475_v60  ;;  %v15237_v60 = vld [vmem:[#allocation30_spill] sm:$0xff] }
 0xf22   : > { %6330 = vst [vmem:[#allocation1 + $0x6] ss:$9 sm:$0xff] %v12479_v52  ;;  %v15238_v52 = vld [vmem:[#allocation31_spill] sm:$0xff] }
 0xf23   : > { %6331 = vst [vmem:[#allocation1 + $0x7] ss:$9 sm:$0xff] %v12481_v56 }
 0xf2a   : > { %v6332_v49 = vld [vmem:[#allocation1] sm:$0xff] }
 0xf2b   : > { %v8355_v62 = vpack.i.bf16 %v6332_v49, %v6323_v39  ;;  %6333 = vst [vmem:[#allocation1] ss:$9 sm:$0xff] %v12483_v15  ;;  %v15256_v39 = vld [vmem:[#allocation49_spill] sm:$0xff]  ;;  %v15257_v49 = vld [vmem:[#allocation50_spill] sm:$0xff] }
 0xf2c   : > { %6334 = vst [vmem:[#allocation1 + $0x1] ss:$9 sm:$0xff] %v12485_v11  ;;  %v15239_v11 = vld [vmem:[#allocation32_spill] sm:$0xff] }
 0xf2d   : > { %8356 = vrot.lane.b32.xlu1 %v8355_v62, %s8447_s25  ;;  %6335 = vst [vmem:[#allocation1 + $0x2] ss:$9 sm:$0xff] %v12487_v31  ;;  %v15258_v62 = vld [vmem:[#allocation51_spill] sm:$0xff] }
 0xf2e   : > { %6336 = vst [vmem:[#allocation1 + $0x3] ss:$9 sm:$0xff] %v12489_v7  ;;  %v15240_v7 = vld [vmem:[#allocation33_spill] sm:$0xff] }
 0xf2f   : > { %6337 = vst [vmem:[#allocation1 + $0x4] ss:$9 sm:$0xff] %v12494_v34  ;;  %v15241_v34 = vld [vmem:[#allocation34_spill] sm:$0xff] }
 0xf30   : > { %6338 = vst [vmem:[#allocation1 + $0x5] ss:$9 sm:$0xff] %v12498_v48  ;;  %v15242_v48 = vld [vmem:[#allocation35_spill] sm:$0xff] }
 0xf31   : > { %6339 = vst [vmem:[#allocation1 + $0x6] ss:$9 sm:$0xff] %v12500_v16  ;;  %v15243_v16 = vld [vmem:[#allocation36_spill] sm:$0xff] }
 0xf32   : > { %6340 = vst [vmem:[#allocation1 + $0x7] ss:$9 sm:$0xff] %v12502_v55  ;;  %v8248_v55 = vld [vmem:[%s14015_s15 + $0x38] sm:$0xff] }
 0xf33   : > { %7272 = vmatpush.bf16.msrb.mxu3 %v8248_v55  ;;  %v15276_v55 = vld [vmem:[#allocation275_spill] sm:$0xff] }
 0xf39   : > { %v6341_v63 = vld [vmem:[#allocation1] sm:$0xff] }
 0xf3a   : > { %6342 = vst [vmem:[#allocation1] ss:$9 sm:$0xff] %v12504_v32  ;;  %v15244_v32 = vld [vmem:[#allocation37_spill] sm:$0xff] }
 0xf3b   : > { %6343 = vst [vmem:[#allocation1 + $0x1] ss:$9 sm:$0xff] %v12506_v43  ;;  %v15245_v43 = vld [vmem:[#allocation38_spill] sm:$0xff] }
 0xf3c   : > { %6344 = vst [vmem:[#allocation1 + $0x2] ss:$9 sm:$0xff] %v12508_v26  ;;  %v15246_v26 = vld [vmem:[#allocation39_spill] sm:$0xff] }
 0xf3d   : > { %6345 = vst [vmem:[#allocation1 + $0x3] ss:$9 sm:$0xff] %v12513_v1  ;;  %v15247_v1 = vld [vmem:[#allocation40_spill] sm:$0xff] }
 0xf3e   : > { %6346 = vst [vmem:[#allocation1 + $0x4] ss:$9 sm:$0xff] %v12517_v29 }
 0xf3f   : > { %6347 = vst [vmem:[#allocation1 + $0x5] ss:$9 sm:$0xff] %v12519_v27  ;;  %v15248_v27 = vld [vmem:[#allocation46_spill] sm:$0xff] }
 0xf40   : > { %6348 = vst [vmem:[#allocation1 + $0x6] ss:$9 sm:$0xff] %v12521_v33  ;;  %v15249_v33 = vld [vmem:[#allocation47_spill] sm:$0xff] }
 0xf41   : > { %6349 = vst [vmem:[#allocation1 + $0x7] ss:$9 sm:$0xff] %v12523_v13  ;;  %v15250_v13 = vld [vmem:[#allocation41_spill] sm:$0xff] }
 0xf48   : > { %v6350_v44 = vld [vmem:[#allocation1] sm:$0xff] }
 0xf49   : > { %v8360_v40 = vpack.i.bf16 %v6350_v44, %v6341_v63  ;;  %6351 = vst [vmem:[#allocation1] ss:$9 sm:$0xff] %v12525_v36  ;;  %v15251_v36 = vld [vmem:[#allocation42_spill] sm:$0xff]  ;;  %v15259_v63 = vld [vmem:[#allocation52_spill] sm:$0xff] }
 0xf4a   : > { %6352 = vst [vmem:[#allocation1 + $0x1] ss:$9 sm:$0xff] %v12527_v2  ;;  %v8247_v2 = vld [vmem:[%s14015_s15 + $0x30] sm:$0xff]  ;;  %v8246_v44 = vld [vmem:[%s14015_s15 + $0x28] sm:$0xff] }
 0xf4b   : > { %8361 = vrot.lane.b32.xlu2 %v8360_v40, %s8447_s25  ;;  %6353 = vst [vmem:[#allocation1 + $0x2] ss:$9 sm:$0xff] %v12532_v41  ;;  %v15252_v41 = vld [vmem:[#allocation43_spill] sm:$0xff]  ;;  %7273 = vmatpush.bf16.msrb.mxu3 %v8247_v2  ;;  %v15260_v40 = vld [vmem:[#allocation53_spill] sm:$0xff] }
 0xf4c   : > { %6354 = vst [vmem:[#allocation1 + $0x3] ss:$9 sm:$0xff] %v12536_v6  ;;  %v15253_v6 = vld [vmem:[#allocation44_spill] sm:$0xff]  ;;  %v15283_v2 = vld [vmem:[#allocation283_spill] sm:$0xff] }
 0xf4d   : > { %6355 = vst [vmem:[#allocation1 + $0x4] ss:$9 sm:$0xff] %v12538_v25  ;;  %v15254_v25 = vld [vmem:[#allocation45_spill] sm:$0xff] }
 0xf4e   : > { %6356 = vst [vmem:[#allocation1 + $0x5] ss:$9 sm:$0xff] %v12540_v51  ;;  %v15255_v51 = vld [vmem:[#allocation48_spill] sm:$0xff] }
 0xf4f   : > { %6357 = vst [vmem:[#allocation1 + $0x6] ss:$9 sm:$0xff] %v12542_v9  ;;  %7274 = vmatpush.bf16.msrb.mxu3 %v8246_v44  ;;  %v15289_v44 = vrot.slane %v12454_v21, 1 }
 0xf50   : > { %6358 = vst [vmem:[#allocation1 + $0x7] ss:$9 sm:$0xff] %v15230_v35  ;;  %v15261_v35 = vld [vmem:[#allocation56_spill] sm:$0xff] }
 0xf57   : > { %v6359_v38 = vld [vmem:[#allocation1] sm:$0xff] }
 0xf58   : > { %6360 = vst [vmem:[#allocation1] ss:$9 sm:$0xff] %v15231_v8  ;;  %v15263_v8 = vld [vmem:[#allocation55_spill] sm:$0xff] }
 0xf59   : > { %6361 = vst [vmem:[#allocation1 + $0x1] ss:$9 sm:$0xff] %v15232_v42 }
 0xf5a   : > { %6362 = vst [vmem:[#allocation1 + $0x2] ss:$9 sm:$0xff] %v15233_v37  ;;  %v15264_v37 = vld [vmem:[#allocation57_spill] sm:$0xff] }
 0xf5b   : > { %6363 = vst [vmem:[#allocation1 + $0x3] ss:$9 sm:$0xff] %v15234_v24  ;;  %v15265_v24 = vld [vmem:[#allocation58_spill] sm:$0xff] }
 0xf5c   : > { %6364 = vst [vmem:[#allocation1 + $0x4] ss:$9 sm:$0xff] %v15235_v57  ;;  %v15266_v57 = vld [vmem:[#allocation59_spill] sm:$0xff] }
 0xf5d   : > { %6365 = vst [vmem:[#allocation1 + $0x5] ss:$9 sm:$0xff] %v15236_v22  ;;  %v15267_v22 = vld [vmem:[#allocation60_spill] sm:$0xff] }
 0xf5e   : > { %6366 = vst [vmem:[#allocation1 + $0x6] ss:$9 sm:$0xff] %v15237_v60  ;;  %v8245_v60 = vld [vmem:[%s14015_s15 + $0x20] sm:$0xff] }
 0xf5f   : > { %6367 = vst [vmem:[#allocation1 + $0x7] ss:$9 sm:$0xff] %v15238_v52  ;;  %v15268_v52 = vld [vmem:[#allocation61_spill] sm:$0xff]  ;;  %7275 = vmatpush.bf16.msrb.mxu3 %v8245_v60 }
 0xf66   : > { %v6368_v56 = vld [vmem:[#allocation1] sm:$0xff] }
 0xf67   : > { %v8365_v15 = vpack.i.bf16 %v6368_v56, %v6359_v38  ;;  %6369 = vst [vmem:[#allocation1] ss:$9 sm:$0xff] %v15239_v11  ;;  %v15262_v38 = vld [vmem:[#allocation54_spill] sm:$0xff]  ;;  %v15269_v56 = vld [vmem:[#allocation269_spill] sm:$0xff]  ;;  %v15271_v11 = vld [vmem:[#allocation63_spill] sm:$0xff] }
 0xf69   : > { %8366 = vrot.lane.b32.xlu0 %v8365_v15, %s8447_s25  ;;  %v15270_v15 = vld [vmem:[#allocation62_spill] sm:$0xff] }
 0xf6e   : > { %v6370_v31 = vld [vmem:[#allocation1] sm:$0xff] }
 0xf6f   : > { %6392 = vst [vmem:[#allocation1] ss:$9 sm:$0xff] %v15240_v7  ;;  %6383 = vrot.lane.b32.xlu1 %v6370_v31, %s8447_s25  ;;  %v15272_v7 = vld [vmem:[#allocation270_spill] sm:$0xff] }
 0xf70   : > { %6394 = vst [vmem:[#allocation1 + $0x1] ss:$9 sm:$0xff] %v15241_v34  ;;  %v15273_v34 = vld [vmem:[#allocation271_spill] sm:$0xff] }
 0xf71   : > { %6396 = vst [vmem:[#allocation1 + $0x2] ss:$9 sm:$0xff] %v15242_v48  ;;  %v15274_v48 = vld [vmem:[#allocation272_spill] sm:$0xff] }
 0xf72   : > { %6398 = vst [vmem:[#allocation1 + $0x3] ss:$9 sm:$0xff] %v15243_v16  ;;  %v15275_v16 = vld [vmem:[#allocation274_spill] sm:$0xff] }
 0xf73   : > { %6400 = vst [vmem:[#allocation1 + $0x4] ss:$9 sm:$0xff] %v15244_v32  ;;  %v15277_v32 = vld [vmem:[#allocation278_spill] sm:$0xff] }
 0xf74   : > { %6402 = vst [vmem:[#allocation1 + $0x5] ss:$9 sm:$0xff] %v15245_v43  ;;  %v15278_v43 = vld [vmem:[#allocation276_spill] sm:$0xff] }
 0xf75   : > { %6404 = vst [vmem:[#allocation1 + $0x6] ss:$9 sm:$0xff] %v15246_v26  ;;  %v15279_v26 = vld [vmem:[#allocation277_spill] sm:$0xff] }
 0xf76   : > { %6406 = vst [vmem:[#allocation1 + $0x7] ss:$9 sm:$0xff] %v15247_v1  ;;  %v8244_v1 = vld [vmem:[%s14015_s15 + $0x18] sm:$0xff] }
 0xf77   : > { %7276 = vmatpush.bf16.msrb.mxu3 %v8244_v1 }
 0xf7d   : > { %v13347_v29 = vld [vmem:[#allocation1] sm:$0xff] }
 0xf7e   : > { %6413 = vst [vmem:[#allocation1 + $0x5] ss:$9 sm:$0xff] %v15248_v27 }
 0xf7f   : > { %6414 = vst [vmem:[#allocation1 + $0x6] ss:$9 sm:$0xff] %v15249_v33  ;;  %v15280_v33 = vld [vmem:[#allocation279_spill] sm:$0xff] }
 0xf80   : > { %6408 = vst [vmem:[#allocation1] ss:$9 sm:$0xff] %v15250_v13  ;;  %v15281_v13 = vld [vmem:[#allocation280_spill] sm:$0xff] }
 0xf81   : > { %6409 = vst [vmem:[#allocation1 + $0x1] ss:$9 sm:$0xff] %v15251_v36  ;;  %v15282_v36 = vld [vmem:[#allocation282_spill] sm:$0xff] }
 0xf82   : > { %6410 = vst [vmem:[#allocation1 + $0x2] ss:$9 sm:$0xff] %v15252_v41  ;;  %v15284_v41 = vld [vmem:[#allocation284_spill] sm:$0xff] }
 0xf83   : > { %6411 = vst [vmem:[#allocation1 + $0x3] ss:$9 sm:$0xff] %v15253_v6  ;;  %v15285_v6 = vld [vmem:[#allocation287_spill] sm:$0xff] }
 0xf84   : > { %6412 = vst [vmem:[#allocation1 + $0x4] ss:$9 sm:$0xff] %v15254_v25  ;;  %v15286_v25 = vld [vmem:[#allocation285_spill] sm:$0xff] }
 0xf85   : > { %6415 = vst [vmem:[#allocation1 + $0x7] ss:$9 sm:$0xff] %v15255_v51  ;;  %v15287_v51 = vld [vmem:[#allocation286_spill] sm:$0xff] }
 0xf8c   : > { %v13360_v9 = vld [vmem:[#allocation1] sm:$0xff] }
 0xf8d   : > { %6417 = vst [vmem:[#allocation1] ss:$9 sm:$0xff] %v15256_v39  ;;  %v8243_v39 = vld [vmem:[%s14015_s15 + $0x10] sm:$0xff] }
 0xf8e   : > { %6418 = vst [vmem:[#allocation1 + $0x1] ss:$9 sm:$0xff] %v15257_v49  ;;  %7277 = vmatpush.bf16.msrb.mxu3 %v8243_v39  ;;  %v15305_v39 = vld [vmem:[#allocation262_spill] sm:$0xff] }
 0xf8f   : > { %6419 = vst [vmem:[#allocation1 + $0x2] ss:$9 sm:$0xff] %v15258_v62  ;;  %v15288_v62 = vld [vmem:[#allocation288_spill] sm:$0xff] }
 0xf90   : > { %6420 = vst [vmem:[#allocation1 + $0x3] ss:$9 sm:$0xff] %v15259_v63 }
 0xf91   : > { %6421 = vst [vmem:[#allocation1 + $0x4] ss:$9 sm:$0xff] %v15260_v40  ;;  %v15290_v40 = vrot.slane %v12454_v21, 2 }
 0xf92   : > { %6424 = vst [vmem:[#allocation1 + $0x7] ss:$9 sm:$0xff] %v15261_v35  ;;  %v15291_v35 = vrot.slane %v12454_v21, 3 }
 0xf93   : > { %6422 = vst [vmem:[#allocation1 + $0x5] ss:$9 sm:$0xff] %v15262_v38  ;;  %v15292_v38 = vrot.slane %v12454_v21, 4 }
 0xf94   : > { %6423 = vst [vmem:[#allocation1 + $0x6] ss:$9 sm:$0xff] %v15263_v8  ;;  %v15293_v8 = vrot.slane %v12454_v21, 5 }
 0xf9b   : > { %v13373_v42 = vld [vmem:[#allocation1] sm:$0xff] }
 0xf9c   : > { %6426 = vst [vmem:[#allocation1] ss:$9 sm:$0xff] %v15264_v37  ;;  %v15294_v37 = vrot.slane %v12454_v21, 6 }
 0xf9d   : > { %6427 = vst [vmem:[#allocation1 + $0x1] ss:$9 sm:$0xff] %v15265_v24  ;;  %v8242_v24 = vld [vmem:[%s14015_s15 + $0x8] sm:$0xff] }
 0xf9e   : > { %6428 = vst [vmem:[#allocation1 + $0x2] ss:$9 sm:$0xff] %v15266_v57  ;;  %7278 = vmatpush.bf16.msrb.mxu3 %v8242_v24 }
 0xf9f   : > { %6429 = vst [vmem:[#allocation1 + $0x3] ss:$9 sm:$0xff] %v15267_v22  ;;  %v8357_v22 = vpop.permute.xlu1 %8356 }
 0xfa0   : > { %6430 = vst [vmem:[#allocation1 + $0x4] ss:$9 sm:$0xff] %v15268_v52  ;;  %v8359_v60 = vunpack.i.h.bf16 %v8357_v22  ;;  %v8358_v52 = vunpack.i.l.bf16 %v8357_v22  ;;  %v15310_v22 = vld [vmem:[#allocation12_spill] sm:$0xff] }
 0xfa1   : > { %6433 = vst [vmem:[#allocation1 + $0x7] ss:$9 sm:$0xff] %v15269_v56 }
 0xfa2   : > { %6431 = vst [vmem:[#allocation1 + $0x5] ss:$9 sm:$0xff] %v15270_v15  ;;  %v6924_v56 = vsel %vm4940_vm8, %v13128_v45, %v8358_v52  ;;  %v8241_v15 = vld [vmem:[%s14015_s15] sm:$0xff] }
 0xfa3   : > { %6432 = vst [vmem:[#allocation1 + $0x6] ss:$9 sm:$0xff] %v15271_v11  ;;  %7279 = vmatpush.bf16.msrb.mxu3 %v8241_v15  ;;  %v15312_v52 = vld [vmem:[#allocation13_spill] sm:$0xff] }
 0xfaa   : > { %v13386_v31 = vld [vmem:[#allocation1] sm:$0xff] }
 0xfab   : > { %6435 = vst [vmem:[#allocation1] ss:$9 sm:$0xff] %v15272_v7 }
 0xfac   : > { %6436 = vst [vmem:[#allocation1 + $0x1] ss:$9 sm:$0xff] %v15273_v34  ;;  %v8362_v34 = vpop.permute.xlu2 %8361 }
 0xfad   : > { %6437 = vst [vmem:[#allocation1 + $0x2] ss:$9 sm:$0xff] %v15274_v48  ;;  %v8364_v45 = vunpack.i.h.bf16 %v8362_v34 }
 0xfae   : > { %6438 = vst [vmem:[#allocation1 + $0x3] ss:$9 sm:$0xff] %v15275_v16  ;;  %v15295_v16 = vld [vmem:[#allocation250_spill] sm:$0xff] }
 0xfaf   : > { %6439 = vst [vmem:[#allocation1 + $0x4] ss:$9 sm:$0xff] %v15276_v55  ;;  %v15296_v55 = vld [vmem:[#allocation251_spill] sm:$0xff] }
 0xfb0   : > { %6442 = vst [vmem:[#allocation1 + $0x7] ss:$9 sm:$0xff] %v15277_v32  ;;  %v15297_v32 = vld [vmem:[#allocation252_spill] sm:$0xff] }
 0xfb1   : > { %6440 = vst [vmem:[#allocation1 + $0x5] ss:$9 sm:$0xff] %v15278_v43  ;;  %v15298_v43 = vld [vmem:[#allocation253_spill] sm:$0xff] }
 0xfb2   : > { %6441 = vst [vmem:[#allocation1 + $0x6] ss:$9 sm:$0xff] %v15279_v26  ;;  %v15299_v26 = vld [vmem:[#allocation249_spill] sm:$0xff] }
 0xfb9   : > { %v13399_v27 = vld [vmem:[#allocation1] sm:$0xff] }
 0xfba   : > { %6444 = vst [vmem:[#allocation1] ss:$9 sm:$0xff] %v15280_v33  ;;  %v15300_v33 = vld [vmem:[#allocation260_spill] sm:$0xff] }
 0xfbb   : > { %6445 = vst [vmem:[#allocation1 + $0x1] ss:$9 sm:$0xff] %v15281_v13  ;;  %v6927_v13 = vsel %vm4940_vm8, %v15300_v33, %v8364_v45 }
 0xfbc   : > { %6446 = vst [vmem:[#allocation1 + $0x2] ss:$9 sm:$0xff] %v15282_v36 }
 0xfbd   : > { %6447 = vst [vmem:[#allocation1 + $0x3] ss:$9 sm:$0xff] %v15283_v2 }
 0xfbe   : > { %6448 = vst [vmem:[#allocation1 + $0x4] ss:$9 sm:$0xff] %v15284_v41  ;;  %v15301_v41 = vld [vmem:[#allocation257_spill] sm:$0xff] }
 0xfbf   : > { %6451 = vst [vmem:[#allocation1 + $0x7] ss:$9 sm:$0xff] %v15285_v6  ;;  %v15302_v6 = vld [vmem:[#allocation258_spill] sm:$0xff] }
 0xfc0   : > { %6449 = vst [vmem:[#allocation1 + $0x5] ss:$9 sm:$0xff] %v15286_v25  ;;  %v15303_v25 = vld [vmem:[#allocation259_spill] sm:$0xff] }
 0xfc1   : > { %6450 = vst [vmem:[#allocation1 + $0x6] ss:$9 sm:$0xff] %v15287_v51  ;;  %v15304_v51 = vld [vmem:[#allocation261_spill] sm:$0xff] }
 0xfc8   : > { %v13412_v49 = vld [vmem:[#allocation1] sm:$0xff] }
 0xfc9   : > { %6453 = vst [vmem:[#allocation1] ss:$9 sm:$0xff] %v15288_v62  ;;  %v15306_v62 = vld [vmem:[#allocation266_spill] sm:$0xff] }
 0xfd0   : > { %v13415_v63 = vld [vmem:[#allocation1] sm:$0xff] }
 0xfd1   : > { %6462 = vst [vmem:[#allocation1] ss:$9 sm:$0xff] %v12454_v21  ;;  %v6925_v21 = vsel %vm4940_vm8, %v13157_v28, %v8359_v60  ;;  %v8363_v28 = vunpack.i.l.bf16 %v8362_v34  ;;  %v15311_v60 = vld [vmem:[#allocation3_spill] sm:$0xff] }
 0xfd2   : > { %6464 = vst [vmem:[#allocation1 + $0x1] ss:$9 sm:$0xff] %v15289_v44  ;;  %v6952_v11 = vpack.c.bf16 %v6925_v21, %v6924_v56  ;;  %v15307_v44 = vld [vmem:[#allocation11_spill] sm:$0xff] }
 0xfd3   : > { %6466 = vst [vmem:[#allocation1 + $0x2] ss:$9 sm:$0xff] %v15290_v40  ;;  %v6926_v1 = vsel %vm4940_vm8, %v15299_v26, %v8363_v28  ;;  %v15314_v34 = vld [vmem:[#allocation103_spill] sm:$0xff] }
 0xfd4   : > { %6468 = vst [vmem:[#allocation1 + $0x3] ss:$9 sm:$0xff] %v15291_v35  ;;  %7280 = vmatmul.bf16.vlgmr.msrb.gmra.mxu3 %v6952_v11  ;;  %v6957_v36 = vpack.c.bf16 %v6927_v13, %v6926_v1  ;;  %v14218_v28 = vrot.slane %v15314_v34, 2  ;;  %v14216_v26 = vrot.slane %v15314_v34, 4  ;;  %v14215_v33 = vrot.slane %v15314_v34, 5 }
 0xfd5   : > { %6470 = vst [vmem:[#allocation1 + $0x4] ss:$9 sm:$0xff] %v15292_v38  ;;  %v15308_v38 = vld [vmem:[#allocation14_spill] sm:$0xff] }
 0xfd6   : > { %6476 = vst [vmem:[#allocation1 + $0x7] ss:$9 sm:$0xff] %v12473_v61 }
 0xfd7   : > { %6472 = vst [vmem:[#allocation1 + $0x5] ss:$9 sm:$0xff] %v15293_v8 }
 0xfd8   : > { %6474 = vst [vmem:[#allocation1 + $0x6] ss:$9 sm:$0xff] %v15294_v37  ;;  %v15309_v37 = vld [vmem:[#allocation16_spill] sm:$0xff] }
 0xfdb   : > { %v8367_v40 = vpop.permute.xlu0 %8366 }
 0xfdc   : > { %v8369_v24 = vunpack.i.h.bf16 %v8367_v40 }
 0xfde   : > { %v6929_v56 = vsel %vm4940_vm8, %v13278_v54, %v8369_v24  ;;  %v14217_v54 = vrot.slane %v15314_v34, 3  ;;  %v15315_v24 = vld [vmem:[#allocation290_spill] sm:$0xff] }
 0xfdf   : > { %v6477_v57 = vld [vmem:[#allocation1] sm:$0xff] }
 0xfe0   : > { %6478 = vst [vmem:[#allocation1] ss:$9 sm:$0xff] %v13145_v19 }
 0xfe1   : > { %6479 = vst [vmem:[#allocation1 + $0x1] ss:$9 sm:$0xff] %v13152_v59  ;;  %v6384_v45 = vpop.permute.xlu1 %6383 }
 0xfe2   : > { %6480 = vst [vmem:[#allocation1 + $0x2] ss:$9 sm:$0xff] %v13155_v4  ;;  %v6930_v1 = vsel %vm4940_vm8, %v13281_v50, %v6384_v45  ;;  %v8252_v45 = vld [vmem:[%s14015_s15 + $0x58] sm:$0xff] }
 0xfe3   : > { %6481 = vst [vmem:[#allocation1 + $0x3] ss:$9 sm:$0xff] %v13160_v53  ;;  %v6967_v13 = vpack.c.bf16 %v6930_v1, %v6930_v1  ;;  %v15320_v1 = vld [vmem:[#allocation67_spill] sm:$0xff] }
 0xfe4   : > { %6482 = vst [vmem:[#allocation1 + $0x4] ss:$9 sm:$0xff] %v13164_v14  ;;  %7285 = vmatmul.bf16.gmra.mxu3 %v6957_v36  ;;  %v14214_v36 = vrot.slane %v15314_v34, 6 }
 0xfe5   : > { %6483 = vst [vmem:[#allocation1 + $0x5] ss:$9 sm:$0xff] %v13168_v30 }
 0xfe6   : > { %6484 = vst [vmem:[#allocation1 + $0x6] ss:$9 sm:$0xff] %v12492_v23 }
 0xfe7   : > { %6485 = vst [vmem:[#allocation1 + $0x7] ss:$9 sm:$0xff] %v13173_v3 }
 0xfee   : > { %v6486_v7 = vld [vmem:[#allocation1] sm:$0xff] }
 0xfef   : > { %v8370_v48 = vpack.i.bf16 %v6486_v7, %v6477_v57  ;;  %6487 = vst [vmem:[#allocation1] ss:$9 sm:$0xff] %v13177_v58  ;;  %v8368_v57 = vunpack.i.l.bf16 %v8367_v40  ;;  %v15313_v7 = vld [vmem:[#allocation4_spill] sm:$0xff] }
 0xff0   : > { %6488 = vst [vmem:[#allocation1 + $0x1] ss:$9 sm:$0xff] %v13183_v18  ;;  %v8255_v40 = vld [vmem:[%s14015_s15 + $0x70] sm:$0xff] }
 0xff1   : > { %8371 = vrot.lane.b32.xlu2 %v8370_v48, %s8447_s25  ;;  %6489 = vst [vmem:[#allocation1 + $0x2] ss:$9 sm:$0xff] %v13186_v0  ;;  %v6928_v21 = vsel %vm4940_vm8, %v15312_v52, %v8368_v57  ;;  %v14219_v48 = vrot.slane %v15314_v34, 1  ;;  %v8253_v57 = vld [vmem:[%s14015_s15 + $0x60] sm:$0xff] }
 0xff2   : > { %6490 = vst [vmem:[#allocation1 + $0x3] ss:$9 sm:$0xff] %v15295_v16  ;;  %v6962_v15 = vpack.c.bf16 %v6929_v56, %v6928_v21  ;;  %v15316_v52 = vld [vmem:[#allocation105_spill] sm:$0xff]  ;;  %v15317_v21 = vld [vmem:[#allocation64_spill] sm:$0xff] }
 0xff3   : > { %6491 = vst [vmem:[#allocation1 + $0x4] ss:$9 sm:$0xff] %v15296_v55  ;;  %v15318_v56 = vld [vmem:[#allocation65_spill] sm:$0xff] }
 0xff4   : > { %6492 = vst [vmem:[#allocation1 + $0x5] ss:$9 sm:$0xff] %v12511_v20  ;;  %7290 = vmatmul.bf16.gmra.mxu3 %v6962_v15  ;;  %v15319_v15 = vld [vmem:[#allocation66_spill] sm:$0xff] }
 0xff5   : > { %6493 = vst [vmem:[#allocation1 + $0x6] ss:$9 sm:$0xff] %v15297_v32 }
 0xff6   : > { %6494 = vst [vmem:[#allocation1 + $0x7] ss:$9 sm:$0xff] %v15298_v43 }
 0xffd   : > { %v6495_v2 = vld [vmem:[#allocation1] sm:$0xff] }
 0xffe   : > { %6496 = vst [vmem:[#allocation1] ss:$9 sm:$0xff] %v15301_v41 }
 0xfff   : > { %6497 = vst [vmem:[#allocation1 + $0x1] ss:$9 sm:$0xff] %v15302_v6 }
0x1000   : > { %6498 = vst [vmem:[#allocation1 + $0x2] ss:$9 sm:$0xff] %v15303_v25 }
0x1001   : > { %6499 = vst [vmem:[#allocation1 + $0x3] ss:$9 sm:$0xff] %v15304_v51 }
0x1002   : > { %6500 = vst [vmem:[#allocation1 + $0x4] ss:$9 sm:$0xff] %v12530_v17 }
0x1003   : > { %6501 = vst [vmem:[#allocation1 + $0x5] ss:$9 sm:$0xff] %v15305_v39 }
0x1004   : > { %6502 = vst [vmem:[#allocation1 + $0x6] ss:$9 sm:$0xff] %v15306_v62  ;;  %7295 = vmatmul.bf16.gmra.mxu3 %v6967_v13  ;;  %v15321_v13 = vld [vmem:[#allocation68_spill] sm:$0xff] }
0x1005   : > { %6503 = vst [vmem:[#allocation1 + $0x7] ss:$9 sm:$0xff] %v15307_v44 }
0x100c   : > { %v6504_v35 = vld [vmem:[#allocation1] sm:$0xff] }
0x100d   : > { %6505 = vst [vmem:[#allocation1] ss:$9 sm:$0xff] %v15308_v38  ;;  %v8380_v8 = vpack.i.bf16 %v6504_v35, %v6495_v2  ;;  %v8256_v2 = vld [vmem:[%s14015_s15 + $0x78] sm:$0xff]  ;;  %v8254_v35 = vld [vmem:[%s14015_s15 + $0x68] sm:$0xff] }
0x100e   : > { %6506 = vst [vmem:[#allocation1 + $0x1] ss:$9 sm:$0xff] %v15309_v37  ;;  %7300 = vmatpush.bf16.msra.mxu2 %v8256_v2  ;;  %v15322_v2 = vld [vmem:[#allocation69_spill] sm:$0xff] }
0x100f   : > { %6507 = vst [vmem:[#allocation1 + $0x2] ss:$9 sm:$0xff] %v15310_v22  ;;  %8381 = vrot.lane.b32.xlu1 %v8380_v8, %s8447_s25 }
0x1010   : > { %6508 = vst [vmem:[#allocation1 + $0x3] ss:$9 sm:$0xff] %v12549_v5 }
0x1011   : > { %6509 = vst [vmem:[#allocation1 + $0x4] ss:$9 sm:$0xff] %v15311_v60 }
0x1012   : > { %6510 = vst [vmem:[#allocation1 + $0x5] ss:$9 sm:$0xff] %v13258_v47  ;;  %7301 = vmatpush.bf16.msra.mxu2 %v8255_v40  ;;  %v8251_v40 = vld [vmem:[%s14015_s15 + $0x50] sm:$0xff] }
0x1013   : > { %6511 = vst [vmem:[#allocation1 + $0x6] ss:$9 sm:$0xff] %v13262_v46 }
0x1014   : > { %6512 = vst [vmem:[#allocation1 + $0x7] ss:$9 sm:$0xff] %v13266_v10 }
0x1016   : > { %7302 = vmatpush.bf16.msra.mxu2 %v8254_v35  ;;  %v8250_v35 = vld [vmem:[%s14015_s15 + $0x48] sm:$0xff] }
0x101a   : > { %7303 = vmatpush.bf16.msra.mxu2 %v8253_v57  ;;  %v15323_v57 = vld [vmem:[#allocation70_spill] sm:$0xff] }
0x101b   : > { %v13483_v11 = vld [vmem:[#allocation1] sm:$0xff] }
0x101c   : > { %6514 = vst [vmem:[#allocation1] ss:$9 sm:$0xff] %v15313_v7 }
0x101d   : > { %6515 = vst [vmem:[#allocation1 + $0x1] ss:$9 sm:$0xff] %v13276_v12 }
0x101e   : > { %6516 = vst [vmem:[#allocation1 + $0x2] ss:$9 sm:$0xff] %v15314_v34  ;;  %7304 = vmatpush.bf16.msra.mxu2 %v8252_v45  ;;  %v15327_v45 = vld [vmem:[#allocation74_spill] sm:$0xff] }
0x101f   : > { %6517 = vst [vmem:[#allocation1 + $0x3] ss:$9 sm:$0xff] %v14219_v48  ;;  %v15381_v48 = vld [vmem:[#allocation124_spill] sm:$0xff] }
0x1020   : > { %6518 = vst [vmem:[#allocation1 + $0x4] ss:$9 sm:$0xff] %v14218_v28 }
0x1021   : > { %6519 = vst [vmem:[#allocation1 + $0x5] ss:$9 sm:$0xff] %v14217_v54  ;;  %v15373_v54 = vld [vmem:[#allocation291_spill] sm:$0xff] }
0x1022   : > { %6520 = vst [vmem:[#allocation1 + $0x6] ss:$9 sm:$0xff] %v14216_v26  ;;  %7305 = vmatpush.bf16.msra.mxu2 %v8251_v40 }
0x1023   : > { %6521 = vst [vmem:[#allocation1 + $0x7] ss:$9 sm:$0xff] %v14215_v33 }
0x1026   : > { %7306 = vmatpush.bf16.msra.mxu2 %v8250_v35 }
0x102a   : > { %v13509_v50 = vld [vmem:[#allocation1] sm:$0xff] }
0x102b   : > { %6523 = vst [vmem:[#allocation1] ss:$9 sm:$0xff] %v14214_v36 }
0x1032   : > { %v13519_v8 = vld [vmem:[#allocation1] sm:$0xff] }
0x1033   : > { %6546 = vst [vmem:[#allocation1] ss:$9 sm:$0xff] %v15315_v24 }
0x1034   : > { %6548 = vst [vmem:[#allocation1 + $0x1] ss:$9 sm:$0xff] %v15316_v52  ;;  %v15324_v52 = vld [vmem:[#allocation71_spill] sm:$0xff] }
0x1035   : > { %6550 = vst [vmem:[#allocation1 + $0x2] ss:$9 sm:$0xff] %v15317_v21  ;;  %v8249_v21 = vld [vmem:[%s14015_s15 + $0x40] sm:$0xff] }
0x1036   : > { %6552 = vst [vmem:[#allocation1 + $0x3] ss:$9 sm:$0xff] %v15318_v56  ;;  %v15325_v56 = vld [vmem:[#allocation72_spill] sm:$0xff]  ;;  %7307 = vmatpush.bf16.msra.mxu2 %v8249_v21  ;;  %v15332_v21 = vld [vmem:[#allocation79_spill] sm:$0xff] }
0x1037   : > { %6554 = vst [vmem:[#allocation1 + $0x4] ss:$9 sm:$0xff] %v15319_v15  ;;  %v15326_v15 = vld [vmem:[#allocation73_spill] sm:$0xff] }
0x1038   : > { %6556 = vst [vmem:[#allocation1 + $0x5] ss:$9 sm:$0xff] %v15320_v1  ;;  %v15328_v1 = vld [vmem:[#allocation75_spill] sm:$0xff] }
0x1039   : > { %6558 = vst [vmem:[#allocation1 + $0x6] ss:$9 sm:$0xff] %v15321_v13  ;;  %v15329_v13 = vld [vmem:[#allocation76_spill] sm:$0xff] }
0x103a   : > { %6560 = vst [vmem:[#allocation1 + $0x7] ss:$9 sm:$0xff] %v15322_v2  ;;  %v15330_v2 = vld [vmem:[#allocation77_spill] sm:$0xff] }
0x1041   : > { %v13541_v24 = vld [vmem:[#allocation1] sm:$0xff] }
0x1042   : > { %6562 = vst [vmem:[#allocation1] ss:$9 sm:$0xff] %v15323_v57 }
0x1043   : > { %6563 = vst [vmem:[#allocation1 + $0x1] ss:$9 sm:$0xff] %v15324_v52 }
0x1044   : > { %6564 = vst [vmem:[#allocation1 + $0x2] ss:$9 sm:$0xff] %v15325_v56 }
0x1045   : > { %6565 = vst [vmem:[#allocation1 + $0x3] ss:$9 sm:$0xff] %v15326_v15 }
0x1046   : > { %6566 = vst [vmem:[#allocation1 + $0x4] ss:$9 sm:$0xff] %v15327_v45  ;;  %v15331_v45 = vld [vmem:[#allocation78_spill] sm:$0xff] }
0x1047   : > { %6567 = vst [vmem:[#allocation1 + $0x5] ss:$9 sm:$0xff] %v15328_v1  ;;  %v15333_v1 = vld [vmem:[#allocation80_spill] sm:$0xff] }
0x1048   : > { %6568 = vst [vmem:[#allocation1 + $0x6] ss:$9 sm:$0xff] %v15329_v13  ;;  %v15334_v13 = vld [vmem:[#allocation81_spill] sm:$0xff] }
0x1049   : > { %6569 = vst [vmem:[#allocation1 + $0x7] ss:$9 sm:$0xff] %v15330_v2  ;;  %v15335_v2 = vld [vmem:[#allocation82_spill] sm:$0xff] }
0x104b   : > { %v8372_v40 = vpop.permute.xlu2 %8371 }
0x104c   : > { %v8374_v57 = vunpack.i.h.bf16 %v8372_v40  ;;  %v8373_v35 = vunpack.i.l.bf16 %v8372_v40  ;;  %v15336_v40 = vld [vmem:[#allocation83_spill] sm:$0xff] }
0x104e   : > { %v6932_v52 = vsel %vm4940_vm8, %v13360_v9, %v8374_v57  ;;  %v6931_v56 = vsel %vm4940_vm8, %v13347_v29, %v8373_v35  ;;  %v15337_v9 = vld [vmem:[#allocation84_spill] sm:$0xff]  ;;  %v15338_v57 = vld [vmem:[#allocation85_spill] sm:$0xff]  ;;  %v15339_v35 = vld [vmem:[#allocation86_spill] sm:$0xff] }
0x104f   : > { %v6953_v36 = vpack.c.bf16 %v6932_v52, %v6931_v56  ;;  %v15341_v52 = vld [vmem:[#allocation88_spill] sm:$0xff]  ;;  %v15342_v56 = vld [vmem:[#allocation89_spill] sm:$0xff] }
0x1050   : > { %v13558_v15 = vld [vmem:[#allocation1] sm:$0xff] }
0x1051   : > { %7308 = vmatmul.bf16.vlgmr.msra.gmra.mxu2 %v6953_v36  ;;  %6571 = vst [vmem:[#allocation1] ss:$9 sm:$0xff] %v15331_v45  ;;  %v15340_v36 = vld [vmem:[#allocation87_spill] sm:$0xff]  ;;  %v15343_v45 = vld [vmem:[#allocation90_spill] sm:$0xff] }
0x1052   : > { %6572 = vst [vmem:[#allocation1 + $0x1] ss:$9 sm:$0xff] %v15332_v21  ;;  %v15344_v21 = vld [vmem:[#allocation91_spill] sm:$0xff] }
0x1053   : > { %6573 = vst [vmem:[#allocation1 + $0x2] ss:$9 sm:$0xff] %v15333_v1  ;;  %v15345_v1 = vld [vmem:[#allocation92_spill] sm:$0xff] }
0x1054   : > { %6574 = vst [vmem:[#allocation1 + $0x3] ss:$9 sm:$0xff] %v15334_v13  ;;  %v15346_v13 = vld [vmem:[#allocation93_spill] sm:$0xff] }
0x1055   : > { %6575 = vst [vmem:[#allocation1 + $0x4] ss:$9 sm:$0xff] %v15335_v2 }
0x1056   : > { %6576 = vst [vmem:[#allocation1 + $0x5] ss:$9 sm:$0xff] %v15336_v40  ;;  %v15347_v40 = vld [vmem:[#allocation94_spill] sm:$0xff] }
0x1057   : > { %6577 = vst [vmem:[#allocation1 + $0x6] ss:$9 sm:$0xff] %v15337_v9  ;;  %v15348_v9 = vld [vmem:[#allocation95_spill] sm:$0xff] }
0x1058   : > { %6578 = vst [vmem:[#allocation1 + $0x7] ss:$9 sm:$0xff] %v15338_v57  ;;  %v15349_v57 = vld [vmem:[#allocation96_spill] sm:$0xff] }
0x105f   : > { %v13568_v29 = vld [vmem:[#allocation1] sm:$0xff] }
0x1060   : > { %6580 = vst [vmem:[#allocation1] ss:$9 sm:$0xff] %v15339_v35  ;;  %v15350_v35 = vld [vmem:[#allocation97_spill] sm:$0xff] }
0x1061   : > { %6581 = vst [vmem:[#allocation1 + $0x1] ss:$9 sm:$0xff] %v15340_v36  ;;  %v15351_v36 = vld [vmem:[#allocation98_spill] sm:$0xff] }
0x1062   : > { %6582 = vst [vmem:[#allocation1 + $0x2] ss:$9 sm:$0xff] %v15341_v52  ;;  %v15352_v52 = vld [vmem:[#allocation99_spill] sm:$0xff] }
0x1063   : > { %6583 = vst [vmem:[#allocation1 + $0x3] ss:$9 sm:$0xff] %v15342_v56  ;;  %v15353_v56 = vld [vmem:[#allocation100_spill] sm:$0xff] }
0x1064   : > { %6584 = vst [vmem:[#allocation1 + $0x4] ss:$9 sm:$0xff] %v15343_v45  ;;  %v15354_v45 = vld [vmem:[#allocation101_spill] sm:$0xff] }
0x1065   : > { %6585 = vst [vmem:[#allocation1 + $0x5] ss:$9 sm:$0xff] %v15344_v21 }
0x1066   : > { %6586 = vst [vmem:[#allocation1 + $0x6] ss:$9 sm:$0xff] %v15345_v1  ;;  %v15355_v1 = vld [vmem:[#allocation102_spill] sm:$0xff] }
0x1067   : > { %6587 = vst [vmem:[#allocation1 + $0x7] ss:$9 sm:$0xff] %v15346_v13  ;;  %v15356_v13 = vld [vmem:[#allocation267_spill] sm:$0xff] }
0x106e   : > { %v13578_v2 = vld [vmem:[#allocation1] sm:$0xff] }
0x106f   : > { %6589 = vst [vmem:[#allocation1] ss:$9 sm:$0xff] %v15347_v40  ;;  %v15357_v40 = vld [vmem:[#allocation268_spill] sm:$0xff] }
0x1070   : > { %6590 = vst [vmem:[#allocation1 + $0x1] ss:$9 sm:$0xff] %v15348_v9  ;;  %v15358_v9 = vld [vmem:[#allocation104_spill] sm:$0xff] }
0x1071   : > { %6591 = vst [vmem:[#allocation1 + $0x2] ss:$9 sm:$0xff] %v15349_v57  ;;  %v15359_v57 = vld [vmem:[#allocation106_spill] sm:$0xff] }
0x1072   : > { %6592 = vst [vmem:[#allocation1 + $0x3] ss:$9 sm:$0xff] %v15350_v35  ;;  %v15360_v35 = vld [vmem:[#allocation107_spill] sm:$0xff] }
0x1073   : > { %6593 = vst [vmem:[#allocation1 + $0x4] ss:$9 sm:$0xff] %v15351_v36  ;;  %v15361_v36 = vld [vmem:[#allocation108_spill] sm:$0xff] }
0x1074   : > { %6594 = vst [vmem:[#allocation1 + $0x5] ss:$9 sm:$0xff] %v15352_v52  ;;  %v15362_v52 = vld [vmem:[#allocation109_spill] sm:$0xff] }
0x1075   : > { %6595 = vst [vmem:[#allocation1 + $0x6] ss:$9 sm:$0xff] %v15353_v56 }
0x1076   : > { %6596 = vst [vmem:[#allocation1 + $0x7] ss:$9 sm:$0xff] %v15354_v45  ;;  %v15363_v45 = vld [vmem:[#allocation110_spill] sm:$0xff] }
0x107d   : > { %v13588_v21 = vld [vmem:[#allocation1] sm:$0xff] }
0x107e   : > { %6598 = vst [vmem:[#allocation1] ss:$9 sm:$0xff] %v15355_v1  ;;  %v15364_v1 = vld [vmem:[#allocation111_spill] sm:$0xff] }
0x107f   : > { %6599 = vst [vmem:[#allocation1 + $0x1] ss:$9 sm:$0xff] %v15356_v13  ;;  %v15365_v13 = vld [vmem:[#allocation112_spill] sm:$0xff] }
0x1080   : > { %6600 = vst [vmem:[#allocation1 + $0x2] ss:$9 sm:$0xff] %v15357_v40  ;;  %v15366_v40 = vld [vmem:[#allocation273_spill] sm:$0xff] }
0x1081   : > { %6601 = vst [vmem:[#allocation1 + $0x3] ss:$9 sm:$0xff] %v15358_v9  ;;  %v15367_v9 = vld [vmem:[#allocation281_spill] sm:$0xff] }
0x1082   : > { %6602 = vst [vmem:[#allocation1 + $0x4] ss:$9 sm:$0xff] %v15359_v57  ;;  %v15368_v57 = vld [vmem:[#allocation113_spill] sm:$0xff] }
0x1083   : > { %6603 = vst [vmem:[#allocation1 + $0x5] ss:$9 sm:$0xff] %v15360_v35  ;;  %v15369_v35 = vld [vmem:[#allocation114_spill] sm:$0xff] }
0x1084   : > { %6604 = vst [vmem:[#allocation1 + $0x6] ss:$9 sm:$0xff] %v15361_v36  ;;  %v15370_v36 = vld [vmem:[#allocation115_spill] sm:$0xff] }
0x1085   : > { %6605 = vst [vmem:[#allocation1 + $0x7] ss:$9 sm:$0xff] %v15362_v52  ;;  %v15371_v52 = vld [vmem:[#allocation116_spill] sm:$0xff] }
0x108c   : > { %v13598_v56 = vld [vmem:[#allocation1] sm:$0xff] }
0x108d   : > { %6607 = vst [vmem:[#allocation1] ss:$9 sm:$0xff] %v15363_v45  ;;  %v15372_v45 = vld [vmem:[#allocation289_spill] sm:$0xff] }
0x1094   : > { %v13601_v33 = vld [vmem:[#allocation1] sm:$0xff] }
0x1095   : > { %6616 = vst [vmem:[#allocation1] ss:$9 sm:$0xff] %v15364_v1  ;;  %v15374_v1 = vld [vmem:[#allocation117_spill] sm:$0xff] }
0x1096   : > { %6618 = vst [vmem:[#allocation1 + $0x1] ss:$9 sm:$0xff] %v15365_v13  ;;  %v15375_v13 = vld [vmem:[#allocation118_spill] sm:$0xff] }
0x1097   : > { %6620 = vst [vmem:[#allocation1 + $0x2] ss:$9 sm:$0xff] %v15366_v40  ;;  %v15376_v40 = vld [vmem:[#allocation119_spill] sm:$0xff] }
0x1098   : > { %6622 = vst [vmem:[#allocation1 + $0x3] ss:$9 sm:$0xff] %v15367_v9  ;;  %v15377_v9 = vld [vmem:[#allocation120_spill] sm:$0xff] }
0x1099   : > { %6624 = vst [vmem:[#allocation1 + $0x4] ss:$9 sm:$0xff] %v15368_v57  ;;  %v15378_v57 = vld [vmem:[#allocation121_spill] sm:$0xff] }
0x109a   : > { %6626 = vst [vmem:[#allocation1 + $0x5] ss:$9 sm:$0xff] %v15369_v35  ;;  %v15379_v35 = vld [vmem:[#allocation122_spill] sm:$0xff] }
0x109b   : > { %6628 = vst [vmem:[#allocation1 + $0x6] ss:$9 sm:$0xff] %v15370_v36 }
0x109c   : > { %6630 = vst [vmem:[#allocation1 + $0x7] ss:$9 sm:$0xff] %v15371_v52  ;;  %v15380_v52 = vld [vmem:[#allocation123_spill] sm:$0xff] }
0x10a3   : > { %v6631_v26 = vld [vmem:[#allocation1] sm:$0xff] }
0x10a4   : > { %6632 = vst [vmem:[#allocation1] ss:$9 sm:$0xff] %v15372_v45  ;;  %v15383_v45 = vld [vmem:[#allocation126_spill] sm:$0xff] }
0x10a5   : > { %6633 = vst [vmem:[#allocation1 + $0x1] ss:$9 sm:$0xff] %v15373_v54  ;;  %v15382_v54 = vld [vmem:[#allocation125_spill] sm:$0xff] }
0x10a6   : > { %6634 = vst [vmem:[#allocation1 + $0x2] ss:$9 sm:$0xff] %v15374_v1  ;;  %v15384_v1 = vld [vmem:[#allocation127_spill] sm:$0xff] }
0x10a7   : > { %6635 = vst [vmem:[#allocation1 + $0x3] ss:$9 sm:$0xff] %v15375_v13  ;;  %v15385_v13 = vld [vmem:[#allocation128_spill] sm:$0xff] }
0x10a8   : > { %6636 = vst [vmem:[#allocation1 + $0x4] ss:$9 sm:$0xff] %v15376_v40  ;;  %v8382_v40 = vpop.permute.xlu1 %8381 }
0x10a9   : > { %6637 = vst [vmem:[#allocation1 + $0x5] ss:$9 sm:$0xff] %v15377_v9  ;;  %v15386_v9 = vld [vmem:[#allocation129_spill] sm:$0xff] }
0x10aa   : > { %6638 = vst [vmem:[#allocation1 + $0x6] ss:$9 sm:$0xff] %v15378_v57  ;;  %v8384_v57 = vunpack.i.h.bf16 %v8382_v40 }
0x10ab   : > { %6639 = vst [vmem:[#allocation1 + $0x7] ss:$9 sm:$0xff] %v15379_v35  ;;  %v8383_v35 = vunpack.i.l.bf16 %v8382_v40  ;;  %v15391_v40 = vld [vmem:[#allocation134_spill] sm:$0xff] }
0x10b2   : > { %v6640_v36 = vld [vmem:[#allocation1] sm:$0xff] }
0x10b3   : > { %v8375_v28 = vpack.i.bf16 %v6640_v36, %v6631_v26  ;;  %6641 = vst [vmem:[#allocation1] ss:$9 sm:$0xff] %v15380_v52  ;;  %v15387_v26 = vld [vmem:[#allocation130_spill] sm:$0xff]  ;;  %v6934_v36 = vsel %vm4940_vm8, %v13386_v31, %v8384_v57 }
0x10b4   : > { %6642 = vst [vmem:[#allocation1 + $0x1] ss:$9 sm:$0xff] %v15381_v48  ;;  %v8390_v48 = vpack.i.bf16 %v13509_v50, %v13483_v11  ;;  %v15392_v11 = vld [vmem:[#allocation135_spill] sm:$0xff]  ;;  %v15393_v50 = vld [vmem:[#allocation136_spill] sm:$0xff]  ;;  %v15395_v31 = vld [vmem:[#allocation138_spill] sm:$0xff] }
0x10b5   : > { %8376 = vrot.lane.b32.xlu0 %v8375_v28, %s8447_s25  ;;  %6643 = vst [vmem:[#allocation1 + $0x2] ss:$9 sm:$0xff] %v15382_v54  ;;  %v6933_v28 = vsel %vm4940_vm8, %v13373_v42, %v8383_v35  ;;  %v15394_v42 = vld [vmem:[#allocation137_spill] sm:$0xff] }
0x10b6   : > { %6644 = vst [vmem:[#allocation1 + $0x3] ss:$9 sm:$0xff] %v15383_v45  ;;  %v6958_v52 = vpack.c.bf16 %v6934_v36, %v6933_v28  ;;  %v15388_v45 = vld [vmem:[#allocation131_spill] sm:$0xff]  ;;  %v15398_v28 = vld [vmem:[#allocation141_spill] sm:$0xff]  ;;  %v15399_v36 = vld [vmem:[#allocation142_spill] sm:$0xff] }
0x10b7   : > { %6645 = vst [vmem:[#allocation1 + $0x4] ss:$9 sm:$0xff] %v15384_v1  ;;  %v15389_v1 = vld [vmem:[#allocation132_spill] sm:$0xff] }
0x10b8   : > { %6646 = vst [vmem:[#allocation1 + $0x5] ss:$9 sm:$0xff] %v15385_v13  ;;  %7313 = vmatmul.bf16.gmra.mxu2 %v6958_v52  ;;  %v15390_v13 = vld [vmem:[#allocation133_spill] sm:$0xff] }
0x10b9   : > { %6647 = vst [vmem:[#allocation1 + $0x6] ss:$9 sm:$0xff] %v15386_v9  ;;  %v13643_v9 = vpop.f32.mrf.mxu3 }
0x10ba   : > { %6648 = vst [vmem:[#allocation1 + $0x7] ss:$9 sm:$0xff] %v15387_v26  ;;  %v15396_v26 = vld [vmem:[#allocation139_spill] sm:$0xff] }
0x10bd   : > { %8391 = vrot.lane.b32.xlu0 %v8390_v48, %s8447_s25  ;;  %v15397_v48 = vld [vmem:[#allocation140_spill] sm:$0xff] }
0x10c1   : > { %v6649_v54 = vld [vmem:[#allocation1] sm:$0xff]  ;;  %v13650_v52 = vpop.f32.mrf.mxu3 }
0x10c2   : > { %6650 = vst [vmem:[#allocation1] ss:$9 sm:$0xff] %v15388_v45  ;;  %v15400_v45 = vld [vmem:[#allocation143_spill] sm:$0xff] }
0x10c3   : > { %6651 = vst [vmem:[#allocation1 + $0x1] ss:$9 sm:$0xff] %v15389_v1  ;;  %v15401_v1 = vld [vmem:[#allocation144_spill] sm:$0xff] }
0x10c4   : > { %6652 = vst [vmem:[#allocation1 + $0x2] ss:$9 sm:$0xff] %v15390_v13  ;;  %v15402_v13 = vld [vmem:[#allocation145_spill] sm:$0xff] }
0x10c5   : > { %6653 = vst [vmem:[#allocation1 + $0x3] ss:$9 sm:$0xff] %v15391_v40  ;;  %v15403_v40 = vld [vmem:[#allocation146_spill] sm:$0xff] }
0x10c6   : > { %6654 = vst [vmem:[#allocation1 + $0x4] ss:$9 sm:$0xff] %v15392_v11 }
0x10c7   : > { %6655 = vst [vmem:[#allocation1 + $0x5] ss:$9 sm:$0xff] %v15393_v50  ;;  %v15404_v50 = vld [vmem:[#allocation147_spill] sm:$0xff] }
0x10c8   : > { %6656 = vst [vmem:[#allocation1 + $0x6] ss:$9 sm:$0xff] %v15394_v42  ;;  %v15405_v42 = vld [vmem:[#allocation148_spill] sm:$0xff] }
0x10c9   : > { %6657 = vst [vmem:[#allocation1 + $0x7] ss:$9 sm:$0xff] %v15395_v31  ;;  %v15406_v31 = vld [vmem:[#allocation149_spill] sm:$0xff] }
0x10d0   : > { %v6658_v57 = vld [vmem:[#allocation1] sm:$0xff] }
0x10d1   : > { %v8385_v35 = vpack.i.bf16 %v6658_v57, %v6649_v54  ;;  %6659 = vst [vmem:[#allocation1] ss:$9 sm:$0xff] %v15396_v26  ;;  %v13656_v54 = vpop.f32.mrf.mxu3  ;;  %v15407_v57 = vld [vmem:[#allocation150_spill] sm:$0xff]  ;;  %v15409_v26 = vld [vmem:[#allocation152_spill] sm:$0xff] }
0x10d2   : > { %6660 = vst [vmem:[#allocation1 + $0x1] ss:$9 sm:$0xff] %v15397_v48  ;;  %v15410_v48 = vld [vmem:[#allocation153_spill] sm:$0xff] }
0x10d3   : > { %8386 = vrot.lane.b32.xlu2 %v8385_v35, %s8447_s25  ;;  %6661 = vst [vmem:[#allocation1 + $0x2] ss:$9 sm:$0xff] %v15398_v28  ;;  %v15408_v35 = vld [vmem:[#allocation151_spill] sm:$0xff] }
0x10d4   : > { %6662 = vst [vmem:[#allocation1 + $0x3] ss:$9 sm:$0xff] %v15399_v36  ;;  %v8264_v36 = vld [vmem:[%s14015_s15 + $0xb8] sm:$0xff] }
0x10d5   : > { %6663 = vst [vmem:[#allocation1 + $0x4] ss:$9 sm:$0xff] %v15400_v45  ;;  %v15411_v45 = vld [vmem:[#allocation154_spill] sm:$0xff]  ;;  %7328 = vmatpush.bf16.msra.mxu3 %v8264_v36 }
0x10d6   : > { %6664 = vst [vmem:[#allocation1 + $0x5] ss:$9 sm:$0xff] %v15401_v1  ;;  %v8263_v1 = vld [vmem:[%s14015_s15 + $0xb0] sm:$0xff] }
0x10d7   : > { %6665 = vst [vmem:[#allocation1 + $0x6] ss:$9 sm:$0xff] %v15402_v13  ;;  %v8262_v13 = vld [vmem:[%s14015_s15 + $0xa8] sm:$0xff] }
0x10d8   : > { %6666 = vst [vmem:[#allocation1 + $0x7] ss:$9 sm:$0xff] %v15403_v40 }
0x10d9   : > { %v13665_v28 = vpop.f32.mrf.mxu3  ;;  %7329 = vmatpush.bf16.msra.mxu3 %v8263_v1 }
0x10dd   : > { %7330 = vmatpush.bf16.msra.mxu3 %v8262_v13 }
0x10df   : > { %v6667_v11 = vld [vmem:[#allocation1] sm:$0xff] }
0x10e0   : > { %6668 = vst [vmem:[#allocation1] ss:$9 sm:$0xff] %v15404_v50 }
0x10e1   : > { %6669 = vst [vmem:[#allocation1 + $0x1] ss:$9 sm:$0xff] %v15405_v42  ;;  %v13677_v50 = vpop.f32.mrf.mxu3 }
0x10e2   : > { %6670 = vst [vmem:[#allocation1 + $0x2] ss:$9 sm:$0xff] %v15406_v31  ;;  %v15412_v31 = vld [vmem:[#allocation155_spill] sm:$0xff] }
0x10e3   : > { %6671 = vst [vmem:[#allocation1 + $0x3] ss:$9 sm:$0xff] %v15407_v57  ;;  %v8261_v57 = vld [vmem:[%s14015_s15 + $0xa0] sm:$0xff] }
0x10e4   : > { %6672 = vst [vmem:[#allocation1 + $0x4] ss:$9 sm:$0xff] %v15408_v35  ;;  %7331 = vmatpush.bf16.msra.mxu3 %v8261_v57  ;;  %v8260_v35 = vld [vmem:[%s14015_s15 + $0x98] sm:$0xff] }
0x10e5   : > { %6673 = vst [vmem:[#allocation1 + $0x5] ss:$9 sm:$0xff] %v15409_v26  ;;  %v15435_v57 = vld [vmem:[#allocation165_spill] sm:$0xff] }
0x10e6   : > { %6674 = vst [vmem:[#allocation1 + $0x6] ss:$9 sm:$0xff] %v15410_v48 }
0x10e7   : > { %6675 = vst [vmem:[#allocation1 + $0x7] ss:$9 sm:$0xff] %v15411_v45 }
0x10e8   : > { %7332 = vmatpush.bf16.msra.mxu3 %v8260_v35 }
0x10e9   : > { %v13687_v48 = vpop.f32.mrf.mxu3 }
0x10ee   : > { %v6676_v40 = vld [vmem:[#allocation1] sm:$0xff] }
0x10ef   : > { %v8395_v42 = vpack.i.bf16 %v6676_v40, %v6667_v11  ;;  %6677 = vst [vmem:[#allocation1] ss:$9 sm:$0xff] %v15412_v31  ;;  %v15434_v31 = vld [vmem:[#allocation164_spill] sm:$0xff] }
0x10f1   : > { %8396 = vrot.lane.b32.xlu1 %v8395_v42, %s8447_s25 }
0x10f6   : > { %v6678_v26 = vld [vmem:[#allocation1] sm:$0xff] }
0x10f7   : > { %v8400_v36 = vpack.i.bf16 %v6678_v26, %v13519_v8  ;;  %6700 = vst [vmem:[#allocation1] ss:$9 sm:$0xff] %v12473_v61  ;;  %v13699_v8 = vpop.f32.mrf.mxu3  ;;  %v15436_v26 = vld [vmem:[#allocation166_spill] sm:$0xff] }
0x10f8   : > { %6702 = vst [vmem:[#allocation1 + $0x1] ss:$9 sm:$0xff] %v13145_v19 }
0x10f9   : > { %8401 = vrot.lane.b32.xlu2 %v8400_v36, %s8447_s25  ;;  %6704 = vst [vmem:[#allocation1 + $0x2] ss:$9 sm:$0xff] %v13152_v59  ;;  %v15422_v59 = vld [vmem:[#allocation256_spill] sm:$0xff] }
0x10fa   : > { %6706 = vst [vmem:[#allocation1 + $0x3] ss:$9 sm:$0xff] %v13155_v4 }
0x10fb   : > { %6708 = vst [vmem:[#allocation1 + $0x4] ss:$9 sm:$0xff] %v13160_v53  ;;  %v15414_v53 = vrot.slane %v15314_v34, 2 }
0x10fc   : > { %6710 = vst [vmem:[#allocation1 + $0x5] ss:$9 sm:$0xff] %v13164_v14  ;;  %v8259_v14 = vld [vmem:[%s14015_s15 + $0x90] sm:$0xff] }
0x10fd   : > { %6712 = vst [vmem:[#allocation1 + $0x6] ss:$9 sm:$0xff] %v13168_v30  ;;  %7333 = vmatpush.bf16.msra.mxu3 %v8259_v14  ;;  %v15424_v30 = vld [vmem:[#allocation264_spill] sm:$0xff] }
0x10fe   : > { %6714 = vst [vmem:[#allocation1 + $0x7] ss:$9 sm:$0xff] %v12492_v23  ;;  %v15419_v23 = vld [vmem:[#allocation10_spill] sm:$0xff]  ;;  %v15438_v14 = vld [vmem:[#allocation168_spill] sm:$0xff] }
0x10ff   : > { %v7298_v19 = vpop.f32.mrf.mxu3 }
0x1100   : > { %v15437_v19 = vld [vmem:[#allocation167_spill] sm:$0xff] }
0x1105   : > { %v13701_v61 = vld [vmem:[#allocation1] sm:$0xff] }
0x1106   : > { %6716 = vst [vmem:[#allocation1] ss:$9 sm:$0xff] %v13173_v3 }
0x1107   : > { %6717 = vst [vmem:[#allocation1 + $0x1] ss:$9 sm:$0xff] %v13177_v58  ;;  %v15413_v58 = vrot.slane %v15314_v34, 1 }
0x1108   : > { %6718 = vst [vmem:[#allocation1 + $0x2] ss:$9 sm:$0xff] %v13183_v18 }
0x1109   : > { %6719 = vst [vmem:[#allocation1 + $0x3] ss:$9 sm:$0xff] %v13186_v0 }
0x110a   : > { %6720 = vst [vmem:[#allocation1 + $0x4] ss:$9 sm:$0xff] %v15295_v16 }
0x110b   : > { %6721 = vst [vmem:[#allocation1 + $0x5] ss:$9 sm:$0xff] %v15296_v55  ;;  %v15425_v55 = vld [vmem:[#allocation265_spill] sm:$0xff] }
0x110c   : > { %6722 = vst [vmem:[#allocation1 + $0x6] ss:$9 sm:$0xff] %v12511_v20  ;;  %v15420_v20 = vld [vmem:[#allocation254_spill] sm:$0xff] }
0x110d   : > { %6723 = vst [vmem:[#allocation1 + $0x7] ss:$9 sm:$0xff] %v15297_v32 }
0x1114   : > { %v13714_v4 = vld [vmem:[#allocation1] sm:$0xff] }
0x1115   : > { %6725 = vst [vmem:[#allocation1] ss:$9 sm:$0xff] %v15298_v43  ;;  %v15426_v43 = vld [vmem:[#allocation156_spill] sm:$0xff] }
0x1116   : > { %6726 = vst [vmem:[#allocation1 + $0x1] ss:$9 sm:$0xff] %v15301_v41  ;;  %v15427_v41 = vld [vmem:[#allocation157_spill] sm:$0xff] }
0x1117   : > { %6727 = vst [vmem:[#allocation1 + $0x2] ss:$9 sm:$0xff] %v15302_v6  ;;  %v15428_v6 = vld [vmem:[#allocation158_spill] sm:$0xff] }
0x1118   : > { %6728 = vst [vmem:[#allocation1 + $0x3] ss:$9 sm:$0xff] %v15303_v25  ;;  %v15429_v25 = vld [vmem:[#allocation159_spill] sm:$0xff] }
0x1119   : > { %6729 = vst [vmem:[#allocation1 + $0x4] ss:$9 sm:$0xff] %v15304_v51  ;;  %v15430_v51 = vld [vmem:[#allocation160_spill] sm:$0xff] }
0x111a   : > { %6730 = vst [vmem:[#allocation1 + $0x5] ss:$9 sm:$0xff] %v12530_v17  ;;  %v15421_v17 = vld [vmem:[#allocation255_spill] sm:$0xff] }
0x111b   : > { %6731 = vst [vmem:[#allocation1 + $0x6] ss:$9 sm:$0xff] %v15305_v39  ;;  %v15431_v39 = vld [vmem:[#allocation161_spill] sm:$0xff] }
0x111c   : > { %6732 = vst [vmem:[#allocation1 + $0x7] ss:$9 sm:$0xff] %v15306_v62  ;;  %v8258_v62 = vld [vmem:[%s14015_s15 + $0x88] sm:$0xff] }
0x111d   : > { %7334 = vmatpush.bf16.msra.mxu3 %v8258_v62  ;;  %v15450_v62 = vld [vmem:[#allocation180_spill] sm:$0xff] }
0x1123   : > { %v13724_v0 = vld [vmem:[#allocation1] sm:$0xff] }
0x1124   : > { %6734 = vst [vmem:[#allocation1] ss:$9 sm:$0xff] %v15307_v44 }
0x1125   : > { %6735 = vst [vmem:[#allocation1 + $0x1] ss:$9 sm:$0xff] %v15308_v38  ;;  %v15432_v38 = vld [vmem:[#allocation162_spill] sm:$0xff] }
0x1126   : > { %6736 = vst [vmem:[#allocation1 + $0x2] ss:$9 sm:$0xff] %v15309_v37 }
0x1127   : > { %6737 = vst [vmem:[#allocation1 + $0x3] ss:$9 sm:$0xff] %v15310_v22  ;;  %v8377_v44 = vpop.permute.xlu0 %8376 }
0x1128   : > { %6738 = vst [vmem:[#allocation1 + $0x4] ss:$9 sm:$0xff] %v12549_v5  ;;  %v15423_v5 = vld [vmem:[#allocation263_spill] sm:$0xff]  ;;  %v8379_v37 = vunpack.i.h.bf16 %v8377_v44  ;;  %v8378_v22 = vunpack.i.l.bf16 %v8377_v44  ;;  %v15451_v44 = vld [vmem:[#allocation181_spill] sm:$0xff] }
0x1129   : > { %6739 = vst [vmem:[#allocation1 + $0x5] ss:$9 sm:$0xff] %v15311_v60  ;;  %v15433_v60 = vld [vmem:[#allocation163_spill] sm:$0xff] }
0x112a   : > { %6740 = vst [vmem:[#allocation1 + $0x6] ss:$9 sm:$0xff] %v13258_v47  ;;  %v15415_v47 = vrot.slane %v15314_v34, 3  ;;  %v6938_v11 = vsel %vm4940_vm8, %v13541_v24, %v8378_v22  ;;  %v15454_v22 = vld [vmem:[#allocation184_spill] sm:$0xff] }
0x112b   : > { %6741 = vst [vmem:[#allocation1 + $0x7] ss:$9 sm:$0xff] %v13262_v46  ;;  %v15416_v46 = vrot.slane %v15314_v34, 4 }
0x112d   : > { %v8387_v36 = vpop.permute.xlu2 %8386 }
0x112f   : > { %v8392_v1 = vpop.permute.xlu0 %8391 }
0x1130   : > { %v8394_v40 = vunpack.i.h.bf16 %v8392_v1  ;;  %v8393_v42 = vunpack.i.l.bf16 %v8392_v1  ;;  %v15459_v1 = vld [vmem:[#allocation187_spill] sm:$0xff] }
0x1132   : > { %v13734_v18 = vld [vmem:[#allocation1] sm:$0xff]  ;;  %v6935_v35 = vsel %vm4940_vm8, %v13399_v27, %v8393_v42 }
0x1133   : > { %6743 = vst [vmem:[#allocation1] ss:$9 sm:$0xff] %v13266_v10  ;;  %v15417_v10 = vrot.slane %v15314_v34, 5  ;;  %v15462_v42 = vld [vmem:[#allocation190_spill] sm:$0xff] }
0x1134   : > { %6744 = vst [vmem:[#allocation1 + $0x1] ss:$9 sm:$0xff] %v15313_v7  ;;  %v8257_v7 = vld [vmem:[%s14015_s15 + $0x80] sm:$0xff] }
0x1135   : > { %6745 = vst [vmem:[#allocation1 + $0x2] ss:$9 sm:$0xff] %v13276_v12  ;;  %v15418_v12 = vrot.slane %v15314_v34, 6  ;;  %7335 = vmatpush.bf16.msra.mxu3 %v8257_v7  ;;  %v15456_v7 = vld [vmem:[#allocation186_spill] sm:$0xff] }
0x1136   : > { %6746 = vst [vmem:[#allocation1 + $0x3] ss:$9 sm:$0xff] %v15314_v34  ;;  %v6939_v34 = vsel %vm4940_vm8, %v13558_v15, %v8379_v37  ;;  %v6936_v15 = vsel %vm4940_vm8, %v13412_v49, %v8394_v40  ;;  %v15453_v37 = vld [vmem:[#allocation183_spill] sm:$0xff]  ;;  %v15461_v40 = vld [vmem:[#allocation189_spill] sm:$0xff] }
0x1137   : > { %6747 = vst [vmem:[#allocation1 + $0x4] ss:$9 sm:$0xff] %v15413_v58  ;;  %v6954_v45 = vpack.c.bf16 %v6939_v34, %v6938_v11  ;;  %v6963_v24 = vpack.c.bf16 %v6936_v15, %v6935_v35  ;;  %v15439_v58 = vld [vmem:[#allocation169_spill] sm:$0xff]  ;;  %v15457_v34 = vld [vmem:[#allocation15_spill] sm:$0xff]  ;;  %v15464_v35 = vld [vmem:[#allocation192_spill] sm:$0xff] }
0x1138   : > { %6748 = vst [vmem:[#allocation1 + $0x5] ss:$9 sm:$0xff] %v15414_v53  ;;  %v8389_v53 = vunpack.i.h.bf16 %v8387_v36  ;;  %v15465_v15 = vld [vmem:[#allocation193_spill] sm:$0xff] }
0x1139   : > { %6749 = vst [vmem:[#allocation1 + $0x6] ss:$9 sm:$0xff] %v15415_v47  ;;  %7336 = vmatmul.bf16.vlgmr.msra.gmra.mxu3 %v6954_v45  ;;  %7318 = vmatmul.bf16.gmra.mxu2 %v6963_v24  ;;  %v8388_v47 = vunpack.i.l.bf16 %v8387_v36  ;;  %v15458_v45 = vld [vmem:[#allocation7_spill] sm:$0xff] }
0x113a   : > { %6750 = vst [vmem:[#allocation1 + $0x7] ss:$9 sm:$0xff] %v15416_v46  ;;  %v15440_v46 = vld [vmem:[#allocation170_spill] sm:$0xff]  ;;  %v6941_v49 = vsel %vm4940_vm8, %v13578_v2, %v8389_v53  ;;  %v8276_v53 = vld [vmem:[%s14015_s15 + $0x118] sm:$0xff] }
0x113b   : > { %v6940_v27 = vsel %vm4940_vm8, %v13568_v29, %v8388_v47  ;;  %v15447_v29 = vld [vmem:[#allocation177_spill] sm:$0xff]  ;;  %v15448_v2 = vld [vmem:[#allocation178_spill] sm:$0xff]  ;;  %7388 = vmatpush.bf16.msrb.mxu3 %v8276_v53 }
0x113c   : > { %v15497_v53 = vld [vmem:[#allocation222_spill] sm:$0xff] }
0x1141   : > { %v13748_v3 = vld [vmem:[#allocation1] sm:$0xff] }
0x1142   : > { %6752 = vst [vmem:[#allocation1] ss:$9 sm:$0xff] %v15417_v10  ;;  %v15441_v10 = vld [vmem:[#allocation171_spill] sm:$0xff] }
0x1143   : > { %6753 = vst [vmem:[#allocation1 + $0x1] ss:$9 sm:$0xff] %v15418_v12  ;;  %v6959_v12 = vpack.c.bf16 %v6941_v49, %v6940_v27  ;;  %v15468_v27 = vld [vmem:[#allocation196_spill] sm:$0xff]  ;;  %v15469_v49 = vld [vmem:[#allocation197_spill] sm:$0xff] }
0x1144   : > { %6754 = vst [vmem:[#allocation1 + $0x2] ss:$9 sm:$0xff] %v15419_v23 }
0x1145   : > { %6755 = vst [vmem:[#allocation1 + $0x3] ss:$9 sm:$0xff] %v15420_v20 }
0x1146   : > { %6756 = vst [vmem:[#allocation1 + $0x4] ss:$9 sm:$0xff] %v15421_v17  ;;  %v15442_v17 = vld [vmem:[#allocation172_spill] sm:$0xff] }
0x1147   : > { %6757 = vst [vmem:[#allocation1 + $0x5] ss:$9 sm:$0xff] %v15422_v59  ;;  %v15443_v59 = vld [vmem:[#allocation173_spill] sm:$0xff] }
0x1148   : > { %6758 = vst [vmem:[#allocation1 + $0x6] ss:$9 sm:$0xff] %v15423_v5  ;;  %v15444_v5 = vld [vmem:[#allocation174_spill] sm:$0xff] }
0x1149   : > { %6759 = vst [vmem:[#allocation1 + $0x7] ss:$9 sm:$0xff] %v15424_v30  ;;  %7341 = vmatmul.bf16.gmra.mxu3 %v6959_v12  ;;  %v15445_v30 = vld [vmem:[#allocation175_spill] sm:$0xff]  ;;  %v15470_v12 = vld [vmem:[#allocation198_spill] sm:$0xff] }
0x1150   : > { %v13760_v16 = vld [vmem:[#allocation1] sm:$0xff] }
0x1151   : > { %6761 = vst [vmem:[#allocation1] ss:$9 sm:$0xff] %v15425_v55  ;;  %v15446_v55 = vld [vmem:[#allocation176_spill] sm:$0xff] }
0x1158   : > { %v13763_v32 = vld [vmem:[#allocation1] sm:$0xff] }
0x1159   : > { %6770 = vst [vmem:[#allocation1] ss:$9 sm:$0xff] %v15426_v43  ;;  %v8402_v43 = vpop.permute.xlu2 %8401 }
0x115a   : > { %6772 = vst [vmem:[#allocation1 + $0x1] ss:$9 sm:$0xff] %v15427_v41  ;;  %v8403_v41 = vunpack.i.l.bf16 %v8402_v43 }
0x115b   : > { %6774 = vst [vmem:[#allocation1 + $0x2] ss:$9 sm:$0xff] %v15428_v6  ;;  %v15449_v6 = vld [vmem:[#allocation179_spill] sm:$0xff] }
0x115c   : > { %6776 = vst [vmem:[#allocation1 + $0x3] ss:$9 sm:$0xff] %v15429_v25  ;;  %v6937_v25 = vsel %vm4940_vm8, %v13415_v63, %v8403_v41 }
0x115d   : > { %6778 = vst [vmem:[#allocation1 + $0x4] ss:$9 sm:$0xff] %v15430_v51  ;;  %v6968_v51 = vpack.c.bf16 %v6937_v25, %v6937_v25  ;;  %v15474_v25 = vld [vmem:[#allocation202_spill] sm:$0xff] }
0x115e   : > { %6780 = vst [vmem:[#allocation1 + $0x5] ss:$9 sm:$0xff] %v15431_v39 }
0x115f   : > { %6782 = vst [vmem:[#allocation1 + $0x6] ss:$9 sm:$0xff] %v15432_v38  ;;  %7323 = vmatmul.bf16.gmra.mxu2 %v6968_v51  ;;  %v15452_v38 = vld [vmem:[#allocation182_spill] sm:$0xff]  ;;  %v15475_v51 = vld [vmem:[#allocation5_spill] sm:$0xff] }
0x1160   : > { %6784 = vst [vmem:[#allocation1 + $0x7] ss:$9 sm:$0xff] %v15433_v60  ;;  %v15455_v60 = vld [vmem:[#allocation185_spill] sm:$0xff] }
0x1167   : > { %v6785_v13 = vld [vmem:[#allocation1] sm:$0xff] }
0x1168   : > { %6786 = vst [vmem:[#allocation1] ss:$9 sm:$0xff] %v15434_v31  ;;  %v15463_v31 = vld [vmem:[#allocation191_spill] sm:$0xff] }
0x1169   : > { %6787 = vst [vmem:[#allocation1 + $0x1] ss:$9 sm:$0xff] %v15435_v57  ;;  %v8397_v57 = vpop.permute.xlu1 %8396 }
0x116a   : > { %6788 = vst [vmem:[#allocation1 + $0x2] ss:$9 sm:$0xff] %v15436_v26  ;;  %v8399_v26 = vunpack.i.h.bf16 %v8397_v57  ;;  %v8398_v24 = vunpack.i.l.bf16 %v8397_v57 }
0x116b   : > { %6789 = vst [vmem:[#allocation1 + $0x3] ss:$9 sm:$0xff] %v15437_v19 }
0x116c   : > { %6790 = vst [vmem:[#allocation1 + $0x4] ss:$9 sm:$0xff] %v15438_v14  ;;  %v6942_v36 = vsel %vm4940_vm8, %v13588_v21, %v8398_v24  ;;  %v6943_v19 = vsel %vm4940_vm8, %v13598_v56, %v8399_v26  ;;  %v8271_v21 = vld [vmem:[%s14015_s15 + $0xf0] sm:$0xff]  ;;  %v15492_v26 = vld [vmem:[#allocation217_spill] sm:$0xff]  ;;  %v15493_v24 = vld [vmem:[#allocation218_spill] sm:$0xff] }
0x116d   : > { %6791 = vst [vmem:[#allocation1 + $0x5] ss:$9 sm:$0xff] %v15439_v58  ;;  %v6964_v14 = vpack.c.bf16 %v6943_v19, %v6942_v36  ;;  %v8272_v58 = vld [vmem:[%s14015_s15 + $0xf8] sm:$0xff]  ;;  %v8275_v56 = vld [vmem:[%s14015_s15 + $0x110] sm:$0xff] }
0x116e   : > { %6792 = vst [vmem:[#allocation1 + $0x6] ss:$9 sm:$0xff] %v15440_v46  ;;  %v15466_v46 = vld [vmem:[#allocation194_spill] sm:$0xff]  ;;  %7356 = vmatpush.bf16.msrb.mxu2 %v8272_v58  ;;  %7389 = vmatpush.bf16.msrb.mxu3 %v8275_v56  ;;  %v15494_v36 = vld [vmem:[#allocation219_spill] sm:$0xff]  ;;  %v15495_v19 = vld [vmem:[#allocation220_spill] sm:$0xff] }
0x116f   : > { %6793 = vst [vmem:[#allocation1 + $0x7] ss:$9 sm:$0xff] %v15441_v10  ;;  %7346 = vmatmul.bf16.gmra.mxu3 %v6964_v14  ;;  %v15467_v10 = vld [vmem:[#allocation195_spill] sm:$0xff]  ;;  %v15496_v14 = vld [vmem:[#allocation221_spill] sm:$0xff]  ;;  %v15499_v56 = vld [vmem:[#allocation224_spill] sm:$0xff] }
0x1170   : > { %v8267_v58 = vld [vmem:[%s14015_s15 + $0xd0] sm:$0xff] }
0x1172   : > { %7357 = vmatpush.bf16.msrb.mxu2 %v8271_v21  ;;  %v7309_v21 = vpop.f32.mrf.mxu2 }
0x1176   : > { %v6794_v23 = vld [vmem:[#allocation1] sm:$0xff] }
0x1177   : > { %v8405_v20 = vpack.i.bf16 %v6794_v23, %v6785_v13  ;;  %6795 = vst [vmem:[#allocation1] ss:$9 sm:$0xff] %v15442_v17  ;;  %v15460_v13 = vld [vmem:[#allocation188_spill] sm:$0xff]  ;;  %v8270_v23 = vld [vmem:[%s14015_s15 + $0xe8] sm:$0xff] }
0x1178   : > { %6796 = vst [vmem:[#allocation1 + $0x1] ss:$9 sm:$0xff] %v15443_v59  ;;  %v8274_v17 = vld [vmem:[%s14015_s15 + $0x108] sm:$0xff]  ;;  %v15472_v59 = vld [vmem:[#allocation200_spill] sm:$0xff]  ;;  %7358 = vmatpush.bf16.msrb.mxu2 %v8270_v23 }
0x1179   : > { %8406 = vrot.lane.b32.xlu0 %v8405_v20, %s8447_s25  ;;  %6797 = vst [vmem:[#allocation1 + $0x2] ss:$9 sm:$0xff] %v15444_v5  ;;  %v15471_v20 = vld [vmem:[#allocation199_spill] sm:$0xff]  ;;  %v8404_v5 = vunpack.i.h.bf16 %v8402_v43  ;;  %7390 = vmatpush.bf16.msrb.mxu3 %v8274_v17  ;;  %v15503_v23 = vld [vmem:[#allocation228_spill] sm:$0xff]  ;;  %v15504_v17 = vld [vmem:[#allocation229_spill] sm:$0xff] }
0x117a   : > { %6798 = vst [vmem:[#allocation1 + $0x3] ss:$9 sm:$0xff] %v15445_v30  ;;  %v15473_v30 = vld [vmem:[#allocation201_spill] sm:$0xff] }
0x117b   : > { %6799 = vst [vmem:[#allocation1 + $0x4] ss:$9 sm:$0xff] %v15446_v55  ;;  %v8273_v55 = vld [vmem:[%s14015_s15 + $0x100] sm:$0xff] }
0x117c   : > { %6800 = vst [vmem:[#allocation1 + $0x5] ss:$9 sm:$0xff] %v15447_v29  ;;  %v6944_v29 = vsel %vm4940_vm8, %v13601_v33, %v8404_v5  ;;  %v15479_v33 = vld [vmem:[#allocation205_spill] sm:$0xff]  ;;  %v15506_v5 = vld [vmem:[#allocation231_spill] sm:$0xff] }
0x117d   : > { %6801 = vst [vmem:[#allocation1 + $0x6] ss:$9 sm:$0xff] %v15448_v2  ;;  %7391 = vmatpush.bf16.msrb.mxu3 %v8273_v55  ;;  %v6969_v41 = vpack.c.bf16 %v6944_v29, %v6944_v29 }
0x117e   : > { %6802 = vst [vmem:[#allocation1 + $0x7] ss:$9 sm:$0xff] %v15449_v6 }
0x117f   : > { %7351 = vmatmul.bf16.gmra.mxu3 %v6969_v41  ;;  %v8265_v41 = vld [vmem:[%s14015_s15 + $0xc0] sm:$0xff] }
0x1185   : > { %v6803_v39 = vld [vmem:[#allocation1] sm:$0xff] }
0x1186   : > { %6804 = vst [vmem:[#allocation1] ss:$9 sm:$0xff] %v15450_v62  ;;  %v15477_v62 = vld [vmem:[#allocation204_spill] sm:$0xff] }
0x1187   : > { %6805 = vst [vmem:[#allocation1 + $0x1] ss:$9 sm:$0xff] %v15451_v44  ;;  %v15478_v44 = vld [vmem:[#allocation8_spill] sm:$0xff] }
0x1188   : > { %6806 = vst [vmem:[#allocation1 + $0x2] ss:$9 sm:$0xff] %v15452_v38  ;;  %v15480_v38 = vld [vmem:[#allocation206_spill] sm:$0xff] }
0x1189   : > { %6807 = vst [vmem:[#allocation1 + $0x3] ss:$9 sm:$0xff] %v15453_v37  ;;  %v8269_v37 = vld [vmem:[%s14015_s15 + $0xe0] sm:$0xff] }
0x118a   : > { %6808 = vst [vmem:[#allocation1 + $0x4] ss:$9 sm:$0xff] %v15454_v22  ;;  %v15481_v22 = vld [vmem:[#allocation207_spill] sm:$0xff]  ;;  %7359 = vmatpush.bf16.msrb.mxu2 %v8269_v37 }
0x118b   : > { %6809 = vst [vmem:[#allocation1 + $0x5] ss:$9 sm:$0xff] %v15455_v60  ;;  %v15482_v60 = vld [vmem:[#allocation208_spill] sm:$0xff] }
0x118c   : > { %6810 = vst [vmem:[#allocation1 + $0x6] ss:$9 sm:$0xff] %v15456_v7  ;;  %v8268_v7 = vld [vmem:[%s14015_s15 + $0xd8] sm:$0xff] }
0x118d   : > { %6811 = vst [vmem:[#allocation1 + $0x7] ss:$9 sm:$0xff] %v15457_v34 }
0x118e   : > { %7360 = vmatpush.bf16.msrb.mxu2 %v8268_v7  ;;  %v15514_v7 = vld [vmem:[#allocation239_spill] sm:$0xff] }
0x1192   : > { %7361 = vmatpush.bf16.msrb.mxu2 %v8267_v58 }
0x1194   : > { %v6812_v63 = vld [vmem:[#allocation1] sm:$0xff] }
0x1195   : > { %v8410_v11 = vpack.i.bf16 %v6812_v63, %v6803_v39  ;;  %6813 = vst [vmem:[#allocation1] ss:$9 sm:$0xff] %v15458_v45  ;;  %v15476_v39 = vld [vmem:[#allocation203_spill] sm:$0xff]  ;;  %v15483_v63 = vld [vmem:[#allocation209_spill] sm:$0xff] }
0x1196   : > { %6814 = vst [vmem:[#allocation1 + $0x1] ss:$9 sm:$0xff] %v15459_v1  ;;  %v15485_v45 = vld [vmem:[#allocation9_spill] sm:$0xff]  ;;  %v15486_v1 = vld [vmem:[#allocation211_spill] sm:$0xff] }
0x1197   : > { %8411 = vrot.lane.b32.xlu1 %v8410_v11, %s8447_s25  ;;  %6815 = vst [vmem:[#allocation1 + $0x2] ss:$9 sm:$0xff] %v15460_v13  ;;  %v15484_v11 = vld [vmem:[#allocation210_spill] sm:$0xff]  ;;  %v15487_v13 = vld [vmem:[#allocation212_spill] sm:$0xff] }
0x1198   : > { %6816 = vst [vmem:[#allocation1 + $0x3] ss:$9 sm:$0xff] %v15461_v40  ;;  %v15488_v40 = vld [vmem:[#allocation213_spill] sm:$0xff] }
0x1199   : > { %6817 = vst [vmem:[#allocation1 + $0x4] ss:$9 sm:$0xff] %v15462_v42  ;;  %v15489_v42 = vld [vmem:[#allocation214_spill] sm:$0xff] }
0x119a   : > { %6818 = vst [vmem:[#allocation1 + $0x5] ss:$9 sm:$0xff] %v15463_v31  ;;  %v15490_v31 = vld [vmem:[#allocation215_spill] sm:$0xff] }
0x119b   : > { %6819 = vst [vmem:[#allocation1 + $0x6] ss:$9 sm:$0xff] %v15464_v35 }
0x119c   : > { %6820 = vst [vmem:[#allocation1 + $0x7] ss:$9 sm:$0xff] %v15465_v15  ;;  %v15491_v15 = vld [vmem:[#allocation216_spill] sm:$0xff] }
0x11a3   : > { %v6821_v47 = vld [vmem:[#allocation1] sm:$0xff] }
0x11a4   : > { %6822 = vst [vmem:[#allocation1] ss:$9 sm:$0xff] %v15466_v46  ;;  %v8266_v46 = vld [vmem:[%s14015_s15 + $0xc8] sm:$0xff] }
0x11a5   : > { %6823 = vst [vmem:[#allocation1 + $0x1] ss:$9 sm:$0xff] %v15467_v10  ;;  %7362 = vmatpush.bf16.msrb.mxu2 %v8266_v46 }
0x11a6   : > { %6824 = vst [vmem:[#allocation1 + $0x2] ss:$9 sm:$0xff] %v15468_v27  ;;  %v15500_v27 = vld [vmem:[#allocation225_spill] sm:$0xff] }
0x11a7   : > { %6825 = vst [vmem:[#allocation1 + $0x3] ss:$9 sm:$0xff] %v15469_v49  ;;  %v15501_v49 = vld [vmem:[#allocation226_spill] sm:$0xff] }
0x11a8   : > { %6826 = vst [vmem:[#allocation1 + $0x4] ss:$9 sm:$0xff] %v15470_v12  ;;  %v15502_v12 = vld [vmem:[#allocation227_spill] sm:$0xff] }
0x11a9   : > { %6827 = vst [vmem:[#allocation1 + $0x5] ss:$9 sm:$0xff] %v15471_v20  ;;  %v7311_v20 = vpop.f32.mrf.mxu2  ;;  %7363 = vmatpush.bf16.msrb.mxu2 %v8265_v41 }
0x11aa   : > { %6828 = vst [vmem:[#allocation1 + $0x6] ss:$9 sm:$0xff] %v15472_v59  ;;  %v15505_v59 = vld [vmem:[#allocation230_spill] sm:$0xff]  ;;  %v7312_v58 = vadd.f32 %v7311_v20, %v13650_v52 }
0x11ab   : > { %6829 = vst [vmem:[#allocation1 + $0x7] ss:$9 sm:$0xff] %v15473_v30 }
0x11b1   : > { %v7314_v30 = vpop.f32.mrf.mxu2 }
0x11b2   : > { %v6830_v2 = vld [vmem:[#allocation1] sm:$0xff] }
0x11b3   : > { %v8415_v6 = vpack.i.bf16 %v6830_v2, %v6821_v47  ;;  %6831 = vst [vmem:[#allocation1] ss:$9 sm:$0xff] %v15474_v25  ;;  %v15498_v47 = vld [vmem:[#allocation223_spill] sm:$0xff]  ;;  %v15507_v2 = vld [vmem:[#allocation232_spill] sm:$0xff]  ;;  %v15508_v25 = vld [vmem:[#allocation233_spill] sm:$0xff] }
0x11b5   : > { %8416 = vrot.lane.b32.xlu2 %v8415_v6, %s8447_s25 }
0x11ba   : > { %v6832_v43 = vld [vmem:[#allocation1] sm:$0xff] }
0x11bb   : > { %6845 = vrot.lane.b32.xlu0 %v6832_v43, %s8447_s25  ;;  %6854 = vst [vmem:[#allocation1] ss:$9 sm:$0xff] %v15475_v51 }
0x11bc   : > { %6856 = vst [vmem:[#allocation1 + $0x1] ss:$9 sm:$0xff] %v15476_v39  ;;  %v15509_v39 = vld [vmem:[#allocation234_spill] sm:$0xff] }
0x11bd   : > { %6858 = vst [vmem:[#allocation1 + $0x2] ss:$9 sm:$0xff] %v15477_v62  ;;  %v15510_v62 = vld [vmem:[#allocation235_spill] sm:$0xff] }
0x11be   : > { %6860 = vst [vmem:[#allocation1 + $0x3] ss:$9 sm:$0xff] %v15478_v44 }
0x11bf   : > { %6862 = vst [vmem:[#allocation1 + $0x4] ss:$9 sm:$0xff] %v15479_v33 }
0x11c0   : > { %6864 = vst [vmem:[#allocation1 + $0x5] ss:$9 sm:$0xff] %v15480_v38  ;;  %v15511_v38 = vld [vmem:[#allocation236_spill] sm:$0xff] }
0x11c1   : > { %6866 = vst [vmem:[#allocation1 + $0x6] ss:$9 sm:$0xff] %v15481_v22  ;;  %v15512_v22 = vld [vmem:[#allocation237_spill] sm:$0xff] }
0x11c2   : > { %6868 = vst [vmem:[#allocation1 + $0x7] ss:$9 sm:$0xff] %v15482_v60  ;;  %v15513_v60 = vld [vmem:[#allocation238_spill] sm:$0xff] }
0x11c9   : > { %v6869_v34 = vld [vmem:[#allocation1] sm:$0xff] }
0x11ca   : > { %6870 = vst [vmem:[#allocation1] ss:$9 sm:$0xff] %v15483_v63 }
0x11cb   : > { %6871 = vst [vmem:[#allocation1 + $0x1] ss:$9 sm:$0xff] %v15484_v11  ;;  %v7310_v11 = vadd.f32 %v7309_v21, %v13643_v9 }
0x11cc   : > { %6872 = vst [vmem:[#allocation1 + $0x2] ss:$9 sm:$0xff] %v15485_v45  ;;  %v15515_v45 = vld [vmem:[#allocation240_spill] sm:$0xff] }
0x11cd   : > { %6873 = vst [vmem:[#allocation1 + $0x3] ss:$9 sm:$0xff] %v15486_v1 }
0x11ce   : > { %6874 = vst [vmem:[#allocation1 + $0x4] ss:$9 sm:$0xff] %v15487_v13  ;;  %v15517_v13 = vld [vmem:[#allocation242_spill] sm:$0xff] }
0x11cf   : > { %6875 = vst [vmem:[#allocation1 + $0x5] ss:$9 sm:$0xff] %v15488_v40 }
0x11d0   : > { %6876 = vst [vmem:[#allocation1 + $0x6] ss:$9 sm:$0xff] %v15489_v42  ;;  %v15518_v42 = vld [vmem:[#allocation243_spill] sm:$0xff] }
0x11d1   : > { %6877 = vst [vmem:[#allocation1 + $0x7] ss:$9 sm:$0xff] %v15490_v31 }
0x11d8   : > { %v6878_v57 = vld [vmem:[#allocation1] sm:$0xff] }
0x11d9   : > { %v6956_v35 = vpack.c.bf16 %v6878_v57, %v6869_v34  ;;  %6879 = vst [vmem:[#allocation1] ss:$9 sm:$0xff] %v15491_v15  ;;  %v13926_v34 = vpop.f32.mrf.mxu2  ;;  %v15519_v57 = vld [vmem:[#allocation244_spill] sm:$0xff] }
0x11da   : > { %6880 = vst [vmem:[#allocation1 + $0x1] ss:$9 sm:$0xff] %v15492_v26  ;;  %v15520_v26 = vld [vmem:[#allocation245_spill] sm:$0xff] }
0x11db   : > { %8136 = vmatmul.msk.bf16.vlgmr.msrb.gmra.mxu3 %vm4940_vm8, %v6956_v35  ;;  %6881 = vst [vmem:[#allocation1 + $0x2] ss:$9 sm:$0xff] %v15493_v24  ;;  %v15521_v24 = vld [vmem:[#allocation246_spill] sm:$0xff] }
0x11dc   : > { %6882 = vst [vmem:[#allocation1 + $0x3] ss:$9 sm:$0xff] %v15494_v36 }
0x11dd   : > { %6883 = vst [vmem:[#allocation1 + $0x4] ss:$9 sm:$0xff] %v15495_v19  ;;  %v15522_v19 = vld [vmem:[#allocation247_spill] sm:$0xff] }
0x11de   : > { %6884 = vst [vmem:[#allocation1 + $0x5] ss:$9 sm:$0xff] %v15496_v14 }
0x11df   : > { %6885 = vst [vmem:[#allocation1 + $0x6] ss:$9 sm:$0xff] %v15497_v53 }
0x11e0   : > { %6886 = vst [vmem:[#allocation1 + $0x7] ss:$9 sm:$0xff] %v15498_v47 }
0x11e1   : > { %v7319_v1 = vpop.f32.mrf.mxu2 }
0x11e7   : > { %v6887_v10 = vld [vmem:[#allocation1] sm:$0xff] }
0x11e8   : > { %6888 = vst [vmem:[#allocation1] ss:$9 sm:$0xff] %v15499_v56 }
0x11e9   : > { %6889 = vst [vmem:[#allocation1 + $0x1] ss:$9 sm:$0xff] %v15500_v27  ;;  %v7321_v46 = vpop.f32.mrf.mxu2  ;;  %v15523_v27 = vld [vmem:[#allocation248_spill] sm:$0xff] }
0x11ea   : > { %6890 = vst [vmem:[#allocation1 + $0x2] ss:$9 sm:$0xff] %v15501_v49  ;;  %v7315_v49 = vadd.f32 %v7314_v30, %v13656_v54  ;;  %v7320_v54 = vadd.f32 %v7319_v1, %v13677_v50 }
0x11eb   : > { %6891 = vst [vmem:[#allocation1 + $0x3] ss:$9 sm:$0xff] %v15502_v12  ;;  %v8407_v6 = vpop.permute.xlu0 %8406 }
0x11ec   : > { %6892 = vst [vmem:[#allocation1 + $0x4] ss:$9 sm:$0xff] %v15503_v23  ;;  %v8409_v43 = vunpack.i.h.bf16 %v8407_v6  ;;  %v8408_v51 = vunpack.i.l.bf16 %v8407_v6 }
0x11ed   : > { %6893 = vst [vmem:[#allocation1 + $0x5] ss:$9 sm:$0xff] %v15504_v17 }
0x11ee   : > { %6894 = vst [vmem:[#allocation1 + $0x6] ss:$9 sm:$0xff] %v15505_v59  ;;  %v6946_v44 = vsel %vm4940_vm8, %v13714_v4, %v8409_v43  ;;  %v6945_v33 = vsel %vm4940_vm8, %v13701_v61, %v8408_v51  ;;  %v15516_v4 = vld [vmem:[#allocation241_spill] sm:$0xff]  ;;  %v7337_v61 = vpop.f32.mrf.mxu3 }
0x11ef   : > { %6895 = vst [vmem:[#allocation1 + $0x7] ss:$9 sm:$0xff] %v15506_v5  ;;  %v6955_v37 = vpack.c.bf16 %v6946_v44, %v6945_v33  ;;  %v7338_v40 = vadd.f32 %v7337_v61, %v7310_v11  ;;  %v7317_v61 = vadd.f32 %v13926_v34, %v13665_v28 }
0x11f1   : > { %7364 = vmatmul.bf16.vlgmr.msrb.gmra.mxu2 %v6955_v37  ;;  %v7324_v17 = vpop.f32.mrf.mxu2 }
0x11f6   : > { %v6896_v55 = vld [vmem:[#allocation1] sm:$0xff]  ;;  %v7339_v53 = vpop.f32.mrf.mxu3 }
0x11f7   : > { %v6961_v29 = vpack.c.bf16 %v6896_v55, %v6887_v10  ;;  %6897 = vst [vmem:[#allocation1] ss:$9 sm:$0xff] %v15507_v2  ;;  %v7340_v47 = vadd.f32 %v7339_v53, %v7312_v58 }
0x11f8   : > { %6898 = vst [vmem:[#allocation1 + $0x1] ss:$9 sm:$0xff] %v15508_v25 }
0x11f9   : > { %8137 = vmatmul.msk.bf16.gmra.mxu3 %vm4940_vm8, %v6961_v29  ;;  %6899 = vst [vmem:[#allocation1 + $0x2] ss:$9 sm:$0xff] %v15509_v39  ;;  %v7326_v55 = vpop.f32.mrf.mxu2  ;;  %v7325_v39 = vadd.f32 %v7324_v17, %v13699_v8 }
0x11fa   : > { %6900 = vst [vmem:[#allocation1 + $0x3] ss:$9 sm:$0xff] %v15510_v62 }
0x11fb   : > { %6901 = vst [vmem:[#allocation1 + $0x4] ss:$9 sm:$0xff] %v15511_v38 }
0x11fc   : > { %6902 = vst [vmem:[#allocation1 + $0x5] ss:$9 sm:$0xff] %v15512_v22 }
0x11fd   : > { %6903 = vst [vmem:[#allocation1 + $0x6] ss:$9 sm:$0xff] %v15513_v60 }
0x11fe   : > { %6904 = vst [vmem:[#allocation1 + $0x7] ss:$9 sm:$0xff] %v15514_v7 }
0x1205   : > { %v6905_v63 = vld [vmem:[#allocation1] sm:$0xff] }
0x1206   : > { %6906 = vst [vmem:[#allocation1] ss:$9 sm:$0xff] %v15515_v45 }
0x1207   : > { %6907 = vst [vmem:[#allocation1 + $0x1] ss:$9 sm:$0xff] %v15516_v4 }
0x1208   : > { %6908 = vst [vmem:[#allocation1 + $0x2] ss:$9 sm:$0xff] %v15517_v13 }
0x1209   : > { %6909 = vst [vmem:[#allocation1 + $0x3] ss:$9 sm:$0xff] %v15518_v42  ;;  %v8412_v31 = vpop.permute.xlu1 %8411 }
0x120a   : > { %6910 = vst [vmem:[#allocation1 + $0x4] ss:$9 sm:$0xff] %v15519_v57  ;;  %v8414_v35 = vunpack.i.h.bf16 %v8412_v31  ;;  %v8413_v15 = vunpack.i.l.bf16 %v8412_v31 }
0x120b   : > { %6911 = vst [vmem:[#allocation1 + $0x5] ss:$9 sm:$0xff] %v15520_v26 }
0x120c   : > { %6912 = vst [vmem:[#allocation1 + $0x6] ss:$9 sm:$0xff] %v15521_v24  ;;  %v6947_v9 = vsel %vm4940_vm8, %v13724_v0, %v8413_v15  ;;  %v6948_v36 = vsel %vm4940_vm8, %v13734_v18, %v8414_v35  ;;  %v7342_v18 = vpop.f32.mrf.mxu3 }
0x120d   : > { %6913 = vst [vmem:[#allocation1 + $0x7] ss:$9 sm:$0xff] %v15522_v19  ;;  %v6960_v14 = vpack.c.bf16 %v6948_v36, %v6947_v9  ;;  %v7343_v23 = vadd.f32 %v7342_v18, %v7315_v49  ;;  %v15526_v18 = vld [vmem:[#allocation18_spill] sm:$0xff] }
0x120f   : > { %7369 = vmatmul.bf16.gmra.mxu2 %v6960_v14  ;;  %v8417_v21 = vpop.permute.xlu2 %8416 }
0x1210   : > { %v8419_v0 = vunpack.i.h.bf16 %v8417_v21  ;;  %v8418_v12 = vunpack.i.l.bf16 %v8417_v21 }
0x1212   : > { %v6949_v52 = vsel %vm4940_vm8, %v13748_v3, %v8418_v12  ;;  %v6950_v20 = vsel %vm4940_vm8, %v13760_v16, %v8419_v0  ;;  %v7322_v3 = vadd.f32 %v7321_v46, %v13687_v48  ;;  %v15525_v0 = vld [vmem:[#allocation17_spill] sm:$0xff] }
0x1213   : > { %v6965_v59 = vpack.c.bf16 %v6950_v20, %v6949_v52  ;;  %v15527_v52 = vld [vmem:[#allocation19_spill] sm:$0xff] }
0x1214   : > { %v6914_v10 = vld [vmem:[#allocation1] sm:$0xff]  ;;  %v7344_v5 = vpop.f32.mrf.mxu3 }
0x1215   : > { %v6966_v56 = vpack.c.bf16 %v6914_v10, %v6905_v63  ;;  %6915 = vst [vmem:[#allocation1] ss:$9 sm:$0xff] %v15523_v27  ;;  %v7345_v1 = vadd.f32 %v7344_v5, %v7317_v61  ;;  %v15524_v10 = vld [vmem:[#allocation6_spill] sm:$0xff]  ;;  %v8430_v27 = vld [vmem:[%s14016_s16] ss:$0 sm:$0xff] }
0x1217   : > { %8138 = vmatmul.msk.bf16.gmra.mxu3 %vm4940_vm8, %v6966_v56 }
0x121c   : > { %v6916_v29 = vld [vmem:[#allocation1] sm:$0xff]  ;;  %v7347_v30 = vpop.f32.mrf.mxu3 }
0x121d   : > { %v6971_v2 = vpack.c.bf16 %v6916_v29, %v6916_v29  ;;  %v7348_v41 = vadd.f32 %v7347_v30, %v7320_v54 }
0x121f   : > { %7374 = vmatmul.bf16.gmra.mxu2 %v6965_v59  ;;  %v8431_v59 = vld [vmem:[%s14017_s17] ss:$0 sm:$0xff] }
0x1224   : > { %v7349_v16 = vpop.f32.mrf.mxu3 }
0x1225   : > { %v7350_v51 = vadd.f32 %v7349_v16, %v7322_v3 }
0x1227   : > { %8139 = vmatmul.msk.bf16.gmra.mxu3 %vm4940_vm8, %v6971_v2 }
0x122c   : > { %v7352_v62 = vpop.f32.mrf.mxu3 }
0x122d   : > { %v6846_v6 = vpop.permute.xlu0 %6845  ;;  %v7353_v44 = vadd.f32 %v7352_v62, %v7325_v39 }
0x122e   : > { %v6951_v25 = vsel %vm4940_vm8, %v13763_v32, %v6846_v6  ;;  %v15528_v6 = vld [vmem:[#allocation21_spill] sm:$0xff] }
0x122f   : > { %v6970_v43 = vpack.c.bf16 %v6951_v25, %v6951_v25 }
0x1231   : > { %7379 = vmatmul.bf16.gmra.mxu2 %v6970_v43 }
0x1234   : > { %v7354_v33 = vpop.f32.mrf.mxu3 }
0x125e   : > { %v7393_v50 = vpop.f32.mrf.mxu3 }
0x1266   : > { %v7395_v38 = vpop.f32.mrf.mxu3 }
0x1274   : > { %v7365_v37 = vpop.f32.mrf.mxu2 }
0x1275   : > { %v7366_v22 = vadd.f32 %v7365_v37, %v7338_v40 }
0x1277   : > { %v7394_v60 = vadd.f32 %v7393_v50, %v7366_v22 }
0x1279   : > { %7419 = vrot.lane.b32.xlu1 %v7394_v60, %s8449_s4 }
0x127c   : > { %v7398_v7 = vpop.f32.mrf.mxu3  ;;  %v7367_v32 = vpop.f32.mrf.mxu2 }
0x127d   : > { %v7368_v48 = vadd.f32 %v7367_v32, %v7340_v47 }
0x127f   : > { %v7396_v63 = vadd.f32 %v7395_v38, %v7368_v48 }
0x1281   : > { %7421 = vrot.lane.b32.xlu2 %v7396_v63, %s8449_s4 }
0x1284   : > { %v7400_v11 = vpop.f32.mrf.mxu3 }
0x1292   : > { %v7370_v45 = vpop.f32.mrf.mxu2 }
0x1293   : > { %v7371_v8 = vadd.f32 %v7370_v45, %v7343_v23 }
0x1295   : > { %v7399_v4 = vadd.f32 %v7398_v7, %v7371_v8 }
0x1297   : > { %7423 = vrot.lane.b32.xlu0 %v7399_v4, %s8449_s4 }
0x129a   : > { %v7403_v13 = vpop.f32.mrf.mxu3  ;;  %v7372_v40 = vpop.f32.mrf.mxu2 }
0x129b   : > { %v7373_v42 = vadd.f32 %v7372_v40, %v7345_v1  ;;  %v15530_v1 = vld [vmem:[#allocation22_spill] sm:$0xff] }
0x129d   : > { %v7401_v31 = vadd.f32 %v7400_v11, %v7373_v42 }
0x129f   : > { %7425 = vrot.lane.b32.xlu1 %v7401_v31, %s8449_s4 }
0x12a2   : > { %v7405_v57 = vpop.f32.mrf.mxu3  ;;  %v7375_v35 = vpop.f32.mrf.mxu2 }
0x12a3   : > { %v7376_v15 = vadd.f32 %v7375_v35, %v7348_v41 }
0x12a5   : > { %v7404_v26 = vadd.f32 %v7403_v13, %v7376_v15 }
0x12a7   : > { %7427 = vrot.lane.b32.xlu2 %v7404_v26, %s8449_s4 }
0x12aa   : > { %v7408_v24 = vpop.f32.mrf.mxu3  ;;  %v7377_v9 = vpop.f32.mrf.mxu2 }
0x12ab   : > { %v7378_v36 = vadd.f32 %v7377_v9, %v7350_v51  ;;  %v15529_v51 = vld [vmem:[#allocation20_spill] sm:$0xff] }
0x12ad   : > { %v7406_v19 = vadd.f32 %v7405_v57, %v7378_v36 }
0x12af   : > { %7429 = vrot.lane.b32.xlu0 %v7406_v19, %s8449_s4 }
0x12b2   : > { %v7410_v28 = vpop.f32.mrf.mxu3 }
0x12b4   : > { %v7380_v34 = vpop.f32.mrf.mxu2 }
0x12b5   : > { %v7381_v14 = vadd.f32 %v7380_v34, %v7353_v44 }
0x12b7   : > { %v7409_v58 = vadd.f32 %v7408_v24, %v7381_v14 }
0x12b9   : > { %7431 = vrot.lane.b32.xlu1 %v7409_v58, %s8449_s4 }
0x12bc   : > { %v7382_v53 = vpop.f32.mrf.mxu2 }
0x12bd   : > { %v7497_v53 = vld [vmem:[%s14018_s18] sm:$0x1] }
0x12db   : > { %v7422_v46 = vpop.permute.xlu2 %7421 }
0x12dc   : > { %v7441_v12 = vsel %vm5591_vm9, %v15525_v0, %v7422_v46 }
0x12dd   : > { %v7452_v5 = vmul.f32 %v8430_v27, %v7441_v12 }
0x12df   : > { %v7463_v30 = vadd.f32 %v8431_v59, %v7452_v5 }
0x12e1   : > { %v7470_v62 = vmax.f32 %v7463_v30, 0.0 }
0x12e3   : > { %v7477_v22 = vsel %vm4940_vm8, %v7470_v62, 0.0 }
0x12eb   : > { %v7420_v47 = vpop.permute.xlu1 %7419 }
0x12ec   : > { %v7440_v56 = vsel %vm5591_vm9, %v15524_v10, %v7420_v47  ;;  %v7502_v10 = vld [vmem:[#allocation2] sm:$0x1] }
0x12ed   : > { %v7451_v17 = vmul.f32 %v8430_v27, %v7440_v56 }
0x12ef   : > { %v7462_v29 = vadd.f32 %v8431_v59, %v7451_v17 }
0x12f1   : > { %v7469_v3 = vmax.f32 %v7462_v29, 0.0 }
0x12f3   : > { %v7476_v38 = vsel %vm4940_vm8, %v7469_v3, 0.0 }
0x12f4   : > { %v7478_v48 = vadd.f32 %v7477_v22, %v7476_v38 }
0x1301   : > { %v7428_v2 = vpop.permute.xlu2 %7427 }
0x1302   : > { %v7444_v25 = vsel %vm5591_vm9, %v15528_v6, %v7428_v2 }
0x1303   : > { %v7455_v44 = vmul.f32 %v8430_v27, %v7444_v25 }
0x1305   : > { %v7466_v60 = vadd.f32 %v8431_v59, %v7455_v44 }
0x1307   : > { %v7473_v45 = vmax.f32 %v7466_v60, 0.0 }
0x1309   : > { %v7424_v21 = vpop.permute.xlu0 %7423  ;;  %v7483_v42 = vsel %vm4940_vm8, %v7473_v45, 0.0 }
0x130a   : > { %v7442_v23 = vsel %vm5591_vm9, %v15526_v18, %v7424_v21 }
0x130b   : > { %v7453_v55 = vmul.f32 %v8430_v27, %v7442_v23 }
0x130d   : > { %v7464_v41 = vadd.f32 %v8431_v59, %v7453_v55 }
0x130f   : > { %v7471_v33 = vmax.f32 %v7464_v41, 0.0 }
0x1311   : > { %v7426_v49 = vpop.permute.xlu1 %7425  ;;  %v7479_v7 = vsel %vm4940_vm8, %v7471_v33, 0.0 }
0x1312   : > { %v7443_v20 = vsel %vm5591_vm9, %v15527_v52, %v7426_v49  ;;  %v7480_v11 = vadd.f32 %v7479_v7, %v7478_v48 }
0x1313   : > { %v7454_v54 = vmul.f32 %v8430_v27, %v7443_v20 }
0x1315   : > { %v7465_v43 = vadd.f32 %v8431_v59, %v7454_v54 }
0x1317   : > { %v7472_v37 = vmax.f32 %v7465_v43, 0.0 }
0x1319   : > { %v7481_v63 = vsel %vm4940_vm8, %v7472_v37, 0.0 }
0x131a   : > { %v7482_v61 = vadd.f32 %v7481_v63, %v7480_v11 }
0x131c   : > { %v7484_v35 = vadd.f32 %v7483_v42, %v7482_v61 }
0x1321   : > { %v7430_v16 = vpop.permute.xlu0 %7429 }
0x1322   : > { %v7445_v39 = vsel %vm5591_vm9, %v15529_v51, %v7430_v16 }
0x1323   : > { %v7456_v50 = vmul.f32 %v8430_v27, %v7445_v39 }
0x1325   : > { %v7467_v32 = vadd.f32 %v8431_v59, %v7456_v50 }
0x1327   : > { %v7474_v8 = vmax.f32 %v7467_v32, 0.0 }
0x1329   : > { %v7485_v57 = vsel %vm4940_vm8, %v7474_v8, 0.0 }
0x132a   : > { %v7486_v26 = vadd.f32 %v7485_v57, %v7484_v35 }
0x132b   : > { %v7432_v4 = vpop.permute.xlu1 %7431 }
0x132c   : > { %v7446_v13 = vsel %vm5591_vm9, %v15530_v1, %v7432_v4 }
0x132d   : > { %v7457_v40 = vmul.f32 %v8430_v27, %v7446_v13 }
0x132f   : > { %v7468_v31 = vadd.f32 %v8431_v59, %v7457_v40 }
0x1331   : > { %v7475_v15 = vmax.f32 %v7468_v31, 0.0 }
0x1333   : > { %v7488_v24 = vsel %vm7487_vm10, %v7475_v15, 0.0 }
0x1334   : > { %v7489_v9 = vadd.f32 %v7488_v24, %v7486_v26 }
0x1336   : > { %v7490_v36 = vrot.slane %v7489_v9, 4 }
0x1338   : > { %v7491_v19 = vadd.f32 %v7490_v36, %v7489_v9 }
0x133a   : > { %v7492_v28 = vrot.slane %v7491_v19, 2 }
0x133c   : > { %v7493_v34 = vadd.f32 %v7492_v28, %v7491_v19 }
0x133e   : > { %v7494_v14 = vrot.slane %v7493_v34, 1 }
0x1340   : > { %v7495_v58 = vadd.f32 %v7494_v14, %v7493_v34 }
0x1342   : > { %v7496_v47 = vmul.f32 0.020408163, %v7495_v58 }
0x1344   : > { %v7498_v46 = vmul.f32 %v7497_v53, %v7496_v47 }
0x1346   : > { %v7499_v21 = vsel %vm7487_vm10, %v7498_v46, 0.0 }
0x1347   : > { %7500 = vadd.xlane.f32.xlu2 %v7499_v21 }
0x13ba   : > { %v7501_v56 = vpop.xlane.xlu2 %7500 }
0x13bb   : > { %v7503_v27 = vadd.f32 %v7502_v10, %v7501_v56 }
0x13bd   : > { %7505 = vst.msk [vmem:[%s627_s26] sm:$0x1] %vm7504_vm11, %v7503_v27 }
0x13be PF: > { %s32_s23 = sadd.s32 1, %s8444_s23  }
0x13bf   : > { %p29_p4 = scmp.ge.s32.totalorder %s32_s23, 4  }
0x13c1   :  { %31 = sbr.rel (!%p29_p4) target bundleno = 6 (0x6), region = 366 }

</bundles_post_ra>
